<compile_context>
chip_gen: v7x
topology: tpu7x:2x2x1
jax: 0.10.0
libtpu: 0.0.40
codegen_flags: <defaults>
</compile_context>

<pallas_src>
import jax
import jax.numpy as jnp
from jax.experimental import pallas as pl
from jax.experimental.pallas import tpu as pltpu

TB = 8        # images per grid step == f32 sublane count (keeps all reshapes trivial)
OUT_LANES = 128   # fc2 output padded to a full lane width (unmasked stores)


# -----------------------------------------------------------------------------
# Fused forward-pass kernel (one batch tile of TB images per grid step)
# -----------------------------------------------------------------------------
def _fused_cnn_kernel(x_ref, w1_ref, b1_ref, w2_ref, b2_ref,
                      fw1_ref, fb1_ref, fw2_ref, fb2_ref, o_ref):
    bf16, f32 = jnp.bfloat16, jnp.float32

    x = x_ref[...]                                          # (28, TB, 28) f32  (h, n, w)

    # ---- conv1 (1->20, 5x5, valid) + bias + ReLU: 5 accumulated banded matmuls ----
    # y1[h, n, wo*20 + c] = sum_i  x[h+i, n, :] @ B_i
    acc1 = None
    for i in range(5):
        lhs = x[i:i + 24].reshape(24 * TB, 28).astype(bf16)        # (192, 28)
        t = jnp.dot(lhs, w1_ref[i], preferred_element_type=f32)    # (192, 480)
        acc1 = t if acc1 is None else acc1 + t
    y1 = jnp.maximum(acc1.reshape(24, TB, 480) + b1_ref[...], 0.0)  # all 24 rows valid

    # ---- pool1 (2x2 / 2): H pair-max on a leading axis, W pair-max via lane shift --
    y1p = y1.reshape(12, 2, TB, 480)
    ph = jnp.maximum(y1p[:, 0], y1p[:, 1])                  # (12, TB, 480)
    m1 = jnp.maximum(ph[..., :460], ph[..., 20:480])        # (12, TB, 460)
    # (stride-2 column selection is folded into the conv2 banded weights)

    # ---- conv2 (20->50, 5x5, valid) + bias + ReLU ----------------------------------
    acc2 = None
    for i in range(5):
        lhs = m1[i:i + 8].reshape(8 * TB, 460).astype(bf16)        # (64, 460)
        t = jnp.dot(lhs, w2_ref[i], preferred_element_type=f32)    # (64, 400)
        acc2 = t if acc2 is None else acc2 + t
    r2 = jnp.maximum(acc2.reshape(8, TB, 400) + b2_ref[...], 0.0)  # (8, TB, 400)

    # ---- pool2 (2x2 / 2) -------------------------------------------------------------
    r2p = r2.reshape(4, 2, TB, 400)
    q = jnp.maximum(r2p[:, 0], r2p[:, 1])                   # (4, TB, 400)
    m2 = jnp.maximum(q[..., :350], q[..., 50:400])          # (4, TB, 350)

    # ---- fc1 (800 -> 500) + ReLU: one dot per pooled row (down-sample folded in) ----
    acc3 = None
    for h in range(4):
        t = jnp.dot(m2[h].astype(bf16), fw1_ref[h], preferred_element_type=f32)  # (TB,500)
        acc3 = t if acc3 is None else acc3 + t
    f1 = jnp.maximum(acc3 + fb1_ref[...], 0.0)              # (TB, 500)

    # ---- fc2 (500 -> 10, padded to 128 lanes for a lane-dense unmasked store) -------
    out = jnp.dot(f1.astype(bf16), fw2_ref[...], preferred_element_type=f32) + fb2_ref[...]
    o_ref[...] = out.astype(o_ref.dtype)                    # (TB, 128); cols 10.. are 0


# -----------------------------------------------------------------------------
# One-time host-side weight repack (PyTorch layout -> lane-dense banded matrices)
# -----------------------------------------------------------------------------
def pack_params(params):
    f32, bf16 = jnp.float32, jnp.bfloat16

    # conv1: (20,1,5,5) -> banded B[i] (28, 480);  B[i][w, wo*20+c] = w1[c,0,i, w-wo]
    w1 = params["conv1_w"].astype(f32).reshape(20, 5, 5)                    # (c, i, dw)
    band1 = (jnp.arange(28)[:, None, None]
             == jnp.arange(24)[None, :, None] + jnp.arange(5)[None, None, :]).astype(f32)
    conv1_wb = jnp.einsum("wod,cid->iwoc", band1, w1).reshape(5, 28, 480)
    conv1_bl = jnp.tile(params["conv1_b"].astype(f32), 24)[None, :]         # (1, 480)

    # conv2: (50,20,5,5) -> banded C[di] (460, 400).  Input lanes are the pre-down-
    # sample pooled columns (w2*20+ci, w2 in [0,23)); only even w2 = 2*(wo+dj) is
    # non-zero, which folds pool1's stride-2 column selection into the matmul.
    w2 = params["conv2_w"].astype(f32)                                      # (co, ci, di, dj)
    band2 = (jnp.arange(23)[:, None, None]
             == 2 * (jnp.arange(8)[None, :, None] + jnp.arange(5)[None, None, :])).astype(f32)
    conv2_wb = jnp.einsum("abd,ecfd->facbe", band2, w2).reshape(5, 460, 400)
    conv2_bl = jnp.tile(params["conv2_b"].astype(f32), 8)[None, :]          # (1, 400)

    # fc1: torch (500, 800), flatten index co*16 + hp*4 + wp.  One (350,500) matrix per
    # pooled row hp; input lanes w2*50+co with only even w2 = 2*wp non-zero (folds
    # pool2's stride-2 column selection).
    fw1 = params["fc1_w"].astype(f32).reshape(500, 50, 4, 4)                # (o, co, hp, wp)
    band3 = (jnp.arange(7)[:, None] == 2 * jnp.arange(4)[None, :]).astype(f32)
    fc1_wb = jnp.einsum("ap,ochp->haco", band3, fw1).reshape(4, 350, 500)
    fc1_bl = params["fc1_b"].astype(f32)[None, :]                           # (1, 500)

    # fc2: pad 10 -> 128 output lanes (zeros) so the kernel's store is unmasked.
    fc2_wb = jnp.pad(params["fc2_w"].astype(f32).T, ((0, 0), (0, OUT_LANES - 10)))
    fc2_bl = jnp.pad(params["fc2_b"].astype(f32), (0, OUT_LANES - 10))[None, :]

    return {
        "conv1_wb": conv1_wb.astype(bf16), "conv1_bl": conv1_bl,
        "conv2_wb": conv2_wb.astype(bf16), "conv2_bl": conv2_bl,
        "fc1_wb": fc1_wb.astype(bf16), "fc1_bl": fc1_bl,
        "fc2_wb": fc2_wb.astype(bf16), "fc2_bl": fc2_bl,
    }


# -----------------------------------------------------------------------------
# Forward pass: input prep (pad batch / transpose) + single fused pallas_call
# -----------------------------------------------------------------------------
def xzr_cnn_forward(x, packed):
    """x: (N, 1, 28, 28) float32 NCHW (as in the PyTorch module). Returns (N, 10) f32."""
    n, c, hh, ww = x.shape
    assert (c, hh, ww) == (1, 28, 28), "architecture hardcodes 1x28x28 inputs"
    n_pad = -n % TB
    xs = x.reshape(n, 28, 28)
    if n_pad:
        xs = jnp.pad(xs, ((0, n_pad), (0, 0), (0, 0)))
    xs = xs.transpose(1, 0, 2)                 # (28, N_pad, 28): (h, n, w)
    n_total = n + n_pad

    out = pl.pallas_call(
        _fused_cnn_kernel,
        out_shape=jax.ShapeDtypeStruct((n_total, OUT_LANES), jnp.float32),
        grid_spec=pltpu.PrefetchScalarGridSpec(
            num_scalar_prefetch=0,
            grid=(n_total // TB,),
            in_specs=[
                pl.BlockSpec((28, TB, 28), lambda b: (0, b, 0)),      # input tile
                pl.BlockSpec((5, 28, 480), lambda b: (0, 0, 0)),      # conv1 banded (bf16)
                pl.BlockSpec((1, 480), lambda b: (0, 0)),             # conv1 bias lanes
                pl.BlockSpec((5, 460, 400), lambda b: (0, 0, 0)),     # conv2 banded (bf16)
                pl.BlockSpec((1, 400), lambda b: (0, 0)),             # conv2 bias lanes
                pl.BlockSpec((4, 350, 500), lambda b: (0, 0, 0)),     # fc1 (pool2 folded)
                pl.BlockSpec((1, 500), lambda b: (0, 0)),             # fc1 bias
                pl.BlockSpec((500, OUT_LANES), lambda b: (0, 0)),     # fc2 weight (padded)
                pl.BlockSpec((1, OUT_LANES), lambda b: (0, 0)),       # fc2 bias (padded)
            ],
            out_specs=pl.BlockSpec((TB, OUT_LANES), lambda b: (b, 0)),
        ),
        compiler_params=pltpu.CompilerParams(
            dimension_semantics=("parallel",),
            vmem_limit_bytes=48 * 1024 * 1024,
        ),
    )(xs, packed["conv1_wb"], packed["conv1_bl"],
      packed["conv2_wb"], packed["conv2_bl"],
      packed["fc1_wb"], packed["fc1_bl"],
      packed["fc2_wb"], packed["fc2_bl"])
    return out[:n, :10]


# -----------------------------------------------------------------------------
# Plain-JAX reference (matches the PyTorch module exactly, f32)
# -----------------------------------------------------------------------------
def xzr_cnn_reference(x, params):
    dn = ("NCHW", "OIHW", "NCHW")
    hp = jax.lax.Precision.HIGHEST
    y = jax.lax.conv_general_dilated(x, params["conv1_w"], (1, 1), "VALID",
                                     dimension_numbers=dn, precision=hp)
    y = jax.nn.relu(y + params["conv1_b"][None, :, None, None])
    y = jax.lax.reduce_window(y, -jnp.inf, jax.lax.max, (1, 1, 2, 2), (1, 1, 2, 2), "VALID")
    y = jax.lax.conv_general_dilated(y, params["conv2_w"], (1, 1), "VALID",
                                     dimension_numbers=dn, precision=hp)
    y = jax.nn.relu(y + params["conv2_b"][None, :, None, None])
    y = jax.lax.reduce_window(y, -jnp.inf, jax.lax.max, (1, 1, 2, 2), (1, 1, 2, 2), "VALID")
    y = y.reshape(y.shape[0], -1)                                  # (N, 800), (C,H,W) order
    y = jax.nn.relu(jnp.dot(y, params["fc1_w"].T, precision=hp) + params["fc1_b"])
    return jnp.dot(y, params["fc2_w"].T, precision=hp) + params["fc2_b"]


def init_params(key):
    ks = jax.random.split(key, 8)
    f32 = jnp.float32

    def u(k, shape, scale):
        return jax.random.uniform(k, shape, f32, -scale, scale)

    return {
        "conv1_w": u(ks[0], (20, 1, 5, 5), 0.2),
        "conv1_b": u(ks[1], (20,), 0.2),
        "conv2_w": u(ks[2], (50, 20, 5, 5), 0.04),
        "conv2_b": u(ks[3], (50,), 0.04),
        "fc1_w": u(ks[4], (500, 800), 0.03),
        "fc1_b": u(ks[5], (500,), 0.03),
        "fc2_w": u(ks[6], (10, 500), 0.04),
        "fc2_b": u(ks[7], (10,), 0.04),
    }


if __name__ == "__main__":
    key = jax.random.PRNGKey(0)
    k_params, k_x = jax.random.split(key)
    params = init_params(k_params)
    packed = pack_params(params)          # one-time weight repack, outside the jitted fwd

    # Architecture hardcodes 4*4*50 after two conv+pool stages -> input is 1x28x28.
    x = jax.random.normal(k_x, (2, 1, 28, 28), dtype=jnp.float32)

    fwd = jax.jit(xzr_cnn_forward)
    out = jax.block_until_ready(fwd(x, packed))
    assert out.shape == (2, 10) and out.dtype == jnp.float32

    # Self-check vs. f32 reference (bf16 matmul operands in the kernel => loose tol).
    ref = jax.block_until_ready(jax.jit(xzr_cnn_reference)(x, params))
    max_err = float(jnp.max(jnp.abs(out - ref)))
    assert max_err < 3e-2, f"mismatch vs reference: max abs err = {max_err}"
    print("KERNEL_OK")
</pallas_src>

<mosaic_0001>
module attributes {stable_mosaic.version = 11 : i64} {
  func.func @_fused_cnn_kernel(%arg0: i32, %arg1: memref<28x8x28xf32, #tpu.memory_space<vmem>>, %arg2: memref<5x28x480xbf16, #tpu.memory_space<vmem>>, %arg3: memref<1x480xf32, #tpu.memory_space<vmem>>, %arg4: memref<5x460x400xbf16, #tpu.memory_space<vmem>>, %arg5: memref<1x400xf32, #tpu.memory_space<vmem>>, %arg6: memref<4x350x500xbf16, #tpu.memory_space<vmem>>, %arg7: memref<1x500xf32, #tpu.memory_space<vmem>>, %arg8: memref<500x128xbf16, #tpu.memory_space<vmem>>, %arg9: memref<1x128xf32, #tpu.memory_space<vmem>>, %arg10: memref<8x128xf32, #tpu.memory_space<vmem>>) attributes {dimension_semantics = [#tpu.dimension_semantics<parallel>], iteration_bounds = array<i64: 1>, scalar_prefetch = 0 : i64, scratch_operands = 0 : i64, tpu.core_type = #tpu.core_type<tc>, window_params = [{transform_indices = @transform_0, window_bounds = array<i64: 28, 8, 28>}, {pipeline_mode = #tpu.pipeline_mode<synchronous>, transform_indices = @transform_1, window_bounds = array<i64: 5, 28, 480>}, {pipeline_mode = #tpu.pipeline_mode<synchronous>, transform_indices = @transform_2, window_bounds = array<i64: 1, 480>}, {pipeline_mode = #tpu.pipeline_mode<synchronous>, transform_indices = @transform_3, window_bounds = array<i64: 5, 460, 400>}, {pipeline_mode = #tpu.pipeline_mode<synchronous>, transform_indices = @transform_4, window_bounds = array<i64: 1, 400>}, {pipeline_mode = #tpu.pipeline_mode<synchronous>, transform_indices = @transform_5, window_bounds = array<i64: 4, 350, 500>}, {pipeline_mode = #tpu.pipeline_mode<synchronous>, transform_indices = @transform_6, window_bounds = array<i64: 1, 500>}, {pipeline_mode = #tpu.pipeline_mode<synchronous>, transform_indices = @transform_7, window_bounds = array<i64: 500, 128>}, {pipeline_mode = #tpu.pipeline_mode<synchronous>, transform_indices = @transform_8, window_bounds = array<i64: 1, 128>}, {transform_indices = @transform_9, window_bounds = array<i64: 8, 128>}]} {
    %c0 = arith.constant 0 : index
    %c0_0 = arith.constant 0 : index
    %c0_1 = arith.constant 0 : index
    %0 = vector.load %arg1[%c0, %c0_0, %c0_1] : memref<28x8x28xf32, #tpu.memory_space<vmem>>, vector<28x8x28xf32>
    %1 = vector.extract_strided_slice %0 {offsets = [0, 0, 0], sizes = [24, 8, 28], strides = [1, 1, 1]} : vector<28x8x28xf32> to vector<24x8x28xf32>
    %2 = vector.shape_cast %1 : vector<24x8x28xf32> to vector<192x28xf32>
    %3 = arith.truncf %2 : vector<192x28xf32> to vector<192x28xbf16>
    %c0_2 = arith.constant 0 : index
    %c0_3 = arith.constant 0 : index
    %c0_4 = arith.constant 0 : index
    %4 = vector.load %arg2[%c0_2, %c0_3, %c0_4] : memref<5x28x480xbf16, #tpu.memory_space<vmem>>, vector<1x28x480xbf16>
    %5 = vector.shape_cast %4 : vector<1x28x480xbf16> to vector<28x480xbf16>
    %cst = arith.constant dense<0.000000e+00> : vector<192x480xf32>
    %6 = tpu.matmul %3, %5, %cst {dimension_numbers = #tpu.dot_dimension_numbers<[1], [0], [0], [1], [0, 0, 1, 1], [], []>} : vector<192x28xbf16>, vector<28x480xbf16>, vector<192x480xf32> -> vector<192x480xf32>
    %7 = vector.extract_strided_slice %0 {offsets = [1, 0, 0], sizes = [24, 8, 28], strides = [1, 1, 1]} : vector<28x8x28xf32> to vector<24x8x28xf32>
    %8 = vector.shape_cast %7 : vector<24x8x28xf32> to vector<192x28xf32>
    %9 = arith.truncf %8 : vector<192x28xf32> to vector<192x28xbf16>
    %c1 = arith.constant 1 : index
    %c0_5 = arith.constant 0 : index
    %c0_6 = arith.constant 0 : index
    %10 = vector.load %arg2[%c1, %c0_5, %c0_6] : memref<5x28x480xbf16, #tpu.memory_space<vmem>>, vector<1x28x480xbf16>
    %11 = vector.shape_cast %10 : vector<1x28x480xbf16> to vector<28x480xbf16>
    %cst_7 = arith.constant dense<0.000000e+00> : vector<192x480xf32>
    %12 = tpu.matmul %9, %11, %cst_7 {dimension_numbers = #tpu.dot_dimension_numbers<[1], [0], [0], [1], [0, 0, 1, 1], [], []>} : vector<192x28xbf16>, vector<28x480xbf16>, vector<192x480xf32> -> vector<192x480xf32>
    %13 = arith.addf %6, %12 : vector<192x480xf32>
    %14 = vector.extract_strided_slice %0 {offsets = [2, 0, 0], sizes = [24, 8, 28], strides = [1, 1, 1]} : vector<28x8x28xf32> to vector<24x8x28xf32>
    %15 = vector.shape_cast %14 : vector<24x8x28xf32> to vector<192x28xf32>
    %16 = arith.truncf %15 : vector<192x28xf32> to vector<192x28xbf16>
    %c2 = arith.constant 2 : index
    %c0_8 = arith.constant 0 : index
    %c0_9 = arith.constant 0 : index
    %17 = vector.load %arg2[%c2, %c0_8, %c0_9] : memref<5x28x480xbf16, #tpu.memory_space<vmem>>, vector<1x28x480xbf16>
    %18 = vector.shape_cast %17 : vector<1x28x480xbf16> to vector<28x480xbf16>
    %cst_10 = arith.constant dense<0.000000e+00> : vector<192x480xf32>
    %19 = tpu.matmul %16, %18, %cst_10 {dimension_numbers = #tpu.dot_dimension_numbers<[1], [0], [0], [1], [0, 0, 1, 1], [], []>} : vector<192x28xbf16>, vector<28x480xbf16>, vector<192x480xf32> -> vector<192x480xf32>
    %20 = arith.addf %13, %19 : vector<192x480xf32>
    %21 = vector.extract_strided_slice %0 {offsets = [3, 0, 0], sizes = [24, 8, 28], strides = [1, 1, 1]} : vector<28x8x28xf32> to vector<24x8x28xf32>
    %22 = vector.shape_cast %21 : vector<24x8x28xf32> to vector<192x28xf32>
    %23 = arith.truncf %22 : vector<192x28xf32> to vector<192x28xbf16>
    %c3 = arith.constant 3 : index
    %c0_11 = arith.constant 0 : index
    %c0_12 = arith.constant 0 : index
    %24 = vector.load %arg2[%c3, %c0_11, %c0_12] : memref<5x28x480xbf16, #tpu.memory_space<vmem>>, vector<1x28x480xbf16>
    %25 = vector.shape_cast %24 : vector<1x28x480xbf16> to vector<28x480xbf16>
    %cst_13 = arith.constant dense<0.000000e+00> : vector<192x480xf32>
    %26 = tpu.matmul %23, %25, %cst_13 {dimension_numbers = #tpu.dot_dimension_numbers<[1], [0], [0], [1], [0, 0, 1, 1], [], []>} : vector<192x28xbf16>, vector<28x480xbf16>, vector<192x480xf32> -> vector<192x480xf32>
    %27 = arith.addf %20, %26 : vector<192x480xf32>
    %28 = vector.extract_strided_slice %0 {offsets = [4, 0, 0], sizes = [24, 8, 28], strides = [1, 1, 1]} : vector<28x8x28xf32> to vector<24x8x28xf32>
    %29 = vector.shape_cast %28 : vector<24x8x28xf32> to vector<192x28xf32>
    %30 = arith.truncf %29 : vector<192x28xf32> to vector<192x28xbf16>
    %c4 = arith.constant 4 : index
    %c0_14 = arith.constant 0 : index
    %c0_15 = arith.constant 0 : index
    %31 = vector.load %arg2[%c4, %c0_14, %c0_15] : memref<5x28x480xbf16, #tpu.memory_space<vmem>>, vector<1x28x480xbf16>
    %32 = vector.shape_cast %31 : vector<1x28x480xbf16> to vector<28x480xbf16>
    %cst_16 = arith.constant dense<0.000000e+00> : vector<192x480xf32>
    %33 = tpu.matmul %30, %32, %cst_16 {dimension_numbers = #tpu.dot_dimension_numbers<[1], [0], [0], [1], [0, 0, 1, 1], [], []>} : vector<192x28xbf16>, vector<28x480xbf16>, vector<192x480xf32> -> vector<192x480xf32>
    %34 = arith.addf %27, %33 : vector<192x480xf32>
    %35 = vector.shape_cast %34 : vector<192x480xf32> to vector<24x8x480xf32>
    %c0_17 = arith.constant 0 : index
    %c0_18 = arith.constant 0 : index
    %36 = vector.load %arg3[%c0_17, %c0_18] : memref<1x480xf32, #tpu.memory_space<vmem>>, vector<1x480xf32>
    %37 = vector.shape_cast %36 : vector<1x480xf32> to vector<1x1x480xf32>
    %38 = vector.broadcast %37 : vector<1x1x480xf32> to vector<24x8x480xf32>
    %39 = arith.addf %35, %38 : vector<24x8x480xf32>
    %cst_19 = arith.constant 0.000000e+00 : f32
    %40 = vector.broadcast %cst_19 : f32 to vector<24x8x480xf32>
    %41 = arith.maximumf %39, %40 : vector<24x8x480xf32>
    %42 = vector.shape_cast %41 : vector<24x8x480xf32> to vector<12x2x8x480xf32>
    %43 = vector.extract_strided_slice %42 {offsets = [0, 0, 0, 0], sizes = [12, 1, 8, 480], strides = [1, 1, 1, 1]} : vector<12x2x8x480xf32> to vector<12x1x8x480xf32>
    %44 = vector.shape_cast %43 : vector<12x1x8x480xf32> to vector<12x8x480xf32>
    %45 = vector.extract_strided_slice %42 {offsets = [0, 1, 0, 0], sizes = [12, 1, 8, 480], strides = [1, 1, 1, 1]} : vector<12x2x8x480xf32> to vector<12x1x8x480xf32>
    %46 = vector.shape_cast %45 : vector<12x1x8x480xf32> to vector<12x8x480xf32>
    %47 = arith.maximumf %44, %46 : vector<12x8x480xf32>
    %48 = vector.extract_strided_slice %47 {offsets = [0, 0, 0], sizes = [12, 8, 460], strides = [1, 1, 1]} : vector<12x8x480xf32> to vector<12x8x460xf32>
    %49 = vector.extract_strided_slice %47 {offsets = [0, 0, 20], sizes = [12, 8, 460], strides = [1, 1, 1]} : vector<12x8x480xf32> to vector<12x8x460xf32>
    %50 = arith.maximumf %48, %49 : vector<12x8x460xf32>
    %51 = vector.extract_strided_slice %50 {offsets = [0, 0, 0], sizes = [8, 8, 460], strides = [1, 1, 1]} : vector<12x8x460xf32> to vector<8x8x460xf32>
    %52 = vector.shape_cast %51 : vector<8x8x460xf32> to vector<64x460xf32>
    %53 = arith.truncf %52 : vector<64x460xf32> to vector<64x460xbf16>
    %c0_20 = arith.constant 0 : index
    %c0_21 = arith.constant 0 : index
    %c0_22 = arith.constant 0 : index
    %54 = vector.load %arg4[%c0_20, %c0_21, %c0_22] : memref<5x460x400xbf16, #tpu.memory_space<vmem>>, vector<1x460x400xbf16>
    %55 = vector.shape_cast %54 : vector<1x460x400xbf16> to vector<460x400xbf16>
    %cst_23 = arith.constant dense<0.000000e+00> : vector<64x400xf32>
    %56 = tpu.matmul %53, %55, %cst_23 {dimension_numbers = #tpu.dot_dimension_numbers<[1], [0], [0], [1], [0, 0, 1, 1], [], []>} : vector<64x460xbf16>, vector<460x400xbf16>, vector<64x400xf32> -> vector<64x400xf32>
    %57 = vector.extract_strided_slice %50 {offsets = [1, 0, 0], sizes = [8, 8, 460], strides = [1, 1, 1]} : vector<12x8x460xf32> to vector<8x8x460xf32>
    %58 = vector.shape_cast %57 : vector<8x8x460xf32> to vector<64x460xf32>
    %59 = arith.truncf %58 : vector<64x460xf32> to vector<64x460xbf16>
    %c1_24 = arith.constant 1 : index
    %c0_25 = arith.constant 0 : index
    %c0_26 = arith.constant 0 : index
    %60 = vector.load %arg4[%c1_24, %c0_25, %c0_26] : memref<5x460x400xbf16, #tpu.memory_space<vmem>>, vector<1x460x400xbf16>
    %61 = vector.shape_cast %60 : vector<1x460x400xbf16> to vector<460x400xbf16>
    %cst_27 = arith.constant dense<0.000000e+00> : vector<64x400xf32>
    %62 = tpu.matmul %59, %61, %cst_27 {dimension_numbers = #tpu.dot_dimension_numbers<[1], [0], [0], [1], [0, 0, 1, 1], [], []>} : vector<64x460xbf16>, vector<460x400xbf16>, vector<64x400xf32> -> vector<64x400xf32>
    %63 = arith.addf %56, %62 : vector<64x400xf32>
    %64 = vector.extract_strided_slice %50 {offsets = [2, 0, 0], sizes = [8, 8, 460], strides = [1, 1, 1]} : vector<12x8x460xf32> to vector<8x8x460xf32>
    %65 = vector.shape_cast %64 : vector<8x8x460xf32> to vector<64x460xf32>
    %66 = arith.truncf %65 : vector<64x460xf32> to vector<64x460xbf16>
    %c2_28 = arith.constant 2 : index
    %c0_29 = arith.constant 0 : index
    %c0_30 = arith.constant 0 : index
    %67 = vector.load %arg4[%c2_28, %c0_29, %c0_30] : memref<5x460x400xbf16, #tpu.memory_space<vmem>>, vector<1x460x400xbf16>
    %68 = vector.shape_cast %67 : vector<1x460x400xbf16> to vector<460x400xbf16>
    %cst_31 = arith.constant dense<0.000000e+00> : vector<64x400xf32>
    %69 = tpu.matmul %66, %68, %cst_31 {dimension_numbers = #tpu.dot_dimension_numbers<[1], [0], [0], [1], [0, 0, 1, 1], [], []>} : vector<64x460xbf16>, vector<460x400xbf16>, vector<64x400xf32> -> vector<64x400xf32>
    %70 = arith.addf %63, %69 : vector<64x400xf32>
    %71 = vector.extract_strided_slice %50 {offsets = [3, 0, 0], sizes = [8, 8, 460], strides = [1, 1, 1]} : vector<12x8x460xf32> to vector<8x8x460xf32>
    %72 = vector.shape_cast %71 : vector<8x8x460xf32> to vector<64x460xf32>
    %73 = arith.truncf %72 : vector<64x460xf32> to vector<64x460xbf16>
    %c3_32 = arith.constant 3 : index
    %c0_33 = arith.constant 0 : index
    %c0_34 = arith.constant 0 : index
    %74 = vector.load %arg4[%c3_32, %c0_33, %c0_34] : memref<5x460x400xbf16, #tpu.memory_space<vmem>>, vector<1x460x400xbf16>
    %75 = vector.shape_cast %74 : vector<1x460x400xbf16> to vector<460x400xbf16>
    %cst_35 = arith.constant dense<0.000000e+00> : vector<64x400xf32>
    %76 = tpu.matmul %73, %75, %cst_35 {dimension_numbers = #tpu.dot_dimension_numbers<[1], [0], [0], [1], [0, 0, 1, 1], [], []>} : vector<64x460xbf16>, vector<460x400xbf16>, vector<64x400xf32> -> vector<64x400xf32>
    %77 = arith.addf %70, %76 : vector<64x400xf32>
    %78 = vector.extract_strided_slice %50 {offsets = [4, 0, 0], sizes = [8, 8, 460], strides = [1, 1, 1]} : vector<12x8x460xf32> to vector<8x8x460xf32>
    %79 = vector.shape_cast %78 : vector<8x8x460xf32> to vector<64x460xf32>
    %80 = arith.truncf %79 : vector<64x460xf32> to vector<64x460xbf16>
    %c4_36 = arith.constant 4 : index
    %c0_37 = arith.constant 0 : index
    %c0_38 = arith.constant 0 : index
    %81 = vector.load %arg4[%c4_36, %c0_37, %c0_38] : memref<5x460x400xbf16, #tpu.memory_space<vmem>>, vector<1x460x400xbf16>
    %82 = vector.shape_cast %81 : vector<1x460x400xbf16> to vector<460x400xbf16>
    %cst_39 = arith.constant dense<0.000000e+00> : vector<64x400xf32>
    %83 = tpu.matmul %80, %82, %cst_39 {dimension_numbers = #tpu.dot_dimension_numbers<[1], [0], [0], [1], [0, 0, 1, 1], [], []>} : vector<64x460xbf16>, vector<460x400xbf16>, vector<64x400xf32> -> vector<64x400xf32>
    %84 = arith.addf %77, %83 : vector<64x400xf32>
    %85 = vector.shape_cast %84 : vector<64x400xf32> to vector<8x8x400xf32>
    %c0_40 = arith.constant 0 : index
    %c0_41 = arith.constant 0 : index
    %86 = vector.load %arg5[%c0_40, %c0_41] : memref<1x400xf32, #tpu.memory_space<vmem>>, vector<1x400xf32>
    %87 = vector.shape_cast %86 : vector<1x400xf32> to vector<1x1x400xf32>
    %88 = vector.broadcast %87 : vector<1x1x400xf32> to vector<8x8x400xf32>
    %89 = arith.addf %85, %88 : vector<8x8x400xf32>
    %cst_42 = arith.constant 0.000000e+00 : f32
    %90 = vector.broadcast %cst_42 : f32 to vector<8x8x400xf32>
    %91 = arith.maximumf %89, %90 : vector<8x8x400xf32>
    %92 = vector.shape_cast %91 : vector<8x8x400xf32> to vector<4x2x8x400xf32>
    %93 = vector.extract_strided_slice %92 {offsets = [0, 0, 0, 0], sizes = [4, 1, 8, 400], strides = [1, 1, 1, 1]} : vector<4x2x8x400xf32> to vector<4x1x8x400xf32>
    %94 = vector.shape_cast %93 : vector<4x1x8x400xf32> to vector<4x8x400xf32>
    %95 = vector.extract_strided_slice %92 {offsets = [0, 1, 0, 0], sizes = [4, 1, 8, 400], strides = [1, 1, 1, 1]} : vector<4x2x8x400xf32> to vector<4x1x8x400xf32>
    %96 = vector.shape_cast %95 : vector<4x1x8x400xf32> to vector<4x8x400xf32>
    %97 = arith.maximumf %94, %96 : vector<4x8x400xf32>
    %98 = vector.extract_strided_slice %97 {offsets = [0, 0, 0], sizes = [4, 8, 350], strides = [1, 1, 1]} : vector<4x8x400xf32> to vector<4x8x350xf32>
    %99 = vector.extract_strided_slice %97 {offsets = [0, 0, 50], sizes = [4, 8, 350], strides = [1, 1, 1]} : vector<4x8x400xf32> to vector<4x8x350xf32>
    %100 = arith.maximumf %98, %99 : vector<4x8x350xf32>
    %101 = vector.extract_strided_slice %100 {offsets = [0, 0, 0], sizes = [1, 8, 350], strides = [1, 1, 1]} : vector<4x8x350xf32> to vector<1x8x350xf32>
    %102 = vector.shape_cast %101 : vector<1x8x350xf32> to vector<8x350xf32>
    %103 = arith.truncf %102 : vector<8x350xf32> to vector<8x350xbf16>
    %c0_43 = arith.constant 0 : index
    %c0_44 = arith.constant 0 : index
    %c0_45 = arith.constant 0 : index
    %104 = vector.load %arg6[%c0_43, %c0_44, %c0_45] : memref<4x350x500xbf16, #tpu.memory_space<vmem>>, vector<1x350x500xbf16>
    %105 = vector.shape_cast %104 : vector<1x350x500xbf16> to vector<350x500xbf16>
    %cst_46 = arith.constant dense<0.000000e+00> : vector<8x500xf32>
    %106 = tpu.matmul %103, %105, %cst_46 {dimension_numbers = #tpu.dot_dimension_numbers<[1], [0], [0], [1], [0, 0, 1, 1], [], []>} : vector<8x350xbf16>, vector<350x500xbf16>, vector<8x500xf32> -> vector<8x500xf32>
    %107 = vector.extract_strided_slice %100 {offsets = [1, 0, 0], sizes = [1, 8, 350], strides = [1, 1, 1]} : vector<4x8x350xf32> to vector<1x8x350xf32>
    %108 = vector.shape_cast %107 : vector<1x8x350xf32> to vector<8x350xf32>
    %109 = arith.truncf %108 : vector<8x350xf32> to vector<8x350xbf16>
    %c1_47 = arith.constant 1 : index
    %c0_48 = arith.constant 0 : index
    %c0_49 = arith.constant 0 : index
    %110 = vector.load %arg6[%c1_47, %c0_48, %c0_49] : memref<4x350x500xbf16, #tpu.memory_space<vmem>>, vector<1x350x500xbf16>
    %111 = vector.shape_cast %110 : vector<1x350x500xbf16> to vector<350x500xbf16>
    %cst_50 = arith.constant dense<0.000000e+00> : vector<8x500xf32>
    %112 = tpu.matmul %109, %111, %cst_50 {dimension_numbers = #tpu.dot_dimension_numbers<[1], [0], [0], [1], [0, 0, 1, 1], [], []>} : vector<8x350xbf16>, vector<350x500xbf16>, vector<8x500xf32> -> vector<8x500xf32>
    %113 = arith.addf %106, %112 : vector<8x500xf32>
    %114 = vector.extract_strided_slice %100 {offsets = [2, 0, 0], sizes = [1, 8, 350], strides = [1, 1, 1]} : vector<4x8x350xf32> to vector<1x8x350xf32>
    %115 = vector.shape_cast %114 : vector<1x8x350xf32> to vector<8x350xf32>
    %116 = arith.truncf %115 : vector<8x350xf32> to vector<8x350xbf16>
    %c2_51 = arith.constant 2 : index
    %c0_52 = arith.constant 0 : index
    %c0_53 = arith.constant 0 : index
    %117 = vector.load %arg6[%c2_51, %c0_52, %c0_53] : memref<4x350x500xbf16, #tpu.memory_space<vmem>>, vector<1x350x500xbf16>
    %118 = vector.shape_cast %117 : vector<1x350x500xbf16> to vector<350x500xbf16>
    %cst_54 = arith.constant dense<0.000000e+00> : vector<8x500xf32>
    %119 = tpu.matmul %116, %118, %cst_54 {dimension_numbers = #tpu.dot_dimension_numbers<[1], [0], [0], [1], [0, 0, 1, 1], [], []>} : vector<8x350xbf16>, vector<350x500xbf16>, vector<8x500xf32> -> vector<8x500xf32>
    %120 = arith.addf %113, %119 : vector<8x500xf32>
    %121 = vector.extract_strided_slice %100 {offsets = [3, 0, 0], sizes = [1, 8, 350], strides = [1, 1, 1]} : vector<4x8x350xf32> to vector<1x8x350xf32>
    %122 = vector.shape_cast %121 : vector<1x8x350xf32> to vector<8x350xf32>
    %123 = arith.truncf %122 : vector<8x350xf32> to vector<8x350xbf16>
    %c3_55 = arith.constant 3 : index
    %c0_56 = arith.constant 0 : index
    %c0_57 = arith.constant 0 : index
    %124 = vector.load %arg6[%c3_55, %c0_56, %c0_57] : memref<4x350x500xbf16, #tpu.memory_space<vmem>>, vector<1x350x500xbf16>
    %125 = vector.shape_cast %124 : vector<1x350x500xbf16> to vector<350x500xbf16>
    %cst_58 = arith.constant dense<0.000000e+00> : vector<8x500xf32>
    %126 = tpu.matmul %123, %125, %cst_58 {dimension_numbers = #tpu.dot_dimension_numbers<[1], [0], [0], [1], [0, 0, 1, 1], [], []>} : vector<8x350xbf16>, vector<350x500xbf16>, vector<8x500xf32> -> vector<8x500xf32>
    %127 = arith.addf %120, %126 : vector<8x500xf32>
    %c0_59 = arith.constant 0 : index
    %c0_60 = arith.constant 0 : index
    %128 = vector.load %arg7[%c0_59, %c0_60] : memref<1x500xf32, #tpu.memory_space<vmem>>, vector<1x500xf32>
    %129 = vector.broadcast %128 : vector<1x500xf32> to vector<8x500xf32>
    %130 = arith.addf %127, %129 : vector<8x500xf32>
    %cst_61 = arith.constant 0.000000e+00 : f32
    %131 = vector.broadcast %cst_61 : f32 to vector<8x500xf32>
    %132 = arith.maximumf %130, %131 : vector<8x500xf32>
    %133 = arith.truncf %132 : vector<8x500xf32> to vector<8x500xbf16>
    %c0_62 = arith.constant 0 : index
    %c0_63 = arith.constant 0 : index
    %134 = vector.load %arg8[%c0_62, %c0_63] : memref<500x128xbf16, #tpu.memory_space<vmem>>, vector<500x128xbf16>
    %cst_64 = arith.constant dense<0.000000e+00> : vector<8x128xf32>
    %135 = tpu.matmul %133, %134, %cst_64 {dimension_numbers = #tpu.dot_dimension_numbers<[1], [0], [0], [1], [0, 0, 1, 1], [], []>} : vector<8x500xbf16>, vector<500x128xbf16>, vector<8x128xf32> -> vector<8x128xf32>
    %c0_65 = arith.constant 0 : index
    %c0_66 = arith.constant 0 : index
    %136 = vector.load %arg9[%c0_65, %c0_66] : memref<1x128xf32, #tpu.memory_space<vmem>>, vector<1x128xf32>
    %137 = vector.broadcast %136 : vector<1x128xf32> to vector<8x128xf32>
    %138 = arith.addf %135, %137 : vector<8x128xf32>
    %c0_67 = arith.constant 0 : index
    %c0_68 = arith.constant 0 : index
    %139 = vector.load %arg10[%c0_67, %c0_68] : memref<8x128xf32, #tpu.memory_space<vmem>>, vector<8x128xf32>
    tpu.vector_store %arg10[%c0_67, %c0_68], %138 {strides = array<i32>} : memref<8x128xf32, #tpu.memory_space<vmem>>, vector<8x128xf32>,
    return
  }
  func.func @transform_0(%arg0: i32) -> (i32, i32, i32) {
    %c0_i32 = arith.constant 0 : i32
    %c0_i32_0 = arith.constant 0 : i32
    %c0_i32_1 = arith.constant 0 : i32
    return %c0_i32, %arg0, %c0_i32_0 : i32, i32, i32
  }
  func.func @transform_1(%arg0: i32) -> (i32, i32, i32) {
    %c0_i32 = arith.constant 0 : i32
    %c0_i32_0 = arith.constant 0 : i32
    %c0_i32_1 = arith.constant 0 : i32
    %c0_i32_2 = arith.constant 0 : i32
    return %c0_i32, %c0_i32_0, %c0_i32_1 : i32, i32, i32
  }
  func.func @transform_2(%arg0: i32) -> (i32, i32) {
    %c0_i32 = arith.constant 0 : i32
    %c0_i32_0 = arith.constant 0 : i32
    %c0_i32_1 = arith.constant 0 : i32
    return %c0_i32, %c0_i32_0 : i32, i32
  }
  func.func @transform_3(%arg0: i32) -> (i32, i32, i32) {
    %c0_i32 = arith.constant 0 : i32
    %c0_i32_0 = arith.constant 0 : i32
    %c0_i32_1 = arith.constant 0 : i32
    %c0_i32_2 = arith.constant 0 : i32
    return %c0_i32, %c0_i32_0, %c0_i32_1 : i32, i32, i32
  }
  func.func @transform_4(%arg0: i32) -> (i32, i32) {
    %c0_i32 = arith.constant 0 : i32
    %c0_i32_0 = arith.constant 0 : i32
    %c0_i32_1 = arith.constant 0 : i32
    return %c0_i32, %c0_i32_0 : i32, i32
  }
  func.func @transform_5(%arg0: i32) -> (i32, i32, i32) {
    %c0_i32 = arith.constant 0 : i32
    %c0_i32_0 = arith.constant 0 : i32
    %c0_i32_1 = arith.constant 0 : i32
    %c0_i32_2 = arith.constant 0 : i32
    return %c0_i32, %c0_i32_0, %c0_i32_1 : i32, i32, i32
  }
  func.func @transform_6(%arg0: i32) -> (i32, i32) {
    %c0_i32 = arith.constant 0 : i32
    %c0_i32_0 = arith.constant 0 : i32
    %c0_i32_1 = arith.constant 0 : i32
    return %c0_i32, %c0_i32_0 : i32, i32
  }
  func.func @transform_7(%arg0: i32) -> (i32, i32) {
    %c0_i32 = arith.constant 0 : i32
    %c0_i32_0 = arith.constant 0 : i32
    %c0_i32_1 = arith.constant 0 : i32
    return %c0_i32, %c0_i32_0 : i32, i32
  }
  func.func @transform_8(%arg0: i32) -> (i32, i32) {
    %c0_i32 = arith.constant 0 : i32
    %c0_i32_0 = arith.constant 0 : i32
    %c0_i32_1 = arith.constant 0 : i32
    return %c0_i32, %c0_i32_0 : i32, i32
  }
  func.func @transform_9(%arg0: i32) -> (i32, i32) {
    %c0_i32 = arith.constant 0 : i32
    %c0_i32_0 = arith.constant 0 : i32
    return %arg0, %c0_i32 : i32, i32
  }
}

</mosaic_0001>

<bundles_post_ra>
// kernel: xzr_cnn_forward.1
= control target key start
LH: loop header
LB: loop body
LE: loop exit
PB: predicated region body
PF: predicated region fallthrough
CT: control target
= control target key end

     0   :  { %v20380_v1 = vmov 0   ;;  %vm175_vm0 = vcmask 1045504   ;;  %vm138_vm1 = vcmask 228352   ;;  %s15693_s30 = smov 108   ;;  %vm2679_vm2 = vcmask 883712   ;;  %s20370_s1 = inlined_call_operand.vmem [shape: bf16[5,28,480], index: 1, kind: input, shape index: {}]   ;;  %s20371_s0 = inlined_call_operand.vmem [shape: f32[28,8,28], index: 0, kind: input, shape index: {}]   ;;  %s20372_s3 = inlined_call_operand.vmem [shape: bf16[5,460,400], index: 3, kind: input, shape index: {}]   ;;  %s20373_s2 = inlined_call_operand.vmem [shape: f32[1,480], index: 2, kind: input, shape index: {}]   ;;  %s20374_s5 = inlined_call_operand.vmem [shape: bf16[4,350,500], index: 5, kind: input, shape index: {}]   ;;  %s20375_s4 = inlined_call_operand.vmem [shape: f32[1,400], index: 4, kind: input, shape index: {}]   ;;  %s20376_s7 = inlined_call_operand.vmem [shape: bf16[500,128], index: 7, kind: input, shape index: {}]   ;;  %s20377_s6 = inlined_call_operand.vmem [shape: f32[1,500], index: 6, kind: input, shape index: {}]   ;;  %s20378_s8 = inlined_call_operand.vmem [shape: f32[1,128], index: 8, kind: input, shape index: {}]   ;;  %s20379_s9 = inlined_call_operand.vmem [shape: f32[8,128], index: 9, kind: output, shape index: {}]  }
   0x1   :  { %v14202_v0 = vld [vmem:[%s20370_s1 + $0x44] ss:$16 sps:$4 sm:$0xff]   ;;  %220 = vmatprep.mubr.bf16.mxu0 %v20380_v1  ;;  %373 = vmatprep.mubr.bf16.mxu1 %v20380_v1  ;;  %v14204_v2 = vld [vmem:[%s20370_s1 + $0x4c] ss:$16 sps:$4 sm:$0xff]   ;;  %v14206_v3 = vld [vmem:[%s20370_s1 + $0x40] ss:$16 sps:$4 sm:$0xff]  }
   0x2   :  { %188 = vmatprep.subr.bf16.mxu0 %v14202_v0  ;;  %v14207_v4 = vld [vmem:[%s20370_s1 + $0x48] ss:$16 sps:$4 sm:$0xff]   ;;  %341 = vmatprep.subr.bf16.mxu1 %v14204_v2  ;;  %v14208_v5 = vld [vmem:[%s20370_s1 + $0x64] ss:$16 sps:$4 sm:$0x3f]   ;;  %vm3653_vm3 = vcmask 621568  }
   0x3   :  { %189 = vmatpush1.bf16.msra.mxu0 %v14206_v3  ;;  %342 = vmatpush1.bf16.msra.mxu1 %v14207_v4  ;;  %v14210_v6 = vld [vmem:[%s20370_s1 + $0x6c] ss:$16 sps:$4 sm:$0x3f]   ;;  %v14212_v7 = vld [vmem:[%s20370_s1 + $0x60] ss:$16 sps:$4 sm:$0x3f]  }
   0x4   :  { %11396 = vmatprep.subr.msk.bf16.mxu0 %vm175_vm0, %v14208_v5  ;;  %v14213_v8 = vld [vmem:[%s20370_s1 + $0x68] ss:$16 sps:$4 sm:$0x3f]   ;;  %11409 = vmatprep.subr.msk.bf16.mxu1 %vm175_vm0, %v14210_v6  ;;  %v35_v10 = vld [vmem:[%s20371_s0 + $0x10] sm:$0xff]  ;;  %v177_v11 = vsel %vm175_vm0, %v14212_v7, 0  ;;  %v37_v19 = vld [vmem:[%s20371_s0 + $0x20] sm:$0xff] }
   0x5   :  { %v15776_v9 = vld [vmem:[%s20371_s0 + $0x8] sm:$0xff]  ;;  %v183_v12 = vsel %vm175_vm0, %v14213_v8, 0  ;;  %v14214_v14 = vld [vmem:[%s20370_s1] ss:$16 sps:$4 sm:$0xff]   ;;  %v14216_v15 = vld [vmem:[%s20370_s1 + $0x4] ss:$16 sps:$4 sm:$0xff]  }
   0x6   :  { %v81_v13 = vpack.c.bf16 %v35_v10, %v15776_v9  ;;  %v14217_v16 = vld [vmem:[%s20370_s1 + $0x8] ss:$16 sps:$4 sm:$0xff]   ;;  %v14219_v17 = vld [vmem:[%s20370_s1 + $0xc] ss:$16 sps:$4 sm:$0xff]   ;;  %v39_v21 = vld [vmem:[%s20371_s0 + $0x30] sm:$0xff]  ;;  %vm8780_vm4 = vcmask 1046528  }
   0x7   :  { %191 = vmatpush1.bf16.msra.mxu0 %v177_v11  ;;  %344 = vmatpush1.bf16.msra.mxu1 %v183_v12  ;;  %v36_v18 = vld [vmem:[%s20371_s0 + $0x18] sm:$0xff]  ;;  %v38_v20 = vld [vmem:[%s20371_s0 + $0x28] sm:$0xff]  ;;  %v41_v25 = vld [vmem:[%s20371_s0 + $0x40] sm:$0xff]  ;;  %vm8120_vm5 = vcmask 637952   ;;  %vm8776_vm6 = vcmask 769024   ;;  %vm11291_vm7 = vcmask 1041408  }
   0x8   :  { %578 = vmatprep.subr.bf16.mxu0 %v14216_v15  ;;  %v40_v22 = vld [vmem:[%s20371_s0 + $0x38] sm:$0xff]  ;;  %v15811_v23 = vpack.c.bf16 %v36_v18, %v35_v10  ;;  %v15815_v24 = vpack.c.bf16 %v38_v20, %v37_v19  ;;  %v42_v27 = vld [vmem:[%s20371_s0 + $0x48] sm:$0xff]  ;;  %v43_v28 = vld [vmem:[%s20371_s0 + $0x50] sm:$0xff]  ;;  %731 = vmatprep.subr.bf16.mxu1 %v14219_v17  ;;  %v15854_v38 = vpack.c.bf16 %v37_v19, %v36_v18  ;;  %vm11287_vm8 = vcmask 949248  }
   0x9   :  { %v15820_v26 = vpack.c.bf16 %v40_v22, %v39_v21  ;;  %v15828_v29 = vpack.c.bf16 %v42_v27, %v41_v25  ;;  %v44_v30 = vld [vmem:[%s20371_s0 + $0x58] sm:$0xff]  ;;  %v45_v31 = vld [vmem:[%s20371_s0 + $0x60] sm:$0xff]  ;;  %v46_v32 = vld [vmem:[%s20371_s0 + $0x68] sm:$0xff]  ;;  %v15915_v59 = vpack.c.bf16 %v39_v21, %v38_v20  ;;  %v15923_v60 = vpack.c.bf16 %v41_v25, %v40_v22 }
   0xa   :  { %11397 = vmatmul.mubr.msk.bf16.vlgmr.msra.gmra.mrb[0].mxu0 %vm138_vm1, %v81_v13  ;;  %11410 = vmatmul.mubr.msk.bf16.vlgmr.msra.gmra.mrb[0].mxu1 %vm138_vm1, %v81_v13  ;;  %v15840_v33 = vpack.c.bf16 %v44_v30, %v43_v28  ;;  %v15842_v34 = vpack.c.bf16 %v46_v32, %v45_v31  ;;  %v47_v35 = vld [vmem:[%s20371_s0 + $0x70] sm:$0xff]  ;;  %v14223_v39 = vld [vmem:[%s20370_s1 + $0x2c] ss:$16 sps:$4 sm:$0x3f]   ;;  %v49_v43 = vld [vmem:[%s20371_s0 + $0x80] sm:$0xff]  ;;  %v15931_v61 = vpack.c.bf16 %v43_v28, %v42_v27 }
   0xb   :  { %579 = vmatpush1.bf16.msra.mxu0 %v14214_v14  ;;  %732 = vmatpush1.bf16.msra.mxu1 %v14217_v16  ;;  %v14220_v36 = vld [vmem:[%s20370_s1 + $0x24] ss:$16 sps:$4 sm:$0x3f]   ;;  %v14222_v37 = vld [vmem:[%s20370_s1 + $0x20] ss:$16 sps:$4 sm:$0x3f]   ;;  %v15939_v62 = vpack.c.bf16 %v45_v31, %v44_v30  ;;  %v15947_v63 = vpack.c.bf16 %v47_v35, %v46_v32 }
   0xc   :  { %230 = vmatprep.mubr.bf16.mxu0 %v20380_v1  ;;  %383 = vmatprep.mubr.bf16.mxu1 %v20380_v1  ;;  %v567_v40 = vsel %vm175_vm0, %v14222_v37, 0  ;;  %v14225_v41 = vld [vmem:[%s20370_s1 + $0x28] ss:$16 sps:$4 sm:$0x3f]   ;;  %v51_v46 = vld [vmem:[%s20371_s0 + $0x90] sm:$0xff]  ;;  %v53_v50 = vld [vmem:[%s20371_s0 + $0xa0] sm:$0xff] }
   0xd   :  { %11430 = vmatprep.subr.msk.bf16.mxu0 %vm175_vm0, %v14220_v36  ;;  %v48_v42 = vld [vmem:[%s20371_s0 + $0x78] sm:$0xff]  ;;  %11443 = vmatprep.subr.msk.bf16.mxu1 %vm175_vm0, %v14223_v39  ;;  %v50_v45 = vld [vmem:[%s20371_s0 + $0x88] sm:$0xff]  ;;  %v573_v48 = vsel %vm175_vm0, %v14225_v41, 0  ;;  %v55_v53 = vld [vmem:[%s20371_s0 + $0xb0] sm:$0xff] }
   0xe   :  { %v15871_v44 = vpack.c.bf16 %v48_v42, %v47_v35  ;;  %v52_v47 = vld [vmem:[%s20371_s0 + $0x98] sm:$0xff]  ;;  %v15883_v49 = vpack.c.bf16 %v50_v45, %v49_v43  ;;  %v54_v52 = vld [vmem:[%s20371_s0 + $0xa8] sm:$0xff]  ;;  %v14228_v57 = vld [vmem:[%s20370_s1 + $0x84] ss:$16 sps:$4 sm:$0xff]   ;;  %v15955_v0 = vpack.c.bf16 %v49_v43, %v48_v42  ;;  %v15963_v2 = vpack.c.bf16 %v51_v46, %v50_v45 }
   0xf   :  { %581 = vmatpush1.bf16.msra.mxu0 %v567_v40  ;;  %v15888_v51 = vpack.c.bf16 %v52_v47, %v51_v46  ;;  %v15900_v54 = vpack.c.bf16 %v54_v52, %v53_v50  ;;  %v56_v55 = vld [vmem:[%s20371_s0 + $0xb8] sm:$0xff]  ;;  %734 = vmatpush1.bf16.msra.mxu1 %v573_v48  ;;  %v15971_v3 = vpack.c.bf16 %v53_v50, %v52_v47  ;;  %v15990_v5 = vld [vmem:[%s20371_s0 + $0xc0] sm:$0xff] }
  0x10   :  { %v15907_v56 = vpack.c.bf16 %v56_v55, %v55_v53  ;;  %945 = vmatprep.subr.bf16.mxu0 %v14228_v57  ;;  %v14231_v58 = vld [vmem:[%s20370_s1 + $0x8c] ss:$16 sps:$4 sm:$0xff]   ;;  %v15979_v4 = vpack.c.bf16 %v55_v53, %v54_v52  ;;  %v15993_v6 = vpack.c.bf16 %v15990_v5, %v56_v55  ;;  %v33_v7 = vld [vmem:[%s20371_s0] sm:$0xff]  ;;  %v14229_v11 = vld [vmem:[%s20370_s1 + $0x88] ss:$16 sps:$4 sm:$0xff]  }
  0x11   :  { %1098 = vmatprep.subr.bf16.mxu1 %v14231_v58  ;;  %v61_v8 = vpack.c.bf16 %v15776_v9, %v33_v7  ;;  %v14226_v10 = vld [vmem:[%s20370_s1 + $0x80] ss:$16 sps:$4 sm:$0xff]   ;;  %v14237_v13 = vld [vmem:[%s20370_s1 + $0xa8] ss:$16 sps:$4 sm:$0x3f]  }
  0x12   :  { %11398 = vmatmul.mubr.msk.bf16.gmra.mrb[4].mxu0 %vm138_vm1, %v15854_v38  ;;  %11411 = vmatmul.mubr.msk.bf16.gmra.mrb[4].mxu1 %vm138_vm1, %v15854_v38  ;;  %v14234_v12 = vld [vmem:[%s20370_s1 + $0xa0] ss:$16 sps:$4 sm:$0x3f]   ;;  %v14232_v9 = vld [vmem:[%s20370_s1 + $0xa4] ss:$16 sps:$4 sm:$0x3f]  }
  0x13   :  { %240 = vmatprep.mubr.bf16.mxu0 %v20380_v1  ;;  %393 = vmatprep.mubr.bf16.mxu1 %v20380_v1  ;;  %v14235_v14 = vld [vmem:[%s20370_s1 + $0xac] ss:$16 sps:$4 sm:$0x3f]   ;;  %v934_v15 = vsel %vm175_vm0, %v14234_v12, 0  ;;  %v940_v16 = vsel %vm175_vm0, %v14237_v13, 0 }
  0x14   :  { %v14240_v17 = vld [vmem:[%s20370_s1 + $0xc4] ss:$16 sps:$4 sm:$0xff]   ;;  %v14243_v18 = vld [vmem:[%s20370_s1 + $0xcc] ss:$16 sps:$4 sm:$0xff]   ;;  %v14238_v19 = vld [vmem:[%s20370_s1 + $0xc0] ss:$16 sps:$4 sm:$0xff]  }
  0x15   :  { %v14241_v20 = vld [vmem:[%s20370_s1 + $0xc8] ss:$16 sps:$4 sm:$0xff]   ;;  %v14246_v21 = vld [vmem:[%s20370_s1 + $0xe0] ss:$16 sps:$4 sm:$0x3f]  }
  0x16   :  { %v14249_v22 = vld [vmem:[%s20370_s1 + $0xe8] ss:$16 sps:$4 sm:$0x3f]   ;;  %v14244_v25 = vld [vmem:[%s20370_s1 + $0xe4] ss:$16 sps:$4 sm:$0x3f]  }
  0x17   :  { %v14247_v27 = vld [vmem:[%s20370_s1 + $0xec] ss:$16 sps:$4 sm:$0x3f]   ;;  %v1397_v28 = vsel %vm175_vm0, %v14246_v21, 0  ;;  %v1403_v30 = vsel %vm175_vm0, %v14249_v22, 0 }
  0x18   :  { %v14252_v31 = vld [vmem:[%s20370_s1 + $0x104] ss:$16 sps:$4 sm:$0xff]   ;;  %v14255_v32 = vld [vmem:[%s20370_s1 + $0x10c] ss:$16 sps:$4 sm:$0xff]   ;;  %v14250_v36 = vld [vmem:[%s20370_s1 + $0x100] ss:$16 sps:$4 sm:$0xff]  }
  0x19   :  { %v14253_v37 = vld [vmem:[%s20370_s1 + $0x108] ss:$16 sps:$4 sm:$0xff]   ;;  %v14258_v39 = vld [vmem:[%s20370_s1 + $0x120] ss:$16 sps:$4 sm:$0x3f]  }
  0x1a   :  { %11399 = vmatmul.mubr.msk.bf16.gmra.mrb[8].mxu0 %vm138_vm1, %v15915_v59  ;;  %11412 = vmatmul.mubr.msk.bf16.gmra.mrb[8].mxu1 %vm138_vm1, %v15915_v59  ;;  %v14261_v40 = vld [vmem:[%s20370_s1 + $0x128] ss:$16 sps:$4 sm:$0x3f]   ;;  %v14256_v41 = vld [vmem:[%s20370_s1 + $0x124] ss:$16 sps:$4 sm:$0x3f]  }
  0x1b   :  { %250 = vmatprep.mubr.bf16.mxu0 %v20380_v1  ;;  %403 = vmatprep.mubr.bf16.mxu1 %v20380_v1  ;;  %v14259_v42 = vld [vmem:[%s20370_s1 + $0x12c] ss:$16 sps:$4 sm:$0x3f]   ;;  %v1860_v43 = vsel %vm175_vm0, %v14258_v39, 0  ;;  %v1866_v45 = vsel %vm175_vm0, %v14261_v40, 0 }
  0x1c   :  { %v14268_v47 = vld [vmem:[%s20372_s3 + $0x3e8] ss:$16 sps:$4 sm:$0xff]   ;;  %v14270_v48 = vld [vmem:[%s20372_s3 + $0x3ec] ss:$16 sps:$4 sm:$0xff]   ;;  %v14277_v52 = vld [vmem:[%s20372_s3 + $0x3a0] ss:$16 sps:$4 sm:$0xff]  }
  0x1d   :  { %v14273_v50 = vld [vmem:[%s20372_s3 + $0x40c] ss:$16 sps:$4 sm:$0xff]   ;;  %v14274_v53 = vld [vmem:[%s20372_s3 + $0x428] ss:$16 sps:$4 sm:$0xff]   ;;  %v14285_v55 = vld [vmem:[%s20372_s3 + $0x3c4] ss:$16 sps:$4 sm:$0xff]  }
  0x1e   :  { %v14280_v57 = vld [vmem:[%s20372_s3 + $0x448] ss:$16 sps:$4 sm:$0xff]   ;;  %v14282_v58 = vld [vmem:[%s20372_s3 + $0x44c] ss:$16 sps:$4 sm:$0xff]   ;;  %v14303_v7 = vld [vmem:[%s20372_s3 + $0x444] ss:$16 sps:$4 sm:$0xff]  }
  0x1f   :  { %v14309_v12 = vld [vmem:[%s20372_s3 + $0x464] ss:$16 sps:$4 sm:$0xff]   ;;  %v14310_v13 = vld [vmem:[%s20372_s3 + $0x4c8] ss:$16 sps:$4 sm:$0xff]   ;;  %v14316_v21 = vld [vmem:[%s20372_s3 + $0x4a0] ss:$16 sps:$4 sm:$0xff]  }
  0x20   :  { %v14325_v22 = vld [vmem:[%s20372_s3 + $0x508] ss:$16 sps:$4 sm:$0xff]   ;;  %v14328_v40 = vld [vmem:[%s20372_s3 + $0x4e0] ss:$16 sps:$4 sm:$0xff]  }
  0x22   :  { %11400 = vmatmul.mubr.msk.bf16.gmra.mrb[12].mxu0 %vm138_vm1, %v15923_v60  ;;  %11413 = vmatmul.mubr.msk.bf16.gmra.mrb[12].mxu1 %vm138_vm1, %v15923_v60 }
  0x23   :  { %260 = vmatprep.mubr.bf16.mxu0 %v20380_v1  ;;  %413 = vmatprep.mubr.bf16.mxu1 %v20380_v1 }
  0x2a   :  { %11401 = vmatmul.mubr.msk.bf16.gmra.mrb[16].mxu0 %vm138_vm1, %v15931_v61  ;;  %11414 = vmatmul.mubr.msk.bf16.gmra.mrb[16].mxu1 %vm138_vm1, %v15931_v61 }
  0x2b   :  { %270 = vmatprep.mubr.bf16.mxu0 %v20380_v1  ;;  %423 = vmatprep.mubr.bf16.mxu1 %v20380_v1 }
  0x32   :  { %11402 = vmatmul.mubr.msk.bf16.gmra.mrb[20].mxu0 %vm138_vm1, %v15939_v62  ;;  %11415 = vmatmul.mubr.msk.bf16.gmra.mrb[20].mxu1 %vm138_vm1, %v15939_v62 }
  0x33   :  { %280 = vmatprep.mubr.bf16.mxu0 %v20380_v1  ;;  %433 = vmatprep.mubr.bf16.mxu1 %v20380_v1 }
  0x3a   :  { %11403 = vmatmul.mubr.msk.bf16.gmra.mrb[24].mxu0 %vm138_vm1, %v15947_v63  ;;  %11416 = vmatmul.mubr.msk.bf16.gmra.mrb[24].mxu1 %vm138_vm1, %v15947_v63 }
  0x3b   :  { %290 = vmatprep.mubr.bf16.mxu0 %v20380_v1  ;;  %443 = vmatprep.mubr.bf16.mxu1 %v20380_v1 }
  0x42   :  { %11404 = vmatmul.mubr.msk.bf16.gmra.mrb[28].mxu0 %vm138_vm1, %v15955_v0  ;;  %11417 = vmatmul.mubr.msk.bf16.gmra.mrb[28].mxu1 %vm138_vm1, %v15955_v0 }
  0x43   :  { %300 = vmatprep.mubr.bf16.mxu0 %v20380_v1  ;;  %453 = vmatprep.mubr.bf16.mxu1 %v20380_v1 }
  0x4a   :  { %11405 = vmatmul.mubr.msk.bf16.gmra.mrb[32].mxu0 %vm138_vm1, %v15963_v2  ;;  %11418 = vmatmul.mubr.msk.bf16.gmra.mrb[32].mxu1 %vm138_vm1, %v15963_v2 }
  0x4b   :  { %310 = vmatprep.mubr.bf16.mxu0 %v20380_v1  ;;  %463 = vmatprep.mubr.bf16.mxu1 %v20380_v1 }
  0x52   :  { %11406 = vmatmul.mubr.msk.bf16.gmra.mrb[36].mxu0 %vm138_vm1, %v15971_v3  ;;  %11419 = vmatmul.mubr.msk.bf16.gmra.mrb[36].mxu1 %vm138_vm1, %v15971_v3 }
  0x53   :  { %320 = vmatprep.mubr.bf16.mxu0 %v20380_v1  ;;  %473 = vmatprep.mubr.bf16.mxu1 %v20380_v1 }
  0x5a   :  { %11407 = vmatmul.mubr.msk.bf16.gmra.mrb[40].mxu0 %vm138_vm1, %v15979_v4  ;;  %11420 = vmatmul.mubr.msk.bf16.gmra.mrb[40].mxu1 %vm138_vm1, %v15979_v4 }
  0x5b   :  { %330 = vmatprep.mubr.bf16.mxu0 %v20380_v1  ;;  %483 = vmatprep.mubr.bf16.mxu1 %v20380_v1 }
  0x62   :  { %11408 = vmatmul.mubr.msk.bf16.gmra.mrb[44].mxu0 %vm138_vm1, %v15993_v6  ;;  %11421 = vmatmul.mubr.msk.bf16.gmra.mrb[44].mxu1 %vm138_vm1, %v15993_v6 }
  0x63   :  { %610 = vmatprep.mubr.bf16.mxu0 %v20380_v1  ;;  %763 = vmatprep.mubr.bf16.mxu1 %v20380_v1 }
  0x6a   :  { %11431 = vmatmul.mubr.msk.bf16.vlgmr.msra.gmra.mrb[0].mxu0 %vm138_vm1, %v61_v8  ;;  %11444 = vmatmul.mubr.msk.bf16.vlgmr.msra.gmra.mrb[0].mxu1 %vm138_vm1, %v61_v8  ;;  %v14304_v8 = vld [vmem:[%s20372_s3 + $0x4a8] ss:$16 sps:$4 sm:$0xff]  }
  0x6b   :  { %946 = vmatpush1.bf16.msra.mxu0 %v14226_v10  ;;  %1099 = vmatpush1.bf16.msra.mxu1 %v14229_v11  ;;  %v14306_v10 = vld [vmem:[%s20372_s3 + $0x4ac] ss:$16 sps:$4 sm:$0xff]   ;;  %v14307_v11 = vld [vmem:[%s20372_s3 + $0x460] ss:$16 sps:$4 sm:$0xff]  }
  0x6c   :  { %620 = vmatprep.mubr.bf16.mxu0 %v20380_v1  ;;  %773 = vmatprep.mubr.bf16.mxu1 %v20380_v1 }
  0x6d   :  { %11472 = vmatprep.subr.msk.bf16.mxu0 %vm175_vm0, %v14232_v9  ;;  %11485 = vmatprep.subr.msk.bf16.mxu1 %vm175_vm0, %v14235_v14  ;;  %v14312_v9 = vld [vmem:[%s20372_s3 + $0x4cc] ss:$16 sps:$4 sm:$0xff]   ;;  %v14315_v14 = vld [vmem:[%s20372_s3 + $0x484] ss:$16 sps:$4 sm:$0xff]  }
  0x6f   :  { %948 = vmatpush1.bf16.msra.mxu0 %v934_v15  ;;  %1101 = vmatpush1.bf16.msra.mxu1 %v940_v16  ;;  %v14321_v15 = vld [vmem:[%s20372_s3 + $0x4ec] ss:$16 sps:$4 sm:$0xff]   ;;  %v14313_v16 = vld [vmem:[%s20372_s3 + $0x480] ss:$16 sps:$4 sm:$0xff]  }
  0x70   :  { %1408 = vmatprep.subr.bf16.mxu0 %v14240_v17  ;;  %1561 = vmatprep.subr.bf16.mxu1 %v14243_v18  ;;  %v14319_v17 = vld [vmem:[%s20372_s3 + $0x4e8] ss:$16 sps:$4 sm:$0xff]   ;;  %v2275_v18 = vlaneseq }
  0x72   :  { %11432 = vmatmul.mubr.msk.bf16.gmra.mrb[4].mxu0 %vm138_vm1, %v15811_v23  ;;  %11445 = vmatmul.mubr.msk.bf16.gmra.mrb[4].mxu1 %vm138_vm1, %v15811_v23 }
  0x73   :  { %630 = vmatprep.mubr.bf16.mxu0 %v20380_v1  ;;  %783 = vmatprep.mubr.bf16.mxu1 %v20380_v1 }
  0x7a   :  { %11433 = vmatmul.mubr.msk.bf16.gmra.mrb[8].mxu0 %vm138_vm1, %v15815_v24  ;;  %11446 = vmatmul.mubr.msk.bf16.gmra.mrb[8].mxu1 %vm138_vm1, %v15815_v24 }
  0x7b   :  { %640 = vmatprep.mubr.bf16.mxu0 %v20380_v1  ;;  %793 = vmatprep.mubr.bf16.mxu1 %v20380_v1 }
  0x82   :  { %11434 = vmatmul.mubr.msk.bf16.gmra.mrb[12].mxu0 %vm138_vm1, %v15820_v26  ;;  %11447 = vmatmul.mubr.msk.bf16.gmra.mrb[12].mxu1 %vm138_vm1, %v15820_v26 }
  0x83   :  { %650 = vmatprep.mubr.bf16.mxu0 %v20380_v1  ;;  %803 = vmatprep.mubr.bf16.mxu1 %v20380_v1 }
  0x8a   :  { %11435 = vmatmul.mubr.msk.bf16.gmra.mrb[16].mxu0 %vm138_vm1, %v15828_v29  ;;  %11448 = vmatmul.mubr.msk.bf16.gmra.mrb[16].mxu1 %vm138_vm1, %v15828_v29 }
  0x8b   :  { %660 = vmatprep.mubr.bf16.mxu0 %v20380_v1  ;;  %813 = vmatprep.mubr.bf16.mxu1 %v20380_v1 }
  0x92   :  { %11436 = vmatmul.mubr.msk.bf16.gmra.mrb[20].mxu0 %vm138_vm1, %v15840_v33  ;;  %11449 = vmatmul.mubr.msk.bf16.gmra.mrb[20].mxu1 %vm138_vm1, %v15840_v33 }
  0x93   :  { %670 = vmatprep.mubr.bf16.mxu0 %v20380_v1  ;;  %823 = vmatprep.mubr.bf16.mxu1 %v20380_v1 }
  0x9a   :  { %11437 = vmatmul.mubr.msk.bf16.gmra.mrb[24].mxu0 %vm138_vm1, %v15842_v34  ;;  %11450 = vmatmul.mubr.msk.bf16.gmra.mrb[24].mxu1 %vm138_vm1, %v15842_v34 }
  0x9b   :  { %680 = vmatprep.mubr.bf16.mxu0 %v20380_v1  ;;  %833 = vmatprep.mubr.bf16.mxu1 %v20380_v1 }
  0xa2   :  { %11438 = vmatmul.mubr.msk.bf16.gmra.mrb[28].mxu0 %vm138_vm1, %v15871_v44  ;;  %11451 = vmatmul.mubr.msk.bf16.gmra.mrb[28].mxu1 %vm138_vm1, %v15871_v44 }
  0xa3   :  { %690 = vmatprep.mubr.bf16.mxu0 %v20380_v1  ;;  %843 = vmatprep.mubr.bf16.mxu1 %v20380_v1 }
  0xaa   :  { %11439 = vmatmul.mubr.msk.bf16.gmra.mrb[32].mxu0 %vm138_vm1, %v15883_v49  ;;  %11452 = vmatmul.mubr.msk.bf16.gmra.mrb[32].mxu1 %vm138_vm1, %v15883_v49 }
  0xab   :  { %700 = vmatprep.mubr.bf16.mxu0 %v20380_v1  ;;  %853 = vmatprep.mubr.bf16.mxu1 %v20380_v1 }
  0xb2   :  { %11440 = vmatmul.mubr.msk.bf16.gmra.mrb[36].mxu0 %vm138_vm1, %v15888_v51  ;;  %11453 = vmatmul.mubr.msk.bf16.gmra.mrb[36].mxu1 %vm138_vm1, %v15888_v51 }
  0xb3   :  { %710 = vmatprep.mubr.bf16.mxu0 %v20380_v1  ;;  %863 = vmatprep.mubr.bf16.mxu1 %v20380_v1 }
  0xba   :  { %11441 = vmatmul.mubr.msk.bf16.gmra.mrb[40].mxu0 %vm138_vm1, %v15900_v54  ;;  %11454 = vmatmul.mubr.msk.bf16.gmra.mrb[40].mxu1 %vm138_vm1, %v15900_v54 }
  0xbb   :  { %720 = vmatprep.mubr.bf16.mxu0 %v20380_v1  ;;  %873 = vmatprep.mubr.bf16.mxu1 %v20380_v1 }
  0xc2   :  { %11442 = vmatmul.mubr.msk.bf16.gmra.mrb[44].mxu0 %vm138_vm1, %v15907_v56  ;;  %11455 = vmatmul.mubr.msk.bf16.gmra.mrb[44].mxu1 %vm138_vm1, %v15907_v56 }
  0xc3   :  { %977 = vmatprep.mubr.bf16.mxu0 %v20380_v1  ;;  %1130 = vmatprep.mubr.bf16.mxu1 %v20380_v1 }
  0xca   :  { %11473 = vmatmul.mubr.msk.bf16.vlgmr.msra.gmra.mrb[0].mxu0 %vm138_vm1, %v15811_v23  ;;  %11486 = vmatmul.mubr.msk.bf16.vlgmr.msra.gmra.mrb[0].mxu1 %vm138_vm1, %v15811_v23  ;;  %v16200_v23 = vld [vmem:[%s20371_s0 + $0xc8] sm:$0xff] }
  0xcb   :  { %1409 = vmatpush1.bf16.msra.mxu0 %v14238_v19  ;;  %1562 = vmatpush1.bf16.msra.mxu1 %v14241_v20  ;;  %v16204_v35 = vpack.c.bf16 %v16200_v23, %v15990_v5  ;;  %v14300_v5 = vld [vmem:[%s20372_s3 + $0x424] ss:$16 sps:$4 sm:$0xff]   ;;  %v14327_v20 = vld [vmem:[%s20372_s3 + $0x50c] ss:$16 sps:$4 sm:$0xff]  }
  0xcc   :  { %987 = vmatprep.mubr.bf16.mxu0 %v20380_v1  ;;  %1140 = vmatprep.mubr.bf16.mxu1 %v20380_v1  ;;  %v14318_v19 = vld [vmem:[%s20372_s3 + $0x4a4] ss:$16 sps:$4 sm:$0xff]  }
  0xcd   :  { %11514 = vmatprep.subr.msk.bf16.mxu0 %vm175_vm0, %v14244_v25  ;;  %11527 = vmatprep.subr.msk.bf16.mxu1 %vm175_vm0, %v14247_v27  ;;  %v14324_v25 = vld [vmem:[%s20372_s3 + $0x4c4] ss:$16 sps:$4 sm:$0xff]   ;;  %v14336_v27 = vld [vmem:[%s20372_s3 + $0x52c] ss:$16 sps:$4 sm:$0xff]  }
  0xcf   :  { %1411 = vmatpush1.bf16.msra.mxu0 %v1397_v28  ;;  %1564 = vmatpush1.bf16.msra.mxu1 %v1403_v30  ;;  %v2276_v28 = vshrl.u32 %v2275_v18, 7  ;;  %v14322_v30 = vld [vmem:[%s20372_s3 + $0x4c0] ss:$16 sps:$4 sm:$0xff]  }
  0xd0   :  { %1871 = vmatprep.subr.bf16.mxu0 %v14252_v31  ;;  %2024 = vmatprep.subr.bf16.mxu1 %v14255_v32  ;;  %v14334_v31 = vld [vmem:[%s20372_s3 + $0x528] ss:$16 sps:$4 sm:$0xff]   ;;  %v14330_v32 = vld [vmem:[%s20372_s3 + $0x4e4] ss:$16 sps:$4 sm:$0xff]  }
  0xd1   :  { %v16529_v39 = vsub.s32 3, %v2276_v28 }
  0xd2   :  { %11474 = vmatmul.mubr.msk.bf16.gmra.mrb[4].mxu0 %vm138_vm1, %v15815_v24  ;;  %11487 = vmatmul.mubr.msk.bf16.gmra.mrb[4].mxu1 %vm138_vm1, %v15815_v24 }
  0xd3   :  { %997 = vmatprep.mubr.bf16.mxu0 %v20380_v1  ;;  %1150 = vmatprep.mubr.bf16.mxu1 %v20380_v1  ;;  %20414 = vst [vmem:[#allocation5_spill] sm:$0xff] %v16529_v39 }
  0xda   :  { %11475 = vmatmul.mubr.msk.bf16.gmra.mrb[8].mxu0 %vm138_vm1, %v15820_v26  ;;  %11488 = vmatmul.mubr.msk.bf16.gmra.mrb[8].mxu1 %vm138_vm1, %v15820_v26 }
  0xdb   :  { %1007 = vmatprep.mubr.bf16.mxu0 %v20380_v1  ;;  %1160 = vmatprep.mubr.bf16.mxu1 %v20380_v1 }
  0xe2   :  { %11476 = vmatmul.mubr.msk.bf16.gmra.mrb[12].mxu0 %vm138_vm1, %v15828_v29  ;;  %11489 = vmatmul.mubr.msk.bf16.gmra.mrb[12].mxu1 %vm138_vm1, %v15828_v29 }
  0xe3   :  { %1017 = vmatprep.mubr.bf16.mxu0 %v20380_v1  ;;  %1170 = vmatprep.mubr.bf16.mxu1 %v20380_v1 }
  0xea   :  { %11477 = vmatmul.mubr.msk.bf16.gmra.mrb[16].mxu0 %vm138_vm1, %v15840_v33  ;;  %11490 = vmatmul.mubr.msk.bf16.gmra.mrb[16].mxu1 %vm138_vm1, %v15840_v33 }
  0xeb   :  { %1027 = vmatprep.mubr.bf16.mxu0 %v20380_v1  ;;  %1180 = vmatprep.mubr.bf16.mxu1 %v20380_v1 }
  0xf2   :  { %11478 = vmatmul.mubr.msk.bf16.gmra.mrb[20].mxu0 %vm138_vm1, %v15842_v34  ;;  %11491 = vmatmul.mubr.msk.bf16.gmra.mrb[20].mxu1 %vm138_vm1, %v15842_v34 }
  0xf3   :  { %1037 = vmatprep.mubr.bf16.mxu0 %v20380_v1  ;;  %1190 = vmatprep.mubr.bf16.mxu1 %v20380_v1 }
  0xfa   :  { %11479 = vmatmul.mubr.msk.bf16.gmra.mrb[24].mxu0 %vm138_vm1, %v15871_v44  ;;  %11492 = vmatmul.mubr.msk.bf16.gmra.mrb[24].mxu1 %vm138_vm1, %v15871_v44 }
  0xfb   :  { %1047 = vmatprep.mubr.bf16.mxu0 %v20380_v1  ;;  %1200 = vmatprep.mubr.bf16.mxu1 %v20380_v1 }
 0x102   :  { %11480 = vmatmul.mubr.msk.bf16.gmra.mrb[28].mxu0 %vm138_vm1, %v15883_v49  ;;  %11493 = vmatmul.mubr.msk.bf16.gmra.mrb[28].mxu1 %vm138_vm1, %v15883_v49 }
 0x103   :  { %1057 = vmatprep.mubr.bf16.mxu0 %v20380_v1  ;;  %1210 = vmatprep.mubr.bf16.mxu1 %v20380_v1 }
 0x10a   :  { %11481 = vmatmul.mubr.msk.bf16.gmra.mrb[32].mxu0 %vm138_vm1, %v15888_v51  ;;  %11494 = vmatmul.mubr.msk.bf16.gmra.mrb[32].mxu1 %vm138_vm1, %v15888_v51 }
 0x10b   :  { %1067 = vmatprep.mubr.bf16.mxu0 %v20380_v1  ;;  %1220 = vmatprep.mubr.bf16.mxu1 %v20380_v1 }
 0x112   :  { %11482 = vmatmul.mubr.msk.bf16.gmra.mrb[36].mxu0 %vm138_vm1, %v15900_v54  ;;  %11495 = vmatmul.mubr.msk.bf16.gmra.mrb[36].mxu1 %vm138_vm1, %v15900_v54 }
 0x113   :  { %1077 = vmatprep.mubr.bf16.mxu0 %v20380_v1  ;;  %1230 = vmatprep.mubr.bf16.mxu1 %v20380_v1 }
 0x11a   :  { %11483 = vmatmul.mubr.msk.bf16.gmra.mrb[40].mxu0 %vm138_vm1, %v15907_v56  ;;  %11496 = vmatmul.mubr.msk.bf16.gmra.mrb[40].mxu1 %vm138_vm1, %v15907_v56 }
 0x11b   :  { %1087 = vmatprep.mubr.bf16.mxu0 %v20380_v1  ;;  %1240 = vmatprep.mubr.bf16.mxu1 %v20380_v1 }
 0x122   :  { %11484 = vmatmul.mubr.msk.bf16.gmra.mrb[44].mxu0 %vm138_vm1, %v16204_v35  ;;  %11497 = vmatmul.mubr.msk.bf16.gmra.mrb[44].mxu1 %vm138_vm1, %v16204_v35 }
 0x123   :  { %1440 = vmatprep.mubr.bf16.mxu0 %v20380_v1  ;;  %1593 = vmatprep.mubr.bf16.mxu1 %v20380_v1 }
 0x12a   :  { %11515 = vmatmul.mubr.msk.bf16.vlgmr.msra.gmra.mrb[0].mxu0 %vm138_vm1, %v15854_v38  ;;  %11528 = vmatmul.mubr.msk.bf16.vlgmr.msra.gmra.mrb[0].mxu1 %vm138_vm1, %v15854_v38  ;;  %v59_v38 = vld [vmem:[%s20371_s0 + $0xd0] sm:$0xff] }
 0x12b   :  { %1872 = vmatpush1.bf16.msra.mxu0 %v14250_v36  ;;  %2025 = vmatpush1.bf16.msra.mxu1 %v14253_v37  ;;  %v1347_v46 = vpack.c.bf16 %v59_v38, %v16200_v23  ;;  %v2273_v23 = vld [vmem:[%s20373_s2] sm:$0xf]  ;;  %v16525_v36 = vsub.s32 2, %v2276_v28  ;;  %v16527_v37 = vsub.s32 1, %v2276_v28  ;;  %s15694_s2 = smov 78  }
 0x12c   :  { %1450 = vmatprep.mubr.bf16.mxu0 %v20380_v1  ;;  %1603 = vmatprep.mubr.bf16.mxu1 %v20380_v1 }
 0x12d   :  { %11556 = vmatprep.subr.msk.bf16.mxu0 %vm175_vm0, %v14256_v41  ;;  %11569 = vmatprep.subr.msk.bf16.mxu1 %vm175_vm0, %v14259_v42  ;;  %20412 = vst [vmem:[#allocation3_spill] sm:$0xff] %v16525_v36  ;;  %20413 = vst [vmem:[#allocation4_spill] sm:$0xff] %v16527_v37  ;;  %v14333_v41 = vld [vmem:[%s20372_s3 + $0x504] ss:$16 sps:$4 sm:$0xff]  }
 0x12f   :  { %1874 = vmatpush1.bf16.msra.mxu0 %v1860_v43  ;;  %2027 = vmatpush1.bf16.msra.mxu1 %v1866_v45  ;;  %v16541_v43 = vrot.slane %v2273_v23, %v16525_v36  ;;  %v16544_v45 = vrot.slane %v2273_v23, %v16527_v37 }
 0x132   :  { %11516 = vmatmul.mubr.msk.bf16.gmra.mrb[4].mxu0 %vm138_vm1, %v15915_v59  ;;  %11529 = vmatmul.mubr.msk.bf16.gmra.mrb[4].mxu1 %vm138_vm1, %v15915_v59  ;;  %v14288_v59 = vld [vmem:[%s20372_s3 + $0x3e4] ss:$16 sps:$4 sm:$0xff]  }
 0x133   :  { %1460 = vmatprep.mubr.bf16.mxu0 %v20380_v1  ;;  %1613 = vmatprep.mubr.bf16.mxu1 %v20380_v1 }
 0x13a   :  { %11517 = vmatmul.mubr.msk.bf16.gmra.mrb[8].mxu0 %vm138_vm1, %v15923_v60  ;;  %11530 = vmatmul.mubr.msk.bf16.gmra.mrb[8].mxu1 %vm138_vm1, %v15923_v60  ;;  %v14286_v60 = vld [vmem:[%s20372_s3 + $0x3e0] ss:$16 sps:$4 sm:$0xff]  }
 0x13b   :  { %1470 = vmatprep.mubr.bf16.mxu0 %v20380_v1  ;;  %1623 = vmatprep.mubr.bf16.mxu1 %v20380_v1 }
 0x142   :  { %11518 = vmatmul.mubr.msk.bf16.gmra.mrb[12].mxu0 %vm138_vm1, %v15931_v61  ;;  %11531 = vmatmul.mubr.msk.bf16.gmra.mrb[12].mxu1 %vm138_vm1, %v15931_v61  ;;  %v14289_v61 = vld [vmem:[%s20372_s3 + $0x468] ss:$16 sps:$4 sm:$0xff]  }
 0x143   :  { %1480 = vmatprep.mubr.bf16.mxu0 %v20380_v1  ;;  %1633 = vmatprep.mubr.bf16.mxu1 %v20380_v1 }
 0x14a   :  { %11519 = vmatmul.mubr.msk.bf16.gmra.mrb[16].mxu0 %vm138_vm1, %v15939_v62  ;;  %11532 = vmatmul.mubr.msk.bf16.gmra.mrb[16].mxu1 %vm138_vm1, %v15939_v62  ;;  %v14291_v62 = vld [vmem:[%s20372_s3 + $0x46c] ss:$16 sps:$4 sm:$0xff]  }
 0x14b   :  { %1490 = vmatprep.mubr.bf16.mxu0 %v20380_v1  ;;  %1643 = vmatprep.mubr.bf16.mxu1 %v20380_v1 }
 0x152   :  { %11520 = vmatmul.mubr.msk.bf16.gmra.mrb[20].mxu0 %vm138_vm1, %v15947_v63  ;;  %11533 = vmatmul.mubr.msk.bf16.gmra.mrb[20].mxu1 %vm138_vm1, %v15947_v63  ;;  %v14292_v63 = vld [vmem:[%s20372_s3 + $0x400] ss:$16 sps:$4 sm:$0xff]  }
 0x153   :  { %1500 = vmatprep.mubr.bf16.mxu0 %v20380_v1  ;;  %1653 = vmatprep.mubr.bf16.mxu1 %v20380_v1 }
 0x15a   :  { %11521 = vmatmul.mubr.msk.bf16.gmra.mrb[24].mxu0 %vm138_vm1, %v15955_v0  ;;  %11534 = vmatmul.mubr.msk.bf16.gmra.mrb[24].mxu1 %vm138_vm1, %v15955_v0  ;;  %v14294_v0 = vld [vmem:[%s20372_s3 + $0x404] ss:$16 sps:$4 sm:$0xff]  }
 0x15b   :  { %1510 = vmatprep.mubr.bf16.mxu0 %v20380_v1  ;;  %1663 = vmatprep.mubr.bf16.mxu1 %v20380_v1 }
 0x162   :  { %11522 = vmatmul.mubr.msk.bf16.gmra.mrb[28].mxu0 %vm138_vm1, %v15963_v2  ;;  %11535 = vmatmul.mubr.msk.bf16.gmra.mrb[28].mxu1 %vm138_vm1, %v15963_v2  ;;  %v14295_v2 = vld [vmem:[%s20372_s3 + $0x488] ss:$16 sps:$4 sm:$0xff]  }
 0x163   :  { %1520 = vmatprep.mubr.bf16.mxu0 %v20380_v1  ;;  %1673 = vmatprep.mubr.bf16.mxu1 %v20380_v1 }
 0x16a   :  { %11523 = vmatmul.mubr.msk.bf16.gmra.mrb[32].mxu0 %vm138_vm1, %v15971_v3  ;;  %11536 = vmatmul.mubr.msk.bf16.gmra.mrb[32].mxu1 %vm138_vm1, %v15971_v3  ;;  %v14297_v3 = vld [vmem:[%s20372_s3 + $0x48c] ss:$16 sps:$4 sm:$0xff]  }
 0x16b   :  { %1530 = vmatprep.mubr.bf16.mxu0 %v20380_v1  ;;  %1683 = vmatprep.mubr.bf16.mxu1 %v20380_v1 }
 0x172   :  { %11524 = vmatmul.mubr.msk.bf16.gmra.mrb[36].mxu0 %vm138_vm1, %v15979_v4  ;;  %11537 = vmatmul.mubr.msk.bf16.gmra.mrb[36].mxu1 %vm138_vm1, %v15979_v4  ;;  %v14298_v4 = vld [vmem:[%s20372_s3 + $0x420] ss:$16 sps:$4 sm:$0xff]  }
 0x173   :  { %1540 = vmatprep.mubr.bf16.mxu0 %v20380_v1  ;;  %1693 = vmatprep.mubr.bf16.mxu1 %v20380_v1 }
 0x17a   :  { %11525 = vmatmul.mubr.msk.bf16.gmra.mrb[40].mxu0 %vm138_vm1, %v15993_v6  ;;  %11538 = vmatmul.mubr.msk.bf16.gmra.mrb[40].mxu1 %vm138_vm1, %v15993_v6  ;;  %v14301_v6 = vld [vmem:[%s20372_s3 + $0x440] ss:$16 sps:$4 sm:$0xff]  }
 0x17b   :  { %1550 = vmatprep.mubr.bf16.mxu0 %v20380_v1  ;;  %1703 = vmatprep.mubr.bf16.mxu1 %v20380_v1 }
 0x182   :  { %11526 = vmatmul.mubr.msk.bf16.gmra.mrb[44].mxu0 %vm138_vm1, %v1347_v46  ;;  %11539 = vmatmul.mubr.msk.bf16.gmra.mrb[44].mxu1 %vm138_vm1, %v1347_v46  ;;  %v14331_v46 = vld [vmem:[%s20372_s3 + $0x500] ss:$16 sps:$4 sm:$0xff]  }
 0x183   :  { %1903 = vmatprep.mubr.bf16.mxu0 %v20380_v1  ;;  %2056 = vmatprep.mubr.bf16.mxu1 %v20380_v1 }
 0x18a   :  { %11557 = vmatmul.mubr.msk.bf16.vlgmr.msra.gmra.mrb[0].mxu0 %vm138_vm1, %v15815_v24  ;;  %11570 = vmatmul.mubr.msk.bf16.vlgmr.msra.gmra.mrb[0].mxu1 %vm138_vm1, %v15815_v24  ;;  %v60_v24 = vld [vmem:[%s20371_s0 + $0xd8] sm:$0xff] }
 0x18b   :  { %1913 = vmatprep.mubr.bf16.mxu0 %v20380_v1  ;;  %2066 = vmatprep.mubr.bf16.mxu1 %v20380_v1 }
 0x192   :  { %11558 = vmatmul.mubr.msk.bf16.gmra.mrb[4].mxu0 %vm138_vm1, %v15820_v26  ;;  %11571 = vmatmul.mubr.msk.bf16.gmra.mrb[4].mxu1 %vm138_vm1, %v15820_v26  ;;  %v1810_v26 = vpack.c.bf16 %v60_v24, %v59_v38  ;;  %v16547_v38 = vrot.slane %v2273_v23, %v16529_v39 }
 0x193   :  { %1923 = vmatprep.mubr.bf16.mxu0 %v20380_v1  ;;  %2076 = vmatprep.mubr.bf16.mxu1 %v20380_v1 }
 0x19a   :  { %11559 = vmatmul.mubr.msk.bf16.gmra.mrb[8].mxu0 %vm138_vm1, %v15828_v29  ;;  %11572 = vmatmul.mubr.msk.bf16.gmra.mrb[8].mxu1 %vm138_vm1, %v15828_v29  ;;  %v14262_v29 = vld [vmem:[%s20372_s3 + $0x3a8] ss:$16 sps:$4 sm:$0xff]  }
 0x19b   :  { %1933 = vmatprep.mubr.bf16.mxu0 %v20380_v1  ;;  %2086 = vmatprep.mubr.bf16.mxu1 %v20380_v1 }
 0x1a2   :  { %11560 = vmatmul.mubr.msk.bf16.gmra.mrb[12].mxu0 %vm138_vm1, %v15840_v33  ;;  %11573 = vmatmul.mubr.msk.bf16.gmra.mrb[12].mxu1 %vm138_vm1, %v15840_v33  ;;  %v14264_v33 = vld [vmem:[%s20372_s3 + $0x3ac] ss:$16 sps:$4 sm:$0xff]  }
 0x1a3   :  { %1943 = vmatprep.mubr.bf16.mxu0 %v20380_v1  ;;  %2096 = vmatprep.mubr.bf16.mxu1 %v20380_v1 }
 0x1a4   :  { %3824 = vmatprep.subr.bf16.mxu1 %v14264_v33 }
 0x1a5   :  { %3825 = vmatpush1.bf16.msra.mxu1 %v14262_v29 }
 0x1aa   :  { %11561 = vmatmul.mubr.msk.bf16.gmra.mrb[16].mxu0 %vm138_vm1, %v15842_v34  ;;  %11574 = vmatmul.mubr.msk.bf16.gmra.mrb[16].mxu1 %vm138_vm1, %v15842_v34  ;;  %v14265_v34 = vld [vmem:[%s20372_s3 + $0x3c8] ss:$16 sps:$4 sm:$0xff]  }
 0x1ab   :  { %1953 = vmatprep.mubr.bf16.mxu0 %v20380_v1  ;;  %2106 = vmatprep.mubr.bf16.mxu1 %v20380_v1 }
 0x1b2   :  { %11562 = vmatmul.mubr.msk.bf16.gmra.mrb[20].mxu0 %vm138_vm1, %v15871_v44  ;;  %11575 = vmatmul.mubr.msk.bf16.gmra.mrb[20].mxu1 %vm138_vm1, %v15871_v44  ;;  %v14267_v44 = vld [vmem:[%s20372_s3 + $0x3cc] ss:$16 sps:$4 sm:$0xff]  }
 0x1b3   :  { %1963 = vmatprep.mubr.bf16.mxu0 %v20380_v1  ;;  %2116 = vmatprep.mubr.bf16.mxu1 %v20380_v1 }
 0x1b4   :  { %3826 = vmatprep.subr.bf16.mxu1 %v14267_v44 }
 0x1b5   :  { %3827 = vmatpush1.bf16.msra.mxu1 %v14265_v34 }
 0x1b6   :  { %3828 = vmatprep.subr.bf16.mxu1 %v14270_v48 }
 0x1b9   :  { %3829 = vmatpush1.bf16.msra.mxu1 %v14268_v47 }
 0x1ba   :  { %11563 = vmatmul.mubr.msk.bf16.gmra.mrb[24].mxu0 %vm138_vm1, %v15883_v49  ;;  %11576 = vmatmul.mubr.msk.bf16.gmra.mrb[24].mxu1 %vm138_vm1, %v15883_v49  ;;  %v14271_v49 = vld [vmem:[%s20372_s3 + $0x408] ss:$16 sps:$4 sm:$0xff]  }
 0x1bb   :  { %1973 = vmatprep.mubr.bf16.mxu0 %v20380_v1  ;;  %2126 = vmatprep.mubr.bf16.mxu1 %v20380_v1 }
 0x1bc   :  { %3830 = vmatprep.subr.bf16.mxu1 %v14273_v50 }
 0x1bd   :  { %3831 = vmatpush1.bf16.msra.mxu1 %v14271_v49 }
 0x1c2   :  { %11564 = vmatmul.mubr.msk.bf16.gmra.mrb[28].mxu0 %vm138_vm1, %v15888_v51  ;;  %11577 = vmatmul.mubr.msk.bf16.gmra.mrb[28].mxu1 %vm138_vm1, %v15888_v51  ;;  %v14279_v51 = vld [vmem:[%s20372_s3 + $0x3a4] ss:$16 sps:$4 sm:$0xff]  }
 0x1c3   :  { %1983 = vmatprep.mubr.bf16.mxu0 %v20380_v1  ;;  %2136 = vmatprep.mubr.bf16.mxu1 %v20380_v1 }
 0x1c4   :  { %3678 = vmatprep.subr.bf16.mxu0 %v14279_v51 }
 0x1c5   :  { %3679 = vmatpush1.bf16.msra.mxu0 %v14277_v52 }
 0x1c6   :  { %3680 = vmatprep.subr.bf16.mxu0 %v14285_v55 }
 0x1ca   :  { %11565 = vmatmul.mubr.msk.bf16.gmra.mrb[32].mxu0 %vm138_vm1, %v15900_v54  ;;  %11578 = vmatmul.mubr.msk.bf16.gmra.mrb[32].mxu1 %vm138_vm1, %v15900_v54  ;;  %v14276_v54 = vld [vmem:[%s20372_s3 + $0x42c] ss:$16 sps:$4 sm:$0xff]  }
 0x1cb   :  { %1993 = vmatprep.mubr.bf16.mxu0 %v20380_v1  ;;  %2146 = vmatprep.mubr.bf16.mxu1 %v20380_v1 }
 0x1cc   :  { %3832 = vmatprep.subr.bf16.mxu1 %v14276_v54 }
 0x1cd   :  { %3833 = vmatpush1.bf16.msra.mxu1 %v14274_v53 }
 0x1ce   :  { %3834 = vmatprep.subr.bf16.mxu1 %v14282_v58 }
 0x1d1   :  { %3835 = vmatpush1.bf16.msra.mxu1 %v14280_v57 }
 0x1d2   :  { %11566 = vmatmul.mubr.msk.bf16.gmra.mrb[36].mxu0 %vm138_vm1, %v15907_v56  ;;  %11579 = vmatmul.mubr.msk.bf16.gmra.mrb[36].mxu1 %vm138_vm1, %v15907_v56  ;;  %v14283_v56 = vld [vmem:[%s20372_s3 + $0x3c0] ss:$16 sps:$4 sm:$0xff]  }
 0x1d3   :  { %2003 = vmatprep.mubr.bf16.mxu0 %v20380_v1  ;;  %2156 = vmatprep.mubr.bf16.mxu1 %v20380_v1 }
 0x1d4   :  { %3681 = vmatpush1.bf16.msra.mxu0 %v14283_v56  ;;  %3836 = vmatprep.subr.bf16.mxu1 %v14291_v62 }
 0x1d5   :  { %3682 = vmatprep.subr.bf16.mxu0 %v14288_v59  ;;  %3837 = vmatpush1.bf16.msra.mxu1 %v14289_v61 }
 0x1d6   :  { %3838 = vmatprep.subr.bf16.mxu1 %v14297_v3  ;;  %v14337_v3 = vld [vmem:[%s20372_s3 + $0x520] ss:$16 sps:$4 sm:$0xff]  }
 0x1d8   :  { %3683 = vmatpush1.bf16.msra.mxu0 %v14286_v60 }
 0x1d9   :  { %3684 = vmatprep.subr.bf16.mxu0 %v14294_v0  ;;  %3839 = vmatpush1.bf16.msra.mxu1 %v14295_v2 }
 0x1da   :  { %11567 = vmatmul.mubr.msk.bf16.gmra.mrb[40].mxu0 %vm138_vm1, %v16204_v35  ;;  %11580 = vmatmul.mubr.msk.bf16.gmra.mrb[40].mxu1 %vm138_vm1, %v16204_v35  ;;  %v16523_v35 = vsub.s32 0, %v2276_v28 }
 0x1db   :  { %2013 = vmatprep.mubr.bf16.mxu0 %v20380_v1  ;;  %2166 = vmatprep.mubr.bf16.mxu1 %v20380_v1 }
 0x1dc   :  { %3685 = vmatpush1.bf16.msra.mxu0 %v14292_v63  ;;  %3840 = vmatprep.subr.bf16.mxu1 %v14306_v10  ;;  %20411 = vst [vmem:[#allocation2_spill] sm:$0xff] %v16523_v35  ;;  %v16538_v42 = vrot.slane %v2273_v23, %v16523_v35  ;;  %v14339_v63 = vld [vmem:[%s20372_s3 + $0x524] ss:$16 sps:$4 sm:$0xff]  }
 0x1dd   :  { %3686 = vmatprep.subr.bf16.mxu0 %v14300_v5  ;;  %3841 = vmatpush1.bf16.msra.mxu1 %v14304_v8 }
 0x1de   :  { %3842 = vmatprep.subr.bf16.mxu1 %v14312_v9 }
 0x1e0   :  { %3687 = vmatpush1.bf16.msra.mxu0 %v14298_v4 }
 0x1e1   :  { %3688 = vmatprep.subr.bf16.mxu0 %v14303_v7  ;;  %3843 = vmatpush1.bf16.msra.mxu1 %v14310_v13 }
 0x1e2   :  { %11568 = vmatmul.mubr.msk.bf16.gmra.mrb[44].mxu0 %vm138_vm1, %v1810_v26  ;;  %11581 = vmatmul.mubr.msk.bf16.gmra.mrb[44].mxu1 %vm138_vm1, %v1810_v26 }
 0x1e3   :  { %3844 = vmatprep.subr.bf16.mxu1 %v14321_v15  ;;  %v14342_v15 = vld [vmem:[%s20372_s3 + $0x54c] ss:$16 sps:$4 sm:$0xff]  }
 0x1e4   :  { %3689 = vmatpush1.bf16.msra.mxu0 %v14301_v6 }
 0x1e5   :  { %3690 = vmatprep.subr.bf16.mxu0 %v14309_v12  ;;  %3845 = vmatpush1.bf16.msra.mxu1 %v14319_v17 }
 0x1e6   :  { %3846 = vmatprep.subr.bf16.mxu1 %v14327_v20  ;;  %v14343_v20 = vld [vmem:[%s20372_s3 + $0x540] ss:$16 sps:$4 sm:$0xff]  }
 0x1e8   :  { %3691 = vmatpush1.bf16.msra.mxu0 %v14307_v11 }
 0x1e9   :  { %3692 = vmatprep.subr.bf16.mxu0 %v14315_v14  ;;  %3847 = vmatpush1.bf16.msra.mxu1 %v14325_v22  ;;  %v14340_v14 = vld [vmem:[%s20372_s3 + $0x548] ss:$16 sps:$4 sm:$0xff]  }
 0x1ea   :  { %3848 = vmatprep.subr.bf16.mxu1 %v14336_v27 }
 0x1ec   :  { %3693 = vmatpush1.bf16.msra.mxu0 %v14313_v16 }
 0x1ed   :  { %3694 = vmatprep.subr.bf16.mxu0 %v14318_v19  ;;  %3849 = vmatpush1.bf16.msra.mxu1 %v14334_v31 }
 0x1ee   :  { %3850 = vmatprep.subr.bf16.mxu1 %v14342_v15 }
 0x1f0   :  { %3695 = vmatpush1.bf16.msra.mxu0 %v14316_v21  ;;  %v14345_v21 = vld [vmem:[%s20372_s3 + $0x544] ss:$16 sps:$4 sm:$0xff]  }
 0x1f1   :  { %3696 = vmatprep.subr.bf16.mxu0 %v14324_v25  ;;  %3851 = vmatpush1.bf16.msra.mxu1 %v14340_v14 }
 0x1f4   :  { %3697 = vmatpush1.bf16.msra.mxu0 %v14322_v30 }
 0x1f5   :  { %3698 = vmatprep.subr.bf16.mxu0 %v14330_v32 }
 0x1f8   :  { %3699 = vmatpush1.bf16.msra.mxu0 %v14328_v40 }
 0x1f9   :  { %3700 = vmatprep.subr.bf16.mxu0 %v14333_v41 }
 0x1fc   :  { %3701 = vmatpush1.bf16.msra.mxu0 %v14331_v46 }
 0x1fd   :  { %3702 = vmatprep.subr.bf16.mxu0 %v14339_v63 }
 0x200   :  { %3703 = vmatpush1.bf16.msra.mxu0 %v14337_v3  ;;  %v14355_v3 = vld [vmem:[%s20372_s3 + $0x588] ss:$16 sps:$4 sm:$0xff]  }
 0x201   :  { %3704 = vmatprep.subr.bf16.mxu0 %v14345_v21 }
 0x204   :  { %3705 = vmatpush1.bf16.msra.mxu0 %v14343_v20 }
 0x25d   :  { %v1905_v24 = vpop.f32.mrb[0].mxu0  ;;  %v2058_v26 = vpop.f32.mrb[0].mxu1 }
 0x25e   :  { %v2295_v29 = vadd.f32 %v16538_v42, %v1905_v24  ;;  %v2297_v33 = vadd.f32 %v16541_v43, %v2058_v26  ;;  %v1907_v34 = vpop.f32.mrb[1].mxu0  ;;  %v2060_v44 = vpop.f32.mrb[1].mxu1  ;;  %v14348_v26 = vld [vmem:[%s20372_s3 + $0x564] ss:$16 sps:$4 sm:$0xff]  }
 0x25f   :  { %v2296_v47 = vadd.f32 %v16544_v45, %v1907_v34  ;;  %v2298_v48 = vadd.f32 %v16547_v38, %v2060_v44  ;;  %v1909_v49 = vpop.f32.mrb[2].mxu0  ;;  %v2062_v50 = vpop.f32.mrb[2].mxu1  ;;  %v14346_v44 = vld [vmem:[%s20372_s3 + $0x560] ss:$16 sps:$4 sm:$0xff]   ;;  %3706 = vmatprep.subr.bf16.mxu0 %v14348_v26 }
 0x260   :  { %v2391_v51 = vmax.f32 %v2295_v29, 0.0  ;;  %v2393_v52 = vmax.f32 %v2297_v33, 0.0  ;;  %v2299_v53 = vadd.f32 %v16538_v42, %v1909_v49  ;;  %v2301_v54 = vadd.f32 %v16541_v43, %v2062_v50  ;;  %v1911_v55 = vpop.f32.mrb[3].mxu0  ;;  %v2064_v56 = vpop.f32.mrb[3].mxu1  ;;  %v14351_v29 = vld [vmem:[%s20372_s3 + $0x56c] ss:$16 sps:$4 sm:$0xff]   ;;  %3707 = vmatpush1.bf16.msra.mxu0 %v14346_v44 }
 0x261   :  { %v2392_v57 = vmax.f32 %v2296_v47, 0.0  ;;  %v2394_v58 = vmax.f32 %v2298_v48, 0.0  ;;  %v2300_v59 = vadd.f32 %v16544_v45, %v1911_v55  ;;  %v2302_v60 = vadd.f32 %v16547_v38, %v2064_v56  ;;  %v14349_v47 = vld [vmem:[%s20372_s3 + $0x568] ss:$16 sps:$4 sm:$0xff]   ;;  %3852 = vmatprep.subr.bf16.mxu1 %v14351_v29 }
 0x262   :  { %v2395_v61 = vmax.f32 %v2299_v53, 0.0  ;;  %v2397_v62 = vmax.f32 %v2301_v54, 0.0  ;;  %3853 = vmatpush1.bf16.msra.mxu1 %v14349_v47 }
 0x263   :  { %v2396_v0 = vmax.f32 %v2300_v59, 0.0  ;;  %v2398_v2 = vmax.f32 %v2302_v60, 0.0  ;;  %v14357_v59 = vld [vmem:[%s20372_s3 + $0x58c] ss:$16 sps:$4 sm:$0xff]  }
 0x264   :  { %v16566_v4 = vmax.f32 %v2391_v51, %v2395_v61  ;;  %v16568_v5 = vmax.f32 %v2393_v52, %v2397_v62  ;;  %3854 = vmatprep.subr.bf16.mxu1 %v14357_v59 }
 0x265   :  { %v16570_v6 = vmax.f32 %v2392_v57, %v2396_v0  ;;  %v16572_v7 = vmax.f32 %v2394_v58, %v2398_v2  ;;  %v1915_v8 = vpop.f32.mrb[4].mxu0  ;;  %v2068_v10 = vpop.f32.mrb[4].mxu1  ;;  %v14354_v58 = vld [vmem:[%s20372_s3 + $0x584] ss:$16 sps:$4 sm:$0xff]   ;;  %v14352_v2 = vld [vmem:[%s20372_s3 + $0x580] ss:$16 sps:$4 sm:$0xff]  }
 0x266   :  { %v2303_v11 = vadd.f32 %v16538_v42, %v1915_v8  ;;  %v2305_v12 = vadd.f32 %v16541_v43, %v2068_v10  ;;  %v1917_v13 = vpop.f32.mrb[5].mxu0  ;;  %v2070_v9 = vpop.f32.mrb[5].mxu1  ;;  %3708 = vmatprep.subr.bf16.mxu0 %v14354_v58  ;;  %3855 = vmatpush1.bf16.msra.mxu1 %v14355_v3 }
 0x267   :  { %v2304_v16 = vadd.f32 %v16544_v45, %v1917_v13  ;;  %v2306_v17 = vadd.f32 %v16547_v38, %v2070_v9  ;;  %v1919_v18 = vpop.f32.mrb[6].mxu0  ;;  %v2072_v19 = vpop.f32.mrb[6].mxu1  ;;  %3709 = vmatpush1.bf16.msra.mxu0 %v14352_v2 }
 0x268   :  { %v2399_v22 = vmax.f32 %v2303_v11, 0.0  ;;  %v2401_v25 = vmax.f32 %v2305_v12, 0.0  ;;  %v2307_v27 = vadd.f32 %v16538_v42, %v1919_v18  ;;  %v2309_v28 = vadd.f32 %v16541_v43, %v2072_v19  ;;  %v1921_v30 = vpop.f32.mrb[7].mxu0  ;;  %v2074_v31 = vpop.f32.mrb[7].mxu1 }
 0x269   :  { %v2400_v32 = vmax.f32 %v2304_v16, 0.0  ;;  %v2402_v23 = vmax.f32 %v2306_v17, 0.0  ;;  %v2308_v40 = vadd.f32 %v16544_v45, %v1921_v30  ;;  %v2310_v41 = vadd.f32 %v16547_v38, %v2074_v31 }
 0x26a   :  { %v2403_v46 = vmax.f32 %v2307_v27, 0.0  ;;  %v2405_v24 = vmax.f32 %v2309_v28, 0.0 }
 0x26b   :  { %v2404_v33 = vmax.f32 %v2308_v40, 0.0  ;;  %v2406_v34 = vmax.f32 %v2310_v41, 0.0 }
 0x26c   :  { %v16606_v48 = vmax.f32 %v2399_v22, %v2403_v46  ;;  %v16608_v49 = vmax.f32 %v2401_v25, %v2405_v24 }
 0x26d   :  { %v16610_v50 = vmax.f32 %v2400_v32, %v2404_v33  ;;  %v16612_v51 = vmax.f32 %v2402_v23, %v2406_v34  ;;  %v1925_v52 = vpop.f32.mrb[8].mxu0  ;;  %v2078_v53 = vpop.f32.mrb[8].mxu1  ;;  %v14360_v32 = vld [vmem:[%s20372_s3 + $0x5a4] ss:$16 sps:$4 sm:$0xff]   ;;  %v14363_v23 = vld [vmem:[%s20372_s3 + $0x5ac] ss:$16 sps:$4 sm:$0xff]  }
 0x26e   :  { %v2311_v54 = vadd.f32 %v16538_v42, %v1925_v52  ;;  %v2313_v55 = vadd.f32 %v16541_v43, %v2078_v53  ;;  %v1927_v56 = vpop.f32.mrb[9].mxu0  ;;  %v2080_v57 = vpop.f32.mrb[9].mxu1  ;;  %3751 = vmatprep.subr.bf16.mxu0 %v14360_v32  ;;  %3897 = vmatprep.subr.bf16.mxu1 %v14363_v23 }
 0x26f   :  { %v2312_v60 = vadd.f32 %v16544_v45, %v1927_v56  ;;  %v2314_v61 = vadd.f32 %v16547_v38, %v2080_v57  ;;  %v1929_v62 = vpop.f32.mrb[10].mxu0  ;;  %v2082_v63 = vpop.f32.mrb[10].mxu1  ;;  %v14062_v0 = vpack.i.bf16 %v16608_v49, %v16610_v50 }
 0x270   :  { %v2315_v8 = vadd.f32 %v16538_v42, %v1929_v62  ;;  %v2317_v10 = vadd.f32 %v16541_v43, %v2082_v63  ;;  %v1931_v11 = vpop.f32.mrb[11].mxu0  ;;  %v2084_v12 = vpop.f32.mrb[11].mxu1  ;;  %v2407_v13 = vmax.f32 %v2311_v54, 0.0  ;;  %v2409_v9 = vmax.f32 %v2313_v55, 0.0 }
 0x271   :  { %v2316_v14 = vadd.f32 %v16544_v45, %v1931_v11  ;;  %v2318_v15 = vadd.f32 %v16547_v38, %v2084_v12  ;;  %14063 = vrot.lane.b32.xlu0 %v14062_v0, %s15693_s30  ;;  %v2408_v16 = vmax.f32 %v2312_v60, 0.0  ;;  %v2410_v19 = vmax.f32 %v2314_v61, 0.0 }
 0x272   :  { %v2411_v17 = vmax.f32 %v2315_v8, 0.0  ;;  %v2413_v18 = vmax.f32 %v2317_v10, 0.0 }
 0x273   :  { %v2412_v20 = vmax.f32 %v2316_v14, 0.0  ;;  %v2414_v21 = vmax.f32 %v2318_v15, 0.0 }
 0x274   :  { %v16637_v22 = vmax.f32 %v2407_v13, %v2411_v17  ;;  %v16639_v25 = vmax.f32 %v2409_v9, %v2413_v18 }
 0x275   :  { %v16641_v27 = vmax.f32 %v2408_v16, %v2412_v20  ;;  %v16643_v28 = vmax.f32 %v2410_v19, %v2414_v21  ;;  %v1935_v30 = vpop.f32.mrb[12].mxu0  ;;  %v2088_v31 = vpop.f32.mrb[12].mxu1 }
 0x276   :  { %v2319_v40 = vadd.f32 %v16538_v42, %v1935_v30  ;;  %v2321_v41 = vadd.f32 %v16541_v43, %v2088_v31  ;;  %v1937_v46 = vpop.f32.mrb[13].mxu0  ;;  %v2090_v24 = vpop.f32.mrb[13].mxu1  ;;  %v14072_v26 = vpack.i.bf16 %v16637_v22, %v16606_v48 }
 0x277   :  { %v2320_v29 = vadd.f32 %v16544_v45, %v1937_v46  ;;  %v2322_v33 = vadd.f32 %v16547_v38, %v2090_v24  ;;  %v1939_v34 = vpop.f32.mrb[14].mxu0  ;;  %v2092_v44 = vpop.f32.mrb[14].mxu1  ;;  %v14067_v47 = vpack.i.bf16 %v16639_v25, %v16641_v27 }
 0x278   :  { %v2323_v52 = vadd.f32 %v16538_v42, %v1939_v34  ;;  %v2325_v53 = vadd.f32 %v16541_v43, %v2092_v44  ;;  %v2094_v54 = vpop.f32.mrb[15].mxu1  ;;  %14073 = vrot.lane.b32.xlu1 %v14072_v26, %s15693_s30  ;;  %v1941_v55 = vpop.f32.mrb[15].mxu0  ;;  %v2415_v56 = vmax.f32 %v2319_v40, 0.0  ;;  %v2417_v59 = vmax.f32 %v2321_v41, 0.0 }
 0x279   :  { %v2326_v57 = vadd.f32 %v16547_v38, %v2094_v54  ;;  %v2324_v58 = vadd.f32 %v16544_v45, %v1941_v55  ;;  %14068 = vrot.lane.b32.xlu0 %v14067_v47, %s15693_s30  ;;  %v2416_v60 = vmax.f32 %v2320_v29, 0.0  ;;  %v2418_v63 = vmax.f32 %v2322_v33, 0.0 }
 0x27a   :  { %v2419_v61 = vmax.f32 %v2323_v52, 0.0  ;;  %v2421_v62 = vmax.f32 %v2325_v53, 0.0 }
 0x27b   :  { %v2422_v0 = vmax.f32 %v2326_v57, 0.0  ;;  %v2420_v2 = vmax.f32 %v2324_v58, 0.0 }
 0x27c   :  { %v16665_v3 = vmax.f32 %v2415_v56, %v2419_v61  ;;  %v16667_v8 = vmax.f32 %v2417_v59, %v2421_v62 }
 0x27d   :  { %v16669_v10 = vmax.f32 %v2418_v63, %v2422_v0  ;;  %v16671_v11 = vmax.f32 %v2416_v60, %v2420_v2  ;;  %v1945_v12 = vpop.f32.mrb[16].mxu0  ;;  %v2098_v13 = vpop.f32.mrb[16].mxu1 }
 0x27e   :  { %v2327_v9 = vadd.f32 %v16538_v42, %v1945_v12  ;;  %v2329_v14 = vadd.f32 %v16541_v43, %v2098_v13  ;;  %v1947_v15 = vpop.f32.mrb[17].mxu0  ;;  %v2100_v16 = vpop.f32.mrb[17].mxu1 }
 0x27f   :  { %v2328_v17 = vadd.f32 %v16544_v45, %v1947_v15  ;;  %v2330_v18 = vadd.f32 %v16547_v38, %v2100_v16  ;;  %v1949_v19 = vpop.f32.mrb[18].mxu0  ;;  %v2102_v20 = vpop.f32.mrb[18].mxu1  ;;  %v14077_v21 = vpack.i.bf16 %v16667_v8, %v16671_v11 }
 0x280   :  { %v2331_v30 = vadd.f32 %v16538_v42, %v1949_v19  ;;  %v2333_v31 = vadd.f32 %v16541_v43, %v2102_v20  ;;  %v1951_v32 = vpop.f32.mrb[19].mxu0  ;;  %v2104_v23 = vpop.f32.mrb[19].mxu1  ;;  %v2423_v40 = vmax.f32 %v2327_v9, 0.0  ;;  %v2425_v24 = vmax.f32 %v2329_v14, 0.0 }
 0x281   :  { %v2332_v41 = vadd.f32 %v16544_v45, %v1951_v32  ;;  %v2334_v46 = vadd.f32 %v16547_v38, %v2104_v23  ;;  %14078 = vrot.lane.b32.xlu1 %v14077_v21, %s15693_s30  ;;  %v2424_v26 = vmax.f32 %v2328_v17, 0.0  ;;  %v2426_v34 = vmax.f32 %v2330_v18, 0.0 }
 0x282   :  { %v2427_v29 = vmax.f32 %v2331_v30, 0.0  ;;  %v2429_v33 = vmax.f32 %v2333_v31, 0.0 }
 0x283   :  { %v2428_v44 = vmax.f32 %v2332_v41, 0.0  ;;  %v2430_v47 = vmax.f32 %v2334_v46, 0.0 }
 0x284   :  { %v16684_v52 = vmax.f32 %v2423_v40, %v2427_v29  ;;  %v16686_v53 = vmax.f32 %v2425_v24, %v2429_v33 }
 0x285   :  { %v16688_v54 = vmax.f32 %v2424_v26, %v2428_v44  ;;  %v16690_v55 = vmax.f32 %v2426_v34, %v2430_v47  ;;  %v1955_v56 = vpop.f32.mrb[20].mxu0  ;;  %v2108_v57 = vpop.f32.mrb[20].mxu1 }
 0x286   :  { %v2335_v58 = vadd.f32 %v16538_v42, %v1955_v56  ;;  %v2337_v59 = vadd.f32 %v16541_v43, %v2108_v57  ;;  %v1957_v60 = vpop.f32.mrb[21].mxu0  ;;  %v2110_v61 = vpop.f32.mrb[21].mxu1  ;;  %v14087_v62 = vpack.i.bf16 %v16684_v52, %v16665_v3 }
 0x287   :  { %v2336_v63 = vadd.f32 %v16544_v45, %v1957_v60  ;;  %v2338_v0 = vadd.f32 %v16547_v38, %v2110_v61  ;;  %v1959_v2 = vpop.f32.mrb[22].mxu0  ;;  %v2112_v12 = vpop.f32.mrb[22].mxu1  ;;  %v14082_v13 = vpack.i.bf16 %v16686_v53, %v16688_v54 }
 0x288   :  { %v2339_v9 = vadd.f32 %v16538_v42, %v1959_v2  ;;  %v2341_v14 = vadd.f32 %v16541_v43, %v2112_v12  ;;  %v2114_v15 = vpop.f32.mrb[23].mxu1  ;;  %14088 = vrot.lane.b32.xlu1 %v14087_v62, %s15693_s30  ;;  %v1961_v16 = vpop.f32.mrb[23].mxu0  ;;  %v2431_v17 = vmax.f32 %v2335_v58, 0.0  ;;  %v2433_v20 = vmax.f32 %v2337_v59, 0.0 }
 0x289   :  { %v2342_v18 = vadd.f32 %v16547_v38, %v2114_v15  ;;  %v2340_v19 = vadd.f32 %v16544_v45, %v1961_v16  ;;  %14083 = vrot.lane.b32.xlu0 %v14082_v13, %s15693_s30  ;;  %v2432_v21 = vmax.f32 %v2336_v63, 0.0  ;;  %v2434_v32 = vmax.f32 %v2338_v0, 0.0 }
 0x28a   :  { %v2435_v30 = vmax.f32 %v2339_v9, 0.0  ;;  %v2437_v31 = vmax.f32 %v2341_v14, 0.0 }
 0x28b   :  { %v2438_v23 = vmax.f32 %v2342_v18, 0.0  ;;  %v2436_v40 = vmax.f32 %v2340_v19, 0.0 }
 0x28c   :  { %v16706_v41 = vmax.f32 %v2431_v17, %v2435_v30  ;;  %v16708_v46 = vmax.f32 %v2433_v20, %v2437_v31 }
 0x28d   :  { %v16710_v24 = vmax.f32 %v2434_v32, %v2438_v23  ;;  %v16712_v26 = vmax.f32 %v2432_v21, %v2436_v40  ;;  %v1965_v29 = vpop.f32.mrb[24].mxu0  ;;  %v2118_v33 = vpop.f32.mrb[24].mxu1 }
 0x28e   :  { %v2343_v34 = vadd.f32 %v16538_v42, %v1965_v29  ;;  %v2345_v44 = vadd.f32 %v16541_v43, %v2118_v33  ;;  %v1967_v47 = vpop.f32.mrb[25].mxu0  ;;  %v2120_v56 = vpop.f32.mrb[25].mxu1 }
 0x28f   :  { %v2344_v57 = vadd.f32 %v16544_v45, %v1967_v47  ;;  %v2346_v58 = vadd.f32 %v16547_v38, %v2120_v56  ;;  %v1969_v59 = vpop.f32.mrb[26].mxu0  ;;  %v2122_v60 = vpop.f32.mrb[26].mxu1  ;;  %v14092_v61 = vpack.i.bf16 %v16708_v46, %v16712_v26 }
 0x290   :  { %v2347_v62 = vadd.f32 %v16538_v42, %v1969_v59  ;;  %v2349_v63 = vadd.f32 %v16541_v43, %v2122_v60  ;;  %v1971_v0 = vpop.f32.mrb[27].mxu0  ;;  %v2124_v2 = vpop.f32.mrb[27].mxu1  ;;  %v2439_v12 = vmax.f32 %v2343_v34, 0.0  ;;  %v2441_v14 = vmax.f32 %v2345_v44, 0.0 }
 0x291   :  { %v2348_v13 = vadd.f32 %v16544_v45, %v1971_v0  ;;  %v2350_v9 = vadd.f32 %v16547_v38, %v2124_v2  ;;  %14093 = vrot.lane.b32.xlu0 %v14092_v61, %s15693_s30  ;;  %v2440_v15 = vmax.f32 %v2344_v57, 0.0  ;;  %v2442_v18 = vmax.f32 %v2346_v58, 0.0 }
 0x292   :  { %v2443_v16 = vmax.f32 %v2347_v62, 0.0  ;;  %v2445_v17 = vmax.f32 %v2349_v63, 0.0 }
 0x293   :  { %v2444_v19 = vmax.f32 %v2348_v13, 0.0  ;;  %v2446_v20 = vmax.f32 %v2350_v9, 0.0 }
 0x294   :  { %v16725_v21 = vmax.f32 %v2439_v12, %v2443_v16  ;;  %v16727_v30 = vmax.f32 %v2441_v14, %v2445_v17 }
 0x295   :  { %v16729_v31 = vmax.f32 %v2440_v15, %v2444_v19  ;;  %v16731_v32 = vmax.f32 %v2442_v18, %v2446_v20  ;;  %v1975_v23 = vpop.f32.mrb[28].mxu0  ;;  %v2128_v40 = vpop.f32.mrb[28].mxu1 }
 0x296   :  { %v2351_v29 = vadd.f32 %v16538_v42, %v1975_v23  ;;  %v2353_v33 = vadd.f32 %v16541_v43, %v2128_v40  ;;  %v1977_v34 = vpop.f32.mrb[29].mxu0  ;;  %v2130_v44 = vpop.f32.mrb[29].mxu1  ;;  %v14102_v47 = vpack.i.bf16 %v16725_v21, %v16706_v41 }
 0x297   :  { %v2352_v56 = vadd.f32 %v16544_v45, %v1977_v34  ;;  %v2354_v57 = vadd.f32 %v16547_v38, %v2130_v44  ;;  %v1979_v58 = vpop.f32.mrb[30].mxu0  ;;  %v2132_v59 = vpop.f32.mrb[30].mxu1  ;;  %v14097_v60 = vpack.i.bf16 %v16727_v30, %v16729_v31 }
 0x298   :  { %v2355_v61 = vadd.f32 %v16538_v42, %v1979_v58  ;;  %v2357_v62 = vadd.f32 %v16541_v43, %v2132_v59  ;;  %v2134_v63 = vpop.f32.mrb[31].mxu1  ;;  %14103 = vrot.lane.b32.xlu0 %v14102_v47, %s15693_s30  ;;  %v1981_v0 = vpop.f32.mrb[31].mxu0  ;;  %v2447_v2 = vmax.f32 %v2351_v29, 0.0  ;;  %v2449_v9 = vmax.f32 %v2353_v33, 0.0 }
 0x299   :  { %v2358_v12 = vadd.f32 %v16547_v38, %v2134_v63  ;;  %v2356_v13 = vadd.f32 %v16544_v45, %v1981_v0  ;;  %14098 = vrot.lane.b32.xlu1 %v14097_v60, %s15693_s30  ;;  %v2448_v14 = vmax.f32 %v2352_v56, 0.0  ;;  %v2450_v17 = vmax.f32 %v2354_v57, 0.0 }
 0x29a   :  { %v2451_v15 = vmax.f32 %v2355_v61, 0.0  ;;  %v2453_v16 = vmax.f32 %v2357_v62, 0.0 }
 0x29b   :  { %v2454_v18 = vmax.f32 %v2358_v12, 0.0  ;;  %v2452_v19 = vmax.f32 %v2356_v13, 0.0 }
 0x29c   :  { %v16747_v20 = vmax.f32 %v2447_v2, %v2451_v15  ;;  %v16749_v23 = vmax.f32 %v2449_v9, %v2453_v16 }
 0x29d   :  { %v16751_v40 = vmax.f32 %v2450_v17, %v2454_v18  ;;  %v16753_v29 = vmax.f32 %v2448_v14, %v2452_v19  ;;  %v1985_v34 = vpop.f32.mrb[32].mxu0  ;;  %v2138_v44 = vpop.f32.mrb[32].mxu1 }
 0x29e   :  { %v2359_v47 = vadd.f32 %v16538_v42, %v1985_v34  ;;  %v2361_v33 = vadd.f32 %v16541_v43, %v2138_v44  ;;  %v1987_v56 = vpop.f32.mrb[33].mxu0  ;;  %v2140_v58 = vpop.f32.mrb[33].mxu1 }
 0x29f   :  { %v2360_v57 = vadd.f32 %v16544_v45, %v1987_v56  ;;  %v2362_v59 = vadd.f32 %v16547_v38, %v2140_v58  ;;  %v1989_v60 = vpop.f32.mrb[34].mxu0  ;;  %v2142_v61 = vpop.f32.mrb[34].mxu1  ;;  %v14107_v62 = vpack.i.bf16 %v16749_v23, %v16753_v29 }
 0x2a0   :  { %v2363_v63 = vadd.f32 %v16538_v42, %v1989_v60  ;;  %v2365_v0 = vadd.f32 %v16541_v43, %v2142_v61  ;;  %v1991_v2 = vpop.f32.mrb[35].mxu0  ;;  %v2144_v12 = vpop.f32.mrb[35].mxu1  ;;  %v2455_v14 = vmax.f32 %v2359_v47, 0.0  ;;  %v2457_v15 = vmax.f32 %v2361_v33, 0.0 }
 0x2a1   :  { %v2364_v13 = vadd.f32 %v16544_v45, %v1991_v2  ;;  %v2366_v9 = vadd.f32 %v16547_v38, %v2144_v12  ;;  %14108 = vrot.lane.b32.xlu1 %v14107_v62, %s15693_s30  ;;  %v2456_v18 = vmax.f32 %v2360_v57, 0.0  ;;  %v2458_v19 = vmax.f32 %v2362_v59, 0.0 }
 0x2a2   :  { %v2459_v16 = vmax.f32 %v2363_v63, 0.0  ;;  %v2461_v17 = vmax.f32 %v2365_v0, 0.0 }
 0x2a3   :  { %v2460_v34 = vmax.f32 %v2364_v13, 0.0  ;;  %v2462_v44 = vmax.f32 %v2366_v9, 0.0 }
 0x2a4   :  { %v16766_v56 = vmax.f32 %v2455_v14, %v2459_v16  ;;  %v16768_v58 = vmax.f32 %v2457_v15, %v2461_v17 }
 0x2a5   :  { %v16770_v60 = vmax.f32 %v2456_v18, %v2460_v34  ;;  %v16772_v61 = vmax.f32 %v2458_v19, %v2462_v44  ;;  %v1995_v2 = vpop.f32.mrb[36].mxu0  ;;  %v2148_v12 = vpop.f32.mrb[36].mxu1  ;;  %v14127_v44 = vpack.i.bf16 %v16690_v55, %v16669_v10 }
 0x2a6   :  { %20415 = vst [vmem:[#allocation6_spill] sm:$0xff] %v16768_v58  ;;  %v2367_v62 = vadd.f32 %v16538_v42, %v1995_v2  ;;  %v2369_v47 = vadd.f32 %v16541_v43, %v2148_v12  ;;  %v1997_v33 = vpop.f32.mrb[37].mxu0  ;;  %v2150_v63 = vpop.f32.mrb[37].mxu1  ;;  %v14117_v57 = vpack.i.bf16 %v16766_v56, %v16747_v20  ;;  %v14122_v2 = vpack.i.bf16 %v16643_v28, %v16612_v51 }
 0x2a7   :  { %20416 = vst [vmem:[#allocation7_spill] sm:$0xff] %v16772_v61  ;;  %v2368_v59 = vadd.f32 %v16544_v45, %v1997_v33  ;;  %v2370_v0 = vadd.f32 %v16547_v38, %v2150_v63  ;;  %v1999_v13 = vpop.f32.mrb[38].mxu0  ;;  %v2152_v9 = vpop.f32.mrb[38].mxu1  ;;  %v14112_v14 = vpack.i.bf16 %v16768_v58, %v16770_v60 }
 0x2a8   :  { %v2371_v15 = vadd.f32 %v16538_v42, %v1999_v13  ;;  %v2373_v16 = vadd.f32 %v16541_v43, %v2152_v9  ;;  %v2154_v17 = vpop.f32.mrb[39].mxu1  ;;  %14118 = vrot.lane.b32.xlu1 %v14117_v57, %s15693_s30  ;;  %v2001_v18 = vpop.f32.mrb[39].mxu0  ;;  %v2463_v12 = vmax.f32 %v2367_v62, 0.0  ;;  %v2465_v33 = vmax.f32 %v2369_v47, 0.0 }
 0x2a9   :  { %v2374_v19 = vadd.f32 %v16547_v38, %v2154_v17  ;;  %v2372_v34 = vadd.f32 %v16544_v45, %v2001_v18  ;;  %14113 = vrot.lane.b32.xlu0 %v14112_v14, %s15693_s30  ;;  %v2464_v9 = vmax.f32 %v2368_v59, 0.0  ;;  %v2466_v1 = vmax.f32 %v2370_v0, 0.0 }
 0x2aa   :  { %v2467_v63 = vmax.f32 %v2371_v15, 0.0  ;;  %v2469_v13 = vmax.f32 %v2373_v16, 0.0  ;;  %v14137_v16 = vpack.i.bf16 %v16772_v61, %v16751_v40 }
 0x2ab   :  { %v2470_v57 = vmax.f32 %v2374_v19, 0.0  ;;  %v2468_v39 = vmax.f32 %v2372_v34, 0.0 }
 0x2ac   :  { %v16792_v37 = vmax.f32 %v2463_v12, %v2467_v63  ;;  %v16794_v17 = vmax.f32 %v2465_v33, %v2469_v13  ;;  %14128 = vrot.lane.b32.xlu1 %v14127_v44, %s15693_s30  ;;  %v14132_v44 = vpack.i.bf16 %v16731_v32, %v16710_v24 }
 0x2ad   :  { %v16797_v14 = vmax.f32 %v2466_v1, %v2470_v57  ;;  %v16799_v18 = vmax.f32 %v2464_v9, %v2468_v39  ;;  %v2158_v36 = vpop.f32.mrb[40].mxu1  ;;  %14123 = vrot.lane.b32.xlu0 %v14122_v2, %s15693_s30  ;;  %v2005_v62 = vpop.f32.mrb[40].mxu0 }
 0x2ae   :  { %20417 = vst [vmem:[#allocation8_spill] sm:$0xff] %v16794_v17  ;;  %v2377_v47 = vadd.f32 %v16541_v43, %v2158_v36  ;;  %v2375_v59 = vadd.f32 %v16538_v42, %v2005_v62  ;;  %v2007_v0 = vpop.f32.mrb[41].mxu0  ;;  %v2160_v15 = vpop.f32.mrb[41].mxu1 }
 0x2af   :  { %v2376_v19 = vadd.f32 %v16544_v45, %v2007_v0  ;;  %v2378_v1 = vadd.f32 %v16547_v38, %v2160_v15  ;;  %v2009_v34 = vpop.f32.mrb[42].mxu0  ;;  %v2162_v39 = vpop.f32.mrb[42].mxu1  ;;  %v14142_v15 = vpack.i.bf16 %v16568_v5, %v16570_v6 }
 0x2b0   :  { %v2379_v2 = vadd.f32 %v16538_v42, %v2009_v34  ;;  %v2381_v36 = vadd.f32 %v16541_v43, %v2162_v39  ;;  %v2164_v12 = vpop.f32.mrb[43].mxu1  ;;  %14138 = vrot.lane.b32.xlu1 %v14137_v16, %s15693_s30  ;;  %v2011_v33 = vpop.f32.mrb[43].mxu0  ;;  %v2473_v63 = vmax.f32 %v2377_v47, 0.0  ;;  %v2471_v57 = vmax.f32 %v2375_v59, 0.0 }
 0x2b1   :  { %v2382_v13 = vadd.f32 %v16547_v38, %v2164_v12  ;;  %v2380_v9 = vadd.f32 %v16544_v45, %v2011_v33  ;;  %14133 = vrot.lane.b32.xlu0 %v14132_v44, %s15693_s30  ;;  %v2472_v34 = vmax.f32 %v2376_v19, 0.0  ;;  %v2474_v35 = vmax.f32 %v2378_v1, 0.0 }
 0x2b2   :  { %v2475_v62 = vmax.f32 %v2379_v2, 0.0  ;;  %v2477_v0 = vmax.f32 %v2381_v36, 0.0  ;;  %v14147_v33 = vpack.i.bf16 %v16794_v17, %v16799_v18 }
 0x2b3   :  { %v2478_v39 = vmax.f32 %v2382_v13, 0.0  ;;  %v2476_v58 = vmax.f32 %v2380_v9, 0.0 }
 0x2b4   :  { %v16818_v61 = vmax.f32 %v2471_v57, %v2475_v62  ;;  %v16820_v16 = vmax.f32 %v2473_v63, %v2477_v0  ;;  %2583 = vrot.lane.b32.xlu1 %v16566_v4, %s15693_s30 }
 0x2b5   :  { %v16824_v47 = vmax.f32 %v2474_v35, %v2478_v39  ;;  %v16826_v44 = vmax.f32 %v2472_v34, %v2476_v58  ;;  %v2168_v59 = vpop.f32.mrb[44].mxu1  ;;  %14143 = vrot.lane.b32.xlu0 %v14142_v15, %s15693_s30  ;;  %v2015_v2 = vpop.f32.mrb[44].mxu0 }
 0x2b6   :  { %20418 = vst [vmem:[#allocation9_spill] sm:$0xff] %v16818_v61  ;;  %20419 = vst [vmem:[#allocation10_spill] sm:$0xff] %v16820_v16  ;;  %v2385_v19 = vadd.f32 %v16541_v43, %v2168_v59  ;;  %v2383_v1 = vadd.f32 %v16538_v42, %v2015_v2  ;;  %v2017_v36 = vpop.f32.mrb[45].mxu0  ;;  %v2170_v12 = vpop.f32.mrb[45].mxu1 }
 0x2b7   :  { %20420 = vst [vmem:[#allocation11_spill] sm:$0xff] %v16824_v47  ;;  %20421 = vst [vmem:[#allocation12_spill] sm:$0xff] %v16826_v44  ;;  %v2384_v63 = vadd.f32 %v16544_v45, %v2017_v36  ;;  %v2386_v35 = vadd.f32 %v16547_v38, %v2170_v12  ;;  %v2019_v13 = vpop.f32.mrb[46].mxu0  ;;  %v2172_v58 = vpop.f32.mrb[46].mxu1 }
 0x2b8   :  { %v2387_v9 = vadd.f32 %v16538_v42, %v2019_v13  ;;  %v2389_v57 = vadd.f32 %v16541_v43, %v2172_v58  ;;  %v2174_v62 = vpop.f32.mrb[47].mxu1  ;;  %14148 = vrot.lane.b32.xlu1 %v14147_v33, %s15693_s30  ;;  %v2021_v0 = vpop.f32.mrb[47].mxu0  ;;  %v2481_v15 = vmax.f32 %v2385_v19, 0.0  ;;  %v2479_v59 = vmax.f32 %v2383_v1, 0.0 }
 0x2b9   :  { %v2390_v34 = vadd.f32 %v16547_v38, %v2174_v62  ;;  %v2388_v39 = vadd.f32 %v16544_v45, %v2021_v0  ;;  %2589 = vrot.lane.b32.xlu0 %v16572_v7, %s15693_s30  ;;  %v2480_v12 = vmax.f32 %v2384_v63, 0.0  ;;  %v2482_v17 = vmax.f32 %v2386_v35, 0.0 }
 0x2ba   :  { %v2483_v2 = vmax.f32 %v2387_v9, 0.0  ;;  %v2485_v36 = vmax.f32 %v2389_v57, 0.0  ;;  %v14152_v19 = vpack.i.bf16 %v16820_v16, %v16826_v44 }
 0x2bb   :  { %v2486_v42 = vmax.f32 %v2390_v34, 0.0  ;;  %v2484_v13 = vmax.f32 %v2388_v39, 0.0 }
 0x2bc   :  { %v16842_v43 = vmax.f32 %v2479_v59, %v2483_v2  ;;  %v16844_v58 = vmax.f32 %v2481_v15, %v2485_v36  ;;  %2661 = vrot.lane.b32.xlu1 %v16797_v14, %s15693_s30 }
 0x2bd   :  { %v16848_v38 = vmax.f32 %v2482_v17, %v2486_v42  ;;  %v16850_v45 = vmax.f32 %v2480_v12, %v2484_v13  ;;  %2655 = vrot.lane.b32.xlu0 %v16792_v37, %s15693_s30 }
 0x2be   :  { %20422 = vst [vmem:[#allocation13_spill] sm:$0xff] %v16842_v43  ;;  %20423 = vst [vmem:[#allocation14_spill] sm:$0xff] %v16844_v58 }
 0x2bf   :  { %20424 = vst [vmem:[#allocation15_spill] sm:$0xff] %v16848_v38  ;;  %20425 = vst [vmem:[#allocation16_spill] sm:$0xff] %v16850_v45  ;;  %v14157_v1 = vpack.i.bf16 %v16844_v58, %v16850_v45 }
 0x2c0   :  { %2663 = vrot.lane.b32.xlu1 %v16818_v61, %s15693_s30 }
 0x2c1   :  { %14153 = vrot.lane.b32.xlu0 %v14152_v19, %s15693_s30 }
 0x2c4   :  { %14158 = vrot.lane.b32.xlu1 %v14157_v1, %s15693_s30 }
 0x2c5   :  { %2669 = vrot.lane.b32.xlu0 %v16824_v47, %s15693_s30 }
 0x2c8   :  { %2677 = vrot.lane.b32.xlu1 %v16848_v38, %s15693_s30 }
 0x2c9   :  { %2671 = vrot.lane.b32.xlu0 %v16842_v43, %s15693_s30 }
 0x2e3   :  { %v16868_v17 = vpop.permute.xlu0 %14063 }
 0x2e4   :  { %v20394_v33 = vunpack.i.h.bf16 %v16868_v17  ;;  %v14065_v63 = vunpack.i.l.bf16 %v16868_v17 }
 0x2e6   :  { %v2684_v0 = vsel %vm2679_vm2, %v14065_v63, %v20394_v33 }
 0x2e7   :  { %v16889_v42 = vmax.f32 %v16610_v50, %v2684_v0  ;;  %v14369_v50 = vld [vmem:[%s20372_s3 + $0x5cc] ss:$16 sps:$4 sm:$0xff]  }
 0x2ea   :  { %v14074_v35 = vpop.permute.xlu1 %14073 }
 0x2eb   :  { %v14076_v9 = vunpack.i.h.bf16 %v14074_v35  ;;  %v14075_v57 = vunpack.i.l.bf16 %v14074_v35  ;;  %v16872_v62 = vpop.permute.xlu0 %14068  ;;  %v14364_v35 = vld [vmem:[%s20372_s3 + $0x5c0] ss:$16 sps:$4 sm:$0xff]  }
 0x2ec   :  { %v20395_v15 = vunpack.i.h.bf16 %v16872_v62  ;;  %v14070_v34 = vunpack.i.l.bf16 %v16872_v62 }
 0x2ed   :  { %v2683_v39 = vsel %vm2679_vm2, %v14075_v57, %v14065_v63  ;;  %v14361_v63 = vld [vmem:[%s20372_s3 + $0x5a8] ss:$16 sps:$4 sm:$0xff]  }
 0x2ee   :  { %v16881_v59 = vmax.f32 %v16606_v48, %v2683_v39  ;;  %v2686_v2 = vsel %vm2679_vm2, %v14076_v9, %v14070_v34  ;;  %v2687_v36 = vsel %vm2679_vm2, %v14070_v34, %v20395_v15  ;;  %v14358_v48 = vld [vmem:[%s20372_s3 + $0x5a0] ss:$16 sps:$4 sm:$0xff]   ;;  %v14367_v9 = vld [vmem:[%s20372_s3 + $0x5c8] ss:$16 sps:$4 sm:$0xff]   ;;  %v14372_v34 = vld [vmem:[%s20372_s3 + $0x5e4] ss:$16 sps:$4 sm:$0xff]  }
 0x2ef   :  { %v2772_v12 = vmax.f32 %v16637_v22, %v2686_v2  ;;  %v2773_v13 = vmax.f32 %v16641_v27, %v2687_v36  ;;  %v14366_v22 = vld [vmem:[%s20372_s3 + $0x5c4] ss:$16 sps:$4 sm:$0xff]   ;;  %v14375_v39 = vld [vmem:[%s20372_s3 + $0x5ec] ss:$16 sps:$4 sm:$0xff]  }
 0x2f1   :  { %v2944_v19 = vpack.c.bf16 %v2772_v12, %v16881_v59  ;;  %v2945_v1 = vpack.c.bf16 %v2773_v13, %v16889_v42 }
 0x2f3   :  { %3710 = vmatprep.mubr.bf16.mxu0 %v2945_v1  ;;  %3856 = vmatprep.mubr.bf16.mxu1 %v2945_v1  ;;  %v16906_v27 = vpop.permute.xlu1 %14078  ;;  %v14373_v1 = vld [vmem:[%s20372_s3 + $0x5e8] ss:$16 sps:$4 sm:$0xff]  }
 0x2f4   :  { %v20393_v57 = vunpack.i.h.bf16 %v16906_v27  ;;  %v14080_v0 = vunpack.i.l.bf16 %v16906_v27  ;;  %3711 = vmatmul.mubr.bf16.vlgmr.msra.gmra.mrb[48].mxu0 %v2944_v19  ;;  %3857 = vmatmul.mubr.bf16.vlgmr.msra.gmra.mrb[48].mxu1 %v2944_v19  ;;  %v14370_v19 = vld [vmem:[%s20372_s3 + $0x5e0] ss:$16 sps:$4 sm:$0xff]  }
 0x2f5   :  { %3752 = vmatpush1.bf16.msra.mxu0 %v14358_v48  ;;  %3898 = vmatpush1.bf16.msra.mxu1 %v14361_v63  ;;  %v14378_v48 = vld [vmem:[%s20372_s3 + $0x604] ss:$16 sps:$4 sm:$0xff]  }
 0x2f6   :  { %v2690_v2 = vsel %vm2679_vm2, %v14080_v0, %v20393_v57  ;;  %3753 = vmatprep.subr.bf16.mxu0 %v14366_v22  ;;  %3899 = vmatprep.subr.bf16.mxu1 %v14369_v50 }
 0x2f7   :  { %v2777_v36 = vmax.f32 %v16671_v11, %v2690_v2  ;;  %v14381_v11 = vld [vmem:[%s20372_s3 + $0x60c] ss:$16 sps:$4 sm:$0xff]   ;;  %v14376_v2 = vld [vmem:[%s20372_s3 + $0x600] ss:$16 sps:$4 sm:$0xff]  }
 0x2f9   :  { %3754 = vmatpush1.bf16.msra.mxu0 %v14364_v35  ;;  %3900 = vmatpush1.bf16.msra.mxu1 %v14367_v9  ;;  %v16935_v63 = vpack.c.bf16 %v2777_v36, %v2773_v13  ;;  %v14379_v13 = vld [vmem:[%s20372_s3 + $0x608] ss:$16 sps:$4 sm:$0xff]  }
 0x2fa   :  { %v14089_v22 = vpop.permute.xlu1 %14088  ;;  %3755 = vmatprep.subr.bf16.mxu0 %v14372_v34  ;;  %3901 = vmatprep.subr.bf16.mxu1 %v14375_v39  ;;  %v14384_v39 = vld [vmem:[%s20372_s3 + $0x624] ss:$16 sps:$4 sm:$0xff]  }
 0x2fb   :  { %v14091_v50 = vunpack.i.h.bf16 %v14089_v22  ;;  %v14090_v35 = vunpack.i.l.bf16 %v14089_v22  ;;  %v16940_v9 = vpop.permute.xlu0 %14083  ;;  %v14387_v22 = vld [vmem:[%s20372_s3 + $0x62c] ss:$16 sps:$4 sm:$0xff]  }
 0x2fc   :  { %v20403_v57 = vunpack.i.h.bf16 %v16940_v9  ;;  %v14085_v34 = vunpack.i.l.bf16 %v16940_v9 }
 0x2fd   :  { %v2689_v33 = vsel %vm2679_vm2, %v14090_v35, %v14080_v0  ;;  %3756 = vmatpush1.bf16.msra.mxu0 %v14370_v19  ;;  %3902 = vmatpush1.bf16.msra.mxu1 %v14373_v1  ;;  %v14396_v19 = vld [vmem:[%s20372_s3 + $0x664] ss:$16 sps:$4 sm:$0xff]   ;;  %v14399_v1 = vld [vmem:[%s20372_s3 + $0x66c] ss:$16 sps:$4 sm:$0xff]   ;;  %v14394_v35 = vld [vmem:[%s20372_s3 + $0x660] ss:$16 sps:$4 sm:$0xff]  }
 0x2fe   :  { %v2776_v15 = vmax.f32 %v16665_v3, %v2689_v33  ;;  %v2692_v58 = vsel %vm2679_vm2, %v14091_v50, %v14085_v34  ;;  %v2693_v38 = vsel %vm2679_vm2, %v14085_v34, %v20403_v57  ;;  %3757 = vmatprep.subr.bf16.mxu0 %v14378_v48  ;;  %3903 = vmatprep.subr.bf16.mxu1 %v14381_v11  ;;  %v14382_v3 = vld [vmem:[%s20372_s3 + $0x620] ss:$16 sps:$4 sm:$0xff]   ;;  %v14385_v33 = vld [vmem:[%s20372_s3 + $0x628] ss:$16 sps:$4 sm:$0xff]  }
 0x2ff   :  { %v2780_v43 = vmax.f32 %v16684_v52, %v2692_v58  ;;  %v2781_v45 = vmax.f32 %v16688_v54, %v2693_v38  ;;  %v14390_v52 = vld [vmem:[%s20372_s3 + $0x644] ss:$16 sps:$4 sm:$0xff]   ;;  %v14393_v54 = vld [vmem:[%s20372_s3 + $0x64c] ss:$16 sps:$4 sm:$0xff]   ;;  %v14388_v38 = vld [vmem:[%s20372_s3 + $0x640] ss:$16 sps:$4 sm:$0xff]  }
 0x300   :  { %v16964_v16 = vpack.c.bf16 %v2776_v15, %v2772_v12 }
 0x301   :  { %v16966_v47 = vpack.c.bf16 %v2781_v45, %v2777_v36  ;;  %v16968_v0 = vpack.c.bf16 %v2780_v43, %v2776_v15  ;;  %3758 = vmatpush1.bf16.msra.mxu0 %v14376_v2  ;;  %3904 = vmatpush1.bf16.msra.mxu1 %v14379_v13  ;;  %v14391_v15 = vld [vmem:[%s20372_s3 + $0x648] ss:$16 sps:$4 sm:$0xff]   ;;  %v14402_v13 = vld [vmem:[%s20372_s3 + $0x684] ss:$16 sps:$4 sm:$0xff]  }
 0x302   :  { %3759 = vmatprep.subr.bf16.mxu0 %v14384_v39  ;;  %3905 = vmatprep.subr.bf16.mxu1 %v14387_v22  ;;  %v14397_v2 = vld [vmem:[%s20372_s3 + $0x668] ss:$16 sps:$4 sm:$0xff]  }
 0x303   :  { %3720 = vmatprep.mubr.bf16.mxu0 %v16966_v47  ;;  %3866 = vmatprep.mubr.bf16.mxu1 %v16966_v47  ;;  %v16984_v58 = vpop.permute.xlu0 %14093 }
 0x304   :  { %v20402_v12 = vunpack.i.h.bf16 %v16984_v58  ;;  %v14095_v36 = vunpack.i.l.bf16 %v16984_v58  ;;  %3721 = vmatmul.mubr.bf16.gmra.mrb[52].mxu0 %v16968_v0  ;;  %3867 = vmatmul.mubr.bf16.gmra.mrb[52].mxu1 %v16968_v0 }
 0x305   :  { %3760 = vmatpush1.bf16.msra.mxu0 %v14382_v3  ;;  %3906 = vmatpush1.bf16.msra.mxu1 %v14385_v33  ;;  %v14400_v3 = vld [vmem:[%s20372_s3 + $0x680] ss:$16 sps:$4 sm:$0xff]   ;;  %v14403_v33 = vld [vmem:[%s20372_s3 + $0x688] ss:$16 sps:$4 sm:$0xff]  }
 0x306   :  { %v2696_v48 = vsel %vm2679_vm2, %v14095_v36, %v20402_v12  ;;  %3761 = vmatprep.subr.bf16.mxu0 %v14390_v52  ;;  %3907 = vmatprep.subr.bf16.mxu1 %v14393_v54 }
 0x307   :  { %v2785_v11 = vmax.f32 %v16712_v26, %v2696_v48  ;;  %v14405_v26 = vld [vmem:[%s20372_s3 + $0x68c] ss:$16 sps:$4 sm:$0xff]  }
 0x309   :  { %v17006_v50 = vpack.c.bf16 %v2785_v11, %v2781_v45  ;;  %3762 = vmatpush1.bf16.msra.mxu0 %v14388_v38  ;;  %3908 = vmatpush1.bf16.msra.mxu1 %v14391_v15  ;;  %v14408_v38 = vld [vmem:[%s20372_s3 + $0x6a4] ss:$16 sps:$4 sm:$0xff]   ;;  %v14411_v15 = vld [vmem:[%s20372_s3 + $0x6ac] ss:$16 sps:$4 sm:$0xff]  }
 0x30a   :  { %v14104_v34 = vpop.permute.xlu0 %14103  ;;  %3763 = vmatprep.subr.bf16.mxu0 %v14396_v19  ;;  %3909 = vmatprep.subr.bf16.mxu1 %v14399_v1 }
 0x30b   :  { %v14106_v45 = vunpack.i.h.bf16 %v14104_v34  ;;  %v14105_v39 = vunpack.i.l.bf16 %v14104_v34  ;;  %v17020_v22 = vpop.permute.xlu1 %14098 }
 0x30c   :  { %v20404_v52 = vunpack.i.h.bf16 %v17020_v22  ;;  %v14100_v54 = vunpack.i.l.bf16 %v17020_v22 }
 0x30d   :  { %v2695_v19 = vsel %vm2679_vm2, %v14105_v39, %v14095_v36  ;;  %3764 = vmatpush1.bf16.msra.mxu0 %v14394_v35  ;;  %3910 = vmatpush1.bf16.msra.mxu1 %v14397_v2  ;;  %v14406_v36 = vld [vmem:[%s20372_s3 + $0x6a0] ss:$16 sps:$4 sm:$0xff]   ;;  %v14414_v2 = vld [vmem:[%s20372_s3 + $0x6c4] ss:$16 sps:$4 sm:$0xff]  }
 0x30e   :  { %v2784_v1 = vmax.f32 %v16706_v41, %v2695_v19  ;;  %v2698_v48 = vsel %vm2679_vm2, %v14106_v45, %v14100_v54  ;;  %v2699_v34 = vsel %vm2679_vm2, %v14100_v54, %v20404_v52  ;;  %3765 = vmatprep.subr.bf16.mxu0 %v14402_v13  ;;  %3911 = vmatprep.subr.bf16.mxu1 %v14405_v26  ;;  %v14409_v41 = vld [vmem:[%s20372_s3 + $0x6a8] ss:$16 sps:$4 sm:$0xff]   ;;  %v14412_v26 = vld [vmem:[%s20372_s3 + $0x6c0] ss:$16 sps:$4 sm:$0xff]  }
 0x30f   :  { %v2788_v12 = vmax.f32 %v16725_v21, %v2698_v48  ;;  %v2789_v57 = vmax.f32 %v16729_v31, %v2699_v34  ;;  %v14417_v21 = vld [vmem:[%s20372_s3 + $0x6cc] ss:$16 sps:$4 sm:$0xff]   ;;  %v14421_v19 = vld [vmem:[%s20372_s3 + $0x6e8] ss:$16 sps:$4 sm:$0xff]  }
 0x310   :  { %v17050_v35 = vpack.c.bf16 %v2784_v1, %v2780_v43  ;;  %v14429_v48 = vld [vmem:[%s20372_s3 + $0x70c] ss:$16 sps:$4 sm:$0xff]  }
 0x311   :  { %v17058_v13 = vpack.c.bf16 %v2789_v57, %v2785_v11  ;;  %v17060_v31 = vpack.c.bf16 %v2788_v12, %v2784_v1  ;;  %3766 = vmatpush1.bf16.msra.mxu0 %v14400_v3  ;;  %3912 = vmatpush1.bf16.msra.mxu1 %v14403_v33  ;;  %v14415_v11 = vld [vmem:[%s20372_s3 + $0x6c8] ss:$16 sps:$4 sm:$0xff]   ;;  %v14420_v3 = vld [vmem:[%s20372_s3 + $0x6e4] ss:$16 sps:$4 sm:$0xff]   ;;  %v14423_v33 = vld [vmem:[%s20372_s3 + $0x6ec] ss:$16 sps:$4 sm:$0xff]  }
 0x312   :  { %3767 = vmatprep.subr.bf16.mxu0 %v14408_v38  ;;  %3913 = vmatprep.subr.bf16.mxu1 %v14411_v15  ;;  %v14418_v15 = vld [vmem:[%s20372_s3 + $0x6e0] ss:$16 sps:$4 sm:$0xff]   ;;  %v14426_v1 = vld [vmem:[%s20372_s3 + $0x704] ss:$16 sps:$4 sm:$0xff]  }
 0x313   :  { %20426 = vst [vmem:[#allocation17_spill] sm:$0xff] %v17060_v31  ;;  %3730 = vmatprep.mubr.bf16.mxu0 %v17058_v13  ;;  %3876 = vmatprep.mubr.bf16.mxu1 %v17058_v13  ;;  %v17064_v43 = vpop.permute.xlu1 %14108 }
 0x314   :  { %v20405_v45 = vunpack.i.h.bf16 %v17064_v43  ;;  %v14110_v39 = vunpack.i.l.bf16 %v17064_v43  ;;  %3731 = vmatmul.mubr.bf16.gmra.mrb[56].mxu0 %v17060_v31  ;;  %3877 = vmatmul.mubr.bf16.gmra.mrb[56].mxu1 %v17060_v31 }
 0x315   :  { %3768 = vmatpush1.bf16.msra.mxu0 %v14406_v36  ;;  %3914 = vmatpush1.bf16.msra.mxu1 %v14409_v41 }
 0x316   :  { %v2702_v54 = vsel %vm2679_vm2, %v14110_v39, %v20405_v45  ;;  %3769 = vmatprep.subr.bf16.mxu0 %v14414_v2  ;;  %3915 = vmatprep.subr.bf16.mxu1 %v14417_v21  ;;  %v14424_v21 = vld [vmem:[%s20372_s3 + $0x700] ss:$16 sps:$4 sm:$0xff]  }
 0x317   :  { %v2793_v38 = vmax.f32 %v16753_v29, %v2702_v54 }
 0x319   :  { %v17098_v34 = vpack.c.bf16 %v2793_v38, %v2789_v57  ;;  %3770 = vmatpush1.bf16.msra.mxu0 %v14412_v26  ;;  %3916 = vmatpush1.bf16.msra.mxu1 %v14415_v11  ;;  %v14427_v57 = vld [vmem:[%s20372_s3 + $0x708] ss:$16 sps:$4 sm:$0xff]   ;;  %v14434_v26 = vld [vmem:[%s20372_s3 + $0x720] ss:$16 sps:$4 sm:$0x3f]  }
 0x31a   :  { %v14119_v29 = vpop.permute.xlu1 %14118  ;;  %3771 = vmatprep.subr.bf16.mxu0 %v14420_v3  ;;  %3917 = vmatprep.subr.bf16.mxu1 %v14423_v33 }
 0x31b   :  { %v14121_v36 = vunpack.i.h.bf16 %v14119_v29  ;;  %v14120_v41 = vunpack.i.l.bf16 %v14119_v29  ;;  %v17100_v2 = vpop.permute.xlu0 %14113 }
 0x31c   :  { %v20410_v54 = vunpack.i.h.bf16 %v17100_v2  ;;  %v14115_v52 = vunpack.i.l.bf16 %v17100_v2 }
 0x31d   :  { %v2701_v11 = vsel %vm2679_vm2, %v14120_v41, %v14110_v39  ;;  %3772 = vmatpush1.bf16.msra.mxu0 %v14418_v15  ;;  %3918 = vmatpush1.bf16.msra.mxu1 %v14421_v19  ;;  %v14430_v39 = vld [vmem:[%s20372_s3 + $0x724] ss:$16 sps:$4 sm:$0x3f]   ;;  %v20427_v41 = vunpack.i.h.bf16 %v16940_v9 }
 0x31e   :  { %v2792_v3 = vmax.f32 %v16747_v20, %v2701_v11  ;;  %v2704_v33 = vsel %vm2679_vm2, %v14121_v36, %v14115_v52  ;;  %v2705_v29 = vsel %vm2679_vm2, %v14115_v52, %v20410_v54  ;;  %v14129_v45 = vpop.permute.xlu1 %14128  ;;  %3773 = vmatprep.subr.bf16.mxu0 %v14426_v1  ;;  %3919 = vmatprep.subr.bf16.mxu1 %v14429_v48  ;;  %v14435_v20 = vld [vmem:[%s20372_s3 + $0x728] ss:$16 sps:$4 sm:$0x3f]   ;;  %v14432_v52 = vld [vmem:[%s20372_s3 + $0x72c] ss:$16 sps:$4 sm:$0x3f]  }
 0x31f   :  { %v14131_v61 = vunpack.i.h.bf16 %v14129_v45  ;;  %v14130_v44 = vunpack.i.l.bf16 %v14129_v45  ;;  %v14124_v31 = vpop.permute.xlu0 %14123  ;;  %v17131_v1 = vmax.f32 %v16766_v56, %v2704_v33  ;;  %v17134_v45 = vmax.f32 %v16770_v60, %v2705_v29 }
 0x320   :  { %v17125_v15 = vpack.c.bf16 %v2792_v3, %v2788_v12  ;;  %v14126_v19 = vunpack.i.h.bf16 %v14124_v31  ;;  %v14125_v36 = vunpack.i.l.bf16 %v14124_v31  ;;  %v3667_v54 = vsel %vm175_vm0, %v14434_v26, 0 }
 0x321   :  { %v17137_v48 = vmax.f32 %v16669_v10, %v14130_v44  ;;  %3774 = vmatpush1.bf16.msra.mxu0 %v14424_v21  ;;  %v2694_v12 = vsel %vm2679_vm2, %v20427_v41, %v14131_v61  ;;  %3920 = vmatpush1.bf16.msra.mxu1 %v14427_v57  ;;  %v3673_v10 = vsel %vm175_vm0, %v14435_v20, 0  ;;  %v2783_v9 = vmax.f32 %v16690_v55, %v14131_v61 }
 0x322   :  { %v2775_v31 = vmax.f32 %v16643_v28, %v14126_v19  ;;  %v17143_v11 = vpop.permute.xlu1 %14138  ;;  %v17147_v56 = vmax.f32 %v16612_v51, %v14125_v36  ;;  %11814 = vmatprep.subr.msk.bf16.mxu0 %vm175_vm0, %v14430_v39  ;;  %11819 = vmatprep.subr.msk.bf16.mxu1 %vm175_vm0, %v14432_v52  ;;  %v17158_v57 = vmax.f32 %v16686_v53, %v2694_v12  ;;  %v20428_v55 = vunpack.i.h.bf16 %v16872_v62 }
 0x323   :  { %v14134_v60 = vpop.permute.xlu0 %14133  ;;  %v14140_v28 = vunpack.i.l.bf16 %v17143_v11  ;;  %v17161_v26 = vpack.c.bf16 %v17134_v45, %v2793_v38  ;;  %v17164_v29 = vpack.c.bf16 %v17131_v1, %v2792_v3  ;;  %v20429_v20 = vunpack.i.h.bf16 %v17064_v43 }
 0x324   :  { %v17153_v21 = vpack.c.bf16 %v17137_v48, %v2775_v31  ;;  %v14136_v33 = vunpack.i.h.bf16 %v14134_v60  ;;  %v14135_v51 = vunpack.i.l.bf16 %v14134_v60  ;;  %v2688_v61 = vsel %vm2679_vm2, %v20428_v55, %v14126_v19 }
 0x325   :  { %3776 = vmatpush1.bf16.msra.mxu0 %v3667_v54  ;;  %v2947_v39 = vpack.c.bf16 %v2775_v31, %v17147_v56  ;;  %v2703_v52 = vsel %vm2679_vm2, %v20429_v20, %v14140_v28  ;;  %v17174_v53 = vmax.f32 %v16751_v40, %v14140_v28  ;;  %3922 = vmatpush1.bf16.msra.mxu1 %v3673_v10  ;;  %v20430_v3 = vunpack.i.h.bf16 %v17020_v22  ;;  %v14438_v40 = vld [vmem:[%s20372_s3 + $0x4] ss:$16 sps:$4 sm:$0xff]   ;;  %v14441_v31 = vld [vmem:[%s20372_s3 + $0xc] ss:$16 sps:$4 sm:$0xff]  }
 0x326   :  { %v17177_v38 = vmax.f32 %v16749_v23, %v2703_v52  ;;  %v2791_v62 = vmax.f32 %v16731_v32, %v14136_v33  ;;  %v20431_v19 = vunpack.i.h.bf16 %v16984_v58  ;;  %3740 = vmatprep.mubr.bf16.mxu0 %v17161_v26  ;;  %v20432_v23 = vunpack.i.h.bf16 %v16868_v17  ;;  %3886 = vmatprep.mubr.bf16.mxu1 %v17161_v26  ;;  %v14444_v20 = vld [vmem:[%s20372_s3 + $0x24] ss:$16 sps:$4 sm:$0xff]   ;;  %v14447_v52 = vld [vmem:[%s20372_s3 + $0x2c] ss:$16 sps:$4 sm:$0xff]  }
 0x327   :  { %v2700_v54 = vsel %vm2679_vm2, %v20430_v3, %v14136_v33  ;;  %v17187_v43 = vpop.permute.xlu0 %14143  ;;  %v2787_v58 = vmax.f32 %v16710_v24, %v14135_v51  ;;  %v20433_v60 = vunpack.i.h.bf16 %v16906_v27  ;;  %3741 = vmatmul.mubr.bf16.gmra.mrb[60].mxu0 %v17164_v29  ;;  %3887 = vmatmul.mubr.bf16.gmra.mrb[60].mxu1 %v17164_v29  ;;  %v2774_v27 = vmax.f32 %v16639_v25, %v2688_v61  ;;  %v14436_v25 = vld [vmem:[%s20372_s3] ss:$16 sps:$4 sm:$0xff]   ;;  %v14439_v61 = vld [vmem:[%s20372_s3 + $0x8] ss:$16 sps:$4 sm:$0xff]  }
 0x328   :  { %v2697_v41 = vsel %vm2679_vm2, %v20431_v19, %v14135_v51  ;;  %v2685_v22 = vsel %vm2679_vm2, %v20432_v23, %v14125_v36  ;;  %v17196_v12 = vmax.f32 %v16727_v30, %v2700_v54  ;;  %v17210_v36 = vpack.c.bf16 %v17174_v53, %v2791_v62  ;;  %11815 = vmatprep.mubr.msk.bf16.mxu0 %vm3653_vm3, %v2947_v39  ;;  %v14450_v54 = vld [vmem:[%s20372_s3 + $0x44] ss:$16 sps:$4 sm:$0xff]   ;;  %v14453_v19 = vld [vmem:[%s20372_s3 + $0x4c] ss:$16 sps:$4 sm:$0xff]   ;;  %v14454_v23 = vld [vmem:[%s20372_s3 + $0x60] ss:$16 sps:$4 sm:$0xff]  }
 0x329   :  { %v17199_v32 = vmax.f32 %v16708_v46, %v2697_v41  ;;  %v2691_v17 = vsel %vm2679_vm2, %v20433_v60, %v14130_v44  ;;  %v17222_v30 = vpack.c.bf16 %v2787_v58, %v2783_v9  ;;  %v14146_v44 = vunpack.i.h.bf16 %v17187_v43  ;;  %11820 = vmatprep.mubr.msk.bf16.mxu1 %vm3653_vm3, %v2947_v39  ;;  %4570 = vmatprep.subr.bf16.mxu0 %v14438_v40  ;;  %v14459_v60 = vld [vmem:[%s20372_s3 + $0x6c] ss:$16 sps:$4 sm:$0xff]  }
 0x32a   :  { %v17216_v46 = vpack.c.bf16 %v17177_v38, %v17196_v12  ;;  %v2770_v28 = vmax.f32 %v16608_v49, %v2685_v22  ;;  %4716 = vmatprep.subr.bf16.mxu1 %v14441_v31  ;;  %v2778_v51 = vmax.f32 %v16667_v8, %v2691_v17  ;;  %v14442_v8 = vld [vmem:[%s20372_s3 + $0x20] ss:$16 sps:$4 sm:$0xff]   ;;  %v17258_v3 = vpack.c.bf16 %v2783_v9, %v17137_v48  ;;  %v14451_v9 = vld [vmem:[%s20372_s3 + $0x48] ss:$16 sps:$4 sm:$0xff]   ;;  %v14456_v22 = vld [vmem:[%s20372_s3 + $0x64] ss:$16 sps:$4 sm:$0xff]  }
 0x32b   :  { %v17220_v24 = vpack.c.bf16 %v17199_v32, %v17158_v57  ;;  %v17228_v10 = vpop.permute.xlu0 %2589  ;;  %v14448_v48 = vld [vmem:[%s20372_s3 + $0x40] ss:$16 sps:$4 sm:$0xff]   ;;  %v14457_v31 = vld [vmem:[%s20372_s3 + $0x68] ss:$16 sps:$4 sm:$0xff]   ;;  %v14141_v17 = vunpack.i.h.bf16 %v17143_v11 }
 0x32c   :  { %v2682_v33 = vsel %vm2679_vm2, %v14146_v44, %v17228_v10  ;;  %v2946_v49 = vpack.c.bf16 %v2774_v27, %v2770_v28  ;;  %v17266_v41 = vpack.c.bf16 %v2778_v51, %v2774_v27  ;;  %v17279_v40 = vpack.c.bf16 %v17158_v57, %v2778_v51  ;;  %v14462_v27 = vld [vmem:[%s20372_s3 + $0x84] ss:$16 sps:$4 sm:$0xff]   ;;  %v20434_v11 = vld [vmem:[#allocation7_spill] sm:$0xff] }
 0x32d   :  { %v2766_v55 = vmax.f32 %v16568_v5, %v2682_v33  ;;  %v14445_v5 = vld [vmem:[%s20372_s3 + $0x28] ss:$16 sps:$4 sm:$0xff]   ;;  %v17294_v57 = vpack.c.bf16 %v2791_v62, %v2787_v58  ;;  %v17309_v62 = vmax.f32 %v20434_v11, %v14141_v17  ;;  %v14145_v58 = vunpack.i.l.bf16 %v17187_v43  ;;  %v14460_v33 = vld [vmem:[%s20372_s3 + $0x80] ss:$16 sps:$4 sm:$0xff]   ;;  %v14495_v11 = vld [vmem:[%s20372_s3 + $0x12c] ss:$16 sps:$4 sm:$0xff]  }
 0x32e   :  { %v14463_v51 = vld [vmem:[%s20372_s3 + $0x88] ss:$16 sps:$4 sm:$0xff]   ;;  %v14534_v43 = vld [vmem:[%s20372_s3 + $0x204] ss:$16 sps:$4 sm:$0xff]  }
 0x32f   :  { %v17243_v39 = vpack.c.bf16 %v2770_v28, %v2766_v55  ;;  %3784 = vmatmul.mubr.bf16.vlgmr.msra.gmra.mrb[48].mxu0 %v2946_v49  ;;  %3930 = vmatmul.mubr.bf16.vlgmr.msra.gmra.mrb[48].mxu1 %v2946_v49  ;;  %v14465_v28 = vld [vmem:[%s20372_s3 + $0x8c] ss:$16 sps:$4 sm:$0xff]   ;;  %v17320_v55 = vpack.c.bf16 %v17196_v12, %v17199_v32  ;;  %v14466_v49 = vld [vmem:[%s20372_s3 + $0xa0] ss:$16 sps:$4 sm:$0xff]   ;;  %v14474_v32 = vld [vmem:[%s20372_s3 + $0xc4] ss:$16 sps:$4 sm:$0xff]  }
 0x330   :  { %4571 = vmatpush1.bf16.msra.mxu0 %v14436_v25  ;;  %4717 = vmatpush1.bf16.msra.mxu1 %v14439_v61  ;;  %v20435_v25 = vunpack.i.h.bf16 %v17100_v2  ;;  %v14471_v12 = vld [vmem:[%s20372_s3 + $0xac] ss:$16 sps:$4 sm:$0xff]   ;;  %v17339_v2 = vpack.c.bf16 %v17309_v62, %v17174_v53  ;;  %v20436_v53 = vld [vmem:[#allocation6_spill] sm:$0xff] }
 0x331   :  { %11816 = vmatprep.mubr.msk.bf16.mxu0 %vm3653_vm3, %v17258_v3  ;;  %11821 = vmatprep.mubr.msk.bf16.mxu1 %vm3653_vm3, %v17258_v3 }
 0x332   :  { %4572 = vmatprep.subr.bf16.mxu0 %v14444_v20  ;;  %4718 = vmatprep.subr.bf16.mxu1 %v14447_v52  ;;  %v2706_v61 = vsel %vm2679_vm2, %v20435_v25, %v14141_v17  ;;  %v14468_v20 = vld [vmem:[%s20372_s3 + $0xa4] ss:$16 sps:$4 sm:$0xff]   ;;  %v2681_v52 = vsel %vm2679_vm2, %v14145_v58, %v14146_v44  ;;  %v14475_v44 = vld [vmem:[%s20372_s3 + $0xc8] ss:$16 sps:$4 sm:$0xff]   ;;  %v14489_v17 = vld [vmem:[%s20372_s3 + $0x10c] ss:$16 sps:$4 sm:$0xff]  }
 0x333   :  { %v14498_v25 = vld [vmem:[%s20372_s3 + $0x144] ss:$16 sps:$4 sm:$0xff]  }
 0x334   :  { %4573 = vmatpush1.bf16.msra.mxu0 %v14442_v8  ;;  %4719 = vmatpush1.bf16.msra.mxu1 %v14445_v5  ;;  %v14469_v8 = vld [vmem:[%s20372_s3 + $0xa8] ss:$16 sps:$4 sm:$0xff]   ;;  %v14477_v5 = vld [vmem:[%s20372_s3 + $0xcc] ss:$16 sps:$4 sm:$0xff]  }
 0x335   :  { %4574 = vmatprep.subr.bf16.mxu0 %v14450_v54  ;;  %4720 = vmatprep.subr.bf16.mxu1 %v14453_v19  ;;  %v17355_v54 = vmax.f32 %v20436_v53, %v2706_v61  ;;  %v14472_v19 = vld [vmem:[%s20372_s3 + $0xc0] ss:$16 sps:$4 sm:$0xff]   ;;  %v14501_v61 = vld [vmem:[%s20372_s3 + $0x14c] ss:$16 sps:$4 sm:$0xff]  }
 0x336   :  { %v14513_v53 = vld [vmem:[%s20372_s3 + $0x18c] ss:$16 sps:$4 sm:$0xff]  }
 0x337   :  { %3794 = vmatmul.mubr.bf16.gmra.mrb[52].mxu0 %v17279_v40  ;;  %3940 = vmatmul.mubr.bf16.gmra.mrb[52].mxu1 %v17279_v40 }
 0x338   :  { %4575 = vmatpush1.bf16.msra.mxu0 %v14448_v48  ;;  %4721 = vmatpush1.bf16.msra.mxu1 %v14451_v9  ;;  %v2765_v48 = vmax.f32 %v16570_v6, %v2681_v52  ;;  %v17370_v9 = vpack.c.bf16 %v17355_v54, %v17177_v38  ;;  %v14481_v6 = vld [vmem:[%s20372_s3 + $0xe8] ss:$16 sps:$4 sm:$0xff]   ;;  %v14510_v52 = vld [vmem:[%s20372_s3 + $0x184] ss:$16 sps:$4 sm:$0xff]  }
 0x339   :  { %11817 = vmatprep.mubr.msk.bf16.mxu0 %vm3653_vm3, %v17294_v57  ;;  %11822 = vmatprep.mubr.msk.bf16.mxu1 %vm3653_vm3, %v17294_v57 }
 0x33a   :  { %4576 = vmatprep.subr.bf16.mxu0 %v14456_v22  ;;  %4722 = vmatprep.subr.bf16.mxu1 %v14459_v60  ;;  %v14480_v22 = vld [vmem:[%s20372_s3 + $0xe4] ss:$16 sps:$4 sm:$0xff]   ;;  %v2813_v38 = vpack.c.bf16 %v16889_v42, %v2765_v48  ;;  %v14484_v42 = vld [vmem:[%s20372_s3 + $0x100] ss:$16 sps:$4 sm:$0xff]  }
 0x33b   :  { %v14486_v60 = vld [vmem:[%s20372_s3 + $0x104] ss:$16 sps:$4 sm:$0xff]  }
 0x33c   :  { %4577 = vmatpush1.bf16.msra.mxu0 %v14454_v23  ;;  %4723 = vmatpush1.bf16.msra.mxu1 %v14457_v31  ;;  %v14478_v23 = vld [vmem:[%s20372_s3 + $0xe0] ss:$16 sps:$4 sm:$0xff]   ;;  %v14483_v31 = vld [vmem:[%s20372_s3 + $0xec] ss:$16 sps:$4 sm:$0xff]   ;;  %v14516_v48 = vld [vmem:[%s20372_s3 + $0x1a4] ss:$16 sps:$4 sm:$0xff]  }
 0x33d   :  { %4578 = vmatprep.subr.bf16.mxu0 %v14462_v27  ;;  %4724 = vmatprep.subr.bf16.mxu1 %v14465_v28  ;;  %v14487_v27 = vld [vmem:[%s20372_s3 + $0x108] ss:$16 sps:$4 sm:$0xff]   ;;  %v14492_v28 = vld [vmem:[%s20372_s3 + $0x124] ss:$16 sps:$4 sm:$0xff]  }
 0x33f   :  { %3804 = vmatmul.mubr.bf16.gmra.mrb[56].mxu0 %v17320_v55  ;;  %3950 = vmatmul.mubr.bf16.gmra.mrb[56].mxu1 %v17320_v55 }
 0x340   :  { %4579 = vmatpush1.bf16.msra.mxu0 %v14460_v33  ;;  %4725 = vmatpush1.bf16.msra.mxu1 %v14463_v51  ;;  %v14490_v33 = vld [vmem:[%s20372_s3 + $0x120] ss:$16 sps:$4 sm:$0xff]   ;;  %v14493_v51 = vld [vmem:[%s20372_s3 + $0x128] ss:$16 sps:$4 sm:$0xff]  }
 0x341   :  { %11818 = vmatprep.mubr.msk.bf16.mxu0 %vm3653_vm3, %v17339_v2  ;;  %11823 = vmatprep.mubr.msk.bf16.mxu1 %vm3653_vm3, %v17339_v2 }
 0x342   :  { %4580 = vmatprep.subr.bf16.mxu0 %v14468_v20  ;;  %4726 = vmatprep.subr.bf16.mxu1 %v14471_v12  ;;  %v14499_v20 = vld [vmem:[%s20372_s3 + $0x148] ss:$16 sps:$4 sm:$0xff]   ;;  %v14507_v12 = vld [vmem:[%s20372_s3 + $0x16c] ss:$16 sps:$4 sm:$0xff]  }
 0x344   :  { %4581 = vmatpush1.bf16.msra.mxu0 %v14466_v49  ;;  %4727 = vmatpush1.bf16.msra.mxu1 %v14469_v8  ;;  %v14496_v49 = vld [vmem:[%s20372_s3 + $0x140] ss:$16 sps:$4 sm:$0xff]   ;;  %v14504_v8 = vld [vmem:[%s20372_s3 + $0x164] ss:$16 sps:$4 sm:$0xff]  }
 0x345   :  { %4582 = vmatprep.subr.bf16.mxu0 %v14474_v32  ;;  %4728 = vmatprep.subr.bf16.mxu1 %v14477_v5  ;;  %v14502_v32 = vld [vmem:[%s20372_s3 + $0x160] ss:$16 sps:$4 sm:$0xff]   ;;  %v14505_v5 = vld [vmem:[%s20372_s3 + $0x168] ss:$16 sps:$4 sm:$0xff]  }
 0x347   :  { %3814 = vmatmul.mubr.bf16.gmra.mrb[60].mxu0 %v17370_v9  ;;  %3960 = vmatmul.mubr.bf16.gmra.mrb[60].mxu1 %v17370_v9 }
 0x348   :  { %4583 = vmatpush1.bf16.msra.mxu0 %v14472_v19  ;;  %4729 = vmatpush1.bf16.msra.mxu1 %v14475_v44  ;;  %v14508_v19 = vld [vmem:[%s20372_s3 + $0x180] ss:$16 sps:$4 sm:$0xff]   ;;  %v14511_v44 = vld [vmem:[%s20372_s3 + $0x188] ss:$16 sps:$4 sm:$0xff]  }
 0x349   :  { %4602 = vmatprep.mubr.bf16.mxu0 %v2813_v38  ;;  %4748 = vmatprep.mubr.bf16.mxu1 %v2813_v38  ;;  %v14525_v38 = vld [vmem:[%s20372_s3 + $0x1cc] ss:$16 sps:$4 sm:$0xff]  }
 0x34a   :  { %4584 = vmatprep.subr.bf16.mxu0 %v14480_v22  ;;  %4730 = vmatprep.subr.bf16.mxu1 %v14483_v31  ;;  %v14514_v22 = vld [vmem:[%s20372_s3 + $0x1a0] ss:$16 sps:$4 sm:$0xff]   ;;  %v14522_v31 = vld [vmem:[%s20372_s3 + $0x1c4] ss:$16 sps:$4 sm:$0xff]  }
 0x34c   :  { %4585 = vmatpush1.bf16.msra.mxu0 %v14478_v23  ;;  %4731 = vmatpush1.bf16.msra.mxu1 %v14481_v6  ;;  %v14519_v23 = vld [vmem:[%s20372_s3 + $0x1ac] ss:$16 sps:$4 sm:$0xff]   ;;  %v14517_v6 = vld [vmem:[%s20372_s3 + $0x1a8] ss:$16 sps:$4 sm:$0xff]  }
 0x34d   :  { %4586 = vmatprep.subr.bf16.mxu0 %v14486_v60  ;;  %4732 = vmatprep.subr.bf16.mxu1 %v14489_v17  ;;  %v14520_v60 = vld [vmem:[%s20372_s3 + $0x1c0] ss:$16 sps:$4 sm:$0xff]   ;;  %v14523_v17 = vld [vmem:[%s20372_s3 + $0x1c8] ss:$16 sps:$4 sm:$0xff]  }
 0x350   :  { %4587 = vmatpush1.bf16.msra.mxu0 %v14484_v42  ;;  %4733 = vmatpush1.bf16.msra.mxu1 %v14487_v27  ;;  %v2584_v42 = vpop.permute.xlu1 %2583  ;;  %v14528_v27 = vld [vmem:[%s20372_s3 + $0x1e4] ss:$16 sps:$4 sm:$0xff]  }
 0x351   :  { %4588 = vmatprep.subr.bf16.mxu0 %v14492_v28  ;;  %4734 = vmatprep.subr.bf16.mxu1 %v14495_v11  ;;  %v14531_v28 = vld [vmem:[%s20372_s3 + $0x1ec] ss:$16 sps:$4 sm:$0xff]   ;;  %v2680_v11 = vsel %vm2679_vm2, %v2584_v42, %v14145_v58  ;;  %v14562_v42 = vld [vmem:[%s20372_s3 + $0x2a0] ss:$16 sps:$4 sm:$0xff]  }
 0x352   :  { %v14537_v58 = vld [vmem:[%s20372_s3 + $0x20c] ss:$16 sps:$4 sm:$0xff]  }
 0x354   :  { %4589 = vmatpush1.bf16.msra.mxu0 %v14490_v33  ;;  %4735 = vmatpush1.bf16.msra.mxu1 %v14493_v51  ;;  %v14526_v33 = vld [vmem:[%s20372_s3 + $0x1e0] ss:$16 sps:$4 sm:$0xff]   ;;  %v14529_v51 = vld [vmem:[%s20372_s3 + $0x1e8] ss:$16 sps:$4 sm:$0xff]  }
 0x355   :  { %4590 = vmatprep.subr.bf16.mxu0 %v14498_v25  ;;  %4736 = vmatprep.subr.bf16.mxu1 %v14501_v61  ;;  %v2764_v25 = vmax.f32 %v16566_v4, %v2680_v11  ;;  %v14532_v61 = vld [vmem:[%s20372_s3 + $0x200] ss:$16 sps:$4 sm:$0xff]   ;;  %v14535_v4 = vld [vmem:[%s20372_s3 + $0x208] ss:$16 sps:$4 sm:$0xff]   ;;  %v2767_v11 = vmax.f32 %v16572_v7, %v17228_v10  ;;  %v14576_v7 = vld [vmem:[%s20372_s3 + $0x2e4] ss:$16 sps:$4 sm:$0xff]  }
 0x356   :  { %v14579_v10 = vld [vmem:[%s20372_s3 + $0x2ec] ss:$16 sps:$4 sm:$0xff]  }
 0x358   :  { %4591 = vmatpush1.bf16.msra.mxu0 %v14496_v49  ;;  %4737 = vmatpush1.bf16.msra.mxu1 %v14499_v20  ;;  %v2812_v49 = vpack.c.bf16 %v16881_v59, %v2764_v25  ;;  %v14540_v20 = vld [vmem:[%s20372_s3 + $0x224] ss:$16 sps:$4 sm:$0xff]   ;;  %v14538_v59 = vld [vmem:[%s20372_s3 + $0x220] ss:$16 sps:$4 sm:$0xff]   ;;  %v14571_v25 = vld [vmem:[%s20372_s3 + $0x2c8] ss:$16 sps:$4 sm:$0xff]  }
 0x359   :  { %4592 = vmatprep.subr.bf16.mxu0 %v14504_v8  ;;  %4738 = vmatprep.subr.bf16.mxu1 %v14507_v12  ;;  %v14543_v8 = vld [vmem:[%s20372_s3 + $0x22c] ss:$16 sps:$4 sm:$0xff]   ;;  %v14541_v12 = vld [vmem:[%s20372_s3 + $0x228] ss:$16 sps:$4 sm:$0xff]  }
 0x35c   :  { %4593 = vmatpush1.bf16.msra.mxu0 %v14502_v32  ;;  %4739 = vmatpush1.bf16.msra.mxu1 %v14505_v5  ;;  %v14546_v32 = vld [vmem:[%s20372_s3 + $0x244] ss:$16 sps:$4 sm:$0xff]   ;;  %v14549_v5 = vld [vmem:[%s20372_s3 + $0x24c] ss:$16 sps:$4 sm:$0xff]  }
 0x35d   :  { %4594 = vmatprep.subr.bf16.mxu0 %v14510_v52  ;;  %4740 = vmatprep.subr.bf16.mxu1 %v14513_v53  ;;  %v14544_v52 = vld [vmem:[%s20372_s3 + $0x240] ss:$16 sps:$4 sm:$0xff]   ;;  %v14547_v53 = vld [vmem:[%s20372_s3 + $0x248] ss:$16 sps:$4 sm:$0xff]  }
 0x360   :  { %4595 = vmatpush1.bf16.msra.mxu0 %v14508_v19  ;;  %4741 = vmatpush1.bf16.msra.mxu1 %v14511_v44  ;;  %v14552_v19 = vld [vmem:[%s20372_s3 + $0x264] ss:$16 sps:$4 sm:$0xff]   ;;  %v14555_v44 = vld [vmem:[%s20372_s3 + $0x26c] ss:$16 sps:$4 sm:$0xff]  }
 0x361   :  { %4596 = vmatprep.subr.bf16.mxu0 %v14516_v48  ;;  %4742 = vmatprep.subr.bf16.mxu1 %v14519_v23  ;;  %v14550_v48 = vld [vmem:[%s20372_s3 + $0x260] ss:$16 sps:$4 sm:$0xff]   ;;  %v14553_v23 = vld [vmem:[%s20372_s3 + $0x268] ss:$16 sps:$4 sm:$0xff]  }
 0x364   :  { %4597 = vmatpush1.bf16.msra.mxu0 %v14514_v22  ;;  %4743 = vmatpush1.bf16.msra.mxu1 %v14517_v6  ;;  %v14558_v22 = vld [vmem:[%s20372_s3 + $0x284] ss:$16 sps:$4 sm:$0xff]   ;;  %v14561_v6 = vld [vmem:[%s20372_s3 + $0x28c] ss:$16 sps:$4 sm:$0xff]  }
 0x365   :  { %4598 = vmatprep.subr.bf16.mxu0 %v14522_v31  ;;  %4744 = vmatprep.subr.bf16.mxu1 %v14525_v38  ;;  %v14556_v31 = vld [vmem:[%s20372_s3 + $0x280] ss:$16 sps:$4 sm:$0xff]   ;;  %v14559_v38 = vld [vmem:[%s20372_s3 + $0x288] ss:$16 sps:$4 sm:$0xff]  }
 0x368   :  { %4599 = vmatpush1.bf16.msra.mxu0 %v14520_v60  ;;  %4745 = vmatpush1.bf16.msra.mxu1 %v14523_v17  ;;  %v14564_v60 = vld [vmem:[%s20372_s3 + $0x2a4] ss:$16 sps:$4 sm:$0xff]   ;;  %v14567_v17 = vld [vmem:[%s20372_s3 + $0x2ac] ss:$16 sps:$4 sm:$0xff]  }
 0x369   :  { %4600 = vmatprep.subr.bf16.mxu0 %v14528_v27  ;;  %4746 = vmatprep.subr.bf16.mxu1 %v14531_v28  ;;  %v14565_v27 = vld [vmem:[%s20372_s3 + $0x2a8] ss:$16 sps:$4 sm:$0xff]   ;;  %v14570_v28 = vld [vmem:[%s20372_s3 + $0x2c4] ss:$16 sps:$4 sm:$0xff]  }
 0x36c   :  { %4601 = vmatpush1.bf16.msra.mxu0 %v14526_v33  ;;  %4747 = vmatpush1.bf16.msra.mxu1 %v14529_v51  ;;  %v14573_v33 = vld [vmem:[%s20372_s3 + $0x2cc] ss:$16 sps:$4 sm:$0xff]   ;;  %v14568_v51 = vld [vmem:[%s20372_s3 + $0x2c0] ss:$16 sps:$4 sm:$0xff]  }
 0x36d   :  { %4643 = vmatprep.subr.bf16.mxu0 %v14534_v43  ;;  %4789 = vmatprep.subr.bf16.mxu1 %v14537_v58  ;;  %v2815_v43 = vpack.c.bf16 %v17147_v56, %v2767_v11  ;;  %v14574_v56 = vld [vmem:[%s20372_s3 + $0x2e0] ss:$16 sps:$4 sm:$0xff]   ;;  %v14577_v58 = vld [vmem:[%s20372_s3 + $0x2e8] ss:$16 sps:$4 sm:$0xff]  }
 0x36e   :  { %v14610_v11 = vld [vmem:[%s20372_s3 + $0x740] ss:$16 sps:$4 sm:$0xff]  }
 0x36f   :  { %4603 = vmatmul.mubr.bf16.vlgmr.msra.gmra.mrb[48].mxu0 %v2812_v49  ;;  %4749 = vmatmul.mubr.bf16.vlgmr.msra.gmra.mrb[48].mxu1 %v2812_v49  ;;  %v14585_v49 = vld [vmem:[%s20372_s3 + $0x30c] ss:$16 sps:$4 sm:$0xff]  }
 0x370   :  { %4612 = vmatprep.mubr.bf16.mxu0 %v16935_v63  ;;  %4644 = vmatpush1.bf16.msra.mxu0 %v14532_v61  ;;  %v14582_v61 = vld [vmem:[%s20372_s3 + $0x304] ss:$16 sps:$4 sm:$0xff]  }
 0x371   :  { %4758 = vmatprep.mubr.bf16.mxu1 %v16935_v63  ;;  %4790 = vmatpush1.bf16.msra.mxu1 %v14535_v4  ;;  %v14580_v4 = vld [vmem:[%s20372_s3 + $0x300] ss:$16 sps:$4 sm:$0xff]  }
 0x372   :  { %4645 = vmatprep.subr.bf16.mxu0 %v14540_v20  ;;  %4791 = vmatprep.subr.bf16.mxu1 %v14543_v8  ;;  %v14583_v20 = vld [vmem:[%s20372_s3 + $0x308] ss:$16 sps:$4 sm:$0xff]   ;;  %v14588_v8 = vld [vmem:[%s20372_s3 + $0x324] ss:$16 sps:$4 sm:$0xff]  }
 0x374   :  { %4646 = vmatpush1.bf16.msra.mxu0 %v14538_v59  ;;  %v14591_v59 = vld [vmem:[%s20372_s3 + $0x32c] ss:$16 sps:$4 sm:$0xff]  }
 0x375   :  { %4792 = vmatpush1.bf16.msra.mxu1 %v14541_v12  ;;  %4647 = vmatprep.subr.bf16.mxu0 %v14546_v32  ;;  %v14586_v12 = vld [vmem:[%s20372_s3 + $0x320] ss:$16 sps:$4 sm:$0xff]   ;;  %v14589_v32 = vld [vmem:[%s20372_s3 + $0x328] ss:$16 sps:$4 sm:$0xff]  }
 0x376   :  { %4793 = vmatprep.subr.bf16.mxu1 %v14549_v5  ;;  %v14594_v5 = vld [vmem:[%s20372_s3 + $0x344] ss:$16 sps:$4 sm:$0xff]  }
 0x377   :  { %4613 = vmatmul.mubr.bf16.gmra.mrb[52].mxu0 %v16964_v16  ;;  %4759 = vmatmul.mubr.bf16.gmra.mrb[52].mxu1 %v16964_v16 }
 0x378   :  { %4622 = vmatprep.mubr.bf16.mxu0 %v17006_v50  ;;  %4648 = vmatpush1.bf16.msra.mxu0 %v14544_v52  ;;  %v14597_v52 = vld [vmem:[%s20372_s3 + $0x34c] ss:$16 sps:$4 sm:$0xff]  }
 0x379   :  { %4768 = vmatprep.mubr.bf16.mxu1 %v17006_v50  ;;  %4794 = vmatpush1.bf16.msra.mxu1 %v14547_v53  ;;  %v14592_v53 = vld [vmem:[%s20372_s3 + $0x340] ss:$16 sps:$4 sm:$0xff]  }
 0x37a   :  { %4649 = vmatprep.subr.bf16.mxu0 %v14552_v19  ;;  %4795 = vmatprep.subr.bf16.mxu1 %v14555_v44  ;;  %v14595_v19 = vld [vmem:[%s20372_s3 + $0x348] ss:$16 sps:$4 sm:$0xff]   ;;  %v14600_v44 = vld [vmem:[%s20372_s3 + $0x364] ss:$16 sps:$4 sm:$0xff]  }
 0x37c   :  { %4650 = vmatpush1.bf16.msra.mxu0 %v14550_v48  ;;  %v14603_v48 = vld [vmem:[%s20372_s3 + $0x36c] ss:$16 sps:$4 sm:$0xff]  }
 0x37d   :  { %4796 = vmatpush1.bf16.msra.mxu1 %v14553_v23  ;;  %4651 = vmatprep.subr.bf16.mxu0 %v14558_v22  ;;  %v14598_v23 = vld [vmem:[%s20372_s3 + $0x360] ss:$16 sps:$4 sm:$0xff]   ;;  %v14601_v22 = vld [vmem:[%s20372_s3 + $0x368] ss:$16 sps:$4 sm:$0xff]  }
 0x37e   :  { %4797 = vmatprep.subr.bf16.mxu1 %v14561_v6  ;;  %v14604_v6 = vld [vmem:[%s20372_s3 + $0x384] ss:$16 sps:$4 sm:$0x3f]  }
 0x37f   :  { %4623 = vmatmul.mubr.bf16.gmra.mrb[56].mxu0 %v17050_v35  ;;  %4769 = vmatmul.mubr.bf16.gmra.mrb[56].mxu1 %v17050_v35 }
 0x380   :  { %4632 = vmatprep.mubr.bf16.mxu0 %v17098_v34  ;;  %4652 = vmatpush1.bf16.msra.mxu0 %v14556_v31  ;;  %v14608_v31 = vld [vmem:[%s20372_s3 + $0x380] ss:$16 sps:$4 sm:$0x3f]  }
 0x381   :  { %4778 = vmatprep.mubr.bf16.mxu1 %v17098_v34  ;;  %4798 = vmatpush1.bf16.msra.mxu1 %v14559_v38  ;;  %v14606_v38 = vld [vmem:[%s20372_s3 + $0x38c] ss:$16 sps:$4 sm:$0x3f]  }
 0x382   :  { %4653 = vmatprep.subr.bf16.mxu0 %v14564_v60  ;;  %4799 = vmatprep.subr.bf16.mxu1 %v14567_v17  ;;  %v14609_v60 = vld [vmem:[%s20372_s3 + $0x388] ss:$16 sps:$4 sm:$0x3f]   ;;  %v4559_v17 = vsel %vm175_vm0, %v14608_v31, 0  ;;  %v14657_v31 = vld [vmem:[%s20372_s3 + $0x82c] ss:$16 sps:$4 sm:$0xff]  }
 0x384   :  { %4654 = vmatpush1.bf16.msra.mxu0 %v14562_v42  ;;  %v14612_v42 = vld [vmem:[%s20372_s3 + $0x744] ss:$16 sps:$4 sm:$0xff]  }
 0x385   :  { %4800 = vmatpush1.bf16.msra.mxu1 %v14565_v27  ;;  %4655 = vmatprep.subr.bf16.mxu0 %v14570_v28  ;;  %v4565_v27 = vsel %vm175_vm0, %v14609_v60, 0  ;;  %v14615_v28 = vld [vmem:[%s20372_s3 + $0x74c] ss:$16 sps:$4 sm:$0xff]   ;;  %v14655_v60 = vld [vmem:[%s20372_s3 + $0x828] ss:$16 sps:$4 sm:$0xff]  }
 0x386   :  { %4801 = vmatprep.subr.bf16.mxu1 %v14573_v33  ;;  %v14613_v33 = vld [vmem:[%s20372_s3 + $0x748] ss:$16 sps:$4 sm:$0xff]  }
 0x387   :  { %4633 = vmatmul.mubr.bf16.gmra.mrb[60].mxu0 %v17125_v15  ;;  %4779 = vmatmul.mubr.bf16.gmra.mrb[60].mxu1 %v17125_v15 }
 0x388   :  { %4656 = vmatpush1.bf16.msra.mxu0 %v14568_v51  ;;  %11941 = vmatprep.mubr.msk.bf16.mxu0 %vm3653_vm3, %v2815_v43  ;;  %v14618_v51 = vld [vmem:[%s20372_s3 + $0x764] ss:$16 sps:$4 sm:$0xff]  }
 0x389   :  { %4802 = vmatpush1.bf16.msra.mxu1 %v14571_v25  ;;  %11946 = vmatprep.mubr.msk.bf16.mxu1 %vm3653_vm3, %v2815_v43  ;;  %v14621_v25 = vld [vmem:[%s20372_s3 + $0x76c] ss:$16 sps:$4 sm:$0xff]   ;;  %v14616_v43 = vld [vmem:[%s20372_s3 + $0x760] ss:$16 sps:$4 sm:$0xff]  }
 0x38a   :  { %4657 = vmatprep.subr.bf16.mxu0 %v14576_v7  ;;  %4803 = vmatprep.subr.bf16.mxu1 %v14579_v10  ;;  %v14619_v7 = vld [vmem:[%s20372_s3 + $0x768] ss:$16 sps:$4 sm:$0xff]   ;;  %v14627_v10 = vld [vmem:[%s20372_s3 + $0x78c] ss:$16 sps:$4 sm:$0xff]  }
 0x38c   :  { %4658 = vmatpush1.bf16.msra.mxu0 %v14574_v56  ;;  %v14622_v56 = vld [vmem:[%s20372_s3 + $0x780] ss:$16 sps:$4 sm:$0xff]  }
 0x38d   :  { %4804 = vmatpush1.bf16.msra.mxu1 %v14577_v58  ;;  %4659 = vmatprep.subr.bf16.mxu0 %v14582_v61  ;;  %v14625_v58 = vld [vmem:[%s20372_s3 + $0x788] ss:$16 sps:$4 sm:$0xff]   ;;  %v14630_v61 = vld [vmem:[%s20372_s3 + $0x7a4] ss:$16 sps:$4 sm:$0xff]  }
 0x38e   :  { %4805 = vmatprep.subr.bf16.mxu1 %v14585_v49  ;;  %v14633_v49 = vld [vmem:[%s20372_s3 + $0x7ac] ss:$16 sps:$4 sm:$0xff]  }
 0x390   :  { %4660 = vmatpush1.bf16.msra.mxu0 %v14580_v4  ;;  %v14628_v4 = vld [vmem:[%s20372_s3 + $0x7a0] ss:$16 sps:$4 sm:$0xff]  }
 0x391   :  { %4806 = vmatpush1.bf16.msra.mxu1 %v14583_v20  ;;  %4661 = vmatprep.subr.bf16.mxu0 %v14588_v8  ;;  %v14631_v20 = vld [vmem:[%s20372_s3 + $0x7a8] ss:$16 sps:$4 sm:$0xff]   ;;  %v14636_v8 = vld [vmem:[%s20372_s3 + $0x7c4] ss:$16 sps:$4 sm:$0xff]  }
 0x392   :  { %4807 = vmatprep.subr.bf16.mxu1 %v14591_v59  ;;  %v14639_v59 = vld [vmem:[%s20372_s3 + $0x7cc] ss:$16 sps:$4 sm:$0xff]  }
 0x394   :  { %4662 = vmatpush1.bf16.msra.mxu0 %v14586_v12  ;;  %v14634_v12 = vld [vmem:[%s20372_s3 + $0x7c0] ss:$16 sps:$4 sm:$0xff]  }
 0x395   :  { %4808 = vmatpush1.bf16.msra.mxu1 %v14589_v32  ;;  %4663 = vmatprep.subr.bf16.mxu0 %v14594_v5  ;;  %v14637_v32 = vld [vmem:[%s20372_s3 + $0x7c8] ss:$16 sps:$4 sm:$0xff]   ;;  %v14642_v5 = vld [vmem:[%s20372_s3 + $0x7e4] ss:$16 sps:$4 sm:$0xff]  }
 0x396   :  { %4809 = vmatprep.subr.bf16.mxu1 %v14597_v52  ;;  %v14645_v52 = vld [vmem:[%s20372_s3 + $0x7ec] ss:$16 sps:$4 sm:$0xff]  }
 0x398   :  { %4664 = vmatpush1.bf16.msra.mxu0 %v14592_v53  ;;  %v14640_v53 = vld [vmem:[%s20372_s3 + $0x7e0] ss:$16 sps:$4 sm:$0xff]  }
 0x399   :  { %4810 = vmatpush1.bf16.msra.mxu1 %v14595_v19  ;;  %4665 = vmatprep.subr.bf16.mxu0 %v14600_v44  ;;  %v14643_v19 = vld [vmem:[%s20372_s3 + $0x7e8] ss:$16 sps:$4 sm:$0xff]   ;;  %v14648_v44 = vld [vmem:[%s20372_s3 + $0x804] ss:$16 sps:$4 sm:$0xff]  }
 0x39a   :  { %4811 = vmatprep.subr.bf16.mxu1 %v14603_v48  ;;  %v14651_v48 = vld [vmem:[%s20372_s3 + $0x80c] ss:$16 sps:$4 sm:$0xff]  }
 0x39c   :  { %4666 = vmatpush1.bf16.msra.mxu0 %v14598_v23  ;;  %v14646_v23 = vld [vmem:[%s20372_s3 + $0x800] ss:$16 sps:$4 sm:$0xff]  }
 0x39d   :  { %4812 = vmatpush1.bf16.msra.mxu1 %v14601_v22  ;;  %11940 = vmatprep.subr.msk.bf16.mxu0 %vm175_vm0, %v14604_v6  ;;  %v14649_v22 = vld [vmem:[%s20372_s3 + $0x808] ss:$16 sps:$4 sm:$0xff]   ;;  %v14654_v6 = vld [vmem:[%s20372_s3 + $0x824] ss:$16 sps:$4 sm:$0xff]  }
 0x39e   :  { %11945 = vmatprep.subr.msk.bf16.mxu1 %vm175_vm0, %v14606_v38  ;;  %v14652_v38 = vld [vmem:[%s20372_s3 + $0x820] ss:$16 sps:$4 sm:$0xff]  }
 0x3a0   :  { %4668 = vmatpush1.bf16.msra.mxu0 %v4559_v17  ;;  %v14660_v17 = vld [vmem:[%s20372_s3 + $0x844] ss:$16 sps:$4 sm:$0xff]  }
 0x3a1   :  { %4814 = vmatpush1.bf16.msra.mxu1 %v4565_v27  ;;  %5574 = vmatprep.subr.bf16.mxu0 %v14612_v42  ;;  %v14663_v42 = vld [vmem:[%s20372_s3 + $0x84c] ss:$16 sps:$4 sm:$0xff]   ;;  %v14661_v27 = vld [vmem:[%s20372_s3 + $0x848] ss:$16 sps:$4 sm:$0xff]  }
 0x3a2   :  { %5720 = vmatprep.subr.bf16.mxu1 %v14615_v28  ;;  %v14666_v28 = vld [vmem:[%s20372_s3 + $0x864] ss:$16 sps:$4 sm:$0xff]  }
 0x3a3   :  { %4676 = vmatmul.mubr.bf16.vlgmr.msra.gmra.mrb[48].mxu0 %v17243_v39 }
 0x3a4   :  { %4822 = vmatmul.mubr.bf16.vlgmr.msra.gmra.mrb[48].mxu1 %v17243_v39  ;;  %11942 = vmatprep.mubr.msk.bf16.mxu0 %vm3653_vm3, %v17153_v21  ;;  %v14624_v39 = vld [vmem:[%s20372_s3 + $0x784] ss:$16 sps:$4 sm:$0xff]  }
 0x3a5   :  { %11947 = vmatprep.mubr.msk.bf16.mxu1 %vm3653_vm3, %v17153_v21  ;;  %5575 = vmatpush1.bf16.msra.mxu0 %v14610_v11  ;;  %v14669_v11 = vld [vmem:[%s20372_s3 + $0x86c] ss:$16 sps:$4 sm:$0xff]  }
 0x3a6   :  { %5721 = vmatpush1.bf16.msra.mxu1 %v14613_v33  ;;  %5576 = vmatprep.subr.bf16.mxu0 %v14618_v51  ;;  %v14664_v33 = vld [vmem:[%s20372_s3 + $0x860] ss:$16 sps:$4 sm:$0xff]   ;;  %v14667_v51 = vld [vmem:[%s20372_s3 + $0x868] ss:$16 sps:$4 sm:$0xff]  }
 0x3a7   :  { %5722 = vmatprep.subr.bf16.mxu1 %v14621_v25  ;;  %v14672_v25 = vld [vmem:[%s20372_s3 + $0x884] ss:$16 sps:$4 sm:$0xff]  }
 0x3a9   :  { %5577 = vmatpush1.bf16.msra.mxu0 %v14616_v43  ;;  %v14675_v43 = vld [vmem:[%s20372_s3 + $0x88c] ss:$16 sps:$4 sm:$0xff]  }
 0x3aa   :  { %5723 = vmatpush1.bf16.msra.mxu1 %v14619_v7  ;;  %5578 = vmatprep.subr.bf16.mxu0 %v14624_v39  ;;  %v14670_v7 = vld [vmem:[%s20372_s3 + $0x880] ss:$16 sps:$4 sm:$0xff]   ;;  %v14673_v39 = vld [vmem:[%s20372_s3 + $0x888] ss:$16 sps:$4 sm:$0xff]  }
 0x3ab   :  { %4686 = vmatmul.mubr.bf16.gmra.mrb[52].mxu0 %v17266_v41  ;;  %5724 = vmatprep.subr.bf16.mxu1 %v14627_v10  ;;  %v14678_v10 = vld [vmem:[%s20372_s3 + $0x8a4] ss:$16 sps:$4 sm:$0xff]  }
 0x3ac   :  { %4832 = vmatmul.mubr.bf16.gmra.mrb[52].mxu1 %v17266_v41  ;;  %11943 = vmatprep.mubr.msk.bf16.mxu0 %vm3653_vm3, %v17222_v30 }
 0x3ad   :  { %11948 = vmatprep.mubr.msk.bf16.mxu1 %vm3653_vm3, %v17222_v30  ;;  %5579 = vmatpush1.bf16.msra.mxu0 %v14622_v56  ;;  %v14681_v56 = vld [vmem:[%s20372_s3 + $0x8ac] ss:$16 sps:$4 sm:$0xff]  }
 0x3ae   :  { %5725 = vmatpush1.bf16.msra.mxu1 %v14625_v58  ;;  %5580 = vmatprep.subr.bf16.mxu0 %v14630_v61  ;;  %v14676_v58 = vld [vmem:[%s20372_s3 + $0x8a0] ss:$16 sps:$4 sm:$0xff]   ;;  %v14679_v61 = vld [vmem:[%s20372_s3 + $0x8a8] ss:$16 sps:$4 sm:$0xff]  }
 0x3af   :  { %5726 = vmatprep.subr.bf16.mxu1 %v14633_v49  ;;  %v14684_v49 = vld [vmem:[%s20372_s3 + $0x8c4] ss:$16 sps:$4 sm:$0xff]  }
 0x3b1   :  { %5581 = vmatpush1.bf16.msra.mxu0 %v14628_v4  ;;  %v14687_v4 = vld [vmem:[%s20372_s3 + $0x8cc] ss:$16 sps:$4 sm:$0xff]  }
 0x3b2   :  { %5727 = vmatpush1.bf16.msra.mxu1 %v14631_v20  ;;  %5582 = vmatprep.subr.bf16.mxu0 %v14636_v8  ;;  %v14682_v20 = vld [vmem:[%s20372_s3 + $0x8c0] ss:$16 sps:$4 sm:$0xff]   ;;  %v14685_v8 = vld [vmem:[%s20372_s3 + $0x8c8] ss:$16 sps:$4 sm:$0xff]  }
 0x3b3   :  { %4696 = vmatmul.mubr.bf16.gmra.mrb[56].mxu0 %v17220_v24  ;;  %5728 = vmatprep.subr.bf16.mxu1 %v14639_v59  ;;  %v14690_v59 = vld [vmem:[%s20372_s3 + $0x8e4] ss:$16 sps:$4 sm:$0xff]  }
 0x3b4   :  { %4842 = vmatmul.mubr.bf16.gmra.mrb[56].mxu1 %v17220_v24  ;;  %11944 = vmatprep.mubr.msk.bf16.mxu0 %vm3653_vm3, %v17210_v36 }
 0x3b5   :  { %11949 = vmatprep.mubr.msk.bf16.mxu1 %vm3653_vm3, %v17210_v36  ;;  %5583 = vmatpush1.bf16.msra.mxu0 %v14634_v12  ;;  %v14693_v12 = vld [vmem:[%s20372_s3 + $0x8ec] ss:$16 sps:$4 sm:$0xff]  }
 0x3b6   :  { %5729 = vmatpush1.bf16.msra.mxu1 %v14637_v32  ;;  %5584 = vmatprep.subr.bf16.mxu0 %v14642_v5  ;;  %v14688_v32 = vld [vmem:[%s20372_s3 + $0x8e0] ss:$16 sps:$4 sm:$0xff]   ;;  %v14691_v5 = vld [vmem:[%s20372_s3 + $0x8e8] ss:$16 sps:$4 sm:$0xff]  }
 0x3b7   :  { %5730 = vmatprep.subr.bf16.mxu1 %v14645_v52  ;;  %v14696_v52 = vld [vmem:[%s20372_s3 + $0x904] ss:$16 sps:$4 sm:$0xff]  }
 0x3b9   :  { %5585 = vmatpush1.bf16.msra.mxu0 %v14640_v53  ;;  %v14699_v53 = vld [vmem:[%s20372_s3 + $0x90c] ss:$16 sps:$4 sm:$0xff]  }
 0x3ba   :  { %5731 = vmatpush1.bf16.msra.mxu1 %v14643_v19  ;;  %5586 = vmatprep.subr.bf16.mxu0 %v14648_v44  ;;  %v14694_v19 = vld [vmem:[%s20372_s3 + $0x900] ss:$16 sps:$4 sm:$0xff]   ;;  %v14697_v44 = vld [vmem:[%s20372_s3 + $0x908] ss:$16 sps:$4 sm:$0xff]  }
 0x3bb   :  { %4706 = vmatmul.mubr.bf16.gmra.mrb[60].mxu0 %v17216_v46  ;;  %5732 = vmatprep.subr.bf16.mxu1 %v14651_v48  ;;  %v14702_v48 = vld [vmem:[%s20372_s3 + $0x924] ss:$16 sps:$4 sm:$0xff]  }
 0x3bc   :  { %4852 = vmatmul.mubr.bf16.gmra.mrb[60].mxu1 %v17216_v46  ;;  %5606 = vmatprep.mubr.bf16.mxu0 %v16935_v63 }
 0x3bd   :  { %5587 = vmatpush1.bf16.msra.mxu0 %v14646_v23  ;;  %5752 = vmatprep.mubr.bf16.mxu1 %v16935_v63  ;;  %v14658_v63 = vld [vmem:[%s20372_s3 + $0x840] ss:$16 sps:$4 sm:$0xff]   ;;  %v14705_v23 = vld [vmem:[%s20372_s3 + $0x92c] ss:$16 sps:$4 sm:$0xff]  }
 0x3be   :  { %5733 = vmatpush1.bf16.msra.mxu1 %v14649_v22  ;;  %5588 = vmatprep.subr.bf16.mxu0 %v14654_v6  ;;  %v14700_v22 = vld [vmem:[%s20372_s3 + $0x920] ss:$16 sps:$4 sm:$0xff]   ;;  %v14703_v6 = vld [vmem:[%s20372_s3 + $0x928] ss:$16 sps:$4 sm:$0xff]  }
 0x3bf   :  { %5734 = vmatprep.subr.bf16.mxu1 %v14657_v31  ;;  %v14708_v31 = vld [vmem:[%s20372_s3 + $0x944] ss:$16 sps:$4 sm:$0xff]  }
 0x3c1   :  { %5589 = vmatpush1.bf16.msra.mxu0 %v14652_v38  ;;  %v14711_v38 = vld [vmem:[%s20372_s3 + $0x94c] ss:$16 sps:$4 sm:$0xff]  }
 0x3c2   :  { %5735 = vmatpush1.bf16.msra.mxu1 %v14655_v60  ;;  %5590 = vmatprep.subr.bf16.mxu0 %v14660_v17  ;;  %v14706_v60 = vld [vmem:[%s20372_s3 + $0x940] ss:$16 sps:$4 sm:$0xff]   ;;  %v14709_v17 = vld [vmem:[%s20372_s3 + $0x948] ss:$16 sps:$4 sm:$0xff]  }
 0x3c3   :  { %5736 = vmatprep.subr.bf16.mxu1 %v14663_v42  ;;  %v14714_v42 = vld [vmem:[%s20372_s3 + $0x964] ss:$16 sps:$4 sm:$0xff]  }
 0x3c5   :  { %5591 = vmatpush1.bf16.msra.mxu0 %v14658_v63  ;;  %v14717_v63 = vld [vmem:[%s20372_s3 + $0x96c] ss:$16 sps:$4 sm:$0xff]  }
 0x3c6   :  { %5737 = vmatpush1.bf16.msra.mxu1 %v14661_v27  ;;  %5592 = vmatprep.subr.bf16.mxu0 %v14666_v28  ;;  %v17898_v27 = vpop.permute.xlu1 %14148  ;;  %v14712_v28 = vld [vmem:[%s20372_s3 + $0x960] ss:$16 sps:$4 sm:$0xff]  }
 0x3c7   :  { %5738 = vmatprep.subr.bf16.mxu1 %v14669_v11  ;;  %v14715_v11 = vld [vmem:[%s20372_s3 + $0x968] ss:$16 sps:$4 sm:$0xff]  }
 0x3c9   :  { %5593 = vmatpush1.bf16.msra.mxu0 %v14664_v33  ;;  %v14720_v33 = vld [vmem:[%s20372_s3 + $0x984] ss:$16 sps:$4 sm:$0xff]  }
 0x3ca   :  { %5739 = vmatpush1.bf16.msra.mxu1 %v14667_v51  ;;  %5594 = vmatprep.subr.bf16.mxu0 %v14672_v25  ;;  %v14150_v51 = vunpack.i.l.bf16 %v17898_v27  ;;  %v14723_v25 = vld [vmem:[%s20372_s3 + $0x98c] ss:$16 sps:$4 sm:$0xff]  }
 0x3cb   :  { %5740 = vmatprep.subr.bf16.mxu1 %v14675_v43  ;;  %v14718_v43 = vld [vmem:[%s20372_s3 + $0x980] ss:$16 sps:$4 sm:$0xff]  }
 0x3cd   :  { %5595 = vmatpush1.bf16.msra.mxu0 %v14670_v7  ;;  %v14721_v7 = vld [vmem:[%s20372_s3 + $0x988] ss:$16 sps:$4 sm:$0xff]  }
 0x3ce   :  { %5741 = vmatpush1.bf16.msra.mxu1 %v14673_v39  ;;  %5596 = vmatprep.subr.bf16.mxu0 %v14678_v10  ;;  %v14726_v39 = vld [vmem:[%s20372_s3 + $0x9a4] ss:$16 sps:$4 sm:$0xff]  }
 0x3cf   :  { %5742 = vmatprep.subr.bf16.mxu1 %v14681_v56  ;;  %v14729_v56 = vld [vmem:[%s20372_s3 + $0x9ac] ss:$16 sps:$4 sm:$0xff]  }
 0x3d1   :  { %5597 = vmatpush1.bf16.msra.mxu0 %v14676_v58  ;;  %v14724_v58 = vld [vmem:[%s20372_s3 + $0x9a0] ss:$16 sps:$4 sm:$0xff]  }
 0x3d2   :  { %5743 = vmatpush1.bf16.msra.mxu1 %v14679_v61  ;;  %5598 = vmatprep.subr.bf16.mxu0 %v14684_v49  ;;  %v14727_v49 = vld [vmem:[%s20372_s3 + $0x9a8] ss:$16 sps:$4 sm:$0xff]  }
 0x3d3   :  { %5744 = vmatprep.subr.bf16.mxu1 %v14687_v4  ;;  %v14732_v4 = vld [vmem:[%s20372_s3 + $0x9c4] ss:$16 sps:$4 sm:$0xff]  }
 0x3d5   :  { %5599 = vmatpush1.bf16.msra.mxu0 %v14682_v20  ;;  %v2656_v20 = vpop.permute.xlu0 %2655 }
 0x3d6   :  { %5745 = vmatpush1.bf16.msra.mxu1 %v14685_v8  ;;  %5600 = vmatprep.subr.bf16.mxu0 %v14690_v59  ;;  %v14735_v8 = vld [vmem:[%s20372_s3 + $0x9cc] ss:$16 sps:$4 sm:$0xff]   ;;  %v2707_v59 = vsel %vm2679_vm2, %v2656_v20, %v14150_v51 }
 0x3d7   :  { %5746 = vmatprep.subr.bf16.mxu1 %v14693_v12  ;;  %v14733_v12 = vld [vmem:[%s20372_s3 + $0x9c8] ss:$16 sps:$4 sm:$0xff]   ;;  %v14780_v20 = vld [vmem:[%s20372_s3 + $0xacc] ss:$16 sps:$4 sm:$0x3f]  }
 0x3d9   :  { %5601 = vmatpush1.bf16.msra.mxu0 %v14688_v32 }
 0x3da   :  { %5747 = vmatpush1.bf16.msra.mxu1 %v14691_v5  ;;  %5602 = vmatprep.subr.bf16.mxu0 %v14696_v52  ;;  %v14738_v5 = vld [vmem:[%s20372_s3 + $0x9e4] ss:$16 sps:$4 sm:$0xff]   ;;  %v14741_v52 = vld [vmem:[%s20372_s3 + $0x9ec] ss:$16 sps:$4 sm:$0xff]  }
 0x3db   :  { %5748 = vmatprep.subr.bf16.mxu1 %v14699_v53  ;;  %v17972_v53 = vmax.f32 %v16792_v37, %v2707_v59  ;;  %v14747_v37 = vld [vmem:[%s20372_s3 + $0xa0c] ss:$16 sps:$4 sm:$0xff]   ;;  %v14786_v59 = vld [vmem:[%s20372_s3 + $0xae4] ss:$16 sps:$4 sm:$0xff]  }
 0x3dd   :  { %5603 = vmatpush1.bf16.msra.mxu0 %v14694_v19  ;;  %v14739_v19 = vld [vmem:[%s20372_s3 + $0x9e8] ss:$16 sps:$4 sm:$0xff]  }
 0x3de   :  { %5749 = vmatpush1.bf16.msra.mxu1 %v14697_v44  ;;  %5604 = vmatprep.subr.bf16.mxu0 %v14702_v48  ;;  %v14744_v44 = vld [vmem:[%s20372_s3 + $0xa04] ss:$16 sps:$4 sm:$0xff]   ;;  %v17989_v48 = vpack.c.bf16 %v17972_v53, %v17131_v1  ;;  %v14753_v1 = vld [vmem:[%s20372_s3 + $0xa2c] ss:$16 sps:$4 sm:$0xff]  }
 0x3df   :  { %5750 = vmatprep.subr.bf16.mxu1 %v14705_v23  ;;  %v14742_v23 = vld [vmem:[%s20372_s3 + $0xa00] ss:$16 sps:$4 sm:$0xff]  }
 0x3e1   :  { %5605 = vmatpush1.bf16.msra.mxu0 %v14700_v22  ;;  %v14745_v22 = vld [vmem:[%s20372_s3 + $0xa08] ss:$16 sps:$4 sm:$0xff]  }
 0x3e2   :  { %5751 = vmatpush1.bf16.msra.mxu1 %v14703_v6  ;;  %5647 = vmatprep.subr.bf16.mxu0 %v14708_v31  ;;  %v14750_v6 = vld [vmem:[%s20372_s3 + $0xa24] ss:$16 sps:$4 sm:$0xff]   ;;  %v14748_v31 = vld [vmem:[%s20372_s3 + $0xa20] ss:$16 sps:$4 sm:$0xff]  }
 0x3e3   :  { %5793 = vmatprep.subr.bf16.mxu1 %v14711_v38  ;;  %v14751_v38 = vld [vmem:[%s20372_s3 + $0xa28] ss:$16 sps:$4 sm:$0xff]  }
 0x3e4   :  { %5607 = vmatmul.mubr.bf16.vlgmr.msra.gmra.mrb[48].mxu0 %v16964_v16 }
 0x3e5   :  { %5753 = vmatmul.mubr.bf16.vlgmr.msra.gmra.mrb[48].mxu1 %v16964_v16  ;;  %5616 = vmatprep.mubr.bf16.mxu0 %v17006_v50  ;;  %v14151_v16 = vunpack.i.h.bf16 %v17898_v27  ;;  %v14819_v27 = vld [vmem:[%s20372_s3 + $0xb8c] ss:$16 sps:$4 sm:$0xff]  }
 0x3e6   :  { %5648 = vmatpush1.bf16.msra.mxu0 %v14706_v60  ;;  %5762 = vmatprep.mubr.bf16.mxu1 %v17006_v50  ;;  %v14756_v60 = vld [vmem:[%s20372_s3 + $0xa44] ss:$16 sps:$4 sm:$0xff]  }
 0x3e7   :  { %5794 = vmatpush1.bf16.msra.mxu1 %v14709_v17  ;;  %5649 = vmatprep.subr.bf16.mxu0 %v14714_v42  ;;  %v2708_v10 = vsel %vm2679_vm2, %v14150_v51, %v14151_v16  ;;  %v14759_v17 = vld [vmem:[%s20372_s3 + $0xa4c] ss:$16 sps:$4 sm:$0xff]   ;;  %v14757_v42 = vld [vmem:[%s20372_s3 + $0xa48] ss:$16 sps:$4 sm:$0xff]   ;;  %v14768_v51 = vld [vmem:[%s20372_s3 + $0xa84] ss:$16 sps:$4 sm:$0xff]  }
 0x3e8   :  { %5795 = vmatprep.subr.bf16.mxu1 %v14717_v63  ;;  %v17940_v61 = vmax.f32 %v16799_v18, %v2708_v10  ;;  %v14730_v18 = vld [vmem:[%s20372_s3 + $0x9c0] ss:$16 sps:$4 sm:$0xff]   ;;  %v14762_v63 = vld [vmem:[%s20372_s3 + $0xa64] ss:$16 sps:$4 sm:$0xff]   ;;  %v14777_v10 = vld [vmem:[%s20372_s3 + $0xaac] ss:$16 sps:$4 sm:$0xff]  }
 0x3ea   :  { %5650 = vmatpush1.bf16.msra.mxu0 %v14712_v28  ;;  %v17960_v32 = vpack.c.bf16 %v17940_v61, %v17134_v45  ;;  %v14736_v45 = vld [vmem:[%s20372_s3 + $0x9e0] ss:$16 sps:$4 sm:$0xff]   ;;  %v14765_v28 = vld [vmem:[%s20372_s3 + $0xa6c] ss:$16 sps:$4 sm:$0xff]  }
 0x3eb   :  { %5796 = vmatpush1.bf16.msra.mxu1 %v14715_v11  ;;  %5651 = vmatprep.subr.bf16.mxu0 %v14720_v33  ;;  %v14760_v11 = vld [vmem:[%s20372_s3 + $0xa60] ss:$16 sps:$4 sm:$0xff]   ;;  %v14763_v33 = vld [vmem:[%s20372_s3 + $0xa68] ss:$16 sps:$4 sm:$0xff]  }
 0x3ec   :  { %5617 = vmatmul.mubr.bf16.gmra.mrb[52].mxu0 %v17050_v35  ;;  %5797 = vmatprep.subr.bf16.mxu1 %v14723_v25  ;;  %v14771_v25 = vld [vmem:[%s20372_s3 + $0xa8c] ss:$16 sps:$4 sm:$0xff]  }
 0x3ed   :  { %5763 = vmatmul.mubr.bf16.gmra.mrb[52].mxu1 %v17050_v35  ;;  %5626 = vmatprep.mubr.bf16.mxu0 %v17098_v34 }
 0x3ee   :  { %5652 = vmatpush1.bf16.msra.mxu0 %v14718_v43  ;;  %5772 = vmatprep.mubr.bf16.mxu1 %v17098_v34  ;;  %v14766_v43 = vld [vmem:[%s20372_s3 + $0xa80] ss:$16 sps:$4 sm:$0xff]  }
 0x3ef   :  { %5798 = vmatpush1.bf16.msra.mxu1 %v14721_v7  ;;  %5653 = vmatprep.subr.bf16.mxu0 %v14726_v39  ;;  %v14769_v7 = vld [vmem:[%s20372_s3 + $0xa88] ss:$16 sps:$4 sm:$0xff]   ;;  %v14774_v39 = vld [vmem:[%s20372_s3 + $0xaa4] ss:$16 sps:$4 sm:$0xff]  }
 0x3f0   :  { %5799 = vmatprep.subr.bf16.mxu1 %v14729_v56  ;;  %v14772_v56 = vld [vmem:[%s20372_s3 + $0xaa0] ss:$16 sps:$4 sm:$0xff]  }
 0x3f2   :  { %5654 = vmatpush1.bf16.msra.mxu0 %v14724_v58  ;;  %v14775_v58 = vld [vmem:[%s20372_s3 + $0xaa8] ss:$16 sps:$4 sm:$0xff]  }
 0x3f3   :  { %5800 = vmatpush1.bf16.msra.mxu1 %v14727_v49  ;;  %5655 = vmatprep.subr.bf16.mxu0 %v14732_v4  ;;  %v14778_v49 = vld [vmem:[%s20372_s3 + $0xac4] ss:$16 sps:$4 sm:$0x3f]   ;;  %v14782_v4 = vld [vmem:[%s20372_s3 + $0xac0] ss:$16 sps:$4 sm:$0x3f]  }
 0x3f4   :  { %5627 = vmatmul.mubr.bf16.gmra.mrb[56].mxu0 %v17125_v15  ;;  %5801 = vmatprep.subr.bf16.mxu1 %v14735_v8  ;;  %v14783_v8 = vld [vmem:[%s20372_s3 + $0xac8] ss:$16 sps:$4 sm:$0x3f]  }
 0x3f5   :  { %5773 = vmatmul.mubr.bf16.gmra.mrb[56].mxu1 %v17125_v15  ;;  %5636 = vmatprep.mubr.bf16.mxu0 %v17960_v32 }
 0x3f6   :  { %5656 = vmatpush1.bf16.msra.mxu0 %v14730_v18  ;;  %5782 = vmatprep.mubr.bf16.mxu1 %v17960_v32  ;;  %v5563_v18 = vsel %vm175_vm0, %v14782_v4, 0  ;;  %v14828_v4 = vld [vmem:[%s20372_s3 + $0xbc4] ss:$16 sps:$4 sm:$0xff]  }
 0x3f7   :  { %5802 = vmatpush1.bf16.msra.mxu1 %v14733_v12  ;;  %5657 = vmatprep.subr.bf16.mxu0 %v14738_v5  ;;  %v5569_v12 = vsel %vm175_vm0, %v14783_v8, 0  ;;  %v14789_v5 = vld [vmem:[%s20372_s3 + $0xaec] ss:$16 sps:$4 sm:$0xff]   ;;  %v14829_v8 = vld [vmem:[%s20372_s3 + $0xbc8] ss:$16 sps:$4 sm:$0xff]  }
 0x3f8   :  { %5803 = vmatprep.subr.bf16.mxu1 %v14741_v52  ;;  %v14784_v52 = vld [vmem:[%s20372_s3 + $0xae0] ss:$16 sps:$4 sm:$0xff]  }
 0x3fa   :  { %5658 = vmatpush1.bf16.msra.mxu0 %v14736_v45  ;;  %v14787_v45 = vld [vmem:[%s20372_s3 + $0xae8] ss:$16 sps:$4 sm:$0xff]  }
 0x3fb   :  { %5804 = vmatpush1.bf16.msra.mxu1 %v14739_v19  ;;  %5659 = vmatprep.subr.bf16.mxu0 %v14744_v44  ;;  %v14792_v19 = vld [vmem:[%s20372_s3 + $0xb04] ss:$16 sps:$4 sm:$0xff]   ;;  %v14795_v44 = vld [vmem:[%s20372_s3 + $0xb0c] ss:$16 sps:$4 sm:$0xff]  }
 0x3fc   :  { %5637 = vmatmul.mubr.bf16.gmra.mrb[60].mxu0 %v17989_v48  ;;  %5805 = vmatprep.subr.bf16.mxu1 %v14747_v37  ;;  %v14790_v37 = vld [vmem:[%s20372_s3 + $0xb00] ss:$16 sps:$4 sm:$0xff]  }
 0x3fd   :  { %5783 = vmatmul.mubr.bf16.gmra.mrb[60].mxu1 %v17989_v48  ;;  %12183 = vmatprep.mubr.msk.bf16.mxu0 %vm3653_vm3, %v17153_v21 }
 0x3fe   :  { %5660 = vmatpush1.bf16.msra.mxu0 %v14742_v23  ;;  %12188 = vmatprep.mubr.msk.bf16.mxu1 %vm3653_vm3, %v17153_v21  ;;  %v14754_v21 = vld [vmem:[%s20372_s3 + $0xa40] ss:$16 sps:$4 sm:$0xff]   ;;  %v14793_v23 = vld [vmem:[%s20372_s3 + $0xb08] ss:$16 sps:$4 sm:$0xff]  }
 0x3ff   :  { %5806 = vmatpush1.bf16.msra.mxu1 %v14745_v22  ;;  %5661 = vmatprep.subr.bf16.mxu0 %v14750_v6  ;;  %v14801_v22 = vld [vmem:[%s20372_s3 + $0xb2c] ss:$16 sps:$4 sm:$0xff]   ;;  %v14796_v6 = vld [vmem:[%s20372_s3 + $0xb20] ss:$16 sps:$4 sm:$0xff]  }
 0x400   :  { %5807 = vmatprep.subr.bf16.mxu1 %v14753_v1  ;;  %v14799_v1 = vld [vmem:[%s20372_s3 + $0xb28] ss:$16 sps:$4 sm:$0xff]  }
 0x402   :  { %5662 = vmatpush1.bf16.msra.mxu0 %v14748_v31  ;;  %v14804_v31 = vld [vmem:[%s20372_s3 + $0xb44] ss:$16 sps:$4 sm:$0xff]  }
 0x403   :  { %5808 = vmatpush1.bf16.msra.mxu1 %v14751_v38  ;;  %5663 = vmatprep.subr.bf16.mxu0 %v14756_v60  ;;  %v2662_v38 = vpop.permute.xlu1 %2661  ;;  %v14807_v60 = vld [vmem:[%s20372_s3 + $0xb4c] ss:$16 sps:$4 sm:$0xff]  }
 0x404   :  { %5809 = vmatprep.subr.bf16.mxu1 %v14759_v17  ;;  %v14802_v17 = vld [vmem:[%s20372_s3 + $0xb40] ss:$16 sps:$4 sm:$0xff]  }
 0x406   :  { %5664 = vmatpush1.bf16.msra.mxu0 %v14754_v21  ;;  %v18137_v21 = vmax.f32 %v16797_v14, %v2662_v38  ;;  %v14808_v14 = vld [vmem:[%s20372_s3 + $0xb60] ss:$16 sps:$4 sm:$0xff]  }
 0x407   :  { %5810 = vmatpush1.bf16.msra.mxu1 %v14757_v42  ;;  %5665 = vmatprep.subr.bf16.mxu0 %v14762_v63  ;;  %v14805_v42 = vld [vmem:[%s20372_s3 + $0xb48] ss:$16 sps:$4 sm:$0xff]   ;;  %v14810_v63 = vld [vmem:[%s20372_s3 + $0xb64] ss:$16 sps:$4 sm:$0xff]  }
 0x408   :  { %5811 = vmatprep.subr.bf16.mxu1 %v14765_v28  ;;  %v14813_v28 = vld [vmem:[%s20372_s3 + $0xb6c] ss:$16 sps:$4 sm:$0xff]  }
 0x40a   :  { %5666 = vmatpush1.bf16.msra.mxu0 %v14760_v11  ;;  %v2709_v11 = vsel %vm2679_vm2, %v14151_v16, %v2662_v38  ;;  %v14858_v38 = vld [vmem:[%s20372_s3 + $0xc64] ss:$16 sps:$4 sm:$0xff]  }
 0x40b   :  { %5812 = vmatpush1.bf16.msra.mxu1 %v14763_v33  ;;  %5667 = vmatprep.subr.bf16.mxu0 %v14768_v51  ;;  %v18156_v33 = vpack.c.bf16 %v18137_v21, %v17309_v62  ;;  %v14811_v51 = vld [vmem:[%s20372_s3 + $0xb68] ss:$16 sps:$4 sm:$0xff]   ;;  %v20437_v62 = vld [vmem:[#allocation8_spill] sm:$0xff] }
 0x40c   :  { %5813 = vmatprep.subr.bf16.mxu1 %v14771_v25  ;;  %v14816_v25 = vld [vmem:[%s20372_s3 + $0xb84] ss:$16 sps:$4 sm:$0xff]   ;;  %v18172_v16 = vmax.f32 %v20437_v62, %v2709_v11  ;;  %v14865_v11 = vld [vmem:[%s20372_s3 + $0xc88] ss:$16 sps:$4 sm:$0xff]  }
 0x40d   :  { %v14871_v62 = vld [vmem:[%s20372_s3 + $0xca8] ss:$16 sps:$4 sm:$0xff]  }
 0x40e   :  { %5668 = vmatpush1.bf16.msra.mxu0 %v14766_v43  ;;  %v14814_v43 = vld [vmem:[%s20372_s3 + $0xb80] ss:$16 sps:$4 sm:$0xff]  }
 0x40f   :  { %5814 = vmatpush1.bf16.msra.mxu1 %v14769_v7  ;;  %5669 = vmatprep.subr.bf16.mxu0 %v14774_v39  ;;  %v14817_v7 = vld [vmem:[%s20372_s3 + $0xb88] ss:$16 sps:$4 sm:$0xff]   ;;  %v14822_v39 = vld [vmem:[%s20372_s3 + $0xba4] ss:$16 sps:$4 sm:$0xff]  }
 0x410   :  { %5815 = vmatprep.subr.bf16.mxu1 %v14777_v10  ;;  %v14825_v10 = vld [vmem:[%s20372_s3 + $0xbac] ss:$16 sps:$4 sm:$0xff]  }
 0x412   :  { %5670 = vmatpush1.bf16.msra.mxu0 %v14772_v56  ;;  %v18190_v56 = vpack.c.bf16 %v18172_v16, %v17355_v54  ;;  %v14831_v54 = vld [vmem:[%s20372_s3 + $0xbcc] ss:$16 sps:$4 sm:$0xff]  }
 0x413   :  { %5816 = vmatpush1.bf16.msra.mxu1 %v14775_v58  ;;  %12182 = vmatprep.subr.msk.bf16.mxu0 %vm175_vm0, %v14778_v49  ;;  %v14820_v58 = vld [vmem:[%s20372_s3 + $0xba0] ss:$16 sps:$4 sm:$0xff]   ;;  %v14823_v49 = vld [vmem:[%s20372_s3 + $0xba8] ss:$16 sps:$4 sm:$0xff]  }
 0x414   :  { %12187 = vmatprep.subr.msk.bf16.mxu1 %vm175_vm0, %v14780_v20  ;;  %v14826_v20 = vld [vmem:[%s20372_s3 + $0xbc0] ss:$16 sps:$4 sm:$0xff]  }
 0x416   :  { %5672 = vmatpush1.bf16.msra.mxu0 %v5563_v18  ;;  %v14834_v18 = vld [vmem:[%s20372_s3 + $0xbe4] ss:$16 sps:$4 sm:$0xff]  }
 0x417   :  { %5818 = vmatpush1.bf16.msra.mxu1 %v5569_v12  ;;  %6610 = vmatprep.subr.bf16.mxu0 %v14786_v59  ;;  %v14837_v59 = vld [vmem:[%s20372_s3 + $0xbec] ss:$16 sps:$4 sm:$0xff]   ;;  %v14835_v12 = vld [vmem:[%s20372_s3 + $0xbe8] ss:$16 sps:$4 sm:$0xff]  }
 0x418   :  { %6756 = vmatprep.subr.bf16.mxu1 %v14789_v5  ;;  %v14840_v5 = vld [vmem:[%s20372_s3 + $0xc04] ss:$16 sps:$4 sm:$0xff]  }
 0x419   :  { %5680 = vmatmul.mubr.bf16.vlgmr.msra.gmra.mrb[48].mxu0 %v17266_v41 }
 0x41a   :  { %5826 = vmatmul.mubr.bf16.vlgmr.msra.gmra.mrb[48].mxu1 %v17266_v41  ;;  %12184 = vmatprep.mubr.msk.bf16.mxu0 %vm3653_vm3, %v17222_v30  ;;  %v14798_v41 = vld [vmem:[%s20372_s3 + $0xb24] ss:$16 sps:$4 sm:$0xff]  }
 0x41b   :  { %12189 = vmatprep.mubr.msk.bf16.mxu1 %vm3653_vm3, %v17222_v30  ;;  %6611 = vmatpush1.bf16.msra.mxu0 %v14784_v52  ;;  %v14843_v52 = vld [vmem:[%s20372_s3 + $0xc0c] ss:$16 sps:$4 sm:$0xff]  }
 0x41c   :  { %6757 = vmatpush1.bf16.msra.mxu1 %v14787_v45  ;;  %6612 = vmatprep.subr.bf16.mxu0 %v14792_v19  ;;  %v14838_v45 = vld [vmem:[%s20372_s3 + $0xc00] ss:$16 sps:$4 sm:$0xff]   ;;  %v14841_v19 = vld [vmem:[%s20372_s3 + $0xc08] ss:$16 sps:$4 sm:$0xff]  }
 0x41d   :  { %6758 = vmatprep.subr.bf16.mxu1 %v14795_v44  ;;  %v14846_v44 = vld [vmem:[%s20372_s3 + $0xc24] ss:$16 sps:$4 sm:$0xff]  }
 0x41f   :  { %6613 = vmatpush1.bf16.msra.mxu0 %v14790_v37  ;;  %v14849_v37 = vld [vmem:[%s20372_s3 + $0xc2c] ss:$16 sps:$4 sm:$0xff]  }
 0x420   :  { %6759 = vmatpush1.bf16.msra.mxu1 %v14793_v23  ;;  %6614 = vmatprep.subr.bf16.mxu0 %v14798_v41  ;;  %v14844_v23 = vld [vmem:[%s20372_s3 + $0xc20] ss:$16 sps:$4 sm:$0xff]   ;;  %v14847_v41 = vld [vmem:[%s20372_s3 + $0xc28] ss:$16 sps:$4 sm:$0xff]  }
 0x421   :  { %5690 = vmatmul.mubr.bf16.gmra.mrb[52].mxu0 %v17220_v24  ;;  %6760 = vmatprep.subr.bf16.mxu1 %v14801_v22  ;;  %v14852_v22 = vld [vmem:[%s20372_s3 + $0xc44] ss:$16 sps:$4 sm:$0xff]  }
 0x422   :  { %5836 = vmatmul.mubr.bf16.gmra.mrb[52].mxu1 %v17220_v24  ;;  %12185 = vmatprep.mubr.msk.bf16.mxu0 %vm3653_vm3, %v17210_v36 }
 0x423   :  { %12190 = vmatprep.mubr.msk.bf16.mxu1 %vm3653_vm3, %v17210_v36  ;;  %6615 = vmatpush1.bf16.msra.mxu0 %v14796_v6  ;;  %v14855_v6 = vld [vmem:[%s20372_s3 + $0xc4c] ss:$16 sps:$4 sm:$0xff]  }
 0x424   :  { %6761 = vmatpush1.bf16.msra.mxu1 %v14799_v1  ;;  %6616 = vmatprep.subr.bf16.mxu0 %v14804_v31  ;;  %v14850_v1 = vld [vmem:[%s20372_s3 + $0xc40] ss:$16 sps:$4 sm:$0xff]   ;;  %v14853_v31 = vld [vmem:[%s20372_s3 + $0xc48] ss:$16 sps:$4 sm:$0xff]  }
 0x425   :  { %6762 = vmatprep.subr.bf16.mxu1 %v14807_v60  ;;  %v14861_v60 = vld [vmem:[%s20372_s3 + $0xc6c] ss:$16 sps:$4 sm:$0xff]  }
 0x427   :  { %6617 = vmatpush1.bf16.msra.mxu0 %v14802_v17  ;;  %v14856_v17 = vld [vmem:[%s20372_s3 + $0xc60] ss:$16 sps:$4 sm:$0xff]  }
 0x428   :  { %6763 = vmatpush1.bf16.msra.mxu1 %v14805_v42  ;;  %6618 = vmatprep.subr.bf16.mxu0 %v14810_v63  ;;  %v14859_v42 = vld [vmem:[%s20372_s3 + $0xc68] ss:$16 sps:$4 sm:$0xff]   ;;  %v14864_v63 = vld [vmem:[%s20372_s3 + $0xc84] ss:$16 sps:$4 sm:$0xff]  }
 0x429   :  { %5700 = vmatmul.mubr.bf16.gmra.mrb[56].mxu0 %v17216_v46  ;;  %6764 = vmatprep.subr.bf16.mxu1 %v14813_v28  ;;  %v14867_v28 = vld [vmem:[%s20372_s3 + $0xc8c] ss:$16 sps:$4 sm:$0xff]  }
 0x42a   :  { %5846 = vmatmul.mubr.bf16.gmra.mrb[56].mxu1 %v17216_v46  ;;  %12186 = vmatprep.mubr.msk.bf16.mxu0 %vm3653_vm3, %v18156_v33 }
 0x42b   :  { %12191 = vmatprep.mubr.msk.bf16.mxu1 %vm3653_vm3, %v18156_v33  ;;  %6619 = vmatpush1.bf16.msra.mxu0 %v14808_v14  ;;  %v14862_v14 = vld [vmem:[%s20372_s3 + $0xc80] ss:$16 sps:$4 sm:$0xff]  }
 0x42c   :  { %6765 = vmatpush1.bf16.msra.mxu1 %v14811_v51  ;;  %6620 = vmatprep.subr.bf16.mxu0 %v14816_v25  ;;  %v14870_v51 = vld [vmem:[%s20372_s3 + $0xca4] ss:$16 sps:$4 sm:$0xff]   ;;  %v14873_v25 = vld [vmem:[%s20372_s3 + $0xcac] ss:$16 sps:$4 sm:$0xff]  }
 0x42d   :  { %6766 = vmatprep.subr.bf16.mxu1 %v14819_v27  ;;  %v14868_v27 = vld [vmem:[%s20372_s3 + $0xca0] ss:$16 sps:$4 sm:$0xff]  }
 0x42f   :  { %6621 = vmatpush1.bf16.msra.mxu0 %v14814_v43  ;;  %v14876_v43 = vld [vmem:[%s20372_s3 + $0xcc4] ss:$16 sps:$4 sm:$0xff]  }
 0x430   :  { %6767 = vmatpush1.bf16.msra.mxu1 %v14817_v7  ;;  %6622 = vmatprep.subr.bf16.mxu0 %v14822_v39  ;;  %v14879_v7 = vld [vmem:[%s20372_s3 + $0xccc] ss:$16 sps:$4 sm:$0xff]   ;;  %v14874_v39 = vld [vmem:[%s20372_s3 + $0xcc0] ss:$16 sps:$4 sm:$0xff]  }
 0x431   :  { %5710 = vmatmul.mubr.bf16.gmra.mrb[60].mxu0 %v18190_v56  ;;  %6768 = vmatprep.subr.bf16.mxu1 %v14825_v10  ;;  %v14877_v10 = vld [vmem:[%s20372_s3 + $0xcc8] ss:$16 sps:$4 sm:$0xff]  }
 0x432   :  { %5856 = vmatmul.mubr.bf16.gmra.mrb[60].mxu1 %v18190_v56  ;;  %6642 = vmatprep.mubr.bf16.mxu0 %v16966_v47 }
 0x433   :  { %6623 = vmatpush1.bf16.msra.mxu0 %v14820_v58  ;;  %6788 = vmatprep.mubr.bf16.mxu1 %v16966_v47  ;;  %v14832_v47 = vld [vmem:[%s20372_s3 + $0xbe0] ss:$16 sps:$4 sm:$0xff]   ;;  %v14882_v58 = vld [vmem:[%s20372_s3 + $0xce4] ss:$16 sps:$4 sm:$0xff]  }
 0x434   :  { %6769 = vmatpush1.bf16.msra.mxu1 %v14823_v49  ;;  %6624 = vmatprep.subr.bf16.mxu0 %v14828_v4  ;;  %v14885_v49 = vld [vmem:[%s20372_s3 + $0xcec] ss:$16 sps:$4 sm:$0xff]   ;;  %v14880_v4 = vld [vmem:[%s20372_s3 + $0xce0] ss:$16 sps:$4 sm:$0xff]  }
 0x435   :  { %6770 = vmatprep.subr.bf16.mxu1 %v14831_v54  ;;  %v14883_v54 = vld [vmem:[%s20372_s3 + $0xce8] ss:$16 sps:$4 sm:$0xff]  }
 0x437   :  { %6625 = vmatpush1.bf16.msra.mxu0 %v14826_v20  ;;  %v14888_v20 = vld [vmem:[%s20372_s3 + $0xd04] ss:$16 sps:$4 sm:$0xff]  }
 0x438   :  { %6771 = vmatpush1.bf16.msra.mxu1 %v14829_v8  ;;  %6626 = vmatprep.subr.bf16.mxu0 %v14834_v18  ;;  %v14891_v8 = vld [vmem:[%s20372_s3 + $0xd0c] ss:$16 sps:$4 sm:$0xff]   ;;  %v18329_v18 = vpop.permute.xlu0 %14153 }
 0x439   :  { %6772 = vmatprep.subr.bf16.mxu1 %v14837_v59  ;;  %v14886_v59 = vld [vmem:[%s20372_s3 + $0xd00] ss:$16 sps:$4 sm:$0xff]  }
 0x43b   :  { %6627 = vmatpush1.bf16.msra.mxu0 %v14832_v47  ;;  %v14889_v47 = vld [vmem:[%s20372_s3 + $0xd08] ss:$16 sps:$4 sm:$0xff]  }
 0x43c   :  { %6773 = vmatpush1.bf16.msra.mxu1 %v14835_v12  ;;  %6628 = vmatprep.subr.bf16.mxu0 %v14840_v5  ;;  %v14894_v12 = vld [vmem:[%s20372_s3 + $0xd24] ss:$16 sps:$4 sm:$0xff]   ;;  %v14155_v5 = vunpack.i.l.bf16 %v18329_v18 }
 0x43d   :  { %6774 = vmatprep.subr.bf16.mxu1 %v14843_v52  ;;  %v14892_v52 = vld [vmem:[%s20372_s3 + $0xd20] ss:$16 sps:$4 sm:$0xff]  }
 0x43f   :  { %6629 = vmatpush1.bf16.msra.mxu0 %v14838_v45  ;;  %v14895_v45 = vld [vmem:[%s20372_s3 + $0xd28] ss:$16 sps:$4 sm:$0xff]  }
 0x440   :  { %6775 = vmatpush1.bf16.msra.mxu1 %v14841_v19  ;;  %6630 = vmatprep.subr.bf16.mxu0 %v14846_v44  ;;  %v14900_v19 = vld [vmem:[%s20372_s3 + $0xd44] ss:$16 sps:$4 sm:$0xff]  }
 0x441   :  { %6776 = vmatprep.subr.bf16.mxu1 %v14849_v37  ;;  %v20438_v37 = vld [vmem:[#allocation17_spill] sm:$0xff] }
 0x443   :  { %6631 = vmatpush1.bf16.msra.mxu0 %v14844_v23  ;;  %v14903_v23 = vld [vmem:[%s20372_s3 + $0xd4c] ss:$16 sps:$4 sm:$0xff]  }
 0x444   :  { %6777 = vmatpush1.bf16.msra.mxu1 %v14847_v41  ;;  %6632 = vmatprep.subr.bf16.mxu0 %v14852_v22  ;;  %v14898_v41 = vld [vmem:[%s20372_s3 + $0xd40] ss:$16 sps:$4 sm:$0xff]   ;;  %v14901_v22 = vld [vmem:[%s20372_s3 + $0xd48] ss:$16 sps:$4 sm:$0xff]  }
 0x445   :  { %6778 = vmatprep.subr.bf16.mxu1 %v14855_v6  ;;  %v14906_v6 = vld [vmem:[%s20372_s3 + $0xd64] ss:$16 sps:$4 sm:$0xff]  }
 0x447   :  { %6633 = vmatpush1.bf16.msra.mxu0 %v14850_v1  ;;  %v20439_v1 = vld [vmem:[#allocation12_spill] sm:$0xff] }
 0x448   :  { %6779 = vmatpush1.bf16.msra.mxu1 %v14853_v31  ;;  %6634 = vmatprep.subr.bf16.mxu0 %v14858_v38  ;;  %v2664_v38 = vpop.permute.xlu1 %2663 }
 0x449   :  { %6780 = vmatprep.subr.bf16.mxu1 %v14861_v60  ;;  %v14904_v60 = vld [vmem:[%s20372_s3 + $0xd60] ss:$16 sps:$4 sm:$0xff]  }
 0x44b   :  { %6635 = vmatpush1.bf16.msra.mxu0 %v14856_v17  ;;  %v2710_v17 = vsel %vm2679_vm2, %v2664_v38, %v14155_v5 }
 0x44c   :  { %6781 = vmatpush1.bf16.msra.mxu1 %v14859_v42  ;;  %6636 = vmatprep.subr.bf16.mxu0 %v14864_v63  ;;  %v14907_v42 = vld [vmem:[%s20372_s3 + $0xd68] ss:$16 sps:$4 sm:$0xff]  }
 0x44d   :  { %6782 = vmatprep.subr.bf16.mxu1 %v14867_v28  ;;  %v14912_v28 = vld [vmem:[%s20372_s3 + $0xd84] ss:$16 sps:$4 sm:$0xff]  }
 0x44f   :  { %6637 = vmatpush1.bf16.msra.mxu0 %v14862_v14  ;;  %v14915_v14 = vld [vmem:[%s20372_s3 + $0xd8c] ss:$16 sps:$4 sm:$0xff]  }
 0x450   :  { %6783 = vmatpush1.bf16.msra.mxu1 %v14865_v11  ;;  %6638 = vmatprep.subr.bf16.mxu0 %v14870_v51  ;;  %v20440_v11 = vld [vmem:[#allocation9_spill] sm:$0xff] }
 0x451   :  { %6784 = vmatprep.subr.bf16.mxu1 %v14873_v25  ;;  %v18403_v51 = vmax.f32 %v20440_v11, %v2710_v17  ;;  %v14913_v25 = vld [vmem:[%s20372_s3 + $0xd88] ss:$16 sps:$4 sm:$0xff]   ;;  %v14958_v17 = vld [vmem:[%s20372_s3 + $0xe80] ss:$16 sps:$4 sm:$0xff]  }
 0x452   :  { %v14970_v11 = vld [vmem:[%s20372_s3 + $0xec0] ss:$16 sps:$4 sm:$0xff]  }
 0x453   :  { %6639 = vmatpush1.bf16.msra.mxu0 %v14868_v27  ;;  %v14921_v27 = vld [vmem:[%s20372_s3 + $0xdac] ss:$16 sps:$4 sm:$0xff]  }
 0x454   :  { %6785 = vmatpush1.bf16.msra.mxu1 %v14871_v62  ;;  %6640 = vmatprep.subr.bf16.mxu0 %v14876_v43  ;;  %v5898_v62 = vpack.c.bf16 %v18403_v51, %v17972_v53  ;;  %v14916_v43 = vld [vmem:[%s20372_s3 + $0xda0] ss:$16 sps:$4 sm:$0xff]   ;;  %v14927_v53 = vld [vmem:[%s20372_s3 + $0xdcc] ss:$16 sps:$4 sm:$0xff]  }
 0x455   :  { %6786 = vmatprep.subr.bf16.mxu1 %v14879_v7  ;;  %v14919_v7 = vld [vmem:[%s20372_s3 + $0xda8] ss:$16 sps:$4 sm:$0xff]  }
 0x457   :  { %6641 = vmatpush1.bf16.msra.mxu0 %v14874_v39  ;;  %v14924_v39 = vld [vmem:[%s20372_s3 + $0xdc4] ss:$16 sps:$4 sm:$0xff]  }
 0x458   :  { %6787 = vmatpush1.bf16.msra.mxu1 %v14877_v10  ;;  %6683 = vmatprep.subr.bf16.mxu0 %v14882_v58  ;;  %v14922_v10 = vld [vmem:[%s20372_s3 + $0xdc0] ss:$16 sps:$4 sm:$0xff]   ;;  %v14925_v58 = vld [vmem:[%s20372_s3 + $0xdc8] ss:$16 sps:$4 sm:$0xff]  }
 0x459   :  { %6829 = vmatprep.subr.bf16.mxu1 %v14885_v49  ;;  %v14930_v49 = vld [vmem:[%s20372_s3 + $0xde4] ss:$16 sps:$4 sm:$0xff]  }
 0x45a   :  { %6643 = vmatmul.mubr.bf16.vlgmr.msra.gmra.mrb[48].mxu0 %v16968_v0 }
 0x45b   :  { %6789 = vmatmul.mubr.bf16.vlgmr.msra.gmra.mrb[48].mxu1 %v16968_v0  ;;  %6652 = vmatprep.mubr.bf16.mxu0 %v17058_v13  ;;  %v14156_v0 = vunpack.i.h.bf16 %v18329_v18  ;;  %v14993_v18 = vld [vmem:[%s20372_s3 + $0xf2c] ss:$16 sps:$4 sm:$0xff]  }
 0x45c   :  { %6684 = vmatpush1.bf16.msra.mxu0 %v14880_v4  ;;  %6798 = vmatprep.mubr.bf16.mxu1 %v17058_v13  ;;  %v14897_v13 = vld [vmem:[%s20372_s3 + $0xd2c] ss:$16 sps:$4 sm:$0xff]  }
 0x45d   :  { %6830 = vmatpush1.bf16.msra.mxu1 %v14883_v54  ;;  %6685 = vmatprep.subr.bf16.mxu0 %v14888_v20  ;;  %v2711_v44 = vsel %vm2679_vm2, %v14155_v5, %v14156_v0  ;;  %v14933_v4 = vld [vmem:[%s20372_s3 + $0xdec] ss:$16 sps:$4 sm:$0xff]   ;;  %v14931_v54 = vld [vmem:[%s20372_s3 + $0xde8] ss:$16 sps:$4 sm:$0xff]   ;;  %v14936_v20 = vld [vmem:[%s20372_s3 + $0xe04] ss:$16 sps:$4 sm:$0xff]  }
 0x45e   :  { %6831 = vmatprep.subr.bf16.mxu1 %v14891_v8  ;;  %v18377_v31 = vmax.f32 %v20439_v1, %v2711_v44  ;;  %v14939_v8 = vld [vmem:[%s20372_s3 + $0xe0c] ss:$16 sps:$4 sm:$0xff]   ;;  %v14946_v44 = vld [vmem:[%s20372_s3 + $0xe40] ss:$16 sps:$4 sm:$0xff]  }
 0x45f   :  { %v14945_v5 = vld [vmem:[%s20372_s3 + $0xe2c] ss:$16 sps:$4 sm:$0xff]  }
 0x460   :  { %6686 = vmatpush1.bf16.msra.mxu0 %v14886_v59  ;;  %v5899_v63 = vpack.c.bf16 %v18377_v31, %v17940_v61  ;;  %v14910_v61 = vld [vmem:[%s20372_s3 + $0xd80] ss:$16 sps:$4 sm:$0xff]  }
 0x461   :  { %6832 = vmatpush1.bf16.msra.mxu1 %v14889_v47  ;;  %6687 = vmatprep.subr.bf16.mxu0 %v14894_v12  ;;  %v14934_v59 = vld [vmem:[%s20372_s3 + $0xe00] ss:$16 sps:$4 sm:$0xff]   ;;  %v14937_v47 = vld [vmem:[%s20372_s3 + $0xe08] ss:$16 sps:$4 sm:$0xff]   ;;  %v14942_v12 = vld [vmem:[%s20372_s3 + $0xe24] ss:$16 sps:$4 sm:$0xff]  }
 0x462   :  { %6653 = vmatmul.mubr.bf16.gmra.mrb[52].mxu0 %v20438_v37  ;;  %6833 = vmatprep.subr.bf16.mxu1 %v14897_v13  ;;  %v14940_v13 = vld [vmem:[%s20372_s3 + $0xe20] ss:$16 sps:$4 sm:$0xff]  }
 0x463   :  { %6799 = vmatmul.mubr.bf16.gmra.mrb[52].mxu1 %v20438_v37  ;;  %6662 = vmatprep.mubr.bf16.mxu0 %v17161_v26  ;;  %v14949_v37 = vld [vmem:[%s20372_s3 + $0xe48] ss:$16 sps:$4 sm:$0xff]  }
 0x464   :  { %6688 = vmatpush1.bf16.msra.mxu0 %v14892_v52  ;;  %6808 = vmatprep.mubr.bf16.mxu1 %v17161_v26  ;;  %v14909_v26 = vld [vmem:[%s20372_s3 + $0xd6c] ss:$16 sps:$4 sm:$0xff]   ;;  %v14943_v52 = vld [vmem:[%s20372_s3 + $0xe28] ss:$16 sps:$4 sm:$0xff]  }
 0x465   :  { %6834 = vmatpush1.bf16.msra.mxu1 %v14895_v45  ;;  %6689 = vmatprep.subr.bf16.mxu0 %v14900_v19  ;;  %v14948_v45 = vld [vmem:[%s20372_s3 + $0xe44] ss:$16 sps:$4 sm:$0xff]   ;;  %v14951_v19 = vld [vmem:[%s20372_s3 + $0xe4c] ss:$16 sps:$4 sm:$0xff]  }
 0x466   :  { %6835 = vmatprep.subr.bf16.mxu1 %v14903_v23  ;;  %v14952_v23 = vld [vmem:[%s20372_s3 + $0xe64] ss:$16 sps:$4 sm:$0x3f]  }
 0x468   :  { %6690 = vmatpush1.bf16.msra.mxu0 %v14898_v41  ;;  %v14956_v41 = vld [vmem:[%s20372_s3 + $0xe60] ss:$16 sps:$4 sm:$0x3f]  }
 0x469   :  { %6836 = vmatpush1.bf16.msra.mxu1 %v14901_v22  ;;  %6691 = vmatprep.subr.bf16.mxu0 %v14906_v6  ;;  %v14954_v22 = vld [vmem:[%s20372_s3 + $0xe6c] ss:$16 sps:$4 sm:$0x3f]   ;;  %v14957_v6 = vld [vmem:[%s20372_s3 + $0xe68] ss:$16 sps:$4 sm:$0x3f]  }
 0x46a   :  { %6663 = vmatmul.mubr.bf16.gmra.mrb[56].mxu0 %v17164_v29  ;;  %6837 = vmatprep.subr.bf16.mxu1 %v14909_v26  ;;  %v6599_v1 = vsel %vm175_vm0, %v14956_v41, 0  ;;  %v14960_v26 = vld [vmem:[%s20372_s3 + $0xe84] ss:$16 sps:$4 sm:$0xff]   ;;  %v6605_v38 = vsel %vm175_vm0, %v14957_v6, 0  ;;  %v15012_v41 = vld [vmem:[%s20372_s3 + $0xfa0] ss:$16 sps:$4 sm:$0xff]  }
 0x46b   :  { %6809 = vmatmul.mubr.bf16.gmra.mrb[56].mxu1 %v17164_v29  ;;  %6672 = vmatprep.mubr.bf16.mxu0 %v5899_v63  ;;  %v14918_v29 = vld [vmem:[%s20372_s3 + $0xda4] ss:$16 sps:$4 sm:$0xff]  }
 0x46c   :  { %6692 = vmatpush1.bf16.msra.mxu0 %v14904_v60  ;;  %6818 = vmatprep.mubr.bf16.mxu1 %v5899_v63  ;;  %v14963_v60 = vld [vmem:[%s20372_s3 + $0xe8c] ss:$16 sps:$4 sm:$0xff]   ;;  %v14966_v63 = vld [vmem:[%s20372_s3 + $0xea4] ss:$16 sps:$4 sm:$0xff]  }
 0x46d   :  { %6838 = vmatpush1.bf16.msra.mxu1 %v14907_v42  ;;  %6693 = vmatprep.subr.bf16.mxu0 %v14912_v28  ;;  %v14961_v42 = vld [vmem:[%s20372_s3 + $0xe88] ss:$16 sps:$4 sm:$0xff]   ;;  %v14969_v28 = vld [vmem:[%s20372_s3 + $0xeac] ss:$16 sps:$4 sm:$0xff]   ;;  %v15020_v6 = vld [vmem:[%s20372_s3 + $0xfc4] ss:$16 sps:$4 sm:$0xff]  }
 0x46e   :  { %6839 = vmatprep.subr.bf16.mxu1 %v14915_v14  ;;  %v14964_v14 = vld [vmem:[%s20372_s3 + $0xea0] ss:$16 sps:$4 sm:$0xff]  }
 0x470   :  { %6694 = vmatpush1.bf16.msra.mxu0 %v14910_v61  ;;  %v14967_v61 = vld [vmem:[%s20372_s3 + $0xea8] ss:$16 sps:$4 sm:$0xff]  }
 0x471   :  { %6840 = vmatpush1.bf16.msra.mxu1 %v14913_v25  ;;  %6695 = vmatprep.subr.bf16.mxu0 %v14918_v29  ;;  %v14973_v25 = vld [vmem:[%s20372_s3 + $0xec8] ss:$16 sps:$4 sm:$0xff]   ;;  %v14978_v29 = vld [vmem:[%s20372_s3 + $0xee4] ss:$16 sps:$4 sm:$0xff]  }
 0x472   :  { %6673 = vmatmul.mubr.bf16.gmra.mrb[60].mxu0 %v5898_v62  ;;  %6841 = vmatprep.subr.bf16.mxu1 %v14921_v27  ;;  %v2670_v27 = vpop.permute.xlu0 %2669 }
 0x473   :  { %6819 = vmatmul.mubr.bf16.gmra.mrb[60].mxu1 %v5898_v62  ;;  %12425 = vmatprep.mubr.msk.bf16.mxu0 %vm3653_vm3, %v17258_v3  ;;  %v14981_v62 = vld [vmem:[%s20372_s3 + $0xeec] ss:$16 sps:$4 sm:$0xff]  }
 0x474   :  { %6696 = vmatpush1.bf16.msra.mxu0 %v14916_v43  ;;  %12430 = vmatprep.mubr.msk.bf16.mxu1 %vm3653_vm3, %v17258_v3  ;;  %v14928_v3 = vld [vmem:[%s20372_s3 + $0xde0] ss:$16 sps:$4 sm:$0xff]  }
 0x475   :  { %6842 = vmatpush1.bf16.msra.mxu1 %v14919_v7  ;;  %6697 = vmatprep.subr.bf16.mxu0 %v14924_v39  ;;  %v14976_v43 = vld [vmem:[%s20372_s3 + $0xee0] ss:$16 sps:$4 sm:$0xff]   ;;  %v20441_v7 = vld [vmem:[#allocation11_spill] sm:$0xff] }
 0x476   :  { %6843 = vmatprep.subr.bf16.mxu1 %v14927_v53  ;;  %v18560_v39 = vmax.f32 %v20441_v7, %v2670_v27  ;;  %v14984_v53 = vld [vmem:[%s20372_s3 + $0xf04] ss:$16 sps:$4 sm:$0xff]   ;;  %v15045_v7 = vld [vmem:[%s20372_s3 + $0x1048] ss:$16 sps:$4 sm:$0xff]  }
 0x478   :  { %6698 = vmatpush1.bf16.msra.mxu0 %v14922_v10  ;;  %v14982_v10 = vld [vmem:[%s20372_s3 + $0xf00] ss:$16 sps:$4 sm:$0xff]  }
 0x479   :  { %6844 = vmatpush1.bf16.msra.mxu1 %v14925_v58  ;;  %6699 = vmatprep.subr.bf16.mxu0 %v14930_v49  ;;  %v2712_v58 = vsel %vm2679_vm2, %v14156_v0, %v2670_v27  ;;  %v5901_v49 = vpack.c.bf16 %v18560_v39, %v18137_v21  ;;  %v20442_v21 = vld [vmem:[#allocation10_spill] sm:$0xff] }
 0x47a   :  { %6845 = vmatprep.subr.bf16.mxu1 %v14933_v4  ;;  %v14985_v4 = vld [vmem:[%s20372_s3 + $0xf08] ss:$16 sps:$4 sm:$0xff]   ;;  %v18592_v0 = vmax.f32 %v20442_v21, %v2712_v58  ;;  %v15044_v27 = vld [vmem:[%s20372_s3 + $0x1044] ss:$16 sps:$4 sm:$0xff]   ;;  %v15065_v21 = vld [vmem:[%s20372_s3 + $0x10ac] ss:$16 sps:$4 sm:$0xff]  }
 0x47b   :  { %v15056_v58 = vld [vmem:[%s20372_s3 + $0x1084] ss:$16 sps:$4 sm:$0xff]  }
 0x47c   :  { %6700 = vmatpush1.bf16.msra.mxu0 %v14928_v3  ;;  %v14990_v3 = vld [vmem:[%s20372_s3 + $0xf24] ss:$16 sps:$4 sm:$0xff]  }
 0x47d   :  { %6846 = vmatpush1.bf16.msra.mxu1 %v14931_v54  ;;  %6701 = vmatprep.subr.bf16.mxu0 %v14936_v20  ;;  %v14988_v54 = vld [vmem:[%s20372_s3 + $0xf20] ss:$16 sps:$4 sm:$0xff]   ;;  %v14991_v20 = vld [vmem:[%s20372_s3 + $0xf28] ss:$16 sps:$4 sm:$0xff]  }
 0x47e   :  { %6847 = vmatprep.subr.bf16.mxu1 %v14939_v8  ;;  %v14999_v8 = vld [vmem:[%s20372_s3 + $0xf4c] ss:$16 sps:$4 sm:$0xff]  }
 0x480   :  { %6702 = vmatpush1.bf16.msra.mxu0 %v14934_v59  ;;  %v5900_v59 = vpack.c.bf16 %v18592_v0, %v18172_v16  ;;  %v15005_v16 = vld [vmem:[%s20372_s3 + $0xf6c] ss:$16 sps:$4 sm:$0xff]  }
 0x481   :  { %6848 = vmatpush1.bf16.msra.mxu1 %v14937_v47  ;;  %6703 = vmatprep.subr.bf16.mxu0 %v14942_v12  ;;  %v14994_v47 = vld [vmem:[%s20372_s3 + $0xf40] ss:$16 sps:$4 sm:$0xff]   ;;  %v14997_v12 = vld [vmem:[%s20372_s3 + $0xf48] ss:$16 sps:$4 sm:$0xff]  }
 0x482   :  { %6849 = vmatprep.subr.bf16.mxu1 %v14945_v5  ;;  %v15002_v5 = vld [vmem:[%s20372_s3 + $0xf64] ss:$16 sps:$4 sm:$0xff]  }
 0x484   :  { %6704 = vmatpush1.bf16.msra.mxu0 %v14940_v13  ;;  %v15000_v13 = vld [vmem:[%s20372_s3 + $0xf60] ss:$16 sps:$4 sm:$0xff]  }
 0x485   :  { %6850 = vmatpush1.bf16.msra.mxu1 %v14943_v52  ;;  %6705 = vmatprep.subr.bf16.mxu0 %v14948_v45  ;;  %v15003_v52 = vld [vmem:[%s20372_s3 + $0xf68] ss:$16 sps:$4 sm:$0xff]   ;;  %v15008_v45 = vld [vmem:[%s20372_s3 + $0xf84] ss:$16 sps:$4 sm:$0xff]  }
 0x486   :  { %6851 = vmatprep.subr.bf16.mxu1 %v14951_v19  ;;  %v15011_v19 = vld [vmem:[%s20372_s3 + $0xf8c] ss:$16 sps:$4 sm:$0xff]  }
 0x488   :  { %6706 = vmatpush1.bf16.msra.mxu0 %v14946_v44  ;;  %v15009_v44 = vld [vmem:[%s20372_s3 + $0xf88] ss:$16 sps:$4 sm:$0xff]  }
 0x489   :  { %6852 = vmatpush1.bf16.msra.mxu1 %v14949_v37  ;;  %12424 = vmatprep.subr.msk.bf16.mxu0 %vm175_vm0, %v14952_v23  ;;  %v15014_v37 = vld [vmem:[%s20372_s3 + $0xfa4] ss:$16 sps:$4 sm:$0xff]   ;;  %v15017_v23 = vld [vmem:[%s20372_s3 + $0xfac] ss:$16 sps:$4 sm:$0xff]  }
 0x48a   :  { %12429 = vmatprep.subr.msk.bf16.mxu1 %vm175_vm0, %v14954_v22  ;;  %v15015_v22 = vld [vmem:[%s20372_s3 + $0xfa8] ss:$16 sps:$4 sm:$0xff]  }
 0x48c   :  { %6708 = vmatpush1.bf16.msra.mxu0 %v6599_v1  ;;  %v15023_v1 = vld [vmem:[%s20372_s3 + $0xfcc] ss:$16 sps:$4 sm:$0xff]  }
 0x48d   :  { %6854 = vmatpush1.bf16.msra.mxu1 %v6605_v38  ;;  %7646 = vmatprep.subr.bf16.mxu0 %v14960_v26  ;;  %v15018_v26 = vld [vmem:[%s20372_s3 + $0xfc0] ss:$16 sps:$4 sm:$0xff]   ;;  %v15021_v38 = vld [vmem:[%s20372_s3 + $0xfc8] ss:$16 sps:$4 sm:$0xff]  }
 0x48e   :  { %7792 = vmatprep.subr.bf16.mxu1 %v14963_v60  ;;  %v15026_v60 = vld [vmem:[%s20372_s3 + $0xfe4] ss:$16 sps:$4 sm:$0xff]  }
 0x48f   :  { %6716 = vmatmul.mubr.bf16.vlgmr.msra.gmra.mrb[48].mxu0 %v17279_v40 }
 0x490   :  { %6862 = vmatmul.mubr.bf16.vlgmr.msra.gmra.mrb[48].mxu1 %v17279_v40  ;;  %12426 = vmatprep.mubr.msk.bf16.mxu0 %vm3653_vm3, %v17294_v57  ;;  %v14972_v40 = vld [vmem:[%s20372_s3 + $0xec4] ss:$16 sps:$4 sm:$0xff]  }
 0x491   :  { %12431 = vmatprep.mubr.msk.bf16.mxu1 %vm3653_vm3, %v17294_v57  ;;  %7647 = vmatpush1.bf16.msra.mxu0 %v14958_v17  ;;  %v14975_v57 = vld [vmem:[%s20372_s3 + $0xecc] ss:$16 sps:$4 sm:$0xff]  }
 0x492   :  { %7793 = vmatpush1.bf16.msra.mxu1 %v14961_v42  ;;  %7648 = vmatprep.subr.bf16.mxu0 %v14966_v63  ;;  %v15029_v17 = vld [vmem:[%s20372_s3 + $0xfec] ss:$16 sps:$4 sm:$0xff]   ;;  %v15024_v42 = vld [vmem:[%s20372_s3 + $0xfe0] ss:$16 sps:$4 sm:$0xff]   ;;  %v15027_v63 = vld [vmem:[%s20372_s3 + $0xfe8] ss:$16 sps:$4 sm:$0xff]  }
 0x493   :  { %7794 = vmatprep.subr.bf16.mxu1 %v14969_v28  ;;  %v15032_v28 = vld [vmem:[%s20372_s3 + $0x1004] ss:$16 sps:$4 sm:$0xff]  }
 0x495   :  { %7649 = vmatpush1.bf16.msra.mxu0 %v14964_v14  ;;  %v15035_v14 = vld [vmem:[%s20372_s3 + $0x100c] ss:$16 sps:$4 sm:$0xff]  }
 0x496   :  { %7795 = vmatpush1.bf16.msra.mxu1 %v14967_v61  ;;  %7650 = vmatprep.subr.bf16.mxu0 %v14972_v40  ;;  %v15030_v61 = vld [vmem:[%s20372_s3 + $0x1000] ss:$16 sps:$4 sm:$0xff]   ;;  %v15033_v40 = vld [vmem:[%s20372_s3 + $0x1008] ss:$16 sps:$4 sm:$0xff]  }
 0x497   :  { %6726 = vmatmul.mubr.bf16.gmra.mrb[52].mxu0 %v17320_v55  ;;  %7796 = vmatprep.subr.bf16.mxu1 %v14975_v57  ;;  %v15038_v57 = vld [vmem:[%s20372_s3 + $0x1024] ss:$16 sps:$4 sm:$0xff]  }
 0x498   :  { %6872 = vmatmul.mubr.bf16.gmra.mrb[52].mxu1 %v17320_v55  ;;  %12427 = vmatprep.mubr.msk.bf16.mxu0 %vm3653_vm3, %v17339_v2  ;;  %v14979_v55 = vld [vmem:[%s20372_s3 + $0xee8] ss:$16 sps:$4 sm:$0xff]  }
 0x499   :  { %12432 = vmatprep.mubr.msk.bf16.mxu1 %vm3653_vm3, %v17339_v2  ;;  %7651 = vmatpush1.bf16.msra.mxu0 %v14970_v11  ;;  %v14987_v2 = vld [vmem:[%s20372_s3 + $0xf0c] ss:$16 sps:$4 sm:$0xff]  }
 0x49a   :  { %7797 = vmatpush1.bf16.msra.mxu1 %v14973_v25  ;;  %7652 = vmatprep.subr.bf16.mxu0 %v14978_v29  ;;  %v15041_v11 = vld [vmem:[%s20372_s3 + $0x102c] ss:$16 sps:$4 sm:$0xff]   ;;  %v15036_v25 = vld [vmem:[%s20372_s3 + $0x1020] ss:$16 sps:$4 sm:$0xff]   ;;  %v15039_v29 = vld [vmem:[%s20372_s3 + $0x1028] ss:$16 sps:$4 sm:$0xff]  }
 0x49b   :  { %7798 = vmatprep.subr.bf16.mxu1 %v14981_v62  ;;  %v15047_v62 = vld [vmem:[%s20372_s3 + $0x104c] ss:$16 sps:$4 sm:$0xff]  }
 0x49d   :  { %7653 = vmatpush1.bf16.msra.mxu0 %v14976_v43  ;;  %v15042_v43 = vld [vmem:[%s20372_s3 + $0x1040] ss:$16 sps:$4 sm:$0xff]  }
 0x49e   :  { %7799 = vmatpush1.bf16.msra.mxu1 %v14979_v55  ;;  %7654 = vmatprep.subr.bf16.mxu0 %v14984_v53  ;;  %v15050_v55 = vld [vmem:[%s20372_s3 + $0x1064] ss:$16 sps:$4 sm:$0xff]   ;;  %v15053_v53 = vld [vmem:[%s20372_s3 + $0x106c] ss:$16 sps:$4 sm:$0xff]  }
 0x49f   :  { %6736 = vmatmul.mubr.bf16.gmra.mrb[56].mxu0 %v17370_v9  ;;  %7800 = vmatprep.subr.bf16.mxu1 %v14987_v2  ;;  %v15048_v2 = vld [vmem:[%s20372_s3 + $0x1060] ss:$16 sps:$4 sm:$0xff]  }
 0x4a0   :  { %6882 = vmatmul.mubr.bf16.gmra.mrb[56].mxu1 %v17370_v9  ;;  %12428 = vmatprep.mubr.msk.bf16.mxu0 %vm3653_vm3, %v5901_v49  ;;  %v14996_v9 = vld [vmem:[%s20372_s3 + $0xf44] ss:$16 sps:$4 sm:$0xff]  }
 0x4a1   :  { %12433 = vmatprep.mubr.msk.bf16.mxu1 %vm3653_vm3, %v5901_v49  ;;  %7655 = vmatpush1.bf16.msra.mxu0 %v14982_v10  ;;  %v15051_v10 = vld [vmem:[%s20372_s3 + $0x1068] ss:$16 sps:$4 sm:$0xff]   ;;  %v15059_v49 = vld [vmem:[%s20372_s3 + $0x108c] ss:$16 sps:$4 sm:$0xff]  }
 0x4a2   :  { %7801 = vmatpush1.bf16.msra.mxu1 %v14985_v4  ;;  %7656 = vmatprep.subr.bf16.mxu0 %v14990_v3  ;;  %v15054_v4 = vld [vmem:[%s20372_s3 + $0x1080] ss:$16 sps:$4 sm:$0xff]   ;;  %v15057_v3 = vld [vmem:[%s20372_s3 + $0x1088] ss:$16 sps:$4 sm:$0xff]  }
 0x4a3   :  { %7802 = vmatprep.subr.bf16.mxu1 %v14993_v18  ;;  %v15062_v18 = vld [vmem:[%s20372_s3 + $0x10a4] ss:$16 sps:$4 sm:$0xff]  }
 0x4a5   :  { %7657 = vmatpush1.bf16.msra.mxu0 %v14988_v54  ;;  %v18744_v54 = vpop.permute.xlu1 %14158 }
 0x4a6   :  { %7803 = vmatpush1.bf16.msra.mxu1 %v14991_v20  ;;  %7658 = vmatprep.subr.bf16.mxu0 %v14996_v9  ;;  %v15060_v20 = vld [vmem:[%s20372_s3 + $0x10a0] ss:$16 sps:$4 sm:$0xff]   ;;  %v15063_v9 = vld [vmem:[%s20372_s3 + $0x10a8] ss:$16 sps:$4 sm:$0xff]  }
 0x4a7   :  { %6746 = vmatmul.mubr.bf16.gmra.mrb[60].mxu0 %v5900_v59  ;;  %7804 = vmatprep.subr.bf16.mxu1 %v14999_v8  ;;  %v15068_v8 = vld [vmem:[%s20372_s3 + $0x10c4] ss:$16 sps:$4 sm:$0xff]  }
 0x4a8   :  { %6892 = vmatmul.mubr.bf16.gmra.mrb[60].mxu1 %v5900_v59  ;;  %7678 = vmatprep.mubr.bf16.mxu0 %v17006_v50  ;;  %v14160_v59 = vunpack.i.l.bf16 %v18744_v54 }
 0x4a9   :  { %7659 = vmatpush1.bf16.msra.mxu0 %v14994_v47  ;;  %7824 = vmatprep.mubr.bf16.mxu1 %v17006_v50  ;;  %v15006_v50 = vld [vmem:[%s20372_s3 + $0xf80] ss:$16 sps:$4 sm:$0xff]  }
 0x4aa   :  { %7805 = vmatpush1.bf16.msra.mxu1 %v14997_v12  ;;  %7660 = vmatprep.subr.bf16.mxu0 %v15002_v5  ;;  %v15066_v47 = vld [vmem:[%s20372_s3 + $0x10c0] ss:$16 sps:$4 sm:$0xff]   ;;  %v15069_v12 = vld [vmem:[%s20372_s3 + $0x10c8] ss:$16 sps:$4 sm:$0xff]   ;;  %v15074_v5 = vld [vmem:[%s20372_s3 + $0x10e4] ss:$16 sps:$4 sm:$0xff]  }
 0x4ab   :  { %7806 = vmatprep.subr.bf16.mxu1 %v15005_v16 }
 0x4ad   :  { %7661 = vmatpush1.bf16.msra.mxu0 %v15000_v13  ;;  %v15077_v13 = vld [vmem:[%s20372_s3 + $0x10ec] ss:$16 sps:$4 sm:$0xff]  }
 0x4ae   :  { %7807 = vmatpush1.bf16.msra.mxu1 %v15003_v52  ;;  %7662 = vmatprep.subr.bf16.mxu0 %v15008_v45  ;;  %v15072_v52 = vld [vmem:[%s20372_s3 + $0x10e0] ss:$16 sps:$4 sm:$0xff]   ;;  %v15075_v45 = vld [vmem:[%s20372_s3 + $0x10e8] ss:$16 sps:$4 sm:$0xff]  }
 0x4af   :  { %7808 = vmatprep.subr.bf16.mxu1 %v15011_v19  ;;  %v15080_v19 = vld [vmem:[%s20372_s3 + $0x1104] ss:$16 sps:$4 sm:$0xff]  }
 0x4b1   :  { %7663 = vmatpush1.bf16.msra.mxu0 %v15006_v50 }
 0x4b2   :  { %7809 = vmatpush1.bf16.msra.mxu1 %v15009_v44  ;;  %7664 = vmatprep.subr.bf16.mxu0 %v15014_v37  ;;  %v2672_v44 = vpop.permute.xlu0 %2671  ;;  %v15078_v37 = vld [vmem:[%s20372_s3 + $0x1100] ss:$16 sps:$4 sm:$0xff]  }
 0x4b3   :  { %7810 = vmatprep.subr.bf16.mxu1 %v15017_v23  ;;  %v2713_v23 = vsel %vm2679_vm2, %v2672_v44, %v14160_v59  ;;  %v15167_v44 = vld [vmem:[%s20374_s5 + $0x4e4] ss:$16 sps:$4 sm:$0xff]  }
 0x4b5   :  { %7665 = vmatpush1.bf16.msra.mxu0 %v15012_v41  ;;  %v15081_v41 = vld [vmem:[%s20372_s3 + $0x1108] ss:$16 sps:$4 sm:$0xff]  }
 0x4b6   :  { %7811 = vmatpush1.bf16.msra.mxu1 %v15015_v22  ;;  %7666 = vmatprep.subr.bf16.mxu0 %v15020_v6  ;;  %v15086_v6 = vld [vmem:[%s20372_s3 + $0x1124] ss:$16 sps:$4 sm:$0xff]  }
 0x4b7   :  { %7812 = vmatprep.subr.bf16.mxu1 %v15023_v1  ;;  %v15089_v1 = vld [vmem:[%s20372_s3 + $0x112c] ss:$16 sps:$4 sm:$0xff]  }
 0x4b9   :  { %7667 = vmatpush1.bf16.msra.mxu0 %v15018_v26  ;;  %v20444_v26 = vld [vmem:[#allocation13_spill] sm:$0xff] }
 0x4ba   :  { %7813 = vmatpush1.bf16.msra.mxu1 %v15021_v38  ;;  %7668 = vmatprep.subr.bf16.mxu0 %v15026_v60  ;;  %v2808_v38 = vmax.f32 %v20444_v26, %v2713_v23  ;;  %v15087_v60 = vld [vmem:[%s20372_s3 + $0x1128] ss:$16 sps:$4 sm:$0xff]   ;;  %v15173_v23 = vld [vmem:[%s20374_s5 + $0x504] ss:$16 sps:$4 sm:$0xff]   ;;  %v15150_v26 = vld [vmem:[%s20374_s5 + $0x380] ss:$16 sps:$4 sm:$0xff]  }
 0x4bb   :  { %7814 = vmatprep.subr.bf16.mxu1 %v15029_v17  ;;  %v15092_v17 = vld [vmem:[%s20372_s3 + $0x1144] ss:$16 sps:$4 sm:$0xff]  }
 0x4bd   :  { %7669 = vmatpush1.bf16.msra.mxu0 %v15024_v42  ;;  %v6934_v42 = vpack.c.bf16 %v2808_v38, %v18403_v51  ;;  %v15101_v51 = vld [vmem:[%s20372_s3 + $0x116c] ss:$16 sps:$4 sm:$0xff]   ;;  %v15155_v38 = vld [vmem:[%s20374_s5 + $0x3a4] ss:$16 sps:$4 sm:$0xff]  }
 0x4be   :  { %7815 = vmatpush1.bf16.msra.mxu1 %v15027_v63  ;;  %7670 = vmatprep.subr.bf16.mxu0 %v15032_v28  ;;  %v15090_v63 = vld [vmem:[%s20372_s3 + $0x1140] ss:$16 sps:$4 sm:$0xff]   ;;  %v15093_v28 = vld [vmem:[%s20372_s3 + $0x1148] ss:$16 sps:$4 sm:$0xff]  }
 0x4bf   :  { %7816 = vmatprep.subr.bf16.mxu1 %v15035_v14  ;;  %v15098_v14 = vld [vmem:[%s20372_s3 + $0x1164] ss:$16 sps:$4 sm:$0xff]  }
 0x4c1   :  { %7671 = vmatpush1.bf16.msra.mxu0 %v15030_v61  ;;  %v15096_v61 = vld [vmem:[%s20372_s3 + $0x1160] ss:$16 sps:$4 sm:$0xff]  }
 0x4c2   :  { %7817 = vmatpush1.bf16.msra.mxu1 %v15033_v40  ;;  %7672 = vmatprep.subr.bf16.mxu0 %v15038_v57  ;;  %v15099_v40 = vld [vmem:[%s20372_s3 + $0x1168] ss:$16 sps:$4 sm:$0xff]   ;;  %v15104_v57 = vld [vmem:[%s20372_s3 + $0x1184] ss:$16 sps:$4 sm:$0xff]  }
 0x4c3   :  { %7818 = vmatprep.subr.bf16.mxu1 %v15041_v11  ;;  %v15107_v11 = vld [vmem:[%s20372_s3 + $0x118c] ss:$16 sps:$4 sm:$0xff]  }
 0x4c5   :  { %7673 = vmatpush1.bf16.msra.mxu0 %v15036_v25  ;;  %v15105_v25 = vld [vmem:[%s20372_s3 + $0x1188] ss:$16 sps:$4 sm:$0xff]  }
 0x4c6   :  { %7819 = vmatpush1.bf16.msra.mxu1 %v15039_v29  ;;  %7674 = vmatprep.subr.bf16.mxu0 %v15044_v27  ;;  %v15110_v29 = vld [vmem:[%s20372_s3 + $0x11a4] ss:$16 sps:$4 sm:$0xff]   ;;  %v15113_v27 = vld [vmem:[%s20372_s3 + $0x11ac] ss:$16 sps:$4 sm:$0xff]  }
 0x4c7   :  { %7820 = vmatprep.subr.bf16.mxu1 %v15047_v62  ;;  %v15108_v62 = vld [vmem:[%s20372_s3 + $0x11a0] ss:$16 sps:$4 sm:$0xff]  }
 0x4c9   :  { %7675 = vmatpush1.bf16.msra.mxu0 %v15042_v43  ;;  %v15111_v43 = vld [vmem:[%s20372_s3 + $0x11a8] ss:$16 sps:$4 sm:$0xff]  }
 0x4ca   :  { %7821 = vmatpush1.bf16.msra.mxu1 %v15045_v7  ;;  %7676 = vmatprep.subr.bf16.mxu0 %v15050_v55  ;;  %v15116_v7 = vld [vmem:[%s20372_s3 + $0x11c4] ss:$16 sps:$4 sm:$0xff]   ;;  %v15119_v55 = vld [vmem:[%s20372_s3 + $0x11cc] ss:$16 sps:$4 sm:$0xff]  }
 0x4cb   :  { %7822 = vmatprep.subr.bf16.mxu1 %v15053_v53  ;;  %v15114_v53 = vld [vmem:[%s20372_s3 + $0x11c0] ss:$16 sps:$4 sm:$0xff]  }
 0x4cd   :  { %7677 = vmatpush1.bf16.msra.mxu0 %v15048_v2  ;;  %v15117_v2 = vld [vmem:[%s20372_s3 + $0x11c8] ss:$16 sps:$4 sm:$0xff]  }
 0x4ce   :  { %7823 = vmatpush1.bf16.msra.mxu1 %v15051_v10  ;;  %7719 = vmatprep.subr.bf16.mxu0 %v15056_v58  ;;  %v15122_v10 = vld [vmem:[%s20372_s3 + $0x11e4] ss:$16 sps:$4 sm:$0xff]   ;;  %v15125_v58 = vld [vmem:[%s20372_s3 + $0x11ec] ss:$16 sps:$4 sm:$0xff]  }
 0x4cf   :  { %7865 = vmatprep.subr.bf16.mxu1 %v15059_v49  ;;  %v15120_v49 = vld [vmem:[%s20372_s3 + $0x11e0] ss:$16 sps:$4 sm:$0xff]  }
 0x4d0   :  { %7679 = vmatmul.mubr.bf16.vlgmr.msra.gmra.mrb[48].mxu0 %v17050_v35 }
 0x4d1   :  { %7825 = vmatmul.mubr.bf16.vlgmr.msra.gmra.mrb[48].mxu1 %v17050_v35  ;;  %7688 = vmatprep.mubr.bf16.mxu0 %v17098_v34  ;;  %v14161_v35 = vunpack.i.h.bf16 %v18744_v54  ;;  %v15137_v54 = vld [vmem:[%s20374_s5 + $0x2e4] ss:$16 sps:$4 sm:$0xff]  }
 0x4d2   :  { %7720 = vmatpush1.bf16.msra.mxu0 %v15054_v4  ;;  %7834 = vmatprep.mubr.bf16.mxu1 %v17098_v34  ;;  %v15071_v34 = vld [vmem:[%s20372_s3 + $0x10cc] ss:$16 sps:$4 sm:$0xff]   ;;  %v15123_v4 = vld [vmem:[%s20372_s3 + $0x11e8] ss:$16 sps:$4 sm:$0xff]  }
 0x4d3   :  { %7866 = vmatpush1.bf16.msra.mxu1 %v15057_v3  ;;  %7721 = vmatprep.subr.bf16.mxu0 %v15062_v18  ;;  %v2714_v16 = vsel %vm2679_vm2, %v14160_v59, %v14161_v35  ;;  %v15126_v3 = vld [vmem:[%s20372_s3 + $0x1204] ss:$16 sps:$4 sm:$0x3f]   ;;  %v15130_v18 = vld [vmem:[%s20372_s3 + $0x1200] ss:$16 sps:$4 sm:$0x3f]   ;;  %v2678_v59 = vpop.permute.xlu1 %2677 }
 0x4d4   :  { %7867 = vmatprep.subr.bf16.mxu1 %v15065_v21  ;;  %v15128_v21 = vld [vmem:[%s20372_s3 + $0x120c] ss:$16 sps:$4 sm:$0x3f]  }
 0x4d6   :  { %7722 = vmatpush1.bf16.msra.mxu0 %v15060_v20  ;;  %v15131_v20 = vld [vmem:[%s20372_s3 + $0x1208] ss:$16 sps:$4 sm:$0x3f]  }
 0x4d7   :  { %7868 = vmatpush1.bf16.msra.mxu1 %v15063_v9  ;;  %7723 = vmatprep.subr.bf16.mxu0 %v15068_v8  ;;  %v7635_v9 = vsel %vm175_vm0, %v15130_v18, 0  ;;  %v7641_v8 = vsel %vm175_vm0, %v15131_v20, 0 }
 0x4d8   :  { %7689 = vmatmul.mubr.bf16.gmra.mrb[52].mxu0 %v17125_v15  ;;  %7869 = vmatprep.subr.bf16.mxu1 %v15071_v34  ;;  %v20445_v34 = vld [vmem:[#allocation15_spill] sm:$0xff] }
 0x4d9   :  { %7835 = vmatmul.mubr.bf16.gmra.mrb[52].mxu1 %v17125_v15  ;;  %7698 = vmatprep.mubr.bf16.mxu0 %v17960_v32  ;;  %v20443_v15 = vld [vmem:[#allocation16_spill] sm:$0xff] }
 0x4da   :  { %7724 = vmatpush1.bf16.msra.mxu0 %v15066_v47  ;;  %7844 = vmatprep.mubr.bf16.mxu1 %v17960_v32  ;;  %v2809_v50 = vmax.f32 %v20443_v15, %v2714_v16  ;;  %v15083_v32 = vld [vmem:[%s20372_s3 + $0x110c] ss:$16 sps:$4 sm:$0xff]   ;;  %v2811_v47 = vmax.f32 %v20445_v34, %v2678_v59  ;;  %v15138_v16 = vld [vmem:[%s20374_s5 + $0x300] ss:$16 sps:$4 sm:$0xff]   ;;  %v15161_v15 = vld [vmem:[%s20374_s5 + $0x4c4] ss:$16 sps:$4 sm:$0xff]  }
 0x4db   :  { %7870 = vmatpush1.bf16.msra.mxu1 %v15069_v12  ;;  %7725 = vmatprep.subr.bf16.mxu0 %v15074_v5  ;;  %v20447_v5 = vmov 0  }
 0x4dc   :  { %7871 = vmatprep.subr.bf16.mxu1 %v15077_v13  ;;  %v6935_v22 = vpack.c.bf16 %v2809_v50, %v18377_v31  ;;  %v15084_v31 = vld [vmem:[%s20372_s3 + $0x1120] ss:$16 sps:$4 sm:$0xff]   ;;  %v6937_v12 = vpack.c.bf16 %v2811_v47, %v18560_v39  ;;  %v15143_v13 = vld [vmem:[%s20374_s5 + $0x324] ss:$16 sps:$4 sm:$0xff]  }
 0x4dd   :  { %v15132_v39 = vld [vmem:[%s20374_s5 + $0x2c0] ss:$16 sps:$4 sm:$0xff]  }
 0x4de   :  { %7726 = vmatpush1.bf16.msra.mxu0 %v15072_v52  ;;  %v15141_v52 = vld [vmem:[%s20374_s5 + $0x320] ss:$16 sps:$4 sm:$0xff]  }
 0x4df   :  { %7872 = vmatpush1.bf16.msra.mxu1 %v15075_v45  ;;  %7727 = vmatprep.subr.bf16.mxu0 %v15080_v19  ;;  %v15146_v45 = vld [vmem:[%s20374_s5 + $0x344] ss:$16 sps:$4 sm:$0xff]   ;;  %v15159_v19 = vld [vmem:[%s20374_s5 + $0x4c0] ss:$16 sps:$4 sm:$0xff]  }
 0x4e0   :  { %7699 = vmatmul.mubr.bf16.gmra.mrb[56].mxu0 %v17989_v48  ;;  %7873 = vmatprep.subr.bf16.mxu1 %v15083_v32  ;;  %v15144_v50 = vld [vmem:[%s20374_s5 + $0x340] ss:$16 sps:$4 sm:$0xff]  }
 0x4e1   :  { %7845 = vmatmul.mubr.bf16.gmra.mrb[56].mxu1 %v17989_v48  ;;  %7708 = vmatprep.mubr.bf16.mxu0 %v6935_v22  ;;  %v15095_v48 = vld [vmem:[%s20372_s3 + $0x114c] ss:$16 sps:$4 sm:$0xff]   ;;  %v15165_v32 = vld [vmem:[%s20374_s5 + $0x4e0] ss:$16 sps:$4 sm:$0xff]  }
 0x4e2   :  { %7728 = vmatpush1.bf16.msra.mxu0 %v15078_v37  ;;  %7854 = vmatprep.mubr.bf16.mxu1 %v6935_v22  ;;  %v15149_v37 = vld [vmem:[%s20374_s5 + $0x364] ss:$16 sps:$4 sm:$0xff]   ;;  %v15171_v22 = vld [vmem:[%s20374_s5 + $0x500] ss:$16 sps:$4 sm:$0xff]  }
 0x4e3   :  { %7874 = vmatpush1.bf16.msra.mxu1 %v15081_v41  ;;  %7729 = vmatprep.subr.bf16.mxu0 %v15086_v6  ;;  %v15147_v41 = vld [vmem:[%s20374_s5 + $0x360] ss:$16 sps:$4 sm:$0xff]   ;;  %v15152_v6 = vld [vmem:[%s20374_s5 + $0x384] ss:$16 sps:$4 sm:$0xff]  }
 0x4e4   :  { %7875 = vmatprep.subr.bf16.mxu1 %v15089_v1  ;;  %v15182_v1 = vld [vmem:[%s20374_s5 + $0x524] ss:$16 sps:$4 sm:$0xff]  }
 0x4e6   :  { %7730 = vmatpush1.bf16.msra.mxu0 %v15084_v31  ;;  %v15180_v31 = vld [vmem:[%s20374_s5 + $0x520] ss:$16 sps:$4 sm:$0xff]  }
 0x4e7   :  { %7876 = vmatpush1.bf16.msra.mxu1 %v15087_v60  ;;  %7731 = vmatprep.subr.bf16.mxu0 %v15092_v17  ;;  %v15188_v60 = vld [vmem:[%s20374_s5 + $0x544] ss:$16 sps:$4 sm:$0xff]   ;;  %v15153_v17 = vld [vmem:[%s20374_s5 + $0x3a0] ss:$16 sps:$4 sm:$0xff]  }
 0x4e8   :  { %7709 = vmatmul.mubr.bf16.gmra.mrb[60].mxu0 %v6934_v42  ;;  %7877 = vmatprep.subr.bf16.mxu1 %v15095_v48  ;;  %v15186_v48 = vld [vmem:[%s20374_s5 + $0x540] ss:$16 sps:$4 sm:$0xff]  }
 0x4e9   :  { %7855 = vmatmul.mubr.bf16.gmra.mrb[60].mxu1 %v6934_v42  ;;  %12667 = vmatprep.mubr.msk.bf16.mxu0 %vm3653_vm3, %v17222_v30  ;;  %v15158_v42 = vld [vmem:[%s20374_s5 + $0x3c4] ss:$16 sps:$4 sm:$0xff]  }
 0x4ea   :  { %7732 = vmatpush1.bf16.msra.mxu0 %v15090_v63  ;;  %12672 = vmatprep.mubr.msk.bf16.mxu1 %vm3653_vm3, %v17222_v30  ;;  %v15102_v30 = vld [vmem:[%s20372_s3 + $0x1180] ss:$16 sps:$4 sm:$0xff]  }
 0x4eb   :  { %7878 = vmatpush1.bf16.msra.mxu1 %v15093_v28  ;;  %7733 = vmatprep.subr.bf16.mxu0 %v15098_v14  ;;  %v15156_v63 = vld [vmem:[%s20374_s5 + $0x3c0] ss:$16 sps:$4 sm:$0xff]   ;;  %v15164_v28 = vld [vmem:[%s20374_s5 + $0x3e4] ss:$16 sps:$4 sm:$0xff]  }
 0x4ec   :  { %7879 = vmatprep.subr.bf16.mxu1 %v15101_v51  ;;  %v15162_v14 = vld [vmem:[%s20374_s5 + $0x3e0] ss:$16 sps:$4 sm:$0xff]   ;;  %v15170_v51 = vld [vmem:[%s20374_s5 + $0x404] ss:$16 sps:$4 sm:$0xff]  }
 0x4ee   :  { %7734 = vmatpush1.bf16.msra.mxu0 %v15096_v61  ;;  %v15168_v61 = vld [vmem:[%s20374_s5 + $0x400] ss:$16 sps:$4 sm:$0xff]  }
 0x4ef   :  { %7880 = vmatpush1.bf16.msra.mxu1 %v15099_v40  ;;  %7735 = vmatprep.subr.bf16.mxu0 %v15104_v57  ;;  %v15176_v40 = vld [vmem:[%s20374_s5 + $0x424] ss:$16 sps:$4 sm:$0xff]   ;;  %v15174_v57 = vld [vmem:[%s20374_s5 + $0x420] ss:$16 sps:$4 sm:$0xff]  }
 0x4f0   :  { %7881 = vmatprep.subr.bf16.mxu1 %v15107_v11  ;;  %v15179_v11 = vld [vmem:[%s20374_s5 + $0x444] ss:$16 sps:$4 sm:$0xff]  }
 0x4f2   :  { %7736 = vmatpush1.bf16.msra.mxu0 %v15102_v30  ;;  %v15177_v30 = vld [vmem:[%s20374_s5 + $0x440] ss:$16 sps:$4 sm:$0xff]  }
 0x4f3   :  { %7882 = vmatpush1.bf16.msra.mxu1 %v15105_v25  ;;  %7737 = vmatprep.subr.bf16.mxu0 %v15110_v29  ;;  %v15185_v25 = vld [vmem:[%s20374_s5 + $0x464] ss:$16 sps:$4 sm:$0xff]   ;;  %v15183_v29 = vld [vmem:[%s20374_s5 + $0x460] ss:$16 sps:$4 sm:$0xff]  }
 0x4f4   :  { %7883 = vmatprep.subr.bf16.mxu1 %v15113_v27  ;;  %v7970_v27 = vld [vmem:[%s20375_s4] sm:$0xf] }
 0x4f6   :  { %7738 = vmatpush1.bf16.msra.mxu0 %v15108_v62  ;;  %v20448_v62 = vld [vmem:[#allocation2_spill] sm:$0xff] }
 0x4f7   :  { %7884 = vmatpush1.bf16.msra.mxu1 %v15111_v43  ;;  %7739 = vmatprep.subr.bf16.mxu0 %v15116_v7  ;;  %v19053_v43 = vrot.slane %v7970_v27, %v20448_v62  ;;  %v20449_v7 = vld [vmem:[#allocation3_spill] sm:$0xff] }
 0x4f8   :  { %7885 = vmatprep.subr.bf16.mxu1 %v15119_v55  ;;  %v19056_v55 = vrot.slane %v7970_v27, %v20449_v7 }
 0x4fa   :  { %7740 = vmatpush1.bf16.msra.mxu0 %v15114_v53  ;;  %v20450_v53 = vld [vmem:[#allocation4_spill] sm:$0xff] }
 0x4fb   :  { %7886 = vmatpush1.bf16.msra.mxu1 %v15117_v2  ;;  %7741 = vmatprep.subr.bf16.mxu0 %v15122_v10  ;;  %v19059_v2 = vrot.slane %v7970_v27, %v20450_v53  ;;  %v20451_v10 = vld [vmem:[#allocation5_spill] sm:$0xff] }
 0x4fc   :  { %7887 = vmatprep.subr.bf16.mxu1 %v15125_v58  ;;  %v19062_v58 = vrot.slane %v7970_v27, %v20451_v10 }
 0x4fe   :  { %7742 = vmatpush1.bf16.msra.mxu0 %v15120_v49 }
 0x4ff   :  { %7888 = vmatpush1.bf16.msra.mxu1 %v15123_v4  ;;  %12666 = vmatprep.subr.msk.bf16.mxu0 %vm175_vm0, %v15126_v3 }
 0x500   :  { %12671 = vmatprep.subr.msk.bf16.mxu1 %vm175_vm0, %v15128_v21 }
 0x502   :  { %7744 = vmatpush1.bf16.msra.mxu0 %v7635_v9 }
 0x503   :  { %7890 = vmatpush1.bf16.msra.mxu1 %v7641_v8 }
 0x504   :  { %8834 = vmatprep.subr.bf16.mxu1 %v15161_v15 }
 0x505   :  { %7752 = vmatmul.mubr.bf16.vlgmr.msra.gmra.mrb[48].mxu0 %v17220_v24 }
 0x506   :  { %7898 = vmatmul.mubr.bf16.vlgmr.msra.gmra.mrb[48].mxu1 %v17220_v24  ;;  %12668 = vmatprep.mubr.msk.bf16.mxu0 %vm3653_vm3, %v17210_v36  ;;  %v2715_v24 = vsel %vm2679_vm2, %v14161_v35, %v2678_v59  ;;  %v15140_v35 = vld [vmem:[%s20374_s5 + $0x304] ss:$16 sps:$4 sm:$0xff]  }
 0x507   :  { %12673 = vmatprep.mubr.msk.bf16.mxu1 %vm3653_vm3, %v17210_v36  ;;  %v20446_v36 = vld [vmem:[#allocation14_spill] sm:$0xff]  ;;  %8835 = vmatpush1.bf16.msra.mxu1 %v15159_v19 }
 0x508   :  { %8836 = vmatprep.subr.bf16.mxu1 %v15167_v44 }
 0x50b   :  { %8837 = vmatpush1.bf16.msra.mxu1 %v15165_v32 }
 0x50c   :  { %8838 = vmatprep.subr.bf16.mxu1 %v15173_v23 }
 0x50d   :  { %7762 = vmatmul.mubr.bf16.gmra.mrb[52].mxu0 %v17216_v46 }
 0x50e   :  { %7908 = vmatmul.mubr.bf16.gmra.mrb[52].mxu1 %v17216_v46  ;;  %12669 = vmatprep.mubr.msk.bf16.mxu0 %vm3653_vm3, %v18156_v33  ;;  %v2810_v46 = vmax.f32 %v20446_v36, %v2715_v24 }
 0x50f   :  { %12674 = vmatprep.mubr.msk.bf16.mxu1 %vm3653_vm3, %v18156_v33  ;;  %8839 = vmatpush1.bf16.msra.mxu1 %v15171_v22 }
 0x510   :  { %v6936_v33 = vpack.c.bf16 %v2810_v46, %v18592_v0  ;;  %v15135_v0 = vld [vmem:[%s20374_s5 + $0x2e0] ss:$16 sps:$4 sm:$0xff]   ;;  %8840 = vmatprep.subr.bf16.mxu1 %v15182_v1 }
 0x511   :  { %v15194_v1 = vld [vmem:[%s20374_s5 + $0x560] ss:$16 sps:$4 sm:$0x7f]  }
 0x512   :  { %v8782_v27 = vsel %vm8780_vm4, %v15194_v1, 0 }
 0x513   :  { %8841 = vmatpush1.bf16.msra.mxu1 %v15180_v31 }
 0x514   :  { %8842 = vmatprep.subr.bf16.mxu1 %v15188_v60 }
 0x515   :  { %7772 = vmatmul.mubr.bf16.gmra.mrb[56].mxu0 %v18190_v56 }
 0x516   :  { %7918 = vmatmul.mubr.bf16.gmra.mrb[56].mxu1 %v18190_v56  ;;  %12670 = vmatprep.mubr.msk.bf16.mxu0 %vm3653_vm3, %v6937_v12  ;;  %v15134_v56 = vld [vmem:[%s20374_s5 + $0x2c4] ss:$16 sps:$4 sm:$0xff]  }
 0x517   :  { %12675 = vmatprep.mubr.msk.bf16.mxu1 %vm3653_vm3, %v6937_v12  ;;  %8793 = vmatprep.subr.bf16.mxu0 %v15134_v56 }
 0x518   :  { %8794 = vmatpush1.bf16.msra.mxu0 %v15132_v39  ;;  %8843 = vmatpush1.bf16.msra.mxu1 %v15186_v48  ;;  %v15197_v48 = vld [vmem:[%s20374_s5 + $0x4a4] ss:$16 sps:$4 sm:$0xff]  }
 0x519   :  { %8795 = vmatprep.subr.bf16.mxu0 %v15137_v54 }
 0x51c   :  { %8796 = vmatpush1.bf16.msra.mxu0 %v15135_v0 }
 0x51d   :  { %7782 = vmatmul.mubr.bf16.gmra.mrb[60].mxu0 %v6936_v33  ;;  %8797 = vmatprep.subr.bf16.mxu0 %v15140_v35  ;;  %v15191_v35 = vld [vmem:[%s20374_s5 + $0x484] ss:$16 sps:$4 sm:$0xff]  }
 0x51e   :  { %7928 = vmatmul.mubr.bf16.gmra.mrb[60].mxu1 %v6936_v33 }
 0x51f   :  { %8866 = vmatprep.mubr.bf16.mxu1 %v20447_v5 }
 0x520   :  { %8798 = vmatpush1.bf16.msra.mxu0 %v15138_v16 }
 0x521   :  { %8799 = vmatprep.subr.bf16.mxu0 %v15143_v13 }
 0x524   :  { %8800 = vmatpush1.bf16.msra.mxu0 %v15141_v52  ;;  %v15189_v52 = vld [vmem:[%s20374_s5 + $0x480] ss:$16 sps:$4 sm:$0xff]  }
 0x525   :  { %8801 = vmatprep.subr.bf16.mxu0 %v15146_v45 }
 0x528   :  { %8802 = vmatpush1.bf16.msra.mxu0 %v15144_v50 }
 0x529   :  { %8803 = vmatprep.subr.bf16.mxu0 %v15149_v37  ;;  %v15192_v37 = vld [vmem:[%s20374_s5 + $0x564] ss:$16 sps:$4 sm:$0x7f]  }
 0x52a   :  { %12852 = vmatprep.subr.msk.bf16.mxu1 %vm8780_vm4, %v15192_v37 }
 0x52b   :  { %8845 = vmatpush1.bf16.msra.mxu1 %v8782_v27 }
 0x52c   :  { %8804 = vmatpush1.bf16.msra.mxu0 %v15147_v41 }
 0x52d   :  { %8805 = vmatprep.subr.bf16.mxu0 %v15152_v6 }
 0x530   :  { %8806 = vmatpush1.bf16.msra.mxu0 %v15150_v26 }
 0x531   :  { %8807 = vmatprep.subr.bf16.mxu0 %v15155_v38 }
 0x534   :  { %8808 = vmatpush1.bf16.msra.mxu0 %v15153_v17  ;;  %v15195_v17 = vld [vmem:[%s20374_s5 + $0x4a0] ss:$16 sps:$4 sm:$0xff]  }
 0x535   :  { %8809 = vmatprep.subr.bf16.mxu0 %v15158_v42 }
 0x538   :  { %8810 = vmatpush1.bf16.msra.mxu0 %v15156_v63 }
 0x539   :  { %8811 = vmatprep.subr.bf16.mxu0 %v15164_v28 }
 0x53c   :  { %8812 = vmatpush1.bf16.msra.mxu0 %v15162_v14 }
 0x53d   :  { %8813 = vmatprep.subr.bf16.mxu0 %v15170_v51 }
 0x540   :  { %8814 = vmatpush1.bf16.msra.mxu0 %v15168_v61 }
 0x541   :  { %8815 = vmatprep.subr.bf16.mxu0 %v15176_v40 }
 0x544   :  { %8816 = vmatpush1.bf16.msra.mxu0 %v15174_v57 }
 0x545   :  { %8817 = vmatprep.subr.bf16.mxu0 %v15179_v11  ;;  %v15200_v11 = vld [vmem:[%s20374_s5 + $0x2cc] ss:$16 sps:$4 sm:$0xff]  }
 0x546   :  { %8875 = vmatprep.subr.bf16.mxu1 %v15200_v11 }
 0x548   :  { %8818 = vmatpush1.bf16.msra.mxu0 %v15177_v30 }
 0x549   :  { %8819 = vmatprep.subr.bf16.mxu0 %v15185_v25 }
 0x54c   :  { %8820 = vmatpush1.bf16.msra.mxu0 %v15183_v29 }
 0x54d   :  { %8821 = vmatprep.subr.bf16.mxu0 %v15191_v35 }
 0x550   :  { %8822 = vmatpush1.bf16.msra.mxu0 %v15189_v52 }
 0x551   :  { %8823 = vmatprep.subr.bf16.mxu0 %v15197_v48 }
 0x554   :  { %8824 = vmatpush1.bf16.msra.mxu0 %v15195_v17 }
 0x5d8   :  { %v7753_v49 = vpop.f32.mrb[48].mxu0 }
 0x5d9   :  { %v7992_v4 = vadd.f32 %v19053_v43, %v7753_v49  ;;  %v7899_v3 = vpop.f32.mrb[48].mxu1  ;;  %v7755_v18 = vpop.f32.mrb[49].mxu0 }
 0x5da   :  { %v7994_v21 = vadd.f32 %v19056_v55, %v7899_v3  ;;  %v7993_v20 = vadd.f32 %v19059_v2, %v7755_v18  ;;  %v7901_v9 = vpop.f32.mrb[49].mxu1  ;;  %v7757_v8 = vpop.f32.mrb[50].mxu0  ;;  %v15203_v18 = vld [vmem:[%s20374_s5 + $0x4cc] ss:$16 sps:$4 sm:$0xff]  }
 0x5db   :  { %v7995_v59 = vadd.f32 %v19062_v58, %v7901_v9  ;;  %v7996_v34 = vadd.f32 %v19053_v43, %v7757_v8  ;;  %v7903_v47 = vpop.f32.mrb[50].mxu1  ;;  %v7759_v24 = vpop.f32.mrb[51].mxu0  ;;  %v8024_v12 = vmax.f32 %v7992_v4, 0.0  ;;  %8916 = vmatprep.subr.bf16.mxu0 %v15203_v18 }
 0x5dc   :  { %v8026_v36 = vmax.f32 %v7994_v21, 0.0  ;;  %v7998_v46 = vadd.f32 %v19056_v55, %v7903_v47  ;;  %v7997_v33 = vadd.f32 %v19059_v2, %v7759_v24  ;;  %v7905_v39 = vpop.f32.mrb[51].mxu1  ;;  %v8025_v56 = vmax.f32 %v7993_v20, 0.0 }
 0x5dd   :  { %v8028_v54 = vmax.f32 %v7996_v34, 0.0  ;;  %v7999_v0 = vadd.f32 %v19062_v58, %v7905_v39  ;;  %v8027_v45 = vmax.f32 %v7995_v59, 0.0 }
 0x5de   :  { %v8030_v16 = vmax.f32 %v7998_v46, 0.0  ;;  %v8029_v13 = vmax.f32 %v7997_v33, 0.0 }
 0x5df   :  { %v19078_v19 = vmax.f32 %v8024_v12, %v8028_v54  ;;  %v8031_v15 = vmax.f32 %v7999_v0, 0.0 }
 0x5e0   :  { %v19080_v50 = vmax.f32 %v8026_v36, %v8030_v16  ;;  %v19082_v44 = vmax.f32 %v8025_v56, %v8029_v13  ;;  %v7763_v32 = vpop.f32.mrb[52].mxu0 }
 0x5e1   :  { %v19087_v23 = vmax.f32 %v8027_v45, %v8031_v15  ;;  %v8000_v41 = vadd.f32 %v19053_v43, %v7763_v32  ;;  %v7909_v22 = vpop.f32.mrb[52].mxu1  ;;  %v7765_v6 = vpop.f32.mrb[53].mxu0 }
 0x5e2   :  { %v8002_v26 = vadd.f32 %v19056_v55, %v7909_v22  ;;  %v8001_v38 = vadd.f32 %v19059_v2, %v7765_v6  ;;  %v7911_v31 = vpop.f32.mrb[53].mxu1  ;;  %v7767_v60 = vpop.f32.mrb[54].mxu0  ;;  %v14177_v6 = vpack.i.bf16 %v19078_v19, %v19082_v44 }
 0x5e3   :  { %v8003_v42 = vadd.f32 %v19062_v58, %v7911_v31  ;;  %v8004_v63 = vadd.f32 %v19053_v43, %v7767_v60  ;;  %v7913_v28 = vpop.f32.mrb[54].mxu1  ;;  %v7769_v14 = vpop.f32.mrb[55].mxu0  ;;  %v8032_v51 = vmax.f32 %v8000_v41, 0.0 }
 0x5e4   :  { %v8006_v61 = vadd.f32 %v19056_v55, %v7913_v28  ;;  %v8005_v40 = vadd.f32 %v19059_v2, %v7769_v14  ;;  %v7915_v57 = vpop.f32.mrb[55].mxu1  ;;  %v8034_v30 = vmax.f32 %v8002_v26, 0.0  ;;  %v8033_v49 = vmax.f32 %v8001_v38, 0.0 }
 0x5e5   :  { %v8036_v25 = vmax.f32 %v8004_v63, 0.0  ;;  %v8007_v29 = vadd.f32 %v19062_v58, %v7915_v57  ;;  %v8035_v21 = vmax.f32 %v8003_v42, 0.0  ;;  %v14172_v42 = vpack.i.bf16 %v19087_v23, %v19080_v50 }
 0x5e6   :  { %v8038_v4 = vmax.f32 %v8006_v61, 0.0  ;;  %v8037_v3 = vmax.f32 %v8005_v40, 0.0 }
 0x5e7   :  { %v19114_v20 = vmax.f32 %v8032_v51, %v8036_v25  ;;  %v8039_v9 = vmax.f32 %v8007_v29, 0.0 }
 0x5e8   :  { %v19116_v8 = vmax.f32 %v8034_v30, %v8038_v4  ;;  %v19118_v59 = vmax.f32 %v8033_v49, %v8037_v3  ;;  %v7773_v34 = vpop.f32.mrb[56].mxu0 }
 0x5e9   :  { %v8063_v47 = vmax.f32 %v8035_v21, %v8039_v9  ;;  %v8008_v24 = vadd.f32 %v19053_v43, %v7773_v34  ;;  %v7919_v12 = vpop.f32.mrb[56].mxu1  ;;  %v7775_v36 = vpop.f32.mrb[57].mxu0 }
 0x5ea   :  { %v8010_v46 = vadd.f32 %v19056_v55, %v7919_v12  ;;  %v8009_v33 = vadd.f32 %v19059_v2, %v7775_v36  ;;  %v7921_v39 = vpop.f32.mrb[57].mxu1  ;;  %v7777_v56 = vpop.f32.mrb[58].mxu0  ;;  %v14167_v54 = vpack.i.bf16 %v19114_v20, %v19118_v59 }
 0x5eb   :  { %v8011_v0 = vadd.f32 %v19062_v58, %v7921_v39  ;;  %v8012_v35 = vadd.f32 %v19053_v43, %v7777_v56  ;;  %v7923_v16 = vpop.f32.mrb[58].mxu1  ;;  %v7779_v13 = vpop.f32.mrb[59].mxu0  ;;  %v14162_v52 = vpack.i.bf16 %v8063_v47, %v19116_v8  ;;  %v8040_v37 = vmax.f32 %v8008_v24, 0.0 }
 0x5ec   :  { %v8014_v45 = vadd.f32 %v19056_v55, %v7923_v16  ;;  %v8013_v15 = vadd.f32 %v19059_v2, %v7779_v13  ;;  %v7925_v32 = vpop.f32.mrb[59].mxu1  ;;  %14168 = vrot.lane.b32.xlu1 %v14167_v54, %s15694_s2  ;;  %v8042_v1 = vmax.f32 %v8010_v46, 0.0  ;;  %v8041_v26 = vmax.f32 %v8009_v33, 0.0 }
 0x5ed   :  { %v8044_v41 = vmax.f32 %v8012_v35, 0.0  ;;  %v8015_v22 = vadd.f32 %v19062_v58, %v7925_v32  ;;  %14163 = vrot.lane.b32.xlu0 %v14162_v52, %s15694_s2  ;;  %v8043_v60 = vmax.f32 %v8011_v0, 0.0 }
 0x5ee   :  { %v8046_v38 = vmax.f32 %v8014_v45, 0.0  ;;  %v8045_v31 = vmax.f32 %v8013_v15, 0.0 }
 0x5ef   :  { %v19135_v17 = vmax.f32 %v8040_v37, %v8044_v41  ;;  %v8047_v48 = vmax.f32 %v8015_v22, 0.0 }
 0x5f0   :  { %v19139_v63 = vmax.f32 %v8042_v1, %v8046_v38  ;;  %v19141_v28 = vmax.f32 %v8041_v26, %v8045_v31  ;;  %14178 = vrot.lane.b32.xlu1 %v14177_v6, %s15694_s2  ;;  %v7783_v14 = vpop.f32.mrb[60].mxu0 }
 0x5f1   :  { %v8067_v51 = vmax.f32 %v8043_v60, %v8047_v48  ;;  %14173 = vrot.lane.b32.xlu0 %v14172_v42, %s15694_s2  ;;  %v7929_v61 = vpop.f32.mrb[60].mxu1  ;;  %v8016_v40 = vadd.f32 %v19053_v43, %v7783_v14  ;;  %v7785_v57 = vpop.f32.mrb[61].mxu0  ;;  %v15198_v42 = vld [vmem:[%s20374_s5 + $0x2c8] ss:$16 sps:$4 sm:$0xff]  }
 0x5f2   :  { %v8018_v11 = vadd.f32 %v19056_v55, %v7929_v61  ;;  %v8017_v30 = vadd.f32 %v19059_v2, %v7785_v57  ;;  %v7931_v25 = vpop.f32.mrb[61].mxu1  ;;  %v7787_v23 = vpop.f32.mrb[62].mxu0  ;;  %v14187_v29 = vpack.i.bf16 %v19135_v17, %v19141_v28 }
 0x5f3   :  { %v8019_v27 = vadd.f32 %v19062_v58, %v7931_v25  ;;  %v8020_v49 = vadd.f32 %v19053_v43, %v7787_v23  ;;  %v7933_v4 = vpop.f32.mrb[62].mxu1  ;;  %v7789_v3 = vpop.f32.mrb[63].mxu0  ;;  %v14182_v18 = vpack.i.bf16 %v8067_v51, %v19139_v63  ;;  %v8048_v47 = vmax.f32 %v8016_v40, 0.0  ;;  %v15209_v40 = vld [vmem:[%s20374_s5 + $0x4ec] ss:$16 sps:$4 sm:$0xff]  }
 0x5f4   :  { %v8022_v21 = vadd.f32 %v19056_v55, %v7933_v4  ;;  %v8021_v9 = vadd.f32 %v19059_v2, %v7789_v3  ;;  %v7935_v34 = vpop.f32.mrb[63].mxu1  ;;  %14188 = vrot.lane.b32.xlu1 %v14187_v29, %s15694_s2  ;;  %v8050_v36 = vmax.f32 %v8018_v11, 0.0  ;;  %v8049_v46 = vmax.f32 %v8017_v30, 0.0  ;;  %v15204_v30 = vld [vmem:[%s20374_s5 + $0x2e8] ss:$16 sps:$4 sm:$0xff]  }
 0x5f5   :  { %v8052_v24 = vmax.f32 %v8020_v49, 0.0  ;;  %v8023_v12 = vadd.f32 %v19062_v58, %v7935_v34  ;;  %14183 = vrot.lane.b32.xlu0 %v14182_v18, %s15694_s2  ;;  %v8051_v39 = vmax.f32 %v8019_v27, 0.0  ;;  %v15207_v23 = vld [vmem:[%s20374_s5 + $0x4e8] ss:$16 sps:$4 sm:$0xff]   ;;  %v15212_v29 = vld [vmem:[%s20374_s5 + $0x30c] ss:$16 sps:$4 sm:$0xff]  }
 0x5f6   :  { %v8054_v43 = vmax.f32 %v8022_v21, 0.0  ;;  %v8053_v33 = vmax.f32 %v8021_v9, 0.0  ;;  %v15215_v27 = vld [vmem:[%s20374_s5 + $0x50c] ss:$16 sps:$4 sm:$0xff]   ;;  %v15210_v49 = vld [vmem:[%s20374_s5 + $0x308] ss:$16 sps:$4 sm:$0xff]  }
 0x5f7   :  { %v19158_v56 = vmax.f32 %v8048_v47, %v8052_v24  ;;  %v8055_v54 = vmax.f32 %v8023_v12, 0.0  ;;  %v15213_v4 = vld [vmem:[%s20374_s5 + $0x508] ss:$16 sps:$4 sm:$0xff]   ;;  %v15218_v3 = vld [vmem:[%s20374_s5 + $0x32c] ss:$16 sps:$4 sm:$0xff]  }
 0x5f8   :  { %v19160_v55 = vmax.f32 %v8050_v36, %v8054_v43  ;;  %v19162_v2 = vmax.f32 %v8049_v46, %v8053_v33  ;;  %v15221_v21 = vld [vmem:[%s20374_s5 + $0x52c] ss:$16 sps:$4 sm:$0xff]   ;;  %v15216_v47 = vld [vmem:[%s20374_s5 + $0x328] ss:$16 sps:$4 sm:$0xff]  }
 0x5f9   :  { %v8071_v0 = vmax.f32 %v8051_v39, %v8055_v54  ;;  %v15219_v36 = vld [vmem:[%s20374_s5 + $0x528] ss:$16 sps:$4 sm:$0xff]   ;;  %v15224_v46 = vld [vmem:[%s20374_s5 + $0x34c] ss:$16 sps:$4 sm:$0xff]  }
 0x5fa   :  { %v14197_v35 = vpack.i.bf16 %v19158_v56, %v19162_v2  ;;  %v15227_v43 = vld [vmem:[%s20374_s5 + $0x54c] ss:$16 sps:$4 sm:$0xff]   ;;  %v15222_v39 = vld [vmem:[%s20374_s5 + $0x348] ss:$16 sps:$4 sm:$0xff]  }
 0x5fb   :  { %v14192_v58 = vpack.i.bf16 %v8071_v0, %v19160_v55  ;;  %v15225_v54 = vld [vmem:[%s20374_s5 + $0x548] ss:$16 sps:$4 sm:$0xff]   ;;  %v15230_v0 = vld [vmem:[%s20374_s5 + $0x36c] ss:$16 sps:$4 sm:$0xff]  }
 0x5fc   :  { %14198 = vrot.lane.b32.xlu1 %v14197_v35, %s15694_s2  ;;  %v15231_v35 = vld [vmem:[%s20374_s5 + $0x56c] ss:$16 sps:$4 sm:$0x7f]  }
 0x5fd   :  { %14193 = vrot.lane.b32.xlu0 %v14192_v58, %s15694_s2  ;;  %v15233_v58 = vld [vmem:[%s20374_s5 + $0x568] ss:$16 sps:$4 sm:$0x7f]  }
 0x65e   :  { %v14169_v16 = vpop.permute.xlu1 %14168 }
 0x65f   :  { %v14164_v13 = vpop.permute.xlu0 %14163  ;;  %v14171_v52 = vunpack.i.h.bf16 %v14169_v16  ;;  %v14170_v45 = vunpack.i.l.bf16 %v14169_v16  ;;  %v15228_v16 = vld [vmem:[%s20374_s5 + $0x368] ss:$16 sps:$4 sm:$0xff]  }
 0x660   :  { %v14166_v15 = vunpack.i.h.bf16 %v14164_v13  ;;  %v14165_v32 = vunpack.i.l.bf16 %v14164_v13 }
 0x661   :  { %v8124_v37 = vsel %vm8120_vm5, %v14171_v52, %v14170_v45  ;;  %v15236_v52 = vld [vmem:[%s20374_s5 + $0x38c] ss:$16 sps:$4 sm:$0xff]  }
 0x662   :  { %v8126_v41 = vsel %vm8120_vm5, %v14165_v32, %v14166_v15  ;;  %v8148_v22 = vmax.f32 %v19114_v20, %v8124_v37  ;;  %v19172_v6 = vpop.permute.xlu1 %14178  ;;  %v8125_v1 = vsel %vm8120_vm5, %v14170_v45, %v14165_v32  ;;  %v8788_v45 = vsel %vm8780_vm4, %v15233_v58, 0  ;;  %v15239_v15 = vld [vmem:[%s20374_s5 + $0x4] ss:$16 sps:$4 sm:$0xff]   ;;  %v15234_v37 = vld [vmem:[%s20374_s5 + $0x388] ss:$16 sps:$4 sm:$0xff]  }
 0x663   :  { %v8150_v26 = vmax.f32 %v19116_v8, %v8126_v41  ;;  %v14181_v38 = vunpack.i.h.bf16 %v19172_v6  ;;  %v14180_v31 = vunpack.i.l.bf16 %v19172_v6  ;;  %v8149_v60 = vmax.f32 %v19118_v59, %v8125_v1  ;;  %v15201_v8 = vld [vmem:[%s20374_s5 + $0x4c8] ss:$16 sps:$4 sm:$0xff]   ;;  %v15206_v59 = vld [vmem:[%s20374_s5 + $0x2ec] ss:$16 sps:$4 sm:$0xff]   ;;  %v19242_v24 = vpop.permute.xlu0 %14173  ;;  %v15237_v41 = vld [vmem:[%s20374_s5] ss:$16 sps:$4 sm:$0xff]  }
 0x664   :  { %v19179_v48 = vpack.c.bf16 %v8148_v22, %v8148_v22  ;;  %v14175_v33 = vunpack.i.l.bf16 %v19242_v24  ;;  %v15242_v22 = vld [vmem:[%s20374_s5 + $0x3ac] ss:$16 sps:$4 sm:$0xff]   ;;  %v15240_v1 = vld [vmem:[%s20374_s5 + $0x3a8] ss:$16 sps:$4 sm:$0xff]   ;;  %v15285_v58 = vld [vmem:[%s20374_s5 + $0x100] ss:$16 sps:$4 sm:$0xff]  }
 0x665   :  { %v19184_v20 = vpack.c.bf16 %v8150_v26, %v8150_v26  ;;  %v19187_v14 = vsel %vm8120_vm5, %v14181_v38, %v14180_v31  ;;  %v8249_v51 = vpack.c.bf16 %v8149_v60, %v8149_v60  ;;  %v15243_v26 = vld [vmem:[%s20374_s5 + $0x20] ss:$16 sps:$4 sm:$0xff]   ;;  %v15248_v38 = vld [vmem:[%s20374_s5 + $0x3cc] ss:$16 sps:$4 sm:$0xff]   ;;  %v15246_v60 = vld [vmem:[%s20374_s5 + $0x3c8] ss:$16 sps:$4 sm:$0xff]  }
 0x666   :  { %v19192_v61 = vpop.permute.xlu1 %14188  ;;  %v8122_v13 = vsel %vm8120_vm5, %v14180_v31, %v14175_v33  ;;  %v15251_v31 = vld [vmem:[%s20374_s5 + $0x44] ss:$16 sps:$4 sm:$0xff]  }
 0x667   :  { %12853 = vmatmul.mubr.msk.bf16.vlgmr.msra.gmra.mrb[64].mxu1 %vm8776_vm6, %v19184_v20  ;;  %8825 = vmatprep.mubr.bf16.mxu0 %v8249_v51  ;;  %v14191_v57 = vunpack.i.h.bf16 %v19192_v61  ;;  %v14190_v11 = vunpack.i.l.bf16 %v19192_v61  ;;  %v8146_v32 = vmax.f32 %v19082_v44, %v8122_v13  ;;  %v15245_v44 = vld [vmem:[%s20374_s5 + $0x24] ss:$16 sps:$4 sm:$0xff]   ;;  %v15366_v61 = vld [vmem:[%s20374_s5 + $0xc8] ss:$16 sps:$4 sm:$0xff]  }
 0x668   :  { %8876 = vmatpush1.bf16.msra.mxu1 %v15198_v42  ;;  %8826 = vmatmul.mubr.bf16.vlgmr.msra.gmra.mrb[64].mxu0 %v19179_v48  ;;  %v15249_v42 = vld [vmem:[%s20374_s5 + $0x40] ss:$16 sps:$4 sm:$0xff]   ;;  %v15293_v13 = vld [vmem:[%s20374_s5 + $0x124] ss:$16 sps:$4 sm:$0xff]  }
 0x669   :  { %v19211_v25 = vsel %vm8120_vm5, %v14191_v57, %v14190_v11  ;;  %8907 = vmatprep.mubr.bf16.mxu1 %v8249_v51  ;;  %8917 = vmatpush1.bf16.msra.mxu0 %v15201_v8  ;;  %v19301_v6 = vpack.c.bf16 %v8146_v32, %v8146_v32  ;;  %v15257_v51 = vld [vmem:[%s20374_s5 + $0x64] ss:$16 sps:$4 sm:$0xff]   ;;  %v15252_v8 = vld [vmem:[%s20374_s5 + $0x3e8] ss:$16 sps:$4 sm:$0xff]  }
 0x66a   :  { %8877 = vmatprep.subr.bf16.mxu1 %v15206_v59  ;;  %8918 = vmatprep.subr.bf16.mxu0 %v15209_v40  ;;  %v15255_v59 = vld [vmem:[%s20374_s5 + $0x60] ss:$16 sps:$4 sm:$0xff]   ;;  %v15260_v40 = vld [vmem:[%s20374_s5 + $0x40c] ss:$16 sps:$4 sm:$0xff]   ;;  %v15263_v57 = vld [vmem:[%s20374_s5 + $0x84] ss:$16 sps:$4 sm:$0xff]  }
 0x66b   :  { %8948 = vmatprep.mubr.bf16.mxu0 %v20447_v5  ;;  %v15299_v32 = vld [vmem:[%s20374_s5 + $0x144] ss:$16 sps:$4 sm:$0xff]  }
 0x66c   :  { %8878 = vmatpush1.bf16.msra.mxu1 %v15204_v30  ;;  %v15258_v30 = vld [vmem:[%s20374_s5 + $0x408] ss:$16 sps:$4 sm:$0xff]  }
 0x66d   :  { %8919 = vmatpush1.bf16.msra.mxu0 %v15207_v23  ;;  %8879 = vmatprep.subr.bf16.mxu1 %v15212_v29  ;;  %v15261_v23 = vld [vmem:[%s20374_s5 + $0x80] ss:$16 sps:$4 sm:$0xff]   ;;  %v15266_v29 = vld [vmem:[%s20374_s5 + $0x42c] ss:$16 sps:$4 sm:$0xff]  }
 0x66e   :  { %8920 = vmatprep.subr.bf16.mxu0 %v15215_v27  ;;  %v19232_v18 = vpop.permute.xlu1 %14198  ;;  %v15269_v27 = vld [vmem:[%s20374_s5 + $0xa4] ss:$16 sps:$4 sm:$0xff]  }
 0x66f   :  { %v14201_v9 = vunpack.i.h.bf16 %v19232_v18  ;;  %v14200_v34 = vunpack.i.l.bf16 %v19232_v18  ;;  %v15503_v18 = vld [vmem:[%s20374_s5 + $0x844] ss:$16 sps:$4 sm:$0xff]  }
 0x670   :  { %8880 = vmatpush1.bf16.msra.mxu1 %v15210_v49  ;;  %v15264_v49 = vld [vmem:[%s20374_s5 + $0x428] ss:$16 sps:$4 sm:$0xff]  }
 0x671   :  { %v19247_v12 = vsel %vm8120_vm5, %v14201_v9, %v14200_v34  ;;  %8921 = vmatpush1.bf16.msra.mxu0 %v15213_v4  ;;  %8881 = vmatprep.subr.bf16.mxu1 %v15218_v3  ;;  %v15267_v4 = vld [vmem:[%s20374_s5 + $0xa0] ss:$16 sps:$4 sm:$0xff]   ;;  %v15272_v3 = vld [vmem:[%s20374_s5 + $0x44c] ss:$16 sps:$4 sm:$0xff]   ;;  %v15270_v9 = vld [vmem:[%s20374_s5 + $0x448] ss:$16 sps:$4 sm:$0xff]  }
 0x672   :  { %8922 = vmatprep.subr.bf16.mxu0 %v15221_v21  ;;  %v15275_v21 = vld [vmem:[%s20374_s5 + $0xc4] ss:$16 sps:$4 sm:$0xff]  }
 0x674   :  { %8882 = vmatpush1.bf16.msra.mxu1 %v15216_v47  ;;  %v15273_v47 = vld [vmem:[%s20374_s5 + $0xc0] ss:$16 sps:$4 sm:$0xff]  }
 0x675   :  { %8923 = vmatpush1.bf16.msra.mxu0 %v15219_v36  ;;  %8883 = vmatprep.subr.bf16.mxu1 %v15224_v46  ;;  %v15278_v36 = vld [vmem:[%s20374_s5 + $0x46c] ss:$16 sps:$4 sm:$0xff]   ;;  %v15281_v46 = vld [vmem:[%s20374_s5 + $0xe4] ss:$16 sps:$4 sm:$0xff]  }
 0x676   :  { %8924 = vmatprep.subr.bf16.mxu0 %v15227_v43  ;;  %v15276_v43 = vld [vmem:[%s20374_s5 + $0x468] ss:$16 sps:$4 sm:$0xff]  }
 0x678   :  { %8884 = vmatpush1.bf16.msra.mxu1 %v15222_v39  ;;  %v15279_v39 = vld [vmem:[%s20374_s5 + $0xe0] ss:$16 sps:$4 sm:$0xff]  }
 0x679   :  { %8925 = vmatpush1.bf16.msra.mxu0 %v15225_v54  ;;  %8885 = vmatprep.subr.bf16.mxu1 %v15230_v0  ;;  %v15284_v54 = vld [vmem:[%s20374_s5 + $0x48c] ss:$16 sps:$4 sm:$0xff]   ;;  %v15287_v0 = vld [vmem:[%s20374_s5 + $0x104] ss:$16 sps:$4 sm:$0xff]  }
 0x67a   :  { %12854 = vmatprep.subr.msk.bf16.mxu0 %vm8780_vm4, %v15231_v35  ;;  %v15282_v35 = vld [vmem:[%s20374_s5 + $0x488] ss:$16 sps:$4 sm:$0xff]  }
 0x67c   :  { %8886 = vmatpush1.bf16.msra.mxu1 %v15228_v16  ;;  %v15290_v16 = vld [vmem:[%s20374_s5 + $0x4ac] ss:$16 sps:$4 sm:$0xff]  }
 0x67d   :  { %8927 = vmatpush1.bf16.msra.mxu0 %v8788_v45  ;;  %8887 = vmatprep.subr.bf16.mxu1 %v15236_v52  ;;  %v15288_v52 = vld [vmem:[%s20374_s5 + $0x4a8] ss:$16 sps:$4 sm:$0xff]   ;;  %v15291_v45 = vld [vmem:[%s20374_s5 + $0x120] ss:$16 sps:$4 sm:$0xff]  }
 0x67e   :  { %9408 = vmatprep.subr.bf16.mxu0 %v15239_v15  ;;  %v15296_v15 = vld [vmem:[%s20374_s5 + $0x204] ss:$16 sps:$4 sm:$0xff]  }
 0x680   :  { %8888 = vmatpush1.bf16.msra.mxu1 %v15234_v37  ;;  %12855 = vmatmul.mubr.msk.bf16.vlgmr.msra.gmra.mrb[68].mxu0 %vm8776_vm6, %v19184_v20  ;;  %v15254_v20 = vld [vmem:[%s20374_s5 + $0x3ec] ss:$16 sps:$4 sm:$0xff]   ;;  %v15294_v37 = vld [vmem:[%s20374_s5 + $0x200] ss:$16 sps:$4 sm:$0xff]  }
 0x681   :  { %9409 = vmatpush1.bf16.msra.mxu0 %v15237_v41  ;;  %9440 = vmatprep.mubr.bf16.mxu0 %v19301_v6  ;;  %v15297_v41 = vld [vmem:[%s20374_s5 + $0x140] ss:$16 sps:$4 sm:$0xff]  }
 0x682   :  { %8889 = vmatprep.subr.bf16.mxu1 %v15242_v22  ;;  %9410 = vmatprep.subr.bf16.mxu0 %v15245_v44  ;;  %v15302_v22 = vld [vmem:[%s20374_s5 + $0x224] ss:$16 sps:$4 sm:$0xff]  }
 0x683   :  { %v15305_v44 = vld [vmem:[%s20374_s5 + $0x164] ss:$16 sps:$4 sm:$0xff]  }
 0x684   :  { %8890 = vmatpush1.bf16.msra.mxu1 %v15240_v1  ;;  %v15300_v1 = vld [vmem:[%s20374_s5 + $0x220] ss:$16 sps:$4 sm:$0xff]  }
 0x685   :  { %9411 = vmatpush1.bf16.msra.mxu0 %v15243_v26  ;;  %8891 = vmatprep.subr.bf16.mxu1 %v15248_v38  ;;  %v15303_v26 = vld [vmem:[%s20374_s5 + $0x160] ss:$16 sps:$4 sm:$0xff]   ;;  %v15308_v38 = vld [vmem:[%s20374_s5 + $0x244] ss:$16 sps:$4 sm:$0xff]  }
 0x686   :  { %9412 = vmatprep.subr.bf16.mxu0 %v15251_v31  ;;  %v15306_v31 = vld [vmem:[%s20374_s5 + $0x240] ss:$16 sps:$4 sm:$0xff]  }
 0x688   :  { %8892 = vmatpush1.bf16.msra.mxu1 %v15246_v60  ;;  %v15309_v60 = vld [vmem:[%s20374_s5 + $0x180] ss:$16 sps:$4 sm:$0xff]  }
 0x689   :  { %9413 = vmatpush1.bf16.msra.mxu0 %v15249_v42  ;;  %8893 = vmatprep.subr.bf16.mxu1 %v15254_v20  ;;  %v15314_v42 = vld [vmem:[%s20374_s5 + $0x264] ss:$16 sps:$4 sm:$0xff]  }
 0x68a   :  { %9414 = vmatprep.subr.bf16.mxu0 %v15257_v51  ;;  %v15317_v20 = vld [vmem:[%s20374_s5 + $0x1a4] ss:$16 sps:$4 sm:$0xff]   ;;  %v15312_v51 = vld [vmem:[%s20374_s5 + $0x260] ss:$16 sps:$4 sm:$0xff]  }
 0x68c   :  { %8894 = vmatpush1.bf16.msra.mxu1 %v15252_v8  ;;  %v15315_v8 = vld [vmem:[%s20374_s5 + $0x1a0] ss:$16 sps:$4 sm:$0xff]  }
 0x68d   :  { %9415 = vmatpush1.bf16.msra.mxu0 %v15255_v59  ;;  %8895 = vmatprep.subr.bf16.mxu1 %v15260_v40  ;;  %v15320_v59 = vld [vmem:[%s20374_s5 + $0x284] ss:$16 sps:$4 sm:$0xff]   ;;  %v14176_v40 = vunpack.i.h.bf16 %v19242_v24  ;;  %v15332_v24 = vld [vmem:[%s20374_s5 + $0xc] ss:$16 sps:$4 sm:$0xff]  }
 0x68e   :  { %9416 = vmatprep.subr.bf16.mxu0 %v15263_v57  ;;  %v15323_v57 = vld [vmem:[%s20374_s5 + $0x1c4] ss:$16 sps:$4 sm:$0xff]  }
 0x690   :  { %8896 = vmatpush1.bf16.msra.mxu1 %v15258_v30  ;;  %v15318_v30 = vld [vmem:[%s20374_s5 + $0x280] ss:$16 sps:$4 sm:$0xff]  }
 0x691   :  { %9417 = vmatpush1.bf16.msra.mxu0 %v15261_v23  ;;  %8897 = vmatprep.subr.bf16.mxu1 %v15266_v29  ;;  %v15321_v23 = vld [vmem:[%s20374_s5 + $0x1c0] ss:$16 sps:$4 sm:$0xff]   ;;  %v15324_v29 = vld [vmem:[%s20374_s5 + $0x2a4] ss:$16 sps:$4 sm:$0x7f]  }
 0x692   :  { %9418 = vmatprep.subr.bf16.mxu0 %v15269_v27  ;;  %v15329_v27 = vld [vmem:[%s20374_s5 + $0x2a0] ss:$16 sps:$4 sm:$0x7f]  }
 0x694   :  { %8898 = vmatpush1.bf16.msra.mxu1 %v15264_v49  ;;  %v8123_v49 = vsel %vm8120_vm5, %v14175_v33, %v14176_v40  ;;  %v8145_v33 = vmax.f32 %v19078_v19, %v19187_v14  ;;  %v15338_v19 = vld [vmem:[%s20374_s5 + $0x2c] ss:$16 sps:$4 sm:$0xff]   ;;  %v15372_v40 = vld [vmem:[%s20374_s5 + $0xe8] ss:$16 sps:$4 sm:$0xff]  }
 0x695   :  { %9419 = vmatpush1.bf16.msra.mxu0 %v15267_v4  ;;  %8899 = vmatprep.subr.bf16.mxu1 %v15272_v3  ;;  %v15328_v4 = vld [vmem:[%s20374_s5 + $0x1e4] ss:$16 sps:$4 sm:$0xff]   ;;  %v8147_v3 = vmax.f32 %v19080_v50, %v8123_v49  ;;  %v15335_v50 = vld [vmem:[%s20374_s5 + $0x20c] ss:$16 sps:$4 sm:$0xff]  }
 0x696   :  { %9420 = vmatprep.subr.bf16.mxu0 %v15275_v21  ;;  %v15326_v21 = vld [vmem:[%s20374_s5 + $0x1e0] ss:$16 sps:$4 sm:$0xff]   ;;  %v15341_v14 = vld [vmem:[%s20374_s5 + $0x22c] ss:$16 sps:$4 sm:$0xff]  }
 0x697   :  { %v15386_v49 = vld [vmem:[%s20374_s5 + $0x12c] ss:$16 sps:$4 sm:$0xff]  }
 0x698   :  { %8900 = vmatpush1.bf16.msra.mxu1 %v15270_v9  ;;  %v9397_v9 = vsel %vm8780_vm4, %v15329_v27, 0  ;;  %v15381_v27 = vld [vmem:[%s20374_s5 + $0x5c0] ss:$16 sps:$4 sm:$0xff]  }
 0x699   :  { %9421 = vmatpush1.bf16.msra.mxu0 %v15273_v47  ;;  %8901 = vmatprep.subr.bf16.mxu1 %v15278_v36  ;;  %v15330_v47 = vld [vmem:[%s20374_s5 + $0x8] ss:$16 sps:$4 sm:$0xff]   ;;  %v19500_v36 = vpack.c.bf16 %v8147_v3, %v8147_v3 }
 0x69a   :  { %9422 = vmatprep.subr.bf16.mxu0 %v15281_v46  ;;  %v15333_v46 = vld [vmem:[%s20374_s5 + $0x208] ss:$16 sps:$4 sm:$0xff]  }
 0x69b   :  { %v15384_v3 = vld [vmem:[%s20374_s5 + $0x128] ss:$16 sps:$4 sm:$0xff]  }
 0x69c   :  { %8902 = vmatpush1.bf16.msra.mxu1 %v15276_v43  ;;  %v19505_v43 = vpack.c.bf16 %v8145_v33, %v8145_v33  ;;  %v15390_v33 = vld [vmem:[%s20374_s5 + $0x148] ss:$16 sps:$4 sm:$0xff]  }
 0x69d   :  { %9423 = vmatpush1.bf16.msra.mxu0 %v15279_v39  ;;  %8903 = vmatprep.subr.bf16.mxu1 %v15284_v54  ;;  %v15336_v39 = vld [vmem:[%s20374_s5 + $0x28] ss:$16 sps:$4 sm:$0xff]  }
 0x69e   :  { %9424 = vmatprep.subr.bf16.mxu0 %v15287_v0  ;;  %v15339_v54 = vld [vmem:[%s20374_s5 + $0x228] ss:$16 sps:$4 sm:$0xff]   ;;  %v15344_v0 = vld [vmem:[%s20374_s5 + $0x4c] ss:$16 sps:$4 sm:$0xff]  }
 0x6a0   :  { %8904 = vmatpush1.bf16.msra.mxu1 %v15282_v35  ;;  %v15347_v35 = vld [vmem:[%s20374_s5 + $0x24c] ss:$16 sps:$4 sm:$0xff]  }
 0x6a1   :  { %9425 = vmatpush1.bf16.msra.mxu0 %v15285_v58  ;;  %8905 = vmatprep.subr.bf16.mxu1 %v15290_v16  ;;  %v15345_v58 = vld [vmem:[%s20374_s5 + $0x248] ss:$16 sps:$4 sm:$0xff]   ;;  %v15350_v16 = vld [vmem:[%s20374_s5 + $0x6c] ss:$16 sps:$4 sm:$0xff]  }
 0x6a2   :  { %9426 = vmatprep.subr.bf16.mxu0 %v15293_v13  ;;  %v15353_v13 = vld [vmem:[%s20374_s5 + $0x26c] ss:$16 sps:$4 sm:$0xff]  }
 0x6a4   :  { %8906 = vmatpush1.bf16.msra.mxu1 %v15288_v52  ;;  %v15348_v52 = vld [vmem:[%s20374_s5 + $0x68] ss:$16 sps:$4 sm:$0xff]  }
 0x6a5   :  { %9427 = vmatpush1.bf16.msra.mxu0 %v15291_v45  ;;  %9449 = vmatprep.subr.bf16.mxu1 %v15296_v15  ;;  %v19545_v45 = vpop.permute.xlu0 %14183  ;;  %v15351_v15 = vld [vmem:[%s20374_s5 + $0x268] ss:$16 sps:$4 sm:$0xff]  }
 0x6a6   :  { %9428 = vmatprep.subr.bf16.mxu0 %v15299_v32  ;;  %v15356_v32 = vld [vmem:[%s20374_s5 + $0x8c] ss:$16 sps:$4 sm:$0xff]  }
 0x6a7   :  { %8908 = vmatmul.mubr.bf16.vlgmr.msra.gmra.mrb[68].mxu1 %v19179_v48  ;;  %v15311_v48 = vld [vmem:[%s20374_s5 + $0x184] ss:$16 sps:$4 sm:$0xff]  }
 0x6a8   :  { %9450 = vmatpush1.bf16.msra.mxu1 %v15294_v37  ;;  %9481 = vmatprep.mubr.bf16.mxu1 %v20447_v5  ;;  %v15359_v37 = vld [vmem:[%s20374_s5 + $0x28c] ss:$16 sps:$4 sm:$0xff]  }
 0x6a9   :  { %9429 = vmatpush1.bf16.msra.mxu0 %v15297_v41  ;;  %9451 = vmatprep.subr.bf16.mxu1 %v15302_v22  ;;  %v14185_v41 = vunpack.i.l.bf16 %v19545_v45  ;;  %v15354_v22 = vld [vmem:[%s20374_s5 + $0x88] ss:$16 sps:$4 sm:$0xff]  }
 0x6aa   :  { %9430 = vmatprep.subr.bf16.mxu0 %v15305_v44  ;;  %v15357_v44 = vld [vmem:[%s20374_s5 + $0x288] ss:$16 sps:$4 sm:$0xff]  }
 0x6ac   :  { %9452 = vmatpush1.bf16.msra.mxu1 %v15300_v1  ;;  %v15362_v1 = vld [vmem:[%s20374_s5 + $0xac] ss:$16 sps:$4 sm:$0xff]  }
 0x6ad   :  { %9431 = vmatpush1.bf16.msra.mxu0 %v15303_v26  ;;  %9453 = vmatprep.subr.bf16.mxu1 %v15308_v38  ;;  %v15363_v26 = vld [vmem:[%s20374_s5 + $0x2ac] ss:$16 sps:$4 sm:$0x7f]   ;;  %v15365_v38 = vld [vmem:[%s20374_s5 + $0x2a8] ss:$16 sps:$4 sm:$0x7f]  }
 0x6ae   :  { %9432 = vmatprep.subr.bf16.mxu0 %v15311_v48  ;;  %v15360_v48 = vld [vmem:[%s20374_s5 + $0xa8] ss:$16 sps:$4 sm:$0xff]  }
 0x6b0   :  { %9454 = vmatpush1.bf16.msra.mxu1 %v15306_v31  ;;  %v8128_v31 = vsel %vm8120_vm5, %v14190_v11, %v14185_v41  ;;  %v15369_v11 = vld [vmem:[%s20374_s5 + $0x580] ss:$16 sps:$4 sm:$0xff]  }
 0x6b1   :  { %9433 = vmatpush1.bf16.msra.mxu0 %v15309_v60  ;;  %9455 = vmatprep.subr.bf16.mxu1 %v15314_v42  ;;  %v15368_v60 = vld [vmem:[%s20374_s5 + $0xcc] ss:$16 sps:$4 sm:$0xff]   ;;  %v9403_v42 = vsel %vm8780_vm4, %v15365_v38, 0  ;;  %v15431_v38 = vld [vmem:[%s20374_s5 + $0x6c4] ss:$16 sps:$4 sm:$0xff]  }
 0x6b2   :  { %9434 = vmatprep.subr.bf16.mxu0 %v15317_v20  ;;  %v15371_v20 = vld [vmem:[%s20374_s5 + $0x584] ss:$16 sps:$4 sm:$0xff]  }
 0x6b4   :  { %9456 = vmatpush1.bf16.msra.mxu1 %v15312_v51  ;;  %v8152_v51 = vmax.f32 %v19141_v28, %v8128_v31  ;;  %v15377_v28 = vld [vmem:[%s20374_s5 + $0x5a4] ss:$16 sps:$4 sm:$0xff]   ;;  %v15429_v31 = vld [vmem:[%s20374_s5 + $0x6c0] ss:$16 sps:$4 sm:$0xff]  }
 0x6b5   :  { %9435 = vmatpush1.bf16.msra.mxu0 %v15315_v8  ;;  %9457 = vmatprep.subr.bf16.mxu1 %v15320_v59  ;;  %v15374_v8 = vld [vmem:[%s20374_s5 + $0xec] ss:$16 sps:$4 sm:$0xff]  }
 0x6b6   :  { %9436 = vmatprep.subr.bf16.mxu0 %v15323_v57  ;;  %v19601_v59 = vpack.c.bf16 %v8152_v51, %v8152_v51  ;;  %v15375_v57 = vld [vmem:[%s20374_s5 + $0x5a0] ss:$16 sps:$4 sm:$0xff]  }
 0x6b7   :  { %v15435_v51 = vld [vmem:[%s20374_s5 + $0x6e0] ss:$16 sps:$4 sm:$0xff]  }
 0x6b8   :  { %9458 = vmatpush1.bf16.msra.mxu1 %v15318_v30  ;;  %v15380_v30 = vld [vmem:[%s20374_s5 + $0x10c] ss:$16 sps:$4 sm:$0xff]  }
 0x6b9   :  { %9437 = vmatpush1.bf16.msra.mxu0 %v15321_v23  ;;  %12944 = vmatprep.subr.msk.bf16.mxu1 %vm8780_vm4, %v15324_v29  ;;  %v15383_v23 = vld [vmem:[%s20374_s5 + $0x5c4] ss:$16 sps:$4 sm:$0xff]   ;;  %v15378_v29 = vld [vmem:[%s20374_s5 + $0x108] ss:$16 sps:$4 sm:$0xff]  }
 0x6ba   :  { %9438 = vmatprep.subr.bf16.mxu0 %v15328_v4  ;;  %v15389_v4 = vld [vmem:[%s20374_s5 + $0x5e4] ss:$16 sps:$4 sm:$0xff]  }
 0x6bc   :  { %9460 = vmatpush1.bf16.msra.mxu1 %v9397_v9  ;;  %v15392_v9 = vld [vmem:[%s20374_s5 + $0x14c] ss:$16 sps:$4 sm:$0xff]  }
 0x6bd   :  { %9439 = vmatpush1.bf16.msra.mxu0 %v15326_v21  ;;  %9490 = vmatprep.subr.bf16.mxu1 %v15332_v24  ;;  %v15387_v21 = vld [vmem:[%s20374_s5 + $0x5e0] ss:$16 sps:$4 sm:$0xff]   ;;  %v15395_v24 = vld [vmem:[%s20374_s5 + $0x604] ss:$16 sps:$4 sm:$0xff]  }
 0x6be   :  { %9531 = vmatprep.subr.bf16.mxu0 %v15335_v50  ;;  %v15393_v50 = vld [vmem:[%s20374_s5 + $0x600] ss:$16 sps:$4 sm:$0xff]  }
 0x6bf   :  { %12945 = vmatmul.mubr.msk.bf16.vlgmr.msra.gmra.mrb[72].mxu1 %vm8776_vm6, %v19500_v36 }
 0x6c0   :  { %9441 = vmatmul.mubr.bf16.vlgmr.msra.gmra.mrb[72].mxu0 %v19505_v43  ;;  %9491 = vmatpush1.bf16.msra.mxu1 %v15330_v47  ;;  %v15398_v47 = vld [vmem:[%s20374_s5 + $0x16c] ss:$16 sps:$4 sm:$0xff]  }
 0x6c1   :  { %9522 = vmatprep.mubr.bf16.mxu1 %v19301_v6  ;;  %9532 = vmatpush1.bf16.msra.mxu0 %v15333_v46  ;;  %v15342_v6 = vld [vmem:[%s20374_s5 + $0x48] ss:$16 sps:$4 sm:$0xff]  }
 0x6c2   :  { %9492 = vmatprep.subr.bf16.mxu1 %v15338_v19  ;;  %9533 = vmatprep.subr.bf16.mxu0 %v15341_v14  ;;  %v15396_v46 = vld [vmem:[%s20374_s5 + $0x168] ss:$16 sps:$4 sm:$0xff]   ;;  %v15399_v19 = vld [vmem:[%s20374_s5 + $0x620] ss:$16 sps:$4 sm:$0xff]   ;;  %v15404_v14 = vld [vmem:[%s20374_s5 + $0x18c] ss:$16 sps:$4 sm:$0xff]  }
 0x6c3   :  { %9563 = vmatprep.mubr.bf16.mxu0 %v20447_v5 }
 0x6c4   :  { %9493 = vmatpush1.bf16.msra.mxu1 %v15336_v39  ;;  %v15407_v39 = vld [vmem:[%s20374_s5 + $0x644] ss:$16 sps:$4 sm:$0xff]  }
 0x6c5   :  { %9534 = vmatpush1.bf16.msra.mxu0 %v15339_v54  ;;  %9494 = vmatprep.subr.bf16.mxu1 %v15344_v0  ;;  %v15402_v54 = vld [vmem:[%s20374_s5 + $0x188] ss:$16 sps:$4 sm:$0xff]   ;;  %v15405_v0 = vld [vmem:[%s20374_s5 + $0x640] ss:$16 sps:$4 sm:$0xff]  }
 0x6c6   :  { %9535 = vmatprep.subr.bf16.mxu0 %v15347_v35  ;;  %v15410_v35 = vld [vmem:[%s20374_s5 + $0x1ac] ss:$16 sps:$4 sm:$0xff]  }
 0x6c8   :  { %9495 = vmatpush1.bf16.msra.mxu1 %v15342_v6  ;;  %v15413_v6 = vld [vmem:[%s20374_s5 + $0x664] ss:$16 sps:$4 sm:$0xff]  }
 0x6c9   :  { %9536 = vmatpush1.bf16.msra.mxu0 %v15345_v58  ;;  %9496 = vmatprep.subr.bf16.mxu1 %v15350_v16  ;;  %v15408_v58 = vld [vmem:[%s20374_s5 + $0x1a8] ss:$16 sps:$4 sm:$0xff]   ;;  %v15411_v16 = vld [vmem:[%s20374_s5 + $0x660] ss:$16 sps:$4 sm:$0xff]  }
 0x6ca   :  { %9537 = vmatprep.subr.bf16.mxu0 %v15353_v13  ;;  %v15416_v13 = vld [vmem:[%s20374_s5 + $0x1cc] ss:$16 sps:$4 sm:$0xff]  }
 0x6cc   :  { %9497 = vmatpush1.bf16.msra.mxu1 %v15348_v52  ;;  %v15419_v52 = vld [vmem:[%s20374_s5 + $0x684] ss:$16 sps:$4 sm:$0xff]  }
 0x6cd   :  { %9538 = vmatpush1.bf16.msra.mxu0 %v15351_v15  ;;  %9498 = vmatprep.subr.bf16.mxu1 %v15356_v32  ;;  %v15414_v15 = vld [vmem:[%s20374_s5 + $0x1c8] ss:$16 sps:$4 sm:$0xff]   ;;  %v15417_v32 = vld [vmem:[%s20374_s5 + $0x680] ss:$16 sps:$4 sm:$0xff]  }
 0x6ce   :  { %9539 = vmatprep.subr.bf16.mxu0 %v15359_v37  ;;  %v15422_v37 = vld [vmem:[%s20374_s5 + $0x1ec] ss:$16 sps:$4 sm:$0xff]  }
 0x6d0   :  { %9499 = vmatpush1.bf16.msra.mxu1 %v15354_v22  ;;  %v15425_v22 = vld [vmem:[%s20374_s5 + $0x6a4] ss:$16 sps:$4 sm:$0xff]  }
 0x6d1   :  { %9540 = vmatpush1.bf16.msra.mxu0 %v15357_v44  ;;  %9500 = vmatprep.subr.bf16.mxu1 %v15362_v1  ;;  %v15420_v44 = vld [vmem:[%s20374_s5 + $0x1e8] ss:$16 sps:$4 sm:$0xff]   ;;  %v15423_v1 = vld [vmem:[%s20374_s5 + $0x6a0] ss:$16 sps:$4 sm:$0xff]  }
 0x6d2   :  { %12946 = vmatprep.subr.msk.bf16.mxu0 %vm8780_vm4, %v15363_v26  ;;  %v15428_v26 = vld [vmem:[%s20374_s5 + $0x784] ss:$16 sps:$4 sm:$0xff]  }
 0x6d4   :  { %9501 = vmatpush1.bf16.msra.mxu1 %v15360_v48  ;;  %v15426_v48 = vld [vmem:[%s20374_s5 + $0x780] ss:$16 sps:$4 sm:$0xff]  }
 0x6d5   :  { %9542 = vmatpush1.bf16.msra.mxu0 %v9403_v42  ;;  %9502 = vmatprep.subr.bf16.mxu1 %v15368_v60  ;;  %v15434_v60 = vld [vmem:[%s20374_s5 + $0x7a4] ss:$16 sps:$4 sm:$0xff]  }
 0x6d6   :  { %10115 = vmatprep.subr.bf16.mxu0 %v15371_v20  ;;  %v15437_v42 = vld [vmem:[%s20374_s5 + $0x6e4] ss:$16 sps:$4 sm:$0xff]   ;;  %v15432_v20 = vld [vmem:[%s20374_s5 + $0x7a0] ss:$16 sps:$4 sm:$0xff]  }
 0x6d8   :  { %9503 = vmatpush1.bf16.msra.mxu1 %v15366_v61  ;;  %12947 = vmatmul.mubr.msk.bf16.vlgmr.msra.gmra.mrb[76].mxu0 %vm8776_vm6, %v19500_v36  ;;  %v15401_v36 = vld [vmem:[%s20374_s5 + $0x624] ss:$16 sps:$4 sm:$0xff]  }
 0x6d9   :  { %10116 = vmatpush1.bf16.msra.mxu0 %v15369_v11  ;;  %10147 = vmatprep.mubr.bf16.mxu0 %v19601_v59  ;;  %v15440_v61 = vld [vmem:[%s20374_s5 + $0x7c4] ss:$16 sps:$4 sm:$0xff]   ;;  %v15438_v11 = vld [vmem:[%s20374_s5 + $0x7c0] ss:$16 sps:$4 sm:$0xff]  }
 0x6da   :  { %9504 = vmatprep.subr.bf16.mxu1 %v15374_v8  ;;  %10117 = vmatprep.subr.bf16.mxu0 %v15377_v28  ;;  %v15441_v8 = vld [vmem:[%s20374_s5 + $0x700] ss:$16 sps:$4 sm:$0xff]   ;;  %v15446_v28 = vld [vmem:[%s20374_s5 + $0x7e4] ss:$16 sps:$4 sm:$0xff]  }
 0x6dc   :  { %9505 = vmatpush1.bf16.msra.mxu1 %v15372_v40  ;;  %v15449_v40 = vld [vmem:[%s20374_s5 + $0x724] ss:$16 sps:$4 sm:$0xff]  }
 0x6dd   :  { %10118 = vmatpush1.bf16.msra.mxu0 %v15375_v57  ;;  %9506 = vmatprep.subr.bf16.mxu1 %v15380_v30  ;;  %v15444_v57 = vld [vmem:[%s20374_s5 + $0x7e0] ss:$16 sps:$4 sm:$0xff]  }
 0x6de   :  { %10119 = vmatprep.subr.bf16.mxu0 %v15383_v23  ;;  %v15447_v30 = vld [vmem:[%s20374_s5 + $0x720] ss:$16 sps:$4 sm:$0xff]   ;;  %v15452_v23 = vld [vmem:[%s20374_s5 + $0x804] ss:$16 sps:$4 sm:$0xff]  }
 0x6e0   :  { %9507 = vmatpush1.bf16.msra.mxu1 %v15378_v29  ;;  %v14186_v29 = vunpack.i.h.bf16 %v19545_v45  ;;  %v15464_v45 = vld [vmem:[%s20374_s5 + $0x58c] ss:$16 sps:$4 sm:$0xff]  }
 0x6e1   :  { %10120 = vmatpush1.bf16.msra.mxu0 %v15381_v27  ;;  %9508 = vmatprep.subr.bf16.mxu1 %v15386_v49  ;;  %v15455_v27 = vld [vmem:[%s20374_s5 + $0x744] ss:$16 sps:$4 sm:$0xff]   ;;  %v15450_v49 = vld [vmem:[%s20374_s5 + $0x800] ss:$16 sps:$4 sm:$0xff]  }
 0x6e2   :  { %10121 = vmatprep.subr.bf16.mxu0 %v15389_v4  ;;  %v15453_v4 = vld [vmem:[%s20374_s5 + $0x740] ss:$16 sps:$4 sm:$0xff]  }
 0x6e4   :  { %9509 = vmatpush1.bf16.msra.mxu1 %v15384_v3  ;;  %v15456_v3 = vld [vmem:[%s20374_s5 + $0x824] ss:$16 sps:$4 sm:$0x7f]  }
 0x6e5   :  { %10122 = vmatpush1.bf16.msra.mxu0 %v15387_v21  ;;  %9510 = vmatprep.subr.bf16.mxu1 %v15392_v9  ;;  %v15461_v21 = vld [vmem:[%s20374_s5 + $0x820] ss:$16 sps:$4 sm:$0x7f]   ;;  %v8129_v9 = vsel %vm8120_vm5, %v14185_v41, %v14186_v29  ;;  %v8151_v41 = vmax.f32 %v19135_v17, %v19211_v25  ;;  %v15470_v17 = vld [vmem:[%s20374_s5 + $0x5ac] ss:$16 sps:$4 sm:$0xff]  }
 0x6e6   :  { %10123 = vmatprep.subr.bf16.mxu0 %v15395_v24  ;;  %v15460_v24 = vld [vmem:[%s20374_s5 + $0x764] ss:$16 sps:$4 sm:$0xff]   ;;  %v15473_v25 = vld [vmem:[%s20374_s5 + $0x7ac] ss:$16 sps:$4 sm:$0xff]  }
 0x6e7   :  { %v15518_v29 = vld [vmem:[%s20374_s5 + $0x6ac] ss:$16 sps:$4 sm:$0xff]  }
 0x6e8   :  { %9511 = vmatpush1.bf16.msra.mxu1 %v15390_v33  ;;  %v8153_v33 = vmax.f32 %v19139_v63, %v8129_v9  ;;  %v15467_v63 = vld [vmem:[%s20374_s5 + $0x78c] ss:$16 sps:$4 sm:$0xff]   ;;  %v15527_v9 = vld [vmem:[%s20374_s5 + $0x8c4] ss:$16 sps:$4 sm:$0xff]  }
 0x6e9   :  { %10124 = vmatpush1.bf16.msra.mxu0 %v15393_v50  ;;  %9512 = vmatprep.subr.bf16.mxu1 %v15398_v47  ;;  %v15458_v50 = vld [vmem:[%s20374_s5 + $0x760] ss:$16 sps:$4 sm:$0xff]   ;;  %v10104_v47 = vsel %vm8780_vm4, %v15461_v21, 0 }
 0x6ea   :  { %10125 = vmatprep.subr.bf16.mxu0 %v15401_v36  ;;  %v15462_v36 = vld [vmem:[%s20374_s5 + $0x588] ss:$16 sps:$4 sm:$0xff]  }
 0x6ec   :  { %9513 = vmatpush1.bf16.msra.mxu1 %v15396_v46  ;;  %v19800_v46 = vpack.c.bf16 %v8153_v33, %v8153_v33 }
 0x6ed   :  { %10126 = vmatpush1.bf16.msra.mxu0 %v15399_v19  ;;  %9514 = vmatprep.subr.bf16.mxu1 %v15404_v14  ;;  %v15465_v19 = vld [vmem:[%s20374_s5 + $0x788] ss:$16 sps:$4 sm:$0xff]   ;;  %v19805_v14 = vpack.c.bf16 %v8151_v41, %v8151_v41 }
 0x6ee   :  { %10127 = vmatprep.subr.bf16.mxu0 %v15407_v39  ;;  %v15468_v39 = vld [vmem:[%s20374_s5 + $0x5a8] ss:$16 sps:$4 sm:$0xff]  }
 0x6ef   :  { %v15522_v41 = vld [vmem:[%s20374_s5 + $0x6c8] ss:$16 sps:$4 sm:$0xff]  }
 0x6f0   :  { %9515 = vmatpush1.bf16.msra.mxu1 %v15402_v54  ;;  %v15471_v54 = vld [vmem:[%s20374_s5 + $0x7a8] ss:$16 sps:$4 sm:$0xff]  }
 0x6f1   :  { %10128 = vmatpush1.bf16.msra.mxu0 %v15405_v0  ;;  %9516 = vmatprep.subr.bf16.mxu1 %v15410_v35  ;;  %v15476_v0 = vld [vmem:[%s20374_s5 + $0x5cc] ss:$16 sps:$4 sm:$0xff]  }
 0x6f2   :  { %10129 = vmatprep.subr.bf16.mxu0 %v15413_v6  ;;  %v15479_v35 = vld [vmem:[%s20374_s5 + $0x7cc] ss:$16 sps:$4 sm:$0xff]   ;;  %v15477_v6 = vld [vmem:[%s20374_s5 + $0x7c8] ss:$16 sps:$4 sm:$0xff]  }
 0x6f4   :  { %9517 = vmatpush1.bf16.msra.mxu1 %v15408_v58  ;;  %v15482_v58 = vld [vmem:[%s20374_s5 + $0x5ec] ss:$16 sps:$4 sm:$0xff]  }
 0x6f5   :  { %10130 = vmatpush1.bf16.msra.mxu0 %v15411_v16  ;;  %9518 = vmatprep.subr.bf16.mxu1 %v15416_v13  ;;  %v15485_v16 = vld [vmem:[%s20374_s5 + $0x7ec] ss:$16 sps:$4 sm:$0xff]   ;;  %v15480_v13 = vld [vmem:[%s20374_s5 + $0x5e8] ss:$16 sps:$4 sm:$0xff]  }
 0x6f6   :  { %10131 = vmatprep.subr.bf16.mxu0 %v15419_v52  ;;  %v19845_v52 = vpop.permute.xlu0 %14193 }
 0x6f8   :  { %9519 = vmatpush1.bf16.msra.mxu1 %v15414_v15  ;;  %v15483_v15 = vld [vmem:[%s20374_s5 + $0x7e8] ss:$16 sps:$4 sm:$0xff]  }
 0x6f9   :  { %10132 = vmatpush1.bf16.msra.mxu0 %v15417_v32  ;;  %9520 = vmatprep.subr.bf16.mxu1 %v15422_v37  ;;  %v15488_v32 = vld [vmem:[%s20374_s5 + $0x60c] ss:$16 sps:$4 sm:$0xff]  }
 0x6fa   :  { %10133 = vmatprep.subr.bf16.mxu0 %v15425_v22  ;;  %v15491_v37 = vld [vmem:[%s20374_s5 + $0x80c] ss:$16 sps:$4 sm:$0xff]   ;;  %v14195_v22 = vunpack.i.l.bf16 %v19845_v52 }
 0x6fc   :  { %9521 = vmatpush1.bf16.msra.mxu1 %v15420_v44  ;;  %v15486_v44 = vld [vmem:[%s20374_s5 + $0x608] ss:$16 sps:$4 sm:$0xff]  }
 0x6fd   :  { %10134 = vmatpush1.bf16.msra.mxu0 %v15423_v1  ;;  %10156 = vmatprep.subr.bf16.mxu1 %v15428_v26  ;;  %v15489_v1 = vld [vmem:[%s20374_s5 + $0x808] ss:$16 sps:$4 sm:$0xff]   ;;  %v15494_v26 = vld [vmem:[%s20374_s5 + $0x62c] ss:$16 sps:$4 sm:$0xff]  }
 0x6fe   :  { %10135 = vmatprep.subr.bf16.mxu0 %v15431_v38  ;;  %v15495_v38 = vld [vmem:[%s20374_s5 + $0x82c] ss:$16 sps:$4 sm:$0x7f]  }
 0x6ff   :  { %9523 = vmatmul.mubr.bf16.vlgmr.msra.gmra.mrb[76].mxu1 %v19505_v43  ;;  %v15443_v43 = vld [vmem:[%s20374_s5 + $0x704] ss:$16 sps:$4 sm:$0xff]  }
 0x700   :  { %10157 = vmatpush1.bf16.msra.mxu1 %v15426_v48  ;;  %10188 = vmatprep.mubr.bf16.mxu1 %v20447_v5  ;;  %v15497_v48 = vld [vmem:[%s20374_s5 + $0x828] ss:$16 sps:$4 sm:$0x7f]  }
 0x701   :  { %10136 = vmatpush1.bf16.msra.mxu0 %v15429_v31  ;;  %10158 = vmatprep.subr.bf16.mxu1 %v15434_v60  ;;  %v8131_v31 = vsel %vm8120_vm5, %v14200_v34, %v14195_v22  ;;  %v15492_v60 = vld [vmem:[%s20374_s5 + $0x628] ss:$16 sps:$4 sm:$0xff]  }
 0x702   :  { %10137 = vmatprep.subr.bf16.mxu0 %v15437_v42  ;;  %v15500_v42 = vld [vmem:[%s20374_s5 + $0x64c] ss:$16 sps:$4 sm:$0xff]   ;;  %v8155_v34 = vmax.f32 %v19162_v2, %v8131_v31  ;;  %v15509_v2 = vld [vmem:[%s20374_s5 + $0x864] ss:$16 sps:$4 sm:$0xff]   ;;  %v15552_v31 = vld [vmem:[%s20374_s5 + $0x768] ss:$16 sps:$4 sm:$0xff]  }
 0x704   :  { %10159 = vmatpush1.bf16.msra.mxu1 %v15432_v20  ;;  %v10110_v20 = vsel %vm8780_vm4, %v15497_v48, 0  ;;  %v15557_v48 = vld [vmem:[%s20374_s5 + $0x964] ss:$16 sps:$4 sm:$0xff]  }
 0x705   :  { %10138 = vmatpush1.bf16.msra.mxu0 %v15435_v51  ;;  %10160 = vmatprep.subr.bf16.mxu1 %v15440_v61  ;;  %v15498_v51 = vld [vmem:[%s20374_s5 + $0x648] ss:$16 sps:$4 sm:$0xff]   ;;  %v15501_v61 = vld [vmem:[%s20374_s5 + $0x840] ss:$16 sps:$4 sm:$0xff]  }
 0x706   :  { %10139 = vmatprep.subr.bf16.mxu0 %v15443_v43  ;;  %v15506_v43 = vld [vmem:[%s20374_s5 + $0x66c] ss:$16 sps:$4 sm:$0xff]  }
 0x708   :  { %10161 = vmatpush1.bf16.msra.mxu1 %v15438_v11  ;;  %v19901_v11 = vpack.c.bf16 %v8155_v34, %v8155_v34 }
 0x709   :  { %10140 = vmatpush1.bf16.msra.mxu0 %v15441_v8  ;;  %10162 = vmatprep.subr.bf16.mxu1 %v15446_v28  ;;  %v15504_v8 = vld [vmem:[%s20374_s5 + $0x668] ss:$16 sps:$4 sm:$0xff]   ;;  %v15507_v28 = vld [vmem:[%s20374_s5 + $0x860] ss:$16 sps:$4 sm:$0xff]  }
 0x70a   :  { %10141 = vmatprep.subr.bf16.mxu0 %v15449_v40  ;;  %v15512_v40 = vld [vmem:[%s20374_s5 + $0x68c] ss:$16 sps:$4 sm:$0xff]  }
 0x70c   :  { %10163 = vmatpush1.bf16.msra.mxu1 %v15444_v57  ;;  %v15515_v57 = vld [vmem:[%s20374_s5 + $0x884] ss:$16 sps:$4 sm:$0xff]  }
 0x70d   :  { %10142 = vmatpush1.bf16.msra.mxu0 %v15447_v30  ;;  %10164 = vmatprep.subr.bf16.mxu1 %v15452_v23  ;;  %v15510_v30 = vld [vmem:[%s20374_s5 + $0x688] ss:$16 sps:$4 sm:$0xff]   ;;  %v15513_v23 = vld [vmem:[%s20374_s5 + $0x880] ss:$16 sps:$4 sm:$0xff]  }
 0x70e   :  { %10143 = vmatprep.subr.bf16.mxu0 %v15455_v27  ;;  %v15521_v27 = vld [vmem:[%s20374_s5 + $0x8a4] ss:$16 sps:$4 sm:$0xff]  }
 0x710   :  { %10165 = vmatpush1.bf16.msra.mxu1 %v15450_v49  ;;  %v15516_v49 = vld [vmem:[%s20374_s5 + $0x6a8] ss:$16 sps:$4 sm:$0xff]  }
 0x711   :  { %10144 = vmatpush1.bf16.msra.mxu0 %v15453_v4  ;;  %13124 = vmatprep.subr.msk.bf16.mxu1 %vm8780_vm4, %v15456_v3  ;;  %v15519_v4 = vld [vmem:[%s20374_s5 + $0x8a0] ss:$16 sps:$4 sm:$0xff]   ;;  %v15524_v3 = vld [vmem:[%s20374_s5 + $0x6cc] ss:$16 sps:$4 sm:$0xff]  }
 0x712   :  { %10145 = vmatprep.subr.bf16.mxu0 %v15460_v24 }
 0x714   :  { %10167 = vmatpush1.bf16.msra.mxu1 %v10104_v47 }
 0x715   :  { %10146 = vmatpush1.bf16.msra.mxu0 %v15458_v50  ;;  %10197 = vmatprep.subr.bf16.mxu1 %v15464_v45 }
 0x716   :  { %10238 = vmatprep.subr.bf16.mxu0 %v15467_v63 }
 0x717   :  { %13125 = vmatmul.mubr.msk.bf16.vlgmr.msra.gmra.mrb[80].mxu1 %vm8776_vm6, %v19800_v46 }
 0x718   :  { %10148 = vmatmul.mubr.bf16.vlgmr.msra.gmra.mrb[80].mxu0 %v19805_v14  ;;  %10198 = vmatpush1.bf16.msra.mxu1 %v15462_v36 }
 0x719   :  { %10229 = vmatprep.mubr.bf16.mxu1 %v19601_v59  ;;  %10239 = vmatpush1.bf16.msra.mxu0 %v15465_v19  ;;  %v15474_v59 = vld [vmem:[%s20374_s5 + $0x5c8] ss:$16 sps:$4 sm:$0xff]   ;;  %v15525_v19 = vld [vmem:[%s20374_s5 + $0x8c0] ss:$16 sps:$4 sm:$0xff]  }
 0x71a   :  { %10199 = vmatprep.subr.bf16.mxu1 %v15470_v17  ;;  %10240 = vmatprep.subr.bf16.mxu0 %v15473_v25  ;;  %v15530_v17 = vld [vmem:[%s20374_s5 + $0x6ec] ss:$16 sps:$4 sm:$0xff]  }
 0x71b   :  { %10270 = vmatprep.mubr.bf16.mxu0 %v20447_v5 }
 0x71c   :  { %10200 = vmatpush1.bf16.msra.mxu1 %v15468_v39  ;;  %v15533_v39 = vld [vmem:[%s20374_s5 + $0x8e4] ss:$16 sps:$4 sm:$0xff]  }
 0x71d   :  { %10241 = vmatpush1.bf16.msra.mxu0 %v15471_v54  ;;  %10201 = vmatprep.subr.bf16.mxu1 %v15476_v0  ;;  %v15528_v54 = vld [vmem:[%s20374_s5 + $0x6e8] ss:$16 sps:$4 sm:$0xff]   ;;  %v15531_v0 = vld [vmem:[%s20374_s5 + $0x8e0] ss:$16 sps:$4 sm:$0xff]  }
 0x71e   :  { %10242 = vmatprep.subr.bf16.mxu0 %v15479_v35  ;;  %v15536_v35 = vld [vmem:[%s20374_s5 + $0x70c] ss:$16 sps:$4 sm:$0xff]  }
 0x720   :  { %10202 = vmatpush1.bf16.msra.mxu1 %v15474_v59  ;;  %v15539_v59 = vld [vmem:[%s20374_s5 + $0x904] ss:$16 sps:$4 sm:$0xff]  }
 0x721   :  { %10243 = vmatpush1.bf16.msra.mxu0 %v15477_v6  ;;  %10203 = vmatprep.subr.bf16.mxu1 %v15482_v58  ;;  %v15534_v6 = vld [vmem:[%s20374_s5 + $0x708] ss:$16 sps:$4 sm:$0xff]   ;;  %v15537_v58 = vld [vmem:[%s20374_s5 + $0x900] ss:$16 sps:$4 sm:$0xff]  }
 0x722   :  { %10244 = vmatprep.subr.bf16.mxu0 %v15485_v16  ;;  %v15542_v16 = vld [vmem:[%s20374_s5 + $0x72c] ss:$16 sps:$4 sm:$0xff]  }
 0x724   :  { %10204 = vmatpush1.bf16.msra.mxu1 %v15480_v13  ;;  %v15545_v13 = vld [vmem:[%s20374_s5 + $0x924] ss:$16 sps:$4 sm:$0xff]  }
 0x725   :  { %10245 = vmatpush1.bf16.msra.mxu0 %v15483_v15  ;;  %10205 = vmatprep.subr.bf16.mxu1 %v15488_v32  ;;  %v15540_v15 = vld [vmem:[%s20374_s5 + $0x728] ss:$16 sps:$4 sm:$0xff]   ;;  %v15543_v32 = vld [vmem:[%s20374_s5 + $0x920] ss:$16 sps:$4 sm:$0xff]  }
 0x726   :  { %10246 = vmatprep.subr.bf16.mxu0 %v15491_v37  ;;  %v15548_v37 = vld [vmem:[%s20374_s5 + $0x74c] ss:$16 sps:$4 sm:$0xff]  }
 0x728   :  { %10206 = vmatpush1.bf16.msra.mxu1 %v15486_v44  ;;  %v15551_v44 = vld [vmem:[%s20374_s5 + $0x944] ss:$16 sps:$4 sm:$0xff]  }
 0x729   :  { %10247 = vmatpush1.bf16.msra.mxu0 %v15489_v1  ;;  %10207 = vmatprep.subr.bf16.mxu1 %v15494_v26  ;;  %v15546_v1 = vld [vmem:[%s20374_s5 + $0x748] ss:$16 sps:$4 sm:$0xff]   ;;  %v15549_v26 = vld [vmem:[%s20374_s5 + $0x940] ss:$16 sps:$4 sm:$0xff]  }
 0x72a   :  { %13126 = vmatprep.subr.msk.bf16.mxu0 %vm8780_vm4, %v15495_v38  ;;  %v15554_v38 = vld [vmem:[%s20374_s5 + $0x76c] ss:$16 sps:$4 sm:$0xff]  }
 0x72c   :  { %10208 = vmatpush1.bf16.msra.mxu1 %v15492_v60  ;;  %v15555_v60 = vld [vmem:[%s20374_s5 + $0x960] ss:$16 sps:$4 sm:$0xff]  }
 0x72d   :  { %10249 = vmatpush1.bf16.msra.mxu0 %v10110_v20  ;;  %10209 = vmatprep.subr.bf16.mxu1 %v15500_v42  ;;  %v15560_v42 = vld [vmem:[%s20374_s5 + $0xa44] ss:$16 sps:$4 sm:$0xff]  }
 0x72e   :  { %10826 = vmatprep.subr.bf16.mxu0 %v15503_v18  ;;  %v15563_v20 = vld [vmem:[%s20374_s5 + $0x984] ss:$16 sps:$4 sm:$0xff]  }
 0x730   :  { %10210 = vmatpush1.bf16.msra.mxu1 %v15498_v51  ;;  %13127 = vmatmul.mubr.msk.bf16.vlgmr.msra.gmra.mrb[84].mxu0 %vm8776_vm6, %v19800_v46  ;;  %v15558_v51 = vld [vmem:[%s20374_s5 + $0xa40] ss:$16 sps:$4 sm:$0xff]  }
 0x731   :  { %10827 = vmatpush1.bf16.msra.mxu0 %v15501_v61  ;;  %10858 = vmatprep.mubr.bf16.mxu0 %v19901_v11 }
 0x732   :  { %10211 = vmatprep.subr.bf16.mxu1 %v15506_v43  ;;  %10828 = vmatprep.subr.bf16.mxu0 %v15509_v2  ;;  %v15561_v43 = vld [vmem:[%s20374_s5 + $0x980] ss:$16 sps:$4 sm:$0xff]   ;;  %v15566_v2 = vld [vmem:[%s20374_s5 + $0xa64] ss:$16 sps:$4 sm:$0xff]  }
 0x734   :  { %10212 = vmatpush1.bf16.msra.mxu1 %v15504_v8 }
 0x735   :  { %10829 = vmatpush1.bf16.msra.mxu0 %v15507_v28  ;;  %10213 = vmatprep.subr.bf16.mxu1 %v15512_v40  ;;  %v15569_v28 = vld [vmem:[%s20374_s5 + $0x9a4] ss:$16 sps:$4 sm:$0xff]   ;;  %v15564_v40 = vld [vmem:[%s20374_s5 + $0xa60] ss:$16 sps:$4 sm:$0xff]  }
 0x736   :  { %10830 = vmatprep.subr.bf16.mxu0 %v15515_v57  ;;  %v15567_v57 = vld [vmem:[%s20374_s5 + $0x9a0] ss:$16 sps:$4 sm:$0xff]  }
 0x738   :  { %10214 = vmatpush1.bf16.msra.mxu1 %v15510_v30  ;;  %v15572_v30 = vld [vmem:[%s20374_s5 + $0xa84] ss:$16 sps:$4 sm:$0xff]  }
 0x739   :  { %10831 = vmatpush1.bf16.msra.mxu0 %v15513_v23  ;;  %10215 = vmatprep.subr.bf16.mxu1 %v15518_v29  ;;  %v15570_v23 = vld [vmem:[%s20374_s5 + $0xa80] ss:$16 sps:$4 sm:$0xff]  }
 0x73a   :  { %v8868_v21 = vpop.f32.mrb[64].mxu1  ;;  %10832 = vmatprep.subr.bf16.mxu0 %v15521_v27  ;;  %v15573_v29 = vld [vmem:[%s20374_s5 + $0x9c0] ss:$16 sps:$4 sm:$0xff]   ;;  %v15578_v27 = vld [vmem:[%s20374_s5 + $0xaa4] ss:$16 sps:$4 sm:$0xff]  }
 0x73b   :  { %v8827_v24 = vpop.f32.mrb[64].mxu0  ;;  %v8870_v33 = vpop.f32.mrb[65].mxu1 }
 0x73c   :  { %v19942_v50 = vadd.f32 %v8868_v21, %v8827_v24  ;;  %10216 = vmatpush1.bf16.msra.mxu1 %v15516_v49  ;;  %v8829_v47 = vpop.f32.mrb[65].mxu0  ;;  %v8872_v45 = vpop.f32.mrb[66].mxu1  ;;  %v15581_v49 = vld [vmem:[%s20374_s5 + $0x9e4] ss:$16 sps:$4 sm:$0xff]  }
 0x73d   :  { %v19947_v63 = vadd.f32 %v8870_v33, %v8829_v47  ;;  %10833 = vmatpush1.bf16.msra.mxu0 %v15519_v4  ;;  %v8831_v36 = vpop.f32.mrb[66].mxu0  ;;  %v8873_v46 = vpop.f32.mrb[67].mxu1  ;;  %10217 = vmatprep.subr.bf16.mxu1 %v15524_v3  ;;  %v15576_v4 = vld [vmem:[%s20374_s5 + $0xaa0] ss:$16 sps:$4 sm:$0xff]   ;;  %v15584_v21 = vld [vmem:[%s20374_s5 + $0xac4] ss:$16 sps:$4 sm:$0xff]  }
 0x73e   :  { %v8832_v25 = vpop.f32.mrb[67].mxu0  ;;  %10834 = vmatprep.subr.bf16.mxu0 %v15527_v9  ;;  %v15579_v3 = vld [vmem:[%s20374_s5 + $0x9e0] ss:$16 sps:$4 sm:$0xff]   ;;  %v14196_v9 = vunpack.i.h.bf16 %v19845_v52  ;;  %v15587_v24 = vld [vmem:[%s20374_s5 + $0xa04] ss:$16 sps:$4 sm:$0xff]  }
 0x73f   :  { %v15582_v33 = vld [vmem:[%s20374_s5 + $0xac0] ss:$16 sps:$4 sm:$0xff]   ;;  %v15588_v45 = vld [vmem:[%s20374_s5 + $0xae4] ss:$16 sps:$4 sm:$0x7f]  }
 0x740   :  { %10218 = vmatpush1.bf16.msra.mxu1 %v15522_v41  ;;  %v15585_v47 = vld [vmem:[%s20374_s5 + $0xa00] ss:$16 sps:$4 sm:$0xff]   ;;  %v8132_v36 = vsel %vm8120_vm5, %v14195_v22, %v14196_v9  ;;  %v15592_v46 = vld [vmem:[%s20374_s5 + $0xa24] ss:$16 sps:$4 sm:$0xff]   ;;  %v15596_v52 = vld [vmem:[%s20374_s5 + $0x84c] ss:$16 sps:$4 sm:$0xff]   ;;  %v8154_v22 = vmax.f32 %v19158_v56, %v19247_v12 }
 0x741   :  { %10835 = vmatpush1.bf16.msra.mxu0 %v15525_v19  ;;  %10219 = vmatprep.subr.bf16.mxu1 %v15530_v17  ;;  %v15593_v41 = vld [vmem:[%s20374_s5 + $0xae0] ss:$16 sps:$4 sm:$0x7f]   ;;  %v8156_v19 = vmax.f32 %v19160_v55, %v8132_v36  ;;  %v15599_v55 = vld [vmem:[%s20374_s5 + $0xa4c] ss:$16 sps:$4 sm:$0xff]  }
 0x742   :  { %10836 = vmatprep.subr.bf16.mxu0 %v15533_v39  ;;  %v15590_v17 = vld [vmem:[%s20374_s5 + $0xa20] ss:$16 sps:$4 sm:$0xff]   ;;  %v10815_v25 = vsel %vm8780_vm4, %v15593_v41, 0  ;;  %v15594_v39 = vld [vmem:[%s20374_s5 + $0x848] ss:$16 sps:$4 sm:$0xff]  }
 0x743   :  { %v15602_v56 = vld [vmem:[%s20374_s5 + $0x86c] ss:$16 sps:$4 sm:$0xff]  }
 0x744   :  { %10220 = vmatpush1.bf16.msra.mxu1 %v15528_v54  ;;  %v20108_v54 = vpack.c.bf16 %v8156_v19, %v8156_v19  ;;  %v15605_v12 = vld [vmem:[%s20374_s5 + $0xa6c] ss:$16 sps:$4 sm:$0xff]  }
 0x745   :  { %10837 = vmatpush1.bf16.msra.mxu0 %v15531_v0  ;;  %10221 = vmatprep.subr.bf16.mxu1 %v15536_v35  ;;  %v15597_v0 = vld [vmem:[%s20374_s5 + $0xa48] ss:$16 sps:$4 sm:$0xff]   ;;  %v20113_v35 = vpack.c.bf16 %v8154_v22, %v8154_v22  ;;  %v15647_v36 = vld [vmem:[%s20374_s5 + $0x9ac] ss:$16 sps:$4 sm:$0xff]  }
 0x746   :  { %10838 = vmatprep.subr.bf16.mxu0 %v15539_v59  ;;  %v15600_v59 = vld [vmem:[%s20374_s5 + $0x868] ss:$16 sps:$4 sm:$0xff]  }
 0x747   :  { %v15651_v22 = vld [vmem:[%s20374_s5 + $0x9e8] ss:$16 sps:$4 sm:$0xff]  }
 0x748   :  { %10222 = vmatpush1.bf16.msra.mxu1 %v15534_v6  ;;  %v15603_v6 = vld [vmem:[%s20374_s5 + $0xa68] ss:$16 sps:$4 sm:$0xff]  }
 0x749   :  { %10839 = vmatpush1.bf16.msra.mxu0 %v15537_v58  ;;  %10223 = vmatprep.subr.bf16.mxu1 %v15542_v16  ;;  %v15608_v58 = vld [vmem:[%s20374_s5 + $0x88c] ss:$16 sps:$4 sm:$0xff]  }
 0x74a   :  { %10840 = vmatprep.subr.bf16.mxu0 %v15545_v13  ;;  %v15611_v16 = vld [vmem:[%s20374_s5 + $0xa8c] ss:$16 sps:$4 sm:$0xff]   ;;  %v15609_v13 = vld [vmem:[%s20374_s5 + $0xa88] ss:$16 sps:$4 sm:$0xff]  }
 0x74c   :  { %10224 = vmatpush1.bf16.msra.mxu1 %v15540_v15  ;;  %v15614_v15 = vld [vmem:[%s20374_s5 + $0x8ac] ss:$16 sps:$4 sm:$0xff]  }
 0x74d   :  { %10841 = vmatpush1.bf16.msra.mxu0 %v15543_v32  ;;  %10225 = vmatprep.subr.bf16.mxu1 %v15548_v37  ;;  %v15612_v32 = vld [vmem:[%s20374_s5 + $0x8a8] ss:$16 sps:$4 sm:$0xff]  }
 0x74e   :  { %10842 = vmatprep.subr.bf16.mxu0 %v15551_v44  ;;  %v15615_v37 = vld [vmem:[%s20374_s5 + $0xaa8] ss:$16 sps:$4 sm:$0xff]   ;;  %v15620_v44 = vld [vmem:[%s20374_s5 + $0x8cc] ss:$16 sps:$4 sm:$0xff]  }
 0x750   :  { %10226 = vmatpush1.bf16.msra.mxu1 %v15546_v1 }
 0x751   :  { %10843 = vmatpush1.bf16.msra.mxu0 %v15549_v26  ;;  %10227 = vmatprep.subr.bf16.mxu1 %v15554_v38  ;;  %v15623_v26 = vld [vmem:[%s20374_s5 + $0xacc] ss:$16 sps:$4 sm:$0xff]  }
 0x752   :  { %10844 = vmatprep.subr.bf16.mxu0 %v15557_v48 }
 0x753   :  { %v20018_v18 = vpop.f32.mrb[68].mxu0 }
 0x754   :  { %v20020_v34 = vpop.f32.mrb[69].mxu0  ;;  %10228 = vmatpush1.bf16.msra.mxu1 %v15552_v31 }
 0x755   :  { %v8954_v61 = vpop.f32.mrb[70].mxu0  ;;  %10845 = vmatpush1.bf16.msra.mxu0 %v15555_v60  ;;  %10867 = vmatprep.subr.bf16.mxu1 %v15560_v42  ;;  %v15618_v42 = vld [vmem:[%s20374_s5 + $0x8c8] ss:$16 sps:$4 sm:$0xff]  }
 0x756   :  { %v8955_v8 = vpop.f32.mrb[71].mxu0  ;;  %10846 = vmatprep.subr.bf16.mxu0 %v15563_v20  ;;  %v15629_v61 = vld [vmem:[%s20374_s5 + $0xae8] ss:$16 sps:$4 sm:$0x7f]  }
 0x757   :  { %10230 = vmatmul.mubr.bf16.vlgmr.msra.gmra.mrb[84].mxu1 %v19805_v14  ;;  %v15575_v14 = vld [vmem:[%s20374_s5 + $0x9c4] ss:$16 sps:$4 sm:$0xff]   ;;  %v10821_v8 = vsel %vm8780_vm4, %v15629_v61, 0 }
 0x758   :  { %10868 = vmatpush1.bf16.msra.mxu1 %v15558_v51  ;;  %10899 = vmatprep.mubr.bf16.mxu1 %v20447_v5  ;;  %v15621_v51 = vld [vmem:[%s20374_s5 + $0xac8] ss:$16 sps:$4 sm:$0xff]  }
 0x759   :  { %10847 = vmatpush1.bf16.msra.mxu0 %v15561_v43  ;;  %10869 = vmatprep.subr.bf16.mxu1 %v15566_v2  ;;  %v15624_v43 = vld [vmem:[%s20374_s5 + $0x8e8] ss:$16 sps:$4 sm:$0xff]   ;;  %v15632_v2 = vld [vmem:[%s20374_s5 + $0x90c] ss:$16 sps:$4 sm:$0xff]  }
 0x75a   :  { %10848 = vmatprep.subr.bf16.mxu0 %v15569_v28  ;;  %v15630_v28 = vld [vmem:[%s20374_s5 + $0x908] ss:$16 sps:$4 sm:$0xff]  }
 0x75c   :  { %10870 = vmatpush1.bf16.msra.mxu1 %v15564_v40  ;;  %v15635_v40 = vld [vmem:[%s20374_s5 + $0x92c] ss:$16 sps:$4 sm:$0xff]  }
 0x75d   :  { %10849 = vmatpush1.bf16.msra.mxu0 %v15567_v57  ;;  %10871 = vmatprep.subr.bf16.mxu1 %v15572_v30  ;;  %v15633_v57 = vld [vmem:[%s20374_s5 + $0x928] ss:$16 sps:$4 sm:$0xff]   ;;  %v15638_v30 = vld [vmem:[%s20374_s5 + $0x94c] ss:$16 sps:$4 sm:$0xff]  }
 0x75e   :  { %10850 = vmatprep.subr.bf16.mxu0 %v15575_v14  ;;  %v15636_v14 = vld [vmem:[%s20374_s5 + $0x948] ss:$16 sps:$4 sm:$0xff]  }
 0x760   :  { %10872 = vmatpush1.bf16.msra.mxu1 %v15570_v23  ;;  %v15641_v23 = vld [vmem:[%s20374_s5 + $0x96c] ss:$16 sps:$4 sm:$0xff]  }
 0x761   :  { %10851 = vmatpush1.bf16.msra.mxu0 %v15573_v29  ;;  %10873 = vmatprep.subr.bf16.mxu1 %v15578_v27  ;;  %v15639_v29 = vld [vmem:[%s20374_s5 + $0x968] ss:$16 sps:$4 sm:$0xff]   ;;  %v15644_v27 = vld [vmem:[%s20374_s5 + $0x98c] ss:$16 sps:$4 sm:$0xff]  }
 0x762   :  { %10852 = vmatprep.subr.bf16.mxu0 %v15581_v49 }
 0x764   :  { %10874 = vmatpush1.bf16.msra.mxu1 %v15576_v4 }
 0x765   :  { %10853 = vmatpush1.bf16.msra.mxu0 %v15579_v3  ;;  %10875 = vmatprep.subr.bf16.mxu1 %v15584_v21 }
 0x766   :  { %10854 = vmatprep.subr.bf16.mxu0 %v15587_v24 }
 0x768   :  { %10876 = vmatpush1.bf16.msra.mxu1 %v15582_v33  ;;  %v15642_v33 = vld [vmem:[%s20374_s5 + $0x988] ss:$16 sps:$4 sm:$0xff]  }
 0x769   :  { %10855 = vmatpush1.bf16.msra.mxu0 %v15585_v47  ;;  %13304 = vmatprep.subr.msk.bf16.mxu1 %vm8780_vm4, %v15588_v45 }
 0x76a   :  { %10856 = vmatprep.subr.bf16.mxu0 %v15592_v46 }
 0x76c   :  { %10878 = vmatpush1.bf16.msra.mxu1 %v10815_v25  ;;  %v15648_v25 = vld [vmem:[%s20374_s5 + $0x9c8] ss:$16 sps:$4 sm:$0xff]  }
 0x76d   :  { %10857 = vmatpush1.bf16.msra.mxu0 %v15590_v17  ;;  %10908 = vmatprep.subr.bf16.mxu1 %v15596_v52  ;;  %v15645_v17 = vld [vmem:[%s20374_s5 + $0x9a8] ss:$16 sps:$4 sm:$0xff]   ;;  %v15653_v52 = vld [vmem:[%s20374_s5 + $0x9ec] ss:$16 sps:$4 sm:$0xff]  }
 0x76e   :  { %10949 = vmatprep.subr.bf16.mxu0 %v15599_v55  ;;  %v15656_v55 = vld [vmem:[%s20374_s5 + $0xa0c] ss:$16 sps:$4 sm:$0xff]  }
 0x76f   :  { %13305 = vmatmul.mubr.msk.bf16.vlgmr.msra.gmra.mrb[88].mxu1 %vm8776_vm6, %v20108_v54 }
 0x770   :  { %10859 = vmatmul.mubr.bf16.vlgmr.msra.gmra.mrb[88].mxu0 %v20113_v35  ;;  %10909 = vmatpush1.bf16.msra.mxu1 %v15594_v39  ;;  %v15654_v39 = vld [vmem:[%s20374_s5 + $0xa08] ss:$16 sps:$4 sm:$0xff]  }
 0x771   :  { %10940 = vmatprep.mubr.bf16.mxu1 %v19901_v11  ;;  %10950 = vmatpush1.bf16.msra.mxu0 %v15597_v0  ;;  %v15606_v11 = vld [vmem:[%s20374_s5 + $0x888] ss:$16 sps:$4 sm:$0xff]  }
 0x772   :  { %10910 = vmatprep.subr.bf16.mxu1 %v15602_v56  ;;  %10951 = vmatprep.subr.bf16.mxu0 %v15605_v12  ;;  %v15657_v0 = vld [vmem:[%s20374_s5 + $0xa28] ss:$16 sps:$4 sm:$0xff]  }
 0x773   :  { %10981 = vmatprep.mubr.bf16.mxu0 %v20447_v5  ;;  %v15617_v5 = vld [vmem:[%s20374_s5 + $0xaac] ss:$16 sps:$4 sm:$0xff]  }
 0x774   :  { %10911 = vmatpush1.bf16.msra.mxu1 %v15600_v59 }
 0x775   :  { %10952 = vmatpush1.bf16.msra.mxu0 %v15603_v6  ;;  %10912 = vmatprep.subr.bf16.mxu1 %v15608_v58  ;;  %v15660_v58 = vld [vmem:[%s20376_s7 + $0x40] sm:$0xff]  }
 0x776   :  { %10953 = vmatprep.subr.bf16.mxu0 %v15611_v16  ;;  %v15661_v16 = vld [vmem:[%s20376_s7] sm:$0xff]  }
 0x778   :  { %10913 = vmatpush1.bf16.msra.mxu1 %v15606_v11  ;;  %v15662_v11 = vld [vmem:[%s20376_s7 + $0x48] sm:$0xff]  }
 0x779   :  { %10954 = vmatpush1.bf16.msra.mxu0 %v15609_v13  ;;  %10914 = vmatprep.subr.bf16.mxu1 %v15614_v15  ;;  %v15663_v13 = vld [vmem:[%s20376_s7 + $0x8] sm:$0xff]   ;;  %v15665_v15 = vld [vmem:[%s20376_s7 + $0x10] sm:$0xff]  }
 0x77a   :  { %v8909_v1 = vpop.f32.mrb[68].mxu1  ;;  %10955 = vmatprep.subr.bf16.mxu0 %v15617_v5  ;;  %v15666_v5 = vld [vmem:[%s20376_s7 + $0x58] sm:$0xff]  }
 0x77b   :  { %v20163_v38 = vadd.f32 %v20018_v18, %v8909_v1  ;;  %v8911_v48 = vpop.f32.mrb[69].mxu1  ;;  %v15626_v18 = vld [vmem:[%s20374_s5 + $0x8ec] ss:$16 sps:$4 sm:$0xff]  }
 0x77c   :  { %v20166_v31 = vadd.f32 %v20020_v34, %v8911_v48  ;;  %v8913_v60 = vpop.f32.mrb[70].mxu1  ;;  %10915 = vmatpush1.bf16.msra.mxu1 %v15612_v32  ;;  %v15627_v34 = vld [vmem:[%s20374_s5 + $0xaec] ss:$16 sps:$4 sm:$0x7f]   ;;  %v15672_v48 = vld [vmem:[%s20376_s7 + $0x70] sm:$0xff]  }
 0x77d   :  { %v8914_v20 = vpop.f32.mrb[71].mxu1  ;;  %10956 = vmatpush1.bf16.msra.mxu0 %v15615_v37  ;;  %10916 = vmatprep.subr.bf16.mxu1 %v15620_v44  ;;  %v15667_v32 = vld [vmem:[%s20376_s7 + $0x18] sm:$0xff]   ;;  %v15668_v37 = vld [vmem:[%s20376_s7 + $0x60] sm:$0xff]   ;;  %v15670_v1 = vld [vmem:[%s20376_s7 + $0x68] sm:$0xff]  }
 0x77e   :  { %10957 = vmatprep.subr.bf16.mxu0 %v15623_v26  ;;  %v15669_v44 = vld [vmem:[%s20376_s7 + $0x20] sm:$0xff]   ;;  %v15671_v26 = vld [vmem:[%s20376_s7 + $0x28] sm:$0xff]   ;;  %v15673_v60 = vld [vmem:[%s20376_s7 + $0x30] sm:$0xff]  }
 0x77f   :  { %v15675_v20 = vld [vmem:[%s20376_s7 + $0x38] sm:$0xff]  }
 0x780   :  { %10917 = vmatpush1.bf16.msra.mxu1 %v15618_v42  ;;  %v15674_v42 = vld [vmem:[%s20376_s7 + $0x78] sm:$0xff]  }
 0x781   :  { %10958 = vmatpush1.bf16.msra.mxu0 %v15621_v51  ;;  %10918 = vmatprep.subr.bf16.mxu1 %v15626_v18 }
 0x782   :  { %13306 = vmatprep.subr.msk.bf16.mxu0 %vm8780_vm4, %v15627_v34 }
 0x784   :  { %10919 = vmatpush1.bf16.msra.mxu1 %v15624_v43 }
 0x785   :  { %10960 = vmatpush1.bf16.msra.mxu0 %v10821_v8  ;;  %10920 = vmatprep.subr.bf16.mxu1 %v15632_v2 }
 0x786   :  { %13342 = vmatprep.subr.bf16.mxu0 %v15660_v58 }
 0x788   :  { %10921 = vmatpush1.bf16.msra.mxu1 %v15630_v28  ;;  %13307 = vmatmul.mubr.msk.bf16.vlgmr.msra.gmra.mrb[92].mxu0 %vm8776_vm6, %v20108_v54  ;;  %v15659_v54 = vld [vmem:[%s20374_s5 + $0xa2c] ss:$16 sps:$4 sm:$0xff]  }
 0x789   :  { %10922 = vmatprep.subr.bf16.mxu1 %v15635_v40  ;;  %13343 = vmatpush3.bf16.msra.mxu0 %v15661_v16  ;;  %v15676_v40 = vld [vmem:[%s20376_s7 + $0xc0] sm:$0xff]  }
 0x78a   :  { %13344 = vmatprep.subr.bf16.mxu0 %v15662_v11 }
 0x78c   :  { %10923 = vmatpush1.bf16.msra.mxu1 %v15633_v57  ;;  %v15677_v57 = vld [vmem:[%s20376_s7 + $0x80] sm:$0xff]  }
 0x78d   :  { %10924 = vmatprep.subr.bf16.mxu1 %v15638_v30  ;;  %13345 = vmatpush3.bf16.msra.mxu0 %v15663_v13  ;;  %v15678_v30 = vld [vmem:[%s20376_s7 + $0xc8] sm:$0xff]  }
 0x790   :  { %10925 = vmatpush1.bf16.msra.mxu1 %v15636_v14  ;;  %v15681_v14 = vld [vmem:[%s20376_s7 + $0x90] sm:$0xff]  }
 0x791   :  { %10926 = vmatprep.subr.bf16.mxu1 %v15641_v23  ;;  %v15682_v23 = vld [vmem:[%s20376_s7 + $0xd8] sm:$0xff]  }
 0x792   :  { %v9483_v49 = vpop.f32.mrb[72].mxu1 }
 0x793   :  { %v9442_v4 = vpop.f32.mrb[72].mxu0  ;;  %v9485_v3 = vpop.f32.mrb[73].mxu1 }
 0x794   :  { %v9443_v21 = vadd.f32 %v9442_v4, %v19942_v50  ;;  %v9444_v9 = vpop.f32.mrb[73].mxu0  ;;  %v9487_v24 = vpop.f32.mrb[74].mxu1  ;;  %10927 = vmatpush1.bf16.msra.mxu1 %v15639_v29  ;;  %v15683_v29 = vld [vmem:[%s20376_s7 + $0x98] sm:$0xff]  }
 0x795   :  { %v9445_v47 = vadd.f32 %v9444_v9, %v19947_v63  ;;  %v9446_v45 = vpop.f32.mrb[74].mxu0  ;;  %v9488_v41 = vpop.f32.mrb[75].mxu1  ;;  %10928 = vmatprep.subr.bf16.mxu1 %v15644_v27  ;;  %v15650_v63 = vld [vmem:[%s20374_s5 + $0x9cc] ss:$16 sps:$4 sm:$0xff]  }
 0x796   :  { %v20225_v46 = vadd.f32 %v9483_v49, %v9443_v21  ;;  %v9447_v19 = vpop.f32.mrb[75].mxu0  ;;  %v15684_v49 = vld [vmem:[%s20376_s7 + $0xe0] sm:$0xff]  }
 0x797   :  { %v20227_v50 = vadd.f32 %v9485_v3, %v9445_v47  ;;  %v15685_v41 = vld [vmem:[%s20376_s7 + $0xa0] sm:$0xff]  }
 0x798   :  { %10929 = vmatpush1.bf16.msra.mxu1 %v15642_v33 }
 0x799   :  { %10930 = vmatprep.subr.bf16.mxu1 %v15647_v36 }
 0x79c   :  { %10931 = vmatpush1.bf16.msra.mxu1 %v15645_v17 }
 0x79d   :  { %10932 = vmatprep.subr.bf16.mxu1 %v15650_v63  ;;  %v15686_v63 = vld [vmem:[%s20376_s7 + $0xe8] sm:$0xff]  }
 0x7a0   :  { %10933 = vmatpush1.bf16.msra.mxu1 %v15648_v25 }
 0x7a1   :  { %10934 = vmatprep.subr.bf16.mxu1 %v15653_v52  ;;  %v15687_v52 = vld [vmem:[%s20376_s7 + $0xa8] sm:$0xff]  }
 0x7a4   :  { %10935 = vmatpush1.bf16.msra.mxu1 %v15651_v22 }
 0x7a5   :  { %10936 = vmatprep.subr.bf16.mxu1 %v15656_v55 }
 0x7a8   :  { %10937 = vmatpush1.bf16.msra.mxu1 %v15654_v39 }
 0x7a9   :  { %10938 = vmatprep.subr.bf16.mxu1 %v15659_v54  ;;  %v15690_v54 = vld [vmem:[%s20376_s7 + $0xf8] ss:$0 sps:$4 sm:$0x33]  }
 0x7ab   :  { %v9565_v56 = vpop.f32.mrb[76].mxu0 }
 0x7ac   :  { %v9567_v12 = vpop.f32.mrb[77].mxu0  ;;  %10939 = vmatpush1.bf16.msra.mxu1 %v15657_v0  ;;  %v15691_v0 = vld [vmem:[%s20376_s7 + $0xb8] sm:$0xff]  }
 0x7ad   :  { %v9569_v59 = vpop.f32.mrb[78].mxu0  ;;  %13364 = vmatprep.subr.bf16.mxu1 %v15676_v40 }
 0x7ae   :  { %v9570_v6 = vpop.f32.mrb[79].mxu0 }
 0x7af   :  { %10941 = vmatmul.mubr.bf16.vlgmr.msra.gmra.mrb[92].mxu1 %v20113_v35  ;;  %v15664_v35 = vld [vmem:[%s20376_s7 + $0x50] sm:$0xff]  }
 0x7b0   :  { %13346 = vmatprep.subr.bf16.mxu0 %v15664_v35  ;;  %13365 = vmatpush3.bf16.msra.mxu1 %v15677_v57  ;;  %v10994_v35 = vld [vmem:[%s20377_s6] sm:$0xf] }
 0x7b1   :  { %13347 = vmatpush3.bf16.msra.mxu0 %v15665_v15  ;;  %13366 = vmatprep.subr.bf16.mxu1 %v15678_v30 }
 0x7b2   :  { %13348 = vmatprep.subr.bf16.mxu0 %v15666_v5 }
 0x7b5   :  { %13349 = vmatpush3.bf16.msra.mxu0 %v15667_v32 }
 0x7b6   :  { %13350 = vmatprep.subr.bf16.mxu0 %v15668_v37 }
 0x7b9   :  { %13351 = vmatpush3.bf16.msra.mxu0 %v15669_v44  ;;  %v10999_v44 = vrot.slane %v10994_v35, %v20448_v62 }
 0x7ba   :  { %13352 = vmatprep.subr.bf16.mxu0 %v15670_v1 }
 0x7bd   :  { %13353 = vmatpush3.bf16.msra.mxu0 %v15671_v26 }
 0x7be   :  { %13354 = vmatprep.subr.bf16.mxu0 %v15672_v48 }
 0x7c1   :  { %13355 = vmatpush3.bf16.msra.mxu0 %v15673_v60  ;;  %v11003_v60 = vrot.slane %v10994_v35, %v20450_v53  ;;  %v11007_v53 = vrot.slane %v10994_v35, %v20449_v7 }
 0x7c2   :  { %13356 = vmatprep.subr.bf16.mxu0 %v15674_v42 }
 0x7c5   :  { %13357 = vmatpush3.bf16.msra.mxu0 %v15675_v20 }
 0x7d2   :  { %v9524_v51 = vpop.f32.mrb[76].mxu1 }
 0x7d3   :  { %v9525_v18 = vadd.f32 %v9524_v51, %v20163_v38  ;;  %v9526_v34 = vpop.f32.mrb[77].mxu1  ;;  %v15679_v38 = vld [vmem:[%s20376_s7 + $0x88] sm:$0xff]  }
 0x7d4   :  { %v9527_v61 = vadd.f32 %v9526_v34, %v20166_v31  ;;  %v9528_v43 = vpop.f32.mrb[78].mxu1  ;;  %v15680_v31 = vld [vmem:[%s20376_s7 + $0xd0] sm:$0xff]   ;;  %13367 = vmatpush3.bf16.msra.mxu1 %v15679_v38 }
 0x7d5   :  { %v9566_v2 = vadd.f32 %v9565_v56, %v9525_v18  ;;  %v9529_v8 = vpop.f32.mrb[79].mxu1  ;;  %13368 = vmatprep.subr.bf16.mxu1 %v15680_v31 }
 0x7d6   :  { %v9568_v28 = vadd.f32 %v9567_v12, %v9527_v61 }
 0x7d8   :  { %13369 = vmatpush3.bf16.msra.mxu1 %v15681_v14 }
 0x7d9   :  { %13370 = vmatprep.subr.bf16.mxu1 %v15682_v23 }
 0x7dc   :  { %13371 = vmatpush3.bf16.msra.mxu1 %v15683_v29 }
 0x7dd   :  { %13372 = vmatprep.subr.bf16.mxu1 %v15684_v49 }
 0x7e0   :  { %13373 = vmatpush3.bf16.msra.mxu1 %v15685_v41 }
 0x7e1   :  { %13374 = vmatprep.subr.bf16.mxu1 %v15686_v63 }
 0x7e4   :  { %13375 = vmatpush3.bf16.msra.mxu1 %v15687_v52 }
 0x7ea   :  { %v10190_v27 = vpop.f32.mrb[80].mxu1 }
 0x7eb   :  { %v10149_v4 = vpop.f32.mrb[80].mxu0  ;;  %v10192_v3 = vpop.f32.mrb[81].mxu1 }
 0x7ec   :  { %v10191_v21 = vadd.f32 %v10190_v27, %v10149_v4  ;;  %v10151_v9 = vpop.f32.mrb[81].mxu0  ;;  %v10194_v24 = vpop.f32.mrb[82].mxu1  ;;  %v11011_v27 = vrot.slane %v10994_v35, %v20451_v10  ;;  %v13308_v10 = vld [vmem:[%s20378_s8] ss:$0 sm:$0xff] }
 0x7ed   :  { %v10193_v33 = vadd.f32 %v10192_v3, %v10151_v9  ;;  %v10153_v47 = vpop.f32.mrb[82].mxu0  ;;  %v10195_v45 = vpop.f32.mrb[83].mxu1 }
 0x7ee   :  { %v10279_v36 = vadd.f32 %v10191_v21, %v20225_v46  ;;  %v10154_v19 = vpop.f32.mrb[83].mxu0  ;;  %v15688_v46 = vld [vmem:[%s20376_s7 + $0xf0] sm:$0xff]  }
 0x7ef   :  { %v10280_v17 = vadd.f32 %v10193_v33, %v20227_v50  ;;  %v15689_v50 = vld [vmem:[%s20376_s7 + $0xb0] sm:$0xff]   ;;  %13376 = vmatprep.subr.bf16.mxu1 %v15688_v46 }
 0x7f0   :  { %13377 = vmatpush3.bf16.msra.mxu1 %v15689_v50 }
 0x7f1   :  { %14058 = vmatprep.subr.msk.bf16.mxu1 %vm11291_vm7, %v15690_v54 }
 0x7f4   :  { %13379 = vmatpush3.bf16.msra.mxu1 %v15691_v0 }
 0x803   :  { %v10272_v25 = vpop.f32.mrb[84].mxu0 }
 0x804   :  { %v10274_v22 = vpop.f32.mrb[85].mxu0 }
 0x805   :  { %v10276_v55 = vpop.f32.mrb[86].mxu0 }
 0x806   :  { %v10277_v39 = vpop.f32.mrb[87].mxu0 }
 0x82a   :  { %v10231_v56 = vpop.f32.mrb[84].mxu1 }
 0x82b   :  { %v10273_v12 = vadd.f32 %v10272_v25, %v10231_v56  ;;  %v10233_v59 = vpop.f32.mrb[85].mxu1 }
 0x82c   :  { %v10275_v6 = vadd.f32 %v10274_v22, %v10233_v59  ;;  %v10235_v58 = vpop.f32.mrb[86].mxu1 }
 0x82d   :  { %v10281_v16 = vadd.f32 %v10273_v12, %v9566_v2  ;;  %v10236_v11 = vpop.f32.mrb[87].mxu1 }
 0x82e   :  { %v10282_v13 = vadd.f32 %v10275_v6, %v9568_v28 }
 0x842   :  { %v10901_v15 = vpop.f32.mrb[88].mxu1 }
 0x843   :  { %v10860_v5 = vpop.f32.mrb[88].mxu0  ;;  %v10903_v32 = vpop.f32.mrb[89].mxu1 }
 0x844   :  { %v10902_v37 = vadd.f32 %v10901_v15, %v10860_v5  ;;  %v10862_v1 = vpop.f32.mrb[89].mxu0  ;;  %v10905_v26 = vpop.f32.mrb[90].mxu1 }
 0x845   :  { %v10904_v48 = vadd.f32 %v10903_v32, %v10862_v1  ;;  %v10864_v42 = vpop.f32.mrb[90].mxu0  ;;  %v10906_v20 = vpop.f32.mrb[91].mxu1 }
 0x846   :  { %v10990_v51 = vadd.f32 %v10902_v37, %v10279_v36  ;;  %v10865_v18 = vpop.f32.mrb[91].mxu0 }
 0x847   :  { %v10991_v34 = vadd.f32 %v10904_v48, %v10280_v17 }
 0x848   :  { %v11016_v61 = vadd.f32 %v10999_v44, %v10990_v51 }
 0x849   :  { %v11017_v43 = vadd.f32 %v11003_v60, %v10991_v34 }
 0x84a   :  { %v11020_v2 = vmax.f32 %v11016_v61, 0.0 }
 0x84b   :  { %v11021_v8 = vmax.f32 %v11017_v43, 0.0 }
 0x84c   :  { %v11024_v40 = vpack.c.bf16 %v11020_v2, %v11020_v2 }
 0x84d   :  { %v11025_v28 = vpack.c.bf16 %v11021_v8, %v11021_v8 }
 0x84f   :  { %11327 = vmatprep.mubr.bf16.mxu0 %v11025_v28 }
 0x850   :  { %11328 = vmatmul.mubr.bf16.vlgmr.msra.gmra.mrb[96].mxu0 %v11024_v40 }
 0x85b   :  { %v10983_v57 = vpop.f32.mrb[92].mxu0 }
 0x85c   :  { %v10985_v62 = vpop.f32.mrb[93].mxu0 }
 0x85d   :  { %v10987_v30 = vpop.f32.mrb[94].mxu0 }
 0x85e   :  { %v10988_v38 = vpop.f32.mrb[95].mxu0 }
 0x882   :  { %v10942_v31 = vpop.f32.mrb[92].mxu1 }
 0x883   :  { %v10984_v14 = vadd.f32 %v10983_v57, %v10942_v31  ;;  %v10944_v23 = vpop.f32.mrb[93].mxu1 }
 0x884   :  { %v10986_v29 = vadd.f32 %v10985_v62, %v10944_v23  ;;  %v10946_v49 = vpop.f32.mrb[94].mxu1 }
 0x885   :  { %v10992_v4 = vadd.f32 %v10984_v14, %v10281_v16  ;;  %v10947_v3 = vpop.f32.mrb[95].mxu1 }
 0x886   :  { %v10993_v21 = vadd.f32 %v10986_v29, %v10282_v13 }
 0x887   :  { %v11018_v9 = vadd.f32 %v11007_v53, %v10992_v4 }
 0x888   :  { %v11019_v24 = vadd.f32 %v11011_v27, %v10993_v21 }
 0x889   :  { %v11022_v33 = vmax.f32 %v11018_v9, 0.0 }
 0x88a   :  { %v11023_v47 = vmax.f32 %v11019_v24, 0.0 }
 0x88b   :  { %v11026_v41 = vpack.c.bf16 %v11022_v33, %v11022_v33 }
 0x88c   :  { %v11027_v45 = vpack.c.bf16 %v11023_v47, %v11023_v47 }
 0x88e   :  { %13341 = vmatprep.mubr.msk.bf16.mxu1 %vm11287_vm8, %v11027_v45 }
 0x88f   :  { %11368 = vmatmul.mubr.bf16.vlgmr.msra.gmra.mrb[96].mxu1 %v11026_v41 }
 0x923   :  { %v13358_v36 = vpop.f32.mrb[96].mxu0 }
 0x924   :  { %v13359_v19 = vpop.f32.mrb[97].mxu0 }
 0x925   :  { %v13360_v7 = vadd.f32 %v13359_v19, %v13358_v36  ;;  %v13361_v17 = vpop.f32.mrb[98].mxu0 }
 0x926   :  { %v13362_v63 = vpop.f32.mrb[99].mxu0 }
 0x927   :  { %v11330_v22 = vadd.f32 %v13360_v7, %v13308_v10 }
 0x962   :  { %v13380_v25 = vpop.f32.mrb[96].mxu1 }
 0x963   :  { %v13381_v52 = vpop.f32.mrb[97].mxu1 }
 0x964   :  { %v13382_v55 = vadd.f32 %v13381_v52, %v13380_v25  ;;  %v13383_v39 = vpop.f32.mrb[98].mxu1 }
 0x965   :  { %v13384_v46 = vpop.f32.mrb[99].mxu1 }
 0x966   :  { %v11370_v50 = vadd.f32 %v13382_v55, %v11330_v22 }
 0x968   :  { %11375 = vst [vmem:[%s20379_s9] sm:$0xff] %v11370_v50 }

</bundles_post_ra>
